<compile_context>
chip_gen: v7x
topology: tpu7x:2x2x1
jax: 0.10.0
libtpu: 0.0.40
codegen_flags: <defaults>
</compile_context>

<pallas_src>
import jax
import jax.numpy as jnp
from jax.experimental import pallas as pl
from jax.experimental.pallas import tpu as pltpu


# -----------------------------------------------------------------------------
# Pallas kernel: fused deconv-as-GEMM + bias + ReLU for one (batch, R-chunk, tile).
#   x_ref : (Cin, TILE_S)   f32   -- input voxels, spatial on lanes (lane-dense)
#   w_ref : (TR, Cin)       f32   -- rows ordered (co, kd, kh, kw)
#   b_ref : (TR, 1)         f32   -- bias repeated per phase
#   o_ref : (TR, TILE_S)    f32   -- lane-dense output slab
# -----------------------------------------------------------------------------
def deconv_relu_kernel(x_ref, w_ref, b_ref, o_ref):
    # HBM-bound kernel -> full-f32 MXU passes are wall-clock free (perf review #2).
    acc = jnp.dot(
        w_ref[...],
        x_ref[...],
        preferred_element_type=jnp.float32,
        precision=jax.lax.Precision.HIGHEST,
    )
    o_ref[...] = jnp.maximum(acc + b_ref[...], 0.0).astype(o_ref.dtype)


def _vmem_capacity_bytes():
    try:
        return int(pltpu.get_tpu_info().vmem_capacity_bytes)
    except Exception:
        return 64 * 1024 * 1024  # conservative fallback (v7x per-TC VMEM)


def _pick_row_tile(R, max_rows=256):
    """Chunk the R = 8*Cout output rows into <=max_rows chunks (multiple of 8)."""
    if R <= max_rows:
        return R
    for tr in range(max_rows - (max_rows % 8), 7, -8):
        if R % tr == 0:
            return tr
    return 8  # R is always a multiple of 8


def _pick_spatial_tile(DHW, Cin, TR, N, vmem_cap):
    """Largest lane-dense spatial tile (multiple of 128) that (a) divides the padded
    spatial extent, (b) fits ~25% of physical VMEM double-buffered, and (c) leaves
    >=2 parallel grid steps when N == 1 (v7x has 2 TensorCores)."""
    dhw128 = ((DHW + 127) // 128) * 128
    budget = vmem_cap // 4
    cap = max(128, (budget // (8 * (Cin + TR))) // 128 * 128)  # f32, double-buffered
    if N == 1:
        cap = min(cap, max(128, (dhw128 // 2) // 128 * 128))
    cap = min(cap, dhw128)
    tile = 128
    for t in range(128, cap + 1, 128):
        if dhw128 % t == 0:
            tile = t
    return tile, dhw128


def upsampling_deconv_forward(x_ncdhw, weight, bias):
    """Forward pass of UpsamplingDeconvBlock (normalization='none'):
    ConvTranspose3d(Cin, Cout, kernel_size=2, stride=2, padding=0) + ReLU.

    x_ncdhw: (N, Cin, D, H, W) f32
    weight : (Cin, Cout, 2, 2, 2) f32   (PyTorch ConvTranspose3d layout)
    bias   : (Cout,) f32
    returns: (N, Cout, 2D, 2H, 2W) f32
    """
    # TODO(synk): only the normalization='none' branch (module default) is implemented;
    # the batchnorm/groupnorm/instancenorm branches of __init__ are not exercised.
    N, Cin, D, H, W = x_ncdhw.shape
    assert weight.shape[0] == Cin and weight.shape[2:] == (2, 2, 2)
    Cout = weight.shape[1]
    DHW = D * H * W
    R = 8 * Cout  # 8 deconv phases (kd, kh, kw) per output channel

    # Free reshape: NCDHW is already contiguous as (N, Cin, D*H*W).
    x2d = x_ncdhw.reshape(N, Cin, DHW).astype(jnp.float32)
    # (Cin, Cout, 2,2,2) -> (Cout*8, Cin); row index = co*8 + kd*4 + kh*2 + kw
    w2d = jnp.transpose(weight, (1, 2, 3, 4, 0)).reshape(R, Cin).astype(jnp.float32)
    b2d = jnp.repeat(bias.astype(jnp.float32), 8).reshape(R, 1)

    vmem_cap = _vmem_capacity_bytes()
    TR = _pick_row_tile(R)
    tile_s, dhw_pad = _pick_spatial_tile(DHW, Cin, TR, N, vmem_cap)
    if dhw_pad != DHW:  # keep every store lane-dense / unmasked (perf review)
        x2d = jnp.pad(x2d, ((0, 0), (0, 0), (0, dhw_pad - DHW)))
    n_s = dhw_pad // tile_s
    n_r = R // TR

    block_bytes = 4 * ((Cin + TR) * tile_s + TR * (Cin + 1))
    vmem_limit = int(min(vmem_cap * 3 // 4, max(4 * block_bytes, 32 * 1024 * 1024)))

    out2d = pl.pallas_call(
        deconv_relu_kernel,
        out_shape=jax.ShapeDtypeStruct((N, R, dhw_pad), jnp.float32),
        grid_spec=pltpu.PrefetchScalarGridSpec(
            num_scalar_prefetch=0,
            grid=(N, n_r, n_s),
            in_specs=[
                pl.BlockSpec((pl.Squeezed(), Cin, tile_s), lambda n, r, s: (n, 0, s)),
                pl.BlockSpec((TR, Cin), lambda n, r, s: (r, 0)),
                pl.BlockSpec((TR, 1), lambda n, r, s: (r, 0)),
            ],
            out_specs=pl.BlockSpec(
                (pl.Squeezed(), TR, tile_s), lambda n, r, s: (n, r, s)
            ),
        ),
        compiler_params=pltpu.CompilerParams(
            dimension_semantics=("parallel", "parallel", "parallel"),
            vmem_limit_bytes=vmem_limit,
        ),
    )(x2d, w2d, b2d)

    if dhw_pad != DHW:
        out2d = out2d[:, :, :DHW]

    # One fused output rearrangement (XLA): (N, Cout*8, DHW) -> NCDHW with the
    # 8 deconv phases interleaved into the doubled spatial dims.  A consumer that
    # accepts the phase-major layout directly can drop this HBM pass entirely.
    y = out2d.reshape(N, Cout, 2, 2, 2, D, H, W)
    y = jnp.transpose(y, (0, 1, 5, 2, 6, 3, 7, 4))
    return y.reshape(N, Cout, 2 * D, 2 * H, 2 * W)


# -----------------------------------------------------------------------------
# Pure-JAX f32 reference: direct phase-expansion form of ConvTranspose3d(k=2, s=2).
#   out[n, co, 2d+kd, 2h+kh, 2w+kw] = sum_ci x[n,ci,d,h,w] * W[ci,co,kd,kh,kw] + b[co]
# -----------------------------------------------------------------------------
def reference_forward(x_ncdhw, weight, bias):
    N, Cin, D, H, W = x_ncdhw.shape
    Cout = weight.shape[1]
    y = jnp.einsum(
        "ncdhw,copqr->nodphqwr",
        x_ncdhw.astype(jnp.float32),
        weight.astype(jnp.float32),
        precision=jax.lax.Precision.HIGHEST,
    )
    y = y.reshape(N, Cout, 2 * D, 2 * H, 2 * W)
    y = y + bias.reshape(1, Cout, 1, 1, 1)
    return jnp.maximum(y, 0.0)


if __name__ == "__main__":
    key = jax.random.PRNGKey(0)
    k_x, k_w, k_b = jax.random.split(key, 3)

    # Small V-Net-like decoder shapes: batch=2, 32->16 channels, 16^3 spatial (out 32^3).
    N, Cin, Cout = 2, 32, 16
    D = H = W = 16

    x = jax.random.normal(k_x, (N, Cin, D, H, W), dtype=jnp.float32)
    fan_in = Cin * 8
    weight = jax.random.normal(k_w, (Cin, Cout, 2, 2, 2), dtype=jnp.float32)
    weight = weight * (1.0 / jnp.sqrt(fan_in))
    bias = jax.random.normal(k_b, (Cout,), dtype=jnp.float32) * 0.01

    fwd = jax.jit(upsampling_deconv_forward)
    out = jax.block_until_ready(fwd(x, weight, bias))
    ref = jax.block_until_ready(reference_forward(x, weight, bias))

    assert out.shape == (N, Cout, 2 * D, 2 * H, 2 * W), out.shape
    # f32 MXU path typically agrees to ~1e-6; tolerance kept modest for robustness
    # across precision defaults.
    max_err = float(jnp.max(jnp.abs(out - ref)))
    assert jnp.allclose(out, ref, atol=5e-3, rtol=5e-3), max_err

    print("KERNEL_OK")
</pallas_src>

<mosaic_0001>
module attributes {stable_mosaic.version = 11 : i64} {
  func.func @deconv_relu_kernel(%arg0: i32, %arg1: i32, %arg2: i32, %arg3: memref<1x32x4096xf32, #tpu.memory_space<vmem>>, %arg4: memref<128x32xf32, #tpu.memory_space<vmem>>, %arg5: memref<128x1xf32, #tpu.memory_space<vmem>>, %arg6: memref<1x128x4096xf32, #tpu.memory_space<vmem>>) attributes {dimension_semantics = [#tpu.dimension_semantics<parallel>, #tpu.dimension_semantics<parallel>, #tpu.dimension_semantics<parallel>], iteration_bounds = array<i64: 2, 1, 1>, scalar_prefetch = 0 : i64, scratch_operands = 0 : i64, tpu.core_type = #tpu.core_type<tc>, window_params = [{transform_indices = @transform_0, window_bounds = array<i64: 1, 32, 4096>}, {transform_indices = @transform_1, window_bounds = array<i64: 128, 32>}, {transform_indices = @transform_2, window_bounds = array<i64: 128, 1>}, {transform_indices = @transform_3, window_bounds = array<i64: 1, 128, 4096>}]} {
    %c0 = arith.constant 0 : index
    %c0_0 = arith.constant 0 : index
    %0 = vector.load %arg4[%c0, %c0_0] : memref<128x32xf32, #tpu.memory_space<vmem>>, vector<128x32xf32>
    %c0_1 = arith.constant 0 : index
    %c0_2 = arith.constant 0 : index
    %c0_3 = arith.constant 0 : index
    %1 = vector.load %arg3[%c0_1, %c0_2, %c0_3] : memref<1x32x4096xf32, #tpu.memory_space<vmem>>, vector<1x32x4096xf32>
    %2 = vector.shape_cast %1 : vector<1x32x4096xf32> to vector<32x4096xf32>
    %cst = arith.constant dense<0.000000e+00> : vector<128x4096xf32>
    %3 = tpu.matmul %0, %2, %cst {dimension_numbers = #tpu.dot_dimension_numbers<[1], [0], [0], [1], [0, 0, 1, 1], [], []>, precision = #tpu.contract_precision<fp32>} : vector<128x32xf32>, vector<32x4096xf32>, vector<128x4096xf32> -> vector<128x4096xf32>
    %c0_4 = arith.constant 0 : index
    %c0_5 = arith.constant 0 : index
    %4 = vector.load %arg5[%c0_4, %c0_5] : memref<128x1xf32, #tpu.memory_space<vmem>>, vector<128x1xf32>
    %5 = vector.broadcast %4 : vector<128x1xf32> to vector<128x4096xf32>
    %6 = arith.addf %3, %5 : vector<128x4096xf32>
    %cst_6 = arith.constant 0.000000e+00 : f32
    %7 = vector.broadcast %cst_6 : f32 to vector<128x4096xf32>
    %8 = arith.maximumf %6, %7 : vector<128x4096xf32>
    %c0_7 = arith.constant 0 : index
    %c0_8 = arith.constant 0 : index
    %c0_9 = arith.constant 0 : index
    %9 = vector.load %arg6[%c0_7, %c0_8, %c0_9] : memref<1x128x4096xf32, #tpu.memory_space<vmem>>, vector<1x128x4096xf32>
    %10 = vector.shape_cast %9 : vector<1x128x4096xf32> to vector<128x4096xf32>
    %11 = vector.shape_cast %8 : vector<128x4096xf32> to vector<1x128x4096xf32>
    tpu.vector_store %arg6[%c0_7, %c0_8, %c0_9], %11 {strides = array<i32>} : memref<1x128x4096xf32, #tpu.memory_space<vmem>>, vector<1x128x4096xf32>,
    return
  }
  func.func @transform_0(%arg0: i32, %arg1: i32, %arg2: i32) -> (i32, i32, i32) {
    %c0_i32 = arith.constant 0 : i32
    %c0_i32_0 = arith.constant 0 : i32
    return %arg0, %c0_i32, %arg2 : i32, i32, i32
  }
  func.func @transform_1(%arg0: i32, %arg1: i32, %arg2: i32) -> (i32, i32) {
    %c0_i32 = arith.constant 0 : i32
    %c0_i32_0 = arith.constant 0 : i32
    return %arg1, %c0_i32 : i32, i32
  }
  func.func @transform_2(%arg0: i32, %arg1: i32, %arg2: i32) -> (i32, i32) {
    %c0_i32 = arith.constant 0 : i32
    %c0_i32_0 = arith.constant 0 : i32
    return %arg1, %c0_i32 : i32, i32
  }
  func.func @transform_3(%arg0: i32, %arg1: i32, %arg2: i32) -> (i32, i32, i32) {
    %c0_i32 = arith.constant 0 : i32
    return %arg0, %arg1, %arg2 : i32, i32, i32
  }
}

</mosaic_0001>

<bundles_post_ra>
// kernel: upsampling_deconv_forward.1
= control target key start
LH: loop header
LB: loop body
LE: loop exit
PB: predicated region body
PF: predicated region fallthrough
CT: control target
= control target key end

     0   :  { %8 = vsyncpa [#allocation3], 0  ;;  %s33181_s0 = inlined_call_operand.vmem [shape: f32[2,32,4096], index: 0, kind: input, shape index: {}]   ;;  %s33182_s1 = inlined_call_operand.hbm [shape: f32[128,32], index: 1, kind: input, shape index: {}]   ;;  %s33183_s2 = inlined_call_operand.vmem [shape: f32[128,1], index: 2, kind: input, shape index: {}]   ;;  %s33184_s3 = inlined_call_operand.hbm [shape: f32[2,128,4096], index: 3, kind: output, shape index: {}]  }
   0x1   :  { %9 = vsyncpa [#allocation4], 0 }
   0x2   :  { %11 = vsyncpa [#allocation4 + $0x1], 0  ;;  %s26221_s12 = smov 0   ;;  %s26223_s13 = smov 0  }
   0x3   :  { %s26225_s14 = smov 0   ;;  %s26227_s15 = smov 0  }
   0x4   :  { %s26229_s16 = smov 0   ;;  %s26231_s17 = smov 0  }
   0x5 LB: > { %s22149_s18 = sadd.s32 4294967295, %s26191_s17   ;;  %s22150_s19 = sadd.s32 4294967294, %s26191_s17   ;;  %s26191_s17 = sphi %s26231_s17, %s17_s17   ;;  %s26187_s16 = sphi %s26229_s16, %s34711_s16   ;;  %s26183_s15 = sphi %s26227_s15, %s34710_s15   ;;  %s26179_s14 = sphi %s26225_s14, %s34709_s14   ;;  %s26175_s13 = sphi %s26223_s13, %s34708_s13   ;;  %s26171_s12 = sphi %s26221_s12, %s34707_s12  }
   0x6   : > { %s36_s20 = sadd.s32 1, %s26187_s16  ;;  %s127_s21 = sadd.s32 1, %s26179_s14 }
   0x7   : > { %p38_p0 = scmp.ge.s32.totalorder %s36_s20, 2  ;;  %p137_p1 = scmp.ne.s32.totalorder %s26179_s14, %s26175_s13 }
   0x8   : > { %p138_p2 = scmp.eq.s32.totalorder %s22149_s18, 1  ;;  %p143_p3 = scmp.ne.s32.totalorder %s26175_s13, %s26171_s12 }
   0x9   : > { %s34713_s20 = smov (%p38_p0, %s36_s20), 0  ;;  %p144_p5 = scmp.eq.s32.totalorder %s22150_s19, 1 }
   0xa   : > { %p26261_p4 = por %p138_p2, %p137_p1  ;;  %s120_s23 = ssub.s32 %s26187_s16, %s34713_s20 }
   0xb   : > { %p22151_p6 = scmp.ge.s32.totalorder %s26191_s17, 1  ;;  %p125_p7 = scmp.eq.s32.totalorder %s120_s23, 0 }
   0xc   : > { %s33820_s22 = scalar_select %p26261_p4, 1, 0 }
   0xd   : > { %p26268_p8 = por %p144_p5, %p143_p3  ;;  %p151_p9 = scmp.lt.s32.totalorder %s26191_s17, 3 }
   0xe   : > { %s26274_s25 = scalar_select %p125_p7, %s26179_s14, %s127_s21  }
   0xf   : > { %s33821_s24 = scalar_select %p26268_p8, 1, 0 }
  0x10   : > { %p26276_p10 = pnand %p22151_p6, %p151_p9  ;;  %p26280_p11 = scmp.eq.s32.totalorder %s22149_s18, 0 }
  0x11   : > { %s26193_s28 = smov [#allocation2]   ;;  %s26081_s6 = scalar_lea.hbm %s33182_s1, 2048 }
  0x12   : > { %s33822_s26 = scalar_select %p26276_p10, 1, 0 }
  0x13   : > { %s33823_s27 = scalar_select %p26280_p11, 1, 0 }
  0x14   : > { %p26013_p12 = pneg %p26276_p10  ;;  %s166_s29 = sshll.u32 %s26193_s28, 4  ;;  %s167_s29 = int_to_ptr.vmem [resolvable:$true] %s166_s29 }
  0x15   : > { %p26082_p0 = scmp.ne.s32.totalorder %s33182_s1, %s26081_s6  ;;  %p26088_p5 = scmp.lt.u32.totalorder %s26081_s6, %s33182_s1 }
  0x16   : > { %p26288_p13 = pnand %p26280_p11, %p26013_p12 }
  0x18   : > { %p26083_p1 = pneg %p26288_p13 }
  0x1a   : > { %p26084_p2 = pnand %p26083_p1, %p26082_p0 }
  0x1c   : > { %p26085_p3 = pneg %p26084_p2 }
  0x1e   : > { %p26090_p6 = pnand %p26088_p5, %p26085_p3 }
  0x20   : > { %26093 = shalt.err (!%p26090_p6)
}
  0x21   : > { %s26094_s11 = scalar_lea.vmem %s167_s29, 2048  ;;  %p26102_p8 = scmp.lt.s32.totalorder %s167_s29, %s167_s29 }
  0x22   : > { %p26095_p7 = scmp.ne.s32.totalorder %s167_s29, %s26094_s11  ;;  %p26103_p4 = scmp.lt.s32.totalorder %s26094_s11, %s26094_s11 }
  0x24   : > { %p26097_p9 = pnand %p26095_p7, %p26083_p1  ;;  %p26104_p11 = por %p26103_p4, %p26102_p8 }
  0x26   : > { %p26098_p12 = pneg %p26097_p9 }
  0x28   : > { %p26105_p10 = pnand %p26104_p11, %p26098_p12 }
  0x2a   : > { %26108 = shalt.err (!%p26105_p10)
}
  0x2b   : > { %s26194_s18 = smov 128   ;;  %s26195_s19 = smov 8  }
  0x2c   : > { %26016 = dma.hbm_to_vmem [thread:$0]  (!%p26288_p13), %s33182_s1, 2048, %s167_s29, [#allocation3], %s26194_s18, %s26194_s18, %s26195_s19  }
  0x2d   : > { %p33825_p0 = scmp.ne.s32.totalorder %s33822_s26, 0 }
  0x2f   : > { %204 = sbr.rel (%p33825_p0) target bundleno = 3393 (0xd41), region = 32 }
  0x36   : > { %p33826_p2 = scmp.ne.s32.totalorder %s33823_s27, 0 }
  0x38   : > { %26162 = dma.done.wait (%p33826_p2), [#allocation3], 2048  }
  0x39   : > { %26164 = vsyncadd (%p33826_p2), [#allocation3], 4294965248  ;;  %p238_p4 = scmp.lt.s32.totalorder %s26183_s15, 1  ;;  %v33206_v0 = vmov 0.0   ;;  %v256_v37 = vld [vmem:[#allocation2] sm:$0xff]  ;;  %vm496_vm0 = vcmask 261120  }
  0x3a   : > { %617 = vmatprep.mubr.f32.mxu0 %v33206_v0  ;;  %1895 = vmatprep.mubr.f32.mxu1 %v33206_v0  ;;  %v498_v47 = vsel %vm496_vm0, %v256_v37, 0  ;;  %s234_s27 = sand.u32 1, %s26175_s13   ;;  %p34705_p10 = scmp.ne.s32.totalorder %s33820_s22, 0 }
  0x3b   : > { %s239_s28 = scalar_select %p238_p4, %s26183_s15, 1  ;;  %v26412_v51 = vand.u32 4294901760, %v498_v47 }
  0x3c   : > { %s22157_s5 = sshll.u32 %s234_s27, 12  ;;  %s33135_s10 = scalar_lea.sflag [#allocation4], %s234_s27 }
  0x3d   : > { %s22165_s30 = sshll.u32 %s239_s28, 10  ;;  %v26430_v56 = vsub.f32 %v498_v47, %v26412_v51  ;;  %s27686_s6 = scalar_lea.vmem [#allocation5], %s22157_s5 }
  0x3e   : > { %s26321_s26 = scalar_lea.vmem %s33181_s0, %s22165_s30  ;;  %s22036_s7 = sshll.u32 %s27686_s6, 4  ;;  %s33127_s7 = int_to_ptr.vmem [resolvable:$true] %s22036_s7 }
  0x3f   : > { %v273_v1 = vld [vmem:[%s26321_s26 + $0x8] sm:$0xff]  ;;  %v275_v3 = vld [vmem:[%s26321_s26 + $0x18] sm:$0xff]  ;;  %v272_v8 = vld [vmem:[%s26321_s26] sm:$0xff]  ;;  %33827 = vst [vmem:[#allocation8_spill] sm:$0xff] %v26430_v56  ;;  %s26109_s11 = scalar_lea.vmem %s33127_s7, 65536  ;;  %s26198_s18 = smov [#allocation5]  }
  0x40   : > { %v305_v2 = vld [vmem:[%s26321_s26 + $0x108] sm:$0xff]  ;;  %v545_v4 = vand.u32 4294901760, %v273_v1  ;;  %v307_v6 = vld [vmem:[%s26321_s26 + $0x118] sm:$0xff]  ;;  %v1823_v7 = vand.u32 4294901760, %v275_v3  ;;  %v304_v9 = vld [vmem:[%s26321_s26 + $0x100] sm:$0xff]  ;;  %v547_v11 = vand.u32 4294901760, %v272_v8  ;;  %p26110_p8 = scmp.ne.s32.totalorder %s33127_s7, %s26109_s11 }
  0x41   : > { %v549_v5 = vand.u32 4294901760, %v305_v2  ;;  %v1827_v10 = vand.u32 4294901760, %v307_v6  ;;  %v551_v12 = vand.u32 4294901760, %v304_v9  ;;  %v274_v13 = vld [vmem:[%s26321_s26 + $0x10] sm:$0xff]  ;;  %v26332_v15 = vld [vmem:[%s26321_s26 + $0x208] sm:$0xff]  ;;  %v26340_v18 = vld [vmem:[%s26321_s26 + $0x218] sm:$0xff] }
  0x42   : > { %v306_v14 = vld [vmem:[%s26321_s26 + $0x110] sm:$0xff]  ;;  %v26337_v17 = vld [vmem:[%s26321_s26 + $0x308] sm:$0xff]  ;;  %v26343_v19 = vld [vmem:[%s26321_s26 + $0x318] sm:$0xff]  ;;  %v26353_v23 = vsub.f32 %v273_v1, %v545_v4  ;;  %v1825_v24 = vand.u32 4294901760, %v274_v13  ;;  %v553_v26 = vand.u32 4294901760, %v26332_v15  ;;  %v1831_v29 = vand.u32 4294901760, %v26340_v18  ;;  %p26111_p11 = pnand %p26110_p8, %p34705_p10 }
  0x43   : > { %v26334_v16 = vpack.c.bf16 %v549_v5, %v545_v4  ;;  %v26345_v20 = vpack.c.bf16 %v1827_v10, %v1823_v7  ;;  %v26347_v21 = vpack.c.bf16 %v551_v12, %v547_v11  ;;  %v26350_v22 = vld [vmem:[%s26321_s26 + $0x200] sm:$0xff]  ;;  %v1829_v25 = vand.u32 4294901760, %v306_v14  ;;  %v26367_v32 = vld [vmem:[%s26321_s26 + $0x210] sm:$0xff]  ;;  %s26113_s19 = sshll.u32 %s26198_s18, 4  ;;  %s26114_s19 = int_to_ptr.vmem [resolvable:$false] %s26113_s19 }
  0x44   : > { %v26356_v27 = vsub.f32 %v305_v2, %v549_v5  ;;  %v557_v28 = vand.u32 4294901760, %v26337_v17  ;;  %v1835_v30 = vand.u32 4294901760, %v26343_v19  ;;  %v26364_v31 = vld [vmem:[%s26321_s26 + $0x300] sm:$0xff]  ;;  %v26369_v33 = vsub.f32 %v275_v3, %v1823_v7  ;;  %v26375_v36 = vld [vmem:[%s26321_s26 + $0x310] sm:$0xff]  ;;  %v257_v5 = vld [vmem:[#allocation2 + $0x8] sm:$0xff]  ;;  %p26112_p13 = pneg %p26111_p11  ;;  %s26115_s21 = scalar_lea.vmem %s26114_s19, 131072 }
  0x45   : > { %22168 = vmatprep.subr.bf16.mxu0 %v26334_v16  ;;  %22216 = vmatprep.subr.bf16.mxu1 %v26345_v20  ;;  %v26371_v34 = vpack.c.bf16 %v1829_v25, %v1825_v24  ;;  %v555_v35 = vand.u32 4294901760, %v26350_v22  ;;  %v26377_v38 = vsub.f32 %v307_v6, %v1827_v10  ;;  %v26379_v39 = vsub.f32 %v272_v8, %v547_v11  ;;  %v258_v10 = vld [vmem:[#allocation2 + $0x10] sm:$0xff]  ;;  %p26116_p1 = scmp.lt.s32.totalorder %s33127_s7, %s26114_s19  ;;  %p26117_p3 = scmp.lt.s32.totalorder %s26115_s21, %s26109_s11 }
  0x46   : > { %22170 = vmatpush1.bf16.msra.mxu0 %v26347_v21  ;;  %v26385_v40 = vpack.c.bf16 %v557_v28, %v553_v26  ;;  %v26391_v41 = vpack.c.bf16 %v1835_v30, %v1831_v29  ;;  %v26393_v42 = vsub.f32 %v304_v9, %v551_v12  ;;  %v26396_v43 = vsub.f32 %v274_v13, %v1825_v24  ;;  %v259_v24 = vld [vmem:[#allocation2 + $0x18] sm:$0xff] }
  0x47   : > { %22218 = vmatpush1.bf16.msra.mxu1 %v26371_v34  ;;  %v559_v44 = vand.u32 4294901760, %v26364_v31  ;;  %v1833_v45 = vand.u32 4294901760, %v26367_v32  ;;  %v1837_v46 = vand.u32 4294901760, %v26375_v36  ;;  %v33198_v48 = vand.u32 4294901760, %v26353_v23  ;;  %p26118_p5 = por %p26117_p3, %p26116_p1 }
  0x48   : > { %22172 = vmatprep.subr.bf16.mxu0 %v26385_v40  ;;  %22220 = vmatprep.subr.bf16.mxu1 %v26391_v41  ;;  %v33196_v49 = vand.u32 4294901760, %v26356_v27  ;;  %v26414_v52 = vsub.f32 %v306_v14, %v1829_v25  ;;  %v33195_v57 = vand.u32 4294901760, %v26369_v33  ;;  %v33193_v58 = vand.u32 4294901760, %v26377_v38 }
  0x49   : > { %v26410_v50 = vpack.c.bf16 %v559_v44, %v555_v35  ;;  %v26420_v53 = vpack.c.bf16 %v1837_v46, %v1833_v45  ;;  %v797_v54 = vsub.f32 %v26353_v23, %v33198_v48  ;;  %v33192_v59 = vand.u32 4294901760, %v26379_v39  ;;  %p26119_p6 = pnand %p26118_p5, %p26112_p13 }
  0x4a   : > { %v809_v55 = vsub.f32 %v26356_v27, %v33196_v49  ;;  %v33190_v62 = vand.u32 4294901760, %v26393_v42  ;;  %v33189_v63 = vand.u32 4294901760, %v26396_v43  ;;  %v26439_v1 = vand.u32 4294901760, %v26430_v56 }
  0x4b   : > { %22174 = vmatpush1.bf16.msra.mxu0 %v26410_v50  ;;  %22222 = vmatpush1.bf16.msra.mxu1 %v26420_v53  ;;  %v798_v60 = vand.u32 4294901760, %v797_v54  ;;  %v2075_v2 = vsub.f32 %v26369_v33, %v33195_v57  ;;  %v2087_v3 = vsub.f32 %v26377_v38, %v33193_v58  ;;  %v803_v4 = vsub.f32 %v26379_v39, %v33192_v59 }
  0x4c   : > { %v810_v61 = vand.u32 4294901760, %v809_v55  ;;  %33828 = vst [vmem:[#allocation9_spill] sm:$0xff] %v26439_v1  ;;  %v815_v7 = vsub.f32 %v26393_v42, %v33190_v62  ;;  %v2081_v8 = vsub.f32 %v26396_v43, %v33189_v63  ;;  %v33191_v9 = vand.u32 4294901760, %v26414_v52  ;;  %v260_v55 = vld [vmem:[#allocation2 + $0x20] sm:$0xff] }
  0x4d   : > { %v621_v11 = vsub.f32 %v26430_v56, %v26439_v1  ;;  %v2076_v12 = vand.u32 4294901760, %v2075_v2  ;;  %v2088_v13 = vand.u32 4294901760, %v2087_v3  ;;  %v804_v14 = vand.u32 4294901760, %v803_v4 }
  0x4e   : > { %v22175_v6 = vpack.c.bf16 %v810_v61, %v798_v60  ;;  %v816_v25 = vand.u32 4294901760, %v815_v7  ;;  %v2082_v37 = vand.u32 4294901760, %v2081_v8  ;;  %v2093_v47 = vsub.f32 %v26414_v52, %v33191_v9  ;;  %v261_v60 = vld [vmem:[#allocation2 + $0x28] sm:$0xff] }
  0x4f   : > { %v501_v54 = vsel %vm496_vm0, %v257_v5, 0  ;;  %v26463_v61 = vand.u32 4294901760, %v621_v11  ;;  %v22223_v63 = vpack.c.bf16 %v2088_v13, %v2076_v12  ;;  %v504_v2 = vsel %vm496_vm0, %v258_v10, 0  ;;  %v262_v10 = vld [vmem:[#allocation2 + $0x30] sm:$0xff]  ;;  %v263_v13 = vld [vmem:[#allocation2 + $0x38] sm:$0xff] }
  0x50   : > { %22176 = vmatprep.subr.bf16.mxu0 %v22175_v6  ;;  %v26465_v62 = vand.u32 4294901760, %v501_v54  ;;  %v22177_v3 = vpack.c.bf16 %v816_v25, %v804_v14  ;;  %v2094_v4 = vand.u32 4294901760, %v2093_v47  ;;  %v26468_v6 = vand.u32 4294901760, %v504_v2 }
  0x51   : > { %33829 = vst [vmem:[#allocation10_spill] sm:$0xff] %v26463_v61  ;;  %v507_v7 = vsel %vm496_vm0, %v259_v24, 0  ;;  %623 = vmatmul.mubr.f32.vlgmr.msra.gmra.mrb[0].mxu0 %v26463_v61  ;;  %1901 = vmatmul.mubr.f32.vlgmr.msra.gmra.mrb[0].mxu1 %v26463_v61  ;;  %v510_v11 = vsel %vm496_vm0, %v260_v55, 0  ;;  %v513_v12 = vsel %vm496_vm0, %v261_v60, 0  ;;  %v519_v60 = vsel %vm496_vm0, %v263_v13, 0 }
  0x52   : > { %v26474_v5 = vsub.f32 %v501_v54, %v26465_v62  ;;  %v26476_v8 = vand.u32 4294901760, %v507_v7  ;;  %22224 = vmatprep.subr.bf16.mxu1 %v22223_v63  ;;  %22178 = vmatpush1.bf16.msra.mxu0 %v22177_v3  ;;  %v22225_v14 = vpack.c.bf16 %v2094_v4, %v2082_v37  ;;  %v26481_v24 = vsub.f32 %v504_v2, %v26468_v6 }
  0x53   : > { %v26483_v25 = vand.u32 4294901760, %v510_v11  ;;  %v26485_v47 = vand.u32 4294901760, %v513_v12  ;;  %628 = vmatprep.mubr.f32.mxu0 %v33206_v0  ;;  %1906 = vmatprep.mubr.f32.mxu1 %v33206_v0  ;;  %v516_v37 = vsel %vm496_vm0, %v262_v10, 0  ;;  %v26503_v2 = vsub.f32 %v26332_v15, %v553_v26 }
  0x54   : > { %33830 = vst [vmem:[#allocation11_spill] sm:$0xff] %v26474_v5  ;;  %33831 = vst [vmem:[#allocation12_spill] sm:$0xff] %v26481_v24  ;;  %v26490_v54 = vand.u32 4294901760, %v26474_v5  ;;  %v26493_v55 = vsub.f32 %v507_v7, %v26476_v8  ;;  %22226 = vmatpush1.bf16.msra.mxu1 %v22225_v14  ;;  %v26496_v63 = vand.u32 4294901760, %v26481_v24  ;;  %v264_v14 = vld [vmem:[#allocation2 + $0x40] sm:$0xff]  ;;  %v26516_v10 = vsub.f32 %v26337_v17, %v557_v28 }
  0x55   : > { %v26511_v7 = vsub.f32 %v510_v11, %v26483_v25  ;;  %v26521_v15 = vsub.f32 %v513_v12, %v26485_v47  ;;  %v26526_v26 = vsub.f32 %v26340_v18, %v1831_v29  ;;  %v26530_v11 = vand.u32 4294901760, %v516_v37 }
  0x56   : > { %33832 = vst [vmem:[#allocation13_spill] sm:$0xff] %v26490_v54  ;;  %33833 = vst [vmem:[#allocation14_spill] sm:$0xff] %v26493_v55  ;;  %v632_v3 = vsub.f32 %v26474_v5, %v26490_v54  ;;  %v26508_v4 = vand.u32 4294901760, %v26493_v55  ;;  %v643_v13 = vsub.f32 %v26481_v24, %v26496_v63  ;;  %v26532_v59 = vand.u32 4294901760, %v519_v60 }
  0x57   : > { %33834 = vst [vmem:[#allocation15_spill] sm:$0xff] %v26496_v63  ;;  %33836 = vst [vmem:[#allocation17_spill] sm:$0xff] %v26511_v7  ;;  %v26537_v17 = vsub.f32 %v26343_v19, %v1835_v30  ;;  %v26542_v28 = vsub.f32 %v26350_v22, %v555_v35  ;;  %v26547_v18 = vsub.f32 %v26364_v31, %v559_v44  ;;  %v522_v29 = vsel %vm496_vm0, %v264_v14, 0  ;;  %v266_v63 = vld [vmem:[#allocation2 + $0x50] sm:$0xff] }
  0x58   : > { %33835 = vst [vmem:[#allocation16_spill] sm:$0xff] %v26508_v4  ;;  %33837 = vst [vmem:[#allocation18_spill] sm:$0xff] %v26521_v15  ;;  %v26528_v9 = vand.u32 4294901760, %v632_v3  ;;  %v26552_v12 = vand.u32 4294901760, %v643_v13  ;;  %v654_v19 = vsub.f32 %v26493_v55, %v26508_v4  ;;  %v26557_v30 = vand.u32 4294901760, %v26511_v7 }
  0x59   : > { %v33194_v22 = vand.u32 4294901760, %v26503_v2  ;;  %v26563_v31 = vsub.f32 %v26367_v32, %v1833_v45  ;;  %v26568_v35 = vsub.f32 %v26375_v36, %v1837_v46  ;;  %v26573_v44 = vand.u32 4294901760, %v26521_v15 }
  0x5a   : > { %33838 = vst [vmem:[#allocation19_spill] sm:$0xff] %v26528_v9  ;;  %634 = vmatmul.mubr.f32.gmra.mrb[2].mxu0 %v26528_v9  ;;  %1912 = vmatmul.mubr.f32.gmra.mrb[2].mxu1 %v26528_v9  ;;  %33839 = vst [vmem:[#allocation20_spill] sm:$0xff] %v26552_v12  ;;  %v33197_v3 = vand.u32 4294901760, %v26516_v10  ;;  %v26577_v14 = vsub.f32 %v516_v37, %v26530_v11  ;;  %v26580_v32 = vsub.f32 %v519_v60, %v26532_v59 }
  0x5b   : > { %33840 = vst [vmem:[#allocation21_spill] sm:$0xff] %v26557_v30  ;;  %639 = vmatprep.mubr.f32.mxu0 %v33206_v0  ;;  %1917 = vmatprep.mubr.f32.mxu1 %v33206_v0  ;;  %33841 = vst [vmem:[#allocation22_spill] sm:$0xff] %v26573_v44  ;;  %v821_v36 = vsub.f32 %v26503_v2, %v33194_v22  ;;  %v33203_v45 = vand.u32 4294901760, %v26526_v26  ;;  %v26586_v46 = vand.u32 4294901760, %v522_v29  ;;  %v33212_v58 = vand.u32 4294901760, %v26537_v17 }
  0x5c   : > { %33842 = vst [vmem:[#allocation23_spill] sm:$0xff] %v26577_v14  ;;  %33843 = vst [vmem:[#allocation24_spill] sm:$0xff] %v26580_v32  ;;  %v833_v13 = vsub.f32 %v26516_v10, %v33197_v3  ;;  %v33213_v37 = vand.u32 4294901760, %v26542_v28  ;;  %v26595_v60 = vand.u32 4294901760, %v654_v19  ;;  %v665_v22 = vsub.f32 %v26511_v7, %v26557_v30 }
  0x5d   : > { %v822_v57 = vand.u32 4294901760, %v821_v36  ;;  %v2099_v49 = vsub.f32 %v26526_v26, %v33203_v45  ;;  %v2111_v48 = vsub.f32 %v26537_v17, %v33212_v58  ;;  %v676_v36 = vsub.f32 %v26521_v15, %v26573_v44 }
  0x5e   : > { %645 = vmatmul.mubr.f32.gmra.mrb[4].mxu0 %v26552_v12  ;;  %1923 = vmatmul.mubr.f32.gmra.mrb[4].mxu1 %v26552_v12  ;;  %33844 = vst [vmem:[#allocation25_spill] sm:$0xff] %v26595_v60  ;;  %v834_v3 = vand.u32 4294901760, %v833_v13  ;;  %v827_v19 = vsub.f32 %v26542_v28, %v33213_v37  ;;  %v33214_v12 = vand.u32 4294901760, %v26547_v18  ;;  %v33223_v45 = vand.u32 4294901760, %v26563_v31 }
  0x5f   : > { %650 = vmatprep.mubr.f32.mxu0 %v33206_v0  ;;  %1928 = vmatprep.mubr.f32.mxu1 %v33206_v0  ;;  %v2100_v9 = vand.u32 4294901760, %v2099_v49  ;;  %v265_v0 = vld [vmem:[#allocation2 + $0x48] sm:$0xff]  ;;  %v2112_v30 = vand.u32 4294901760, %v2111_v48  ;;  %v26620_v37 = vand.u32 4294901760, %v665_v22  ;;  %v26623_v49 = vand.u32 4294901760, %v26577_v14 }
  0x60   : > { %v22179_v13 = vpack.c.bf16 %v834_v3, %v822_v57  ;;  %v828_v4 = vand.u32 4294901760, %v827_v19  ;;  %v839_v58 = vsub.f32 %v26547_v18, %v33214_v12  ;;  %v2105_v61 = vsub.f32 %v26563_v31, %v33223_v45 }
  0x61   : > { %33845 = vst [vmem:[#allocation26_spill] sm:$0xff] %v26620_v37  ;;  %33846 = vst [vmem:[#allocation27_spill] sm:$0xff] %v26623_v49  ;;  %v33847_v48 = vand.u32 4294901760, %v26568_v35  ;;  %v33848_v3 = vmov 0.0   ;;  %v22227_v19 = vpack.c.bf16 %v2112_v30, %v2100_v9  ;;  %v525_v22 = vsel %vm496_vm0, %v265_v0, 0 }
  0x62   : > { %656 = vmatmul.mubr.f32.gmra.mrb[6].mxu0 %v26595_v60  ;;  %1934 = vmatmul.mubr.f32.gmra.mrb[6].mxu1 %v26595_v60  ;;  %v840_v12 = vand.u32 4294901760, %v839_v58  ;;  %v2106_v60 = vand.u32 4294901760, %v2105_v61  ;;  %v26635_v54 = vand.u32 4294901760, %v26580_v32  ;;  %v26638_v45 = vsub.f32 %v522_v29, %v26586_v46 }
  0x63   : > { %v2117_v57 = vsub.f32 %v26568_v35, %v33847_v48  ;;  %661 = vmatprep.mubr.f32.mxu0 %v33848_v3  ;;  %1939 = vmatprep.mubr.f32.mxu1 %v33848_v3  ;;  %v26642_v9 = vand.u32 4294901760, %v676_v36  ;;  %v687_v0 = vsub.f32 %v26577_v14, %v26623_v49  ;;  %v26646_v61 = vand.u32 4294901760, %v525_v22 }
  0x64   : > { %22180 = vmatprep.subr.bf16.mxu0 %v22179_v13  ;;  %33849 = vst [vmem:[#allocation28_spill] sm:$0xff] %v26635_v54  ;;  %33850 = vst [vmem:[#allocation29_spill] sm:$0xff] %v26638_v45  ;;  %22228 = vmatprep.subr.bf16.mxu1 %v22227_v19  ;;  %v22181_v48 = vpack.c.bf16 %v840_v12, %v828_v4  ;;  %v528_v29 = vsel %vm496_vm0, %v266_v63, 0  ;;  %v267_v4 = vld [vmem:[#allocation2 + $0x58] sm:$0xff]  ;;  %v22183_v12 = vpack.c.bf16 %v26356_v27, %v26353_v23  ;;  %v268_v19 = vld [vmem:[#allocation2 + $0x60] sm:$0xff] }
  0x65   : > { %v2118_v44 = vand.u32 4294901760, %v2117_v57  ;;  %33851 = vst [vmem:[#allocation30_spill] sm:$0xff] %v26642_v9  ;;  %v698_v30 = vsub.f32 %v26580_v32, %v26635_v54  ;;  %v26656_v36 = vand.u32 4294901760, %v26638_v45  ;;  %v26663_v63 = vsub.f32 %v525_v22, %v26646_v61 }
  0x66   : > { %667 = vmatmul.mubr.f32.gmra.mrb[8].mxu0 %v26620_v37  ;;  %1945 = vmatmul.mubr.f32.gmra.mrb[8].mxu1 %v26620_v37  ;;  %v22231_v13 = vpack.c.bf16 %v26377_v38, %v26369_v33  ;;  %v531_v57 = vsel %vm496_vm0, %v267_v4, 0 }
  0x67   : > { %v22229_v58 = vpack.c.bf16 %v2118_v44, %v2106_v60  ;;  %672 = vmatprep.mubr.f32.mxu0 %v33848_v3  ;;  %1950 = vmatprep.mubr.f32.mxu1 %v33848_v3  ;;  %33852 = vst [vmem:[#allocation31_spill] sm:$0xff] %v26656_v36  ;;  %v26660_v44 = vand.u32 4294901760, %v687_v0  ;;  %33854 = vst [vmem:[#allocation33_spill] sm:$0xff] %v26663_v63  ;;  %v26665_v60 = vand.u32 4294901760, %v528_v29  ;;  %v26674_v0 = vand.u32 4294901760, %v698_v30 }
  0x68   : > { %22182 = vmatpush1.bf16.msra.mxu0 %v22181_v48  ;;  %v709_v22 = vsub.f32 %v26638_v45, %v26656_v36  ;;  %v26683_v4 = vand.u32 4294901760, %v26663_v63  ;;  %v534_v30 = vsel %vm496_vm0, %v268_v19, 0  ;;  %v269_v48 = vld [vmem:[#allocation2 + $0x68] sm:$0xff]  ;;  %v270_v36 = vld [vmem:[#allocation2 + $0x70] sm:$0xff] }
  0x69   : > { %22230 = vmatpush1.bf16.msra.mxu1 %v22229_v58  ;;  %33853 = vst [vmem:[#allocation32_spill] sm:$0xff] %v26660_v44  ;;  %22184 = vmatprep.subr.bf16.mxu0 %v22183_v12  ;;  %33855 = vst [vmem:[#allocation34_spill] sm:$0xff] %v26674_v0  ;;  %v26686_v12 = vsub.f32 %v528_v29, %v26665_v60  ;;  %v537_v37 = vsel %vm496_vm0, %v269_v48, 0 }
  0x6a   : > { %678 = vmatmul.mubr.f32.gmra.mrb[10].mxu0 %v26642_v9  ;;  %1956 = vmatmul.mubr.f32.gmra.mrb[10].mxu1 %v26642_v9  ;;  %33856 = vst [vmem:[#allocation35_spill] sm:$0xff] %v26683_v4  ;;  %v26693_v58 = vand.u32 4294901760, %v709_v22  ;;  %v26695_v9 = vand.u32 4294901760, %v534_v30  ;;  %v720_v29 = vsub.f32 %v26663_v63, %v26683_v4  ;;  %v26710_v22 = vand.u32 4294901760, %v537_v37 }
  0x6b   : > { %683 = vmatprep.mubr.f32.mxu0 %v33848_v3  ;;  %1961 = vmatprep.mubr.f32.mxu1 %v33848_v3  ;;  %33857 = vst [vmem:[#allocation36_spill] sm:$0xff] %v26686_v12 }
  0x6c   : > { %22232 = vmatprep.subr.bf16.mxu1 %v22231_v13  ;;  %v26688_v13 = vand.u32 4294901760, %v531_v57  ;;  %33859 = vst [vmem:[#allocation38_spill] sm:$0xff] %v26693_v58  ;;  %33860 = vst [vmem:[#allocation39_spill] sm:$0xff] %v26695_v9  ;;  %v26715_v4 = vand.u32 4294901760, %v720_v29  ;;  %v26723_v54 = vsub.f32 %v534_v30, %v26695_v9  ;;  %v26739_v30 = vsub.f32 %v537_v37, %v26710_v22 }
  0x6d   : > { %33863 = vst [vmem:[#allocation42_spill] sm:$0xff] %v26710_v22 }
  0x6e   : > { %689 = vmatmul.mubr.f32.gmra.mrb[12].mxu0 %v26660_v44  ;;  %1967 = vmatmul.mubr.f32.gmra.mrb[12].mxu1 %v26660_v44  ;;  %33858 = vst [vmem:[#allocation37_spill] sm:$0xff] %v26688_v13  ;;  %v26702_v44 = vand.u32 4294901760, %v26686_v12  ;;  %v26705_v19 = vsub.f32 %v531_v57, %v26688_v13  ;;  %33864 = vst [vmem:[#allocation43_spill] sm:$0xff] %v26715_v4  ;;  %v26754_v37 = vand.u32 4294901760, %v26739_v30 }
  0x6f   : > { %694 = vmatprep.mubr.f32.mxu0 %v33848_v3  ;;  %1972 = vmatprep.mubr.f32.mxu1 %v33848_v3  ;;  %33866 = vst [vmem:[#allocation45_spill] sm:$0xff] %v26723_v54  ;;  %33870 = vst [vmem:[#allocation49_spill] sm:$0xff] %v26739_v30 }
  0x70   : > { %33861 = vst [vmem:[#allocation40_spill] sm:$0xff] %v26702_v44  ;;  %33862 = vst [vmem:[#allocation41_spill] sm:$0xff] %v26705_v19  ;;  %v731_v57 = vsub.f32 %v26686_v12, %v26702_v44  ;;  %v26720_v48 = vand.u32 4294901760, %v26705_v19  ;;  %v26736_v44 = vand.u32 4294901760, %v26723_v54 }
  0x71   : > { %33873 = vst [vmem:[#allocation52_spill] sm:$0xff] %v26754_v37 }
  0x72   : > { %700 = vmatmul.mubr.f32.gmra.mrb[14].mxu0 %v26674_v0  ;;  %1978 = vmatmul.mubr.f32.gmra.mrb[14].mxu1 %v26674_v0  ;;  %v540_v0 = vsel %vm496_vm0, %v270_v36, 0  ;;  %33865 = vst [vmem:[#allocation44_spill] sm:$0xff] %v26720_v48  ;;  %v271_v36 = vld [vmem:[#allocation2 + $0x78] sm:$0xff]  ;;  %v26731_v29 = vand.u32 4294901760, %v731_v57  ;;  %33869 = vst [vmem:[#allocation48_spill] sm:$0xff] %v26736_v44 }
  0x73   : > { %705 = vmatprep.mubr.f32.mxu0 %v33848_v3  ;;  %1983 = vmatprep.mubr.f32.mxu1 %v33848_v3  ;;  %v26727_v49 = vand.u32 4294901760, %v540_v0  ;;  %v543_v1 = vsel %vm496_vm0, %v271_v36, 0 }
  0x74   : > { %33868 = vst [vmem:[#allocation47_spill] sm:$0xff] %v26731_v29 }
  0x75   : > { %33867 = vst [vmem:[#allocation46_spill] sm:$0xff] %v26727_v49  ;;  %v26745_v12 = vsub.f32 %v540_v0, %v26727_v49 }
  0x76   : > { %711 = vmatmul.mubr.f32.gmra.mrb[16].mxu0 %v26693_v58  ;;  %1989 = vmatmul.mubr.f32.gmra.mrb[16].mxu1 %v26693_v58  ;;  %v742_v58 = vsub.f32 %v26705_v19, %v26720_v48  ;;  %v26756_v48 = vand.u32 4294901760, %v543_v1 }
  0x77   : > { %716 = vmatprep.mubr.f32.mxu0 %v33848_v3  ;;  %1994 = vmatprep.mubr.f32.mxu1 %v33848_v3  ;;  %33871 = vst [vmem:[#allocation50_spill] sm:$0xff] %v26745_v12  ;;  %v26767_v36 = vand.u32 4294901760, %v26745_v12 }
  0x78   : > { %v26749_v57 = vand.u32 4294901760, %v742_v58  ;;  %v764_v58 = vsub.f32 %v26739_v30, %v26754_v37 }
  0x79   : > { %33875 = vst [vmem:[#allocation54_spill] sm:$0xff] %v26767_v36 }
  0x7a   : > { %722 = vmatmul.mubr.f32.gmra.mrb[18].mxu0 %v26715_v4  ;;  %2000 = vmatmul.mubr.f32.gmra.mrb[18].mxu1 %v26715_v4  ;;  %33872 = vst [vmem:[#allocation51_spill] sm:$0xff] %v26749_v57  ;;  %v753_v4 = vsub.f32 %v26723_v54, %v26736_v44 }
  0x7b   : > { %727 = vmatprep.mubr.f32.mxu0 %v33848_v3  ;;  %2005 = vmatprep.mubr.f32.mxu1 %v33848_v3 }
  0x7c   : > { %v26762_v0 = vand.u32 4294901760, %v753_v4  ;;  %v775_v4 = vsub.f32 %v26745_v12, %v26767_v36 }
  0x7e   : > { %733 = vmatmul.mubr.f32.gmra.mrb[20].mxu0 %v26731_v29  ;;  %2011 = vmatmul.mubr.f32.gmra.mrb[20].mxu1 %v26731_v29  ;;  %33874 = vst [vmem:[#allocation53_spill] sm:$0xff] %v26762_v0  ;;  %v26770_v29 = vsub.f32 %v543_v1, %v26756_v48  ;;  %v26787_v1 = vand.u32 4294901760, %v775_v4  ;;  %v22187_v4 = vpack.c.bf16 %v26516_v10, %v26503_v2 }
  0x7f   : > { %738 = vmatprep.mubr.f32.mxu0 %v33848_v3  ;;  %2016 = vmatprep.mubr.f32.mxu1 %v33848_v3 }
  0x80   : > { %33876 = vst [vmem:[#allocation55_spill] sm:$0xff] %v26770_v29  ;;  %v26781_v37 = vand.u32 4294901760, %v26770_v29  ;;  %33879 = vst [vmem:[#allocation58_spill] sm:$0xff] %v26787_v1 }
  0x82   : > { %744 = vmatmul.mubr.f32.gmra.mrb[22].mxu0 %v26749_v57  ;;  %2022 = vmatmul.mubr.f32.gmra.mrb[22].mxu1 %v26749_v57  ;;  %v26776_v57 = vand.u32 4294901760, %v764_v58  ;;  %33878 = vst [vmem:[#allocation57_spill] sm:$0xff] %v26781_v37  ;;  %v786_v58 = vsub.f32 %v26770_v29, %v26781_v37  ;;  %v22237_v37 = vpack.c.bf16 %v26568_v35, %v26563_v31 }
  0x83   : > { %749 = vmatprep.mubr.f32.mxu0 %v33848_v3  ;;  %2027 = vmatprep.mubr.f32.mxu1 %v33848_v3 }
  0x84   : > { %33877 = vst [vmem:[#allocation56_spill] sm:$0xff] %v26776_v57 }
  0x86   : > { %755 = vmatmul.mubr.f32.gmra.mrb[24].mxu0 %v26762_v0  ;;  %2033 = vmatmul.mubr.f32.gmra.mrb[24].mxu1 %v26762_v0  ;;  %v26795_v0 = vand.u32 4294901760, %v786_v58  ;;  %v33881_v58 = vpack.c.bf16 %v26393_v42, %v26379_v39 }
  0x87   : > { %760 = vmatprep.mubr.f32.mxu0 %v33848_v3  ;;  %2038 = vmatprep.mubr.f32.mxu1 %v33848_v3 }
  0x88   : > { %33880 = vst [vmem:[#allocation59_spill] sm:$0xff] %v26795_v0 }
  0x8a   : > { %766 = vmatmul.mubr.f32.gmra.mrb[26].mxu0 %v26776_v57  ;;  %2044 = vmatmul.mubr.f32.gmra.mrb[26].mxu1 %v26776_v57  ;;  %v22189_v57 = vpack.c.bf16 %v26547_v18, %v26542_v28 }
  0x8b   : > { %771 = vmatprep.mubr.f32.mxu0 %v33848_v3  ;;  %2049 = vmatprep.mubr.f32.mxu1 %v33848_v3 }
  0x8e   : > { %777 = vmatmul.mubr.f32.gmra.mrb[28].mxu0 %v26787_v1  ;;  %2055 = vmatmul.mubr.f32.gmra.mrb[28].mxu1 %v26787_v1  ;;  %v22235_v1 = vpack.c.bf16 %v26537_v17, %v26526_v26 }
  0x8f   : > { %782 = vmatprep.mubr.f32.mxu0 %v33848_v3  ;;  %2060 = vmatprep.mubr.f32.mxu1 %v33848_v3 }
  0x92   : > { %788 = vmatmul.mubr.f32.gmra.mrb[30].mxu0 %v26795_v0  ;;  %2066 = vmatmul.mubr.f32.gmra.mrb[30].mxu1 %v26795_v0  ;;  %v33882_v0 = vpack.c.bf16 %v26414_v52, %v26396_v43 }
  0x93   : > { %898 = vmatprep.mubr.f32.mxu0 %v33848_v3  ;;  %2176 = vmatprep.mubr.f32.mxu1 %v33848_v3 }
  0x96   : > { %900 = vmatmul.mubr.f32.vlgmr.msra.gmra.mrb[0].mxu0 %v26412_v51  ;;  %2178 = vmatmul.mubr.f32.vlgmr.msra.gmra.mrb[0].mxu1 %v26412_v51 }
  0x97   : > { %22186 = vmatpush1.bf16.msra.mxu0 %v33881_v58  ;;  %22234 = vmatpush1.bf16.msra.mxu1 %v33882_v0 }
  0x98   : > { %905 = vmatprep.mubr.f32.mxu0 %v33848_v3  ;;  %2183 = vmatprep.mubr.f32.mxu1 %v33848_v3 }
  0x99   : > { %22188 = vmatprep.subr.bf16.mxu0 %v22187_v4  ;;  %22236 = vmatprep.subr.bf16.mxu1 %v22235_v1  ;;  %v33885_v1 = vand.u32 4294901760, %v26369_v33  ;;  %v33886_v4 = vand.u32 4294901760, %v26377_v38  ;;  %v33889_v33 = vand.u32 4294901760, %v26393_v42  ;;  %v33898_v42 = vand.u32 4294901760, %v26547_v18  ;;  %v33904_v18 = vld [vmem:[#allocation21_spill] sm:$0xff] }
  0x9a   : > { %907 = vmatmul.mubr.f32.gmra.mrb[2].mxu0 %v26465_v62  ;;  %2185 = vmatmul.mubr.f32.gmra.mrb[2].mxu1 %v26465_v62 }
  0x9b   : > { %912 = vmatprep.mubr.f32.mxu0 %v33848_v3  ;;  %2190 = vmatprep.mubr.f32.mxu1 %v33848_v3  ;;  %v22247_v58 = vpack.c.bf16 %v33886_v4, %v33885_v1  ;;  %v33892_v1 = vand.u32 4294901760, %v26503_v2  ;;  %v33893_v4 = vand.u32 4294901760, %v26516_v10  ;;  %v33900_v2 = vand.u32 4294901760, %v26568_v35  ;;  %v33908_v35 = vld [vmem:[#allocation31_spill] sm:$0xff] }
  0x9c   : > { %22190 = vmatpush1.bf16.msra.mxu0 %v22189_v57  ;;  %22238 = vmatpush1.bf16.msra.mxu1 %v22237_v37  ;;  %v33883_v57 = vand.u32 4294901760, %v26353_v23  ;;  %v33884_v37 = vand.u32 4294901760, %v26356_v27  ;;  %v33887_v23 = vld [vmem:[#allocation36_spill] sm:$0xff]  ;;  %v33888_v27 = vand.u32 4294901760, %v26379_v39  ;;  %v33897_v39 = vand.u32 4294901760, %v26542_v28 }
  0x9d   : > { %22192 = vmatprep.subr.bf16.mxu0 %v26334_v16  ;;  %22240 = vmatprep.subr.bf16.mxu1 %v26345_v20  ;;  %v33903_v28 = vld [vmem:[#allocation16_spill] sm:$0xff] }
  0x9e   : > { %914 = vmatmul.mubr.f32.gmra.mrb[4].mxu0 %v26468_v6  ;;  %2192 = vmatmul.mubr.f32.gmra.mrb[4].mxu1 %v26468_v6  ;;  %v22199_v0 = vpack.c.bf16 %v33884_v37, %v33883_v57  ;;  %v22201_v38 = vpack.c.bf16 %v33889_v33, %v33888_v27  ;;  %v33890_v57 = vand.u32 4294901760, %v26396_v43  ;;  %v33891_v37 = vand.u32 4294901760, %v26414_v52  ;;  %v33912_v27 = vld [vmem:[#allocation52_spill] sm:$0xff]  ;;  %v27048_v33 = vld [vmem:[%s26321_s26 + $0x28] sm:$0xff] }
  0x9f   : > { %919 = vmatprep.mubr.f32.mxu0 %v33848_v3  ;;  %2197 = vmatprep.mubr.f32.mxu1 %v33848_v3  ;;  %v22205_v43 = vpack.c.bf16 %v33898_v42, %v33897_v39  ;;  %v33899_v52 = vand.u32 4294901760, %v26563_v31  ;;  %v33907_v31 = vld [vmem:[#allocation28_spill] sm:$0xff] }
  0xa1   : > { %v22253_v10 = vpack.c.bf16 %v33900_v2, %v33899_v52  ;;  %v405_v52 = vld [vmem:[%s33183_s2 + $0x28] sm:$0xff]  ;;  %v406_v2 = vld [vmem:[%s33183_s2 + $0x30] sm:$0xff] }
  0xa2   : > { %921 = vmatmul.mubr.f32.gmra.mrb[6].mxu0 %v26476_v8  ;;  %2199 = vmatmul.mubr.f32.gmra.mrb[6].mxu1 %v26476_v8 }
  0xa3   : > { %926 = vmatprep.mubr.f32.mxu0 %v33848_v3  ;;  %2204 = vmatprep.mubr.f32.mxu1 %v33848_v3 }
  0xa6   : > { %928 = vmatmul.mubr.f32.gmra.mrb[8].mxu0 %v26483_v25  ;;  %2206 = vmatmul.mubr.f32.gmra.mrb[8].mxu1 %v26483_v25 }
  0xa7   : > { %933 = vmatprep.mubr.f32.mxu0 %v33848_v3  ;;  %2211 = vmatprep.mubr.f32.mxu1 %v33848_v3 }
  0xaa   : > { %935 = vmatmul.mubr.f32.gmra.mrb[10].mxu0 %v26485_v47  ;;  %2213 = vmatmul.mubr.f32.gmra.mrb[10].mxu1 %v26485_v47 }
  0xab   : > { %940 = vmatprep.mubr.f32.mxu0 %v33848_v3  ;;  %2218 = vmatprep.mubr.f32.mxu1 %v33848_v3 }
  0xae   : > { %942 = vmatmul.mubr.f32.gmra.mrb[12].mxu0 %v26530_v11  ;;  %2220 = vmatmul.mubr.f32.gmra.mrb[12].mxu1 %v26530_v11 }
  0xaf   : > { %947 = vmatprep.mubr.f32.mxu0 %v33848_v3  ;;  %2225 = vmatprep.mubr.f32.mxu1 %v33848_v3 }
  0xb2   : > { %949 = vmatmul.mubr.f32.gmra.mrb[14].mxu0 %v26532_v59  ;;  %2227 = vmatmul.mubr.f32.gmra.mrb[14].mxu1 %v26532_v59 }
  0xb3   : > { %954 = vmatprep.mubr.f32.mxu0 %v33848_v3  ;;  %2232 = vmatprep.mubr.f32.mxu1 %v33848_v3 }
  0xb6   : > { %956 = vmatmul.mubr.f32.gmra.mrb[16].mxu0 %v26586_v46  ;;  %2234 = vmatmul.mubr.f32.gmra.mrb[16].mxu1 %v26586_v46 }
  0xb7   : > { %961 = vmatprep.mubr.f32.mxu0 %v33848_v3  ;;  %2239 = vmatprep.mubr.f32.mxu1 %v33848_v3 }
  0xba   : > { %963 = vmatmul.mubr.f32.gmra.mrb[18].mxu0 %v26646_v61  ;;  %2241 = vmatmul.mubr.f32.gmra.mrb[18].mxu1 %v26646_v61 }
  0xbb   : > { %968 = vmatprep.mubr.f32.mxu0 %v33848_v3  ;;  %2246 = vmatprep.mubr.f32.mxu1 %v33848_v3 }
  0xbe   : > { %970 = vmatmul.mubr.f32.gmra.mrb[20].mxu0 %v26665_v60  ;;  %2248 = vmatmul.mubr.f32.gmra.mrb[20].mxu1 %v26665_v60 }
  0xbf   : > { %975 = vmatprep.mubr.f32.mxu0 %v33848_v3  ;;  %2253 = vmatprep.mubr.f32.mxu1 %v33848_v3 }
  0xc2   : > { %977 = vmatmul.mubr.f32.gmra.mrb[22].mxu0 %v26688_v13  ;;  %2255 = vmatmul.mubr.f32.gmra.mrb[22].mxu1 %v26688_v13 }
  0xc3   : > { %982 = vmatprep.mubr.f32.mxu0 %v33848_v3  ;;  %2260 = vmatprep.mubr.f32.mxu1 %v33848_v3 }
  0xc6   : > { %984 = vmatmul.mubr.f32.gmra.mrb[24].mxu0 %v26695_v9  ;;  %2262 = vmatmul.mubr.f32.gmra.mrb[24].mxu1 %v26695_v9 }
  0xc7   : > { %989 = vmatprep.mubr.f32.mxu0 %v33848_v3  ;;  %2267 = vmatprep.mubr.f32.mxu1 %v33848_v3 }
  0xca   : > { %991 = vmatmul.mubr.f32.gmra.mrb[26].mxu0 %v26710_v22  ;;  %2269 = vmatmul.mubr.f32.gmra.mrb[26].mxu1 %v26710_v22 }
  0xcb   : > { %996 = vmatprep.mubr.f32.mxu0 %v33848_v3  ;;  %2274 = vmatprep.mubr.f32.mxu1 %v33848_v3 }
  0xce   : > { %998 = vmatmul.mubr.f32.gmra.mrb[28].mxu0 %v26727_v49  ;;  %2276 = vmatmul.mubr.f32.gmra.mrb[28].mxu1 %v26727_v49 }
  0xcf   : > { %1003 = vmatprep.mubr.f32.mxu0 %v33848_v3  ;;  %2281 = vmatprep.mubr.f32.mxu1 %v33848_v3 }
  0xd2   : > { %1005 = vmatmul.mubr.f32.gmra.mrb[30].mxu0 %v26756_v48  ;;  %2283 = vmatmul.mubr.f32.gmra.mrb[30].mxu1 %v26756_v48 }
  0xd3   : > { %1091 = vmatprep.mubr.f32.mxu0 %v33848_v3  ;;  %2369 = vmatprep.mubr.f32.mxu1 %v33848_v3 }
  0xd6   : > { %1094 = vmatmul.mubr.f32.vlgmr.msra.gmra.mrb[0].mxu0 %v26430_v56  ;;  %2372 = vmatmul.mubr.f32.vlgmr.msra.gmra.mrb[0].mxu1 %v26430_v56 }
  0xd7   : > { %22194 = vmatpush1.bf16.msra.mxu0 %v26347_v21  ;;  %22242 = vmatpush1.bf16.msra.mxu1 %v26371_v34 }
  0xd8   : > { %1099 = vmatprep.mubr.f32.mxu0 %v33848_v3  ;;  %2377 = vmatprep.mubr.f32.mxu1 %v33848_v3 }
  0xd9   : > { %22196 = vmatprep.subr.bf16.mxu0 %v26385_v40  ;;  %22244 = vmatprep.subr.bf16.mxu1 %v26391_v41 }
  0xda   : > { %1102 = vmatmul.mubr.f32.gmra.mrb[2].mxu0 %v26474_v5  ;;  %2380 = vmatmul.mubr.f32.gmra.mrb[2].mxu1 %v26474_v5 }
  0xdb   : > { %1107 = vmatprep.mubr.f32.mxu0 %v33848_v3  ;;  %2385 = vmatprep.mubr.f32.mxu1 %v33848_v3 }
  0xdc   : > { %22198 = vmatpush1.bf16.msra.mxu0 %v26410_v50  ;;  %22246 = vmatpush1.bf16.msra.mxu1 %v26420_v53 }
  0xdd   : > { %22200 = vmatprep.subr.bf16.mxu0 %v22199_v0  ;;  %22248 = vmatprep.subr.bf16.mxu1 %v22247_v58  ;;  %v22249_v0 = vpack.c.bf16 %v33891_v37, %v33890_v57  ;;  %v22203_v58 = vpack.c.bf16 %v33893_v4, %v33892_v1  ;;  %v27053_v57 = vld [vmem:[%s26321_s26 + $0x128] sm:$0xff]  ;;  %v27056_v37 = vld [vmem:[%s26321_s26 + $0x38] sm:$0xff]  ;;  %v3101_v1 = vand.u32 4294901760, %v27048_v33 }
  0xde   : > { %1110 = vmatmul.mubr.f32.gmra.mrb[4].mxu0 %v26481_v24  ;;  %2388 = vmatmul.mubr.f32.gmra.mrb[4].mxu1 %v26481_v24  ;;  %v3105_v4 = vand.u32 4294901760, %v27053_v57 }
  0xdf   : > { %1115 = vmatprep.mubr.f32.mxu0 %v33848_v3  ;;  %2393 = vmatprep.mubr.f32.mxu1 %v33848_v3 }
  0xe0   : > { %v27079_v42 = vpack.c.bf16 %v3105_v4, %v3101_v1 }
  0xe2   : > { %1118 = vmatmul.mubr.f32.gmra.mrb[6].mxu0 %v26493_v55  ;;  %2396 = vmatmul.mubr.f32.gmra.mrb[6].mxu1 %v26493_v55 }
  0xe3   : > { %1123 = vmatprep.mubr.f32.mxu0 %v33848_v3  ;;  %2401 = vmatprep.mubr.f32.mxu1 %v33848_v3 }
  0xe6   : > { %1126 = vmatmul.mubr.f32.gmra.mrb[8].mxu0 %v26511_v7  ;;  %2404 = vmatmul.mubr.f32.gmra.mrb[8].mxu1 %v26511_v7 }
  0xe7   : > { %1131 = vmatprep.mubr.f32.mxu0 %v33848_v3  ;;  %2409 = vmatprep.mubr.f32.mxu1 %v33848_v3 }
  0xea   : > { %1134 = vmatmul.mubr.f32.gmra.mrb[10].mxu0 %v26521_v15  ;;  %2412 = vmatmul.mubr.f32.gmra.mrb[10].mxu1 %v26521_v15 }
  0xeb   : > { %1139 = vmatprep.mubr.f32.mxu0 %v33848_v3  ;;  %2417 = vmatprep.mubr.f32.mxu1 %v33848_v3 }
  0xee   : > { %1142 = vmatmul.mubr.f32.gmra.mrb[12].mxu0 %v26577_v14  ;;  %2420 = vmatmul.mubr.f32.gmra.mrb[12].mxu1 %v26577_v14 }
  0xef   : > { %1147 = vmatprep.mubr.f32.mxu0 %v33848_v3  ;;  %2425 = vmatprep.mubr.f32.mxu1 %v33848_v3 }
  0xf2   : > { %1150 = vmatmul.mubr.f32.gmra.mrb[14].mxu0 %v26580_v32  ;;  %2428 = vmatmul.mubr.f32.gmra.mrb[14].mxu1 %v26580_v32 }
  0xf3   : > { %1155 = vmatprep.mubr.f32.mxu0 %v33848_v3  ;;  %2433 = vmatprep.mubr.f32.mxu1 %v33848_v3 }
  0xf6   : > { %1158 = vmatmul.mubr.f32.gmra.mrb[16].mxu0 %v26638_v45  ;;  %2436 = vmatmul.mubr.f32.gmra.mrb[16].mxu1 %v26638_v45 }
  0xf7   : > { %1163 = vmatprep.mubr.f32.mxu0 %v33848_v3  ;;  %2441 = vmatprep.mubr.f32.mxu1 %v33848_v3 }
  0xfa   : > { %1166 = vmatmul.mubr.f32.gmra.mrb[18].mxu0 %v26663_v63  ;;  %2444 = vmatmul.mubr.f32.gmra.mrb[18].mxu1 %v26663_v63 }
  0xfb   : > { %1171 = vmatprep.mubr.f32.mxu0 %v33848_v3  ;;  %2449 = vmatprep.mubr.f32.mxu1 %v33848_v3 }
  0xfe   : > { %1174 = vmatmul.mubr.f32.gmra.mrb[20].mxu0 %v33887_v23  ;;  %2452 = vmatmul.mubr.f32.gmra.mrb[20].mxu1 %v33887_v23 }
  0xff   : > { %1179 = vmatprep.mubr.f32.mxu0 %v33848_v3  ;;  %2457 = vmatprep.mubr.f32.mxu1 %v33848_v3 }
 0x102   : > { %1182 = vmatmul.mubr.f32.gmra.mrb[22].mxu0 %v26705_v19  ;;  %2460 = vmatmul.mubr.f32.gmra.mrb[22].mxu1 %v26705_v19 }
 0x103   : > { %1187 = vmatprep.mubr.f32.mxu0 %v33848_v3  ;;  %2465 = vmatprep.mubr.f32.mxu1 %v33848_v3 }
 0x106   : > { %1190 = vmatmul.mubr.f32.gmra.mrb[24].mxu0 %v26723_v54  ;;  %2468 = vmatmul.mubr.f32.gmra.mrb[24].mxu1 %v26723_v54  ;;  %v33896_v54 = vld [vmem:[#allocation9_spill] sm:$0xff] }
 0x107   : > { %1195 = vmatprep.mubr.f32.mxu0 %v33848_v3  ;;  %2473 = vmatprep.mubr.f32.mxu1 %v33848_v3 }
 0x10a   : > { %1198 = vmatmul.mubr.f32.gmra.mrb[26].mxu0 %v26739_v30  ;;  %2476 = vmatmul.mubr.f32.gmra.mrb[26].mxu1 %v26739_v30 }
 0x10b   : > { %1203 = vmatprep.mubr.f32.mxu0 %v33848_v3  ;;  %2481 = vmatprep.mubr.f32.mxu1 %v33848_v3 }
 0x10e   : > { %1206 = vmatmul.mubr.f32.gmra.mrb[28].mxu0 %v26745_v12  ;;  %2484 = vmatmul.mubr.f32.gmra.mrb[28].mxu1 %v26745_v12  ;;  %v33895_v12 = vand.u32 4294901760, %v26537_v17  ;;  %v33902_v17 = vld [vmem:[#allocation15_spill] sm:$0xff] }
 0x10f   : > { %1211 = vmatprep.mubr.f32.mxu0 %v33848_v3  ;;  %2489 = vmatprep.mubr.f32.mxu1 %v33848_v3 }
 0x112   : > { %1214 = vmatmul.mubr.f32.gmra.mrb[30].mxu0 %v26770_v29  ;;  %2492 = vmatmul.mubr.f32.gmra.mrb[30].mxu1 %v26770_v29  ;;  %v33894_v29 = vand.u32 4294901760, %v26526_v26  ;;  %v33901_v26 = vld [vmem:[#allocation13_spill] sm:$0xff] }
 0x113   : > { %1292 = vmatprep.mubr.f32.mxu0 %v33848_v3  ;;  %2570 = vmatprep.mubr.f32.mxu1 %v33848_v3 }
 0x114   : > { %v22251_v30 = vpack.c.bf16 %v33895_v12, %v33894_v29  ;;  %v33909_v12 = vld [vmem:[#allocation35_spill] sm:$0xff]  ;;  %v33910_v29 = vld [vmem:[#allocation40_spill] sm:$0xff] }
 0x116   : > { %1296 = vmatmul.mubr.f32.vlgmr.msra.gmra.mrb[0].mxu0 %v33896_v54  ;;  %2574 = vmatmul.mubr.f32.vlgmr.msra.gmra.mrb[0].mxu1 %v33896_v54 }
 0x117   : > { %22202 = vmatpush1.bf16.msra.mxu0 %v22201_v38  ;;  %22250 = vmatpush1.bf16.msra.mxu1 %v22249_v0  ;;  %v33913_v38 = vld [vmem:[#allocation57_spill] sm:$0xff]  ;;  %v27059_v0 = vld [vmem:[%s26321_s26 + $0x138] sm:$0xff] }
 0x118   : > { %1301 = vmatprep.mubr.f32.mxu0 %v33848_v3  ;;  %2579 = vmatprep.mubr.f32.mxu1 %v33848_v3  ;;  %v4383_v39 = vand.u32 4294901760, %v27059_v0 }
 0x119   : > { %22204 = vmatprep.subr.bf16.mxu0 %v22203_v58  ;;  %22252 = vmatprep.subr.bf16.mxu1 %v22251_v30  ;;  %v33911_v30 = vld [vmem:[#allocation44_spill] sm:$0xff]  ;;  %v4379_v58 = vand.u32 4294901760, %v27056_v37 }
 0x11a   : > { %1305 = vmatmul.mubr.f32.gmra.mrb[2].mxu0 %v33901_v26  ;;  %2583 = vmatmul.mubr.f32.gmra.mrb[2].mxu1 %v33901_v26 }
 0x11b   : > { %1310 = vmatprep.mubr.f32.mxu0 %v33848_v3  ;;  %2588 = vmatprep.mubr.f32.mxu1 %v33848_v3 }
 0x11c   : > { %22206 = vmatpush1.bf16.msra.mxu0 %v22205_v43  ;;  %22254 = vmatpush1.bf16.msra.mxu1 %v22253_v10  ;;  %v404_v43 = vld [vmem:[%s33183_s2 + $0x20] sm:$0xff]  ;;  %v407_v10 = vld [vmem:[%s33183_s2 + $0x38] sm:$0xff] }
 0x11d   : > { %22208 = vmatprep.subr.bf16.mxu0 %v26334_v16  ;;  %22256 = vmatprep.subr.bf16.mxu1 %v26345_v20  ;;  %v33905_v16 = vld [vmem:[#allocation22_spill] sm:$0xff]  ;;  %v33906_v20 = vld [vmem:[#allocation27_spill] sm:$0xff] }
 0x11e   : > { %1314 = vmatmul.mubr.f32.gmra.mrb[4].mxu0 %v33902_v17  ;;  %2592 = vmatmul.mubr.f32.gmra.mrb[4].mxu1 %v33902_v17 }
 0x11f   : > { %1319 = vmatprep.mubr.f32.mxu0 %v33848_v3  ;;  %2597 = vmatprep.mubr.f32.mxu1 %v33848_v3 }
 0x122   : > { %1323 = vmatmul.mubr.f32.gmra.mrb[6].mxu0 %v33903_v28  ;;  %2601 = vmatmul.mubr.f32.gmra.mrb[6].mxu1 %v33903_v28 }
 0x123   : > { %1328 = vmatprep.mubr.f32.mxu0 %v33848_v3  ;;  %2606 = vmatprep.mubr.f32.mxu1 %v33848_v3 }
 0x126   : > { %1332 = vmatmul.mubr.f32.gmra.mrb[8].mxu0 %v33904_v18  ;;  %2610 = vmatmul.mubr.f32.gmra.mrb[8].mxu1 %v33904_v18 }
 0x127   : > { %1337 = vmatprep.mubr.f32.mxu0 %v33848_v3  ;;  %2615 = vmatprep.mubr.f32.mxu1 %v33848_v3 }
 0x12a   : > { %1341 = vmatmul.mubr.f32.gmra.mrb[10].mxu0 %v33905_v16  ;;  %2619 = vmatmul.mubr.f32.gmra.mrb[10].mxu1 %v33905_v16 }
 0x12b   : > { %1346 = vmatprep.mubr.f32.mxu0 %v33848_v3  ;;  %2624 = vmatprep.mubr.f32.mxu1 %v33848_v3 }
 0x12e   : > { %1350 = vmatmul.mubr.f32.gmra.mrb[12].mxu0 %v33906_v20  ;;  %2628 = vmatmul.mubr.f32.gmra.mrb[12].mxu1 %v33906_v20 }
 0x12f   : > { %1355 = vmatprep.mubr.f32.mxu0 %v33848_v3  ;;  %2633 = vmatprep.mubr.f32.mxu1 %v33848_v3 }
 0x132   : > { %1359 = vmatmul.mubr.f32.gmra.mrb[14].mxu0 %v33907_v31  ;;  %2637 = vmatmul.mubr.f32.gmra.mrb[14].mxu1 %v33907_v31  ;;  %v27236_v31 = vld [vmem:[%s26321_s26 + $0x330] sm:$0xff] }
 0x133   : > { %1364 = vmatprep.mubr.f32.mxu0 %v33848_v3  ;;  %2642 = vmatprep.mubr.f32.mxu1 %v33848_v3 }
 0x136   : > { %1368 = vmatmul.mubr.f32.gmra.mrb[16].mxu0 %v33908_v35  ;;  %2646 = vmatmul.mubr.f32.gmra.mrb[16].mxu1 %v33908_v35  ;;  %v27233_v35 = vld [vmem:[%s26321_s26 + $0x230] sm:$0xff] }
 0x137   : > { %1373 = vmatprep.mubr.f32.mxu0 %v33848_v3  ;;  %2651 = vmatprep.mubr.f32.mxu1 %v33848_v3 }
 0x13a   : > { %1377 = vmatmul.mubr.f32.gmra.mrb[18].mxu0 %v33909_v12  ;;  %2655 = vmatmul.mubr.f32.gmra.mrb[18].mxu1 %v33909_v12  ;;  %v27230_v12 = vld [vmem:[%s26321_s26 + $0x320] sm:$0xff] }
 0x13b   : > { %1382 = vmatprep.mubr.f32.mxu0 %v33848_v3  ;;  %2660 = vmatprep.mubr.f32.mxu1 %v33848_v3 }
 0x13e   : > { %1386 = vmatmul.mubr.f32.gmra.mrb[20].mxu0 %v33910_v29  ;;  %2664 = vmatmul.mubr.f32.gmra.mrb[20].mxu1 %v33910_v29  ;;  %v27227_v29 = vld [vmem:[%s26321_s26 + $0x220] sm:$0xff] }
 0x13f   : > { %1391 = vmatprep.mubr.f32.mxu0 %v33848_v3  ;;  %2669 = vmatprep.mubr.f32.mxu1 %v33848_v3 }
 0x142   : > { %1395 = vmatmul.mubr.f32.gmra.mrb[22].mxu0 %v33911_v30  ;;  %2673 = vmatmul.mubr.f32.gmra.mrb[22].mxu1 %v33911_v30 }
 0x143   : > { %1400 = vmatprep.mubr.f32.mxu0 %v33848_v3  ;;  %2678 = vmatprep.mubr.f32.mxu1 %v33848_v3 }
 0x146   : > { %1404 = vmatmul.mubr.f32.gmra.mrb[24].mxu0 %v26736_v44  ;;  %2682 = vmatmul.mubr.f32.gmra.mrb[24].mxu1 %v26736_v44 }
 0x147   : > { %1409 = vmatprep.mubr.f32.mxu0 %v33848_v3  ;;  %2687 = vmatprep.mubr.f32.mxu1 %v33848_v3 }
 0x14a   : > { %1413 = vmatmul.mubr.f32.gmra.mrb[26].mxu0 %v33912_v27  ;;  %2691 = vmatmul.mubr.f32.gmra.mrb[26].mxu1 %v33912_v27 }
 0x14b   : > { %1418 = vmatprep.mubr.f32.mxu0 %v33848_v3  ;;  %2696 = vmatprep.mubr.f32.mxu1 %v33848_v3 }
 0x14e   : > { %1422 = vmatmul.mubr.f32.gmra.mrb[28].mxu0 %v26767_v36  ;;  %2700 = vmatmul.mubr.f32.gmra.mrb[28].mxu1 %v26767_v36 }
 0x14f   : > { %1427 = vmatprep.mubr.f32.mxu0 %v33848_v3  ;;  %2705 = vmatprep.mubr.f32.mxu1 %v33848_v3 }
 0x152   : > { %1431 = vmatmul.mubr.f32.gmra.mrb[30].mxu0 %v33913_v38  ;;  %2709 = vmatmul.mubr.f32.gmra.mrb[30].mxu1 %v33913_v38  ;;  %v410_v38 = vld [vmem:[%s33183_s2 + $0x50] sm:$0xff] }
 0x153   : > { %1525 = vmatprep.mubr.f32.mxu0 %v33848_v3  ;;  %2803 = vmatprep.mubr.f32.mxu1 %v33848_v3 }
 0x156   : > { %1527 = vmatmul.mubr.f32.vlgmr.msra.gmra.mrb[0].mxu0 %v26412_v51  ;;  %2805 = vmatmul.mubr.f32.vlgmr.msra.gmra.mrb[0].mxu1 %v26412_v51 }
 0x157   : > { %22210 = vmatpush1.bf16.msra.mxu0 %v26347_v21  ;;  %22258 = vmatpush1.bf16.msra.mxu1 %v26371_v34  ;;  %v27085_v21 = vpack.c.bf16 %v4383_v39, %v4379_v58  ;;  %v400_v34 = vld [vmem:[%s33183_s2] sm:$0xff] }
 0x158   : > { %1532 = vmatprep.mubr.f32.mxu0 %v33848_v3  ;;  %2810 = vmatprep.mubr.f32.mxu1 %v33848_v3 }
 0x159   : > { %22212 = vmatprep.subr.bf16.mxu0 %v26385_v40  ;;  %22260 = vmatprep.subr.bf16.mxu1 %v26391_v41  ;;  %v26197_v40 = vmov 0   ;;  %v401_v41 = vld [vmem:[%s33183_s2 + $0x8] sm:$0xff] }
 0x15a   : > { %1534 = vmatmul.mubr.f32.gmra.mrb[2].mxu0 %v26465_v62  ;;  %2812 = vmatmul.mubr.f32.gmra.mrb[2].mxu1 %v26465_v62 }
 0x15b   : > { %1539 = vmatprep.mubr.f32.mxu0 %v33848_v3  ;;  %2817 = vmatprep.mubr.f32.mxu1 %v33848_v3 }
 0x15c   : > { %22214 = vmatpush1.bf16.msra.mxu0 %v26410_v50  ;;  %22262 = vmatpush1.bf16.msra.mxu1 %v26420_v53  ;;  %v402_v50 = vld [vmem:[%s33183_s2 + $0x10] sm:$0xff]  ;;  %v403_v53 = vld [vmem:[%s33183_s2 + $0x18] sm:$0xff] }
 0x15d   : > { %22264 = vmatprep.subr.bf16.mxu0 %v27079_v42  ;;  %22312 = vmatprep.subr.bf16.mxu1 %v27085_v21 }
 0x15e   : > { %1541 = vmatmul.mubr.f32.gmra.mrb[4].mxu0 %v26468_v6  ;;  %2819 = vmatmul.mubr.f32.gmra.mrb[4].mxu1 %v26468_v6 }
 0x15f   : > { %1546 = vmatprep.mubr.f32.mxu0 %v33848_v3  ;;  %2824 = vmatprep.mubr.f32.mxu1 %v33848_v3 }
 0x160   : > { %26079 = vset.pattern.permute.xlu0 %v26197_v40  ;;  %26080 = vset.pattern.permute.xlu1 %v26197_v40  ;;  %v276_v40 = vld [vmem:[%s26321_s26 + $0x20] sm:$0xff] }
 0x161   : > { %418 = vperm.xlu0 %26079, %v400_v34   ;;  %428 = vperm.xlu1 %26080, %v402_v50   ;;  %v408_v34 = vld [vmem:[%s33183_s2 + $0x40] sm:$0xff]  ;;  %v27171_v50 = vsub.f32 %v27048_v33, %v3101_v1  ;;  %v3103_v33 = vand.u32 4294901760, %v276_v40  ;;  %v278_v1 = vld [vmem:[%s26321_s26 + $0x30] sm:$0xff] }
 0x162   : > { %1548 = vmatmul.mubr.f32.gmra.mrb[6].mxu0 %v26476_v8  ;;  %2826 = vmatmul.mubr.f32.gmra.mrb[6].mxu1 %v26476_v8 }
 0x163   : > { %1553 = vmatprep.mubr.f32.mxu0 %v33848_v3  ;;  %2831 = vmatprep.mubr.f32.mxu1 %v33848_v3  ;;  %v33914_v20 = vand.u32 4294901760, %v27171_v50  ;;  %v27252_v28 = vsub.f32 %v276_v40, %v3103_v33  ;;  %v411_v40 = vld [vmem:[%s33183_s2 + $0x58] sm:$0xff] }
 0x165   : > { %423 = vperm.xlu0 %26079, %v401_v41   ;;  %433 = vperm.xlu1 %26080, %v403_v53   ;;  %v308_v41 = vld [vmem:[%s26321_s26 + $0x120] sm:$0xff]  ;;  %v27176_v53 = vsub.f32 %v27053_v57, %v3105_v4  ;;  %v310_v4 = vld [vmem:[%s26321_s26 + $0x130] sm:$0xff]  ;;  %v3353_v16 = vsub.f32 %v27171_v50, %v33914_v20 }
 0x166   : > { %1555 = vmatmul.mubr.f32.gmra.mrb[8].mxu0 %v26483_v25  ;;  %2833 = vmatmul.mubr.f32.gmra.mrb[8].mxu1 %v26483_v25  ;;  %v3107_v57 = vand.u32 4294901760, %v308_v41  ;;  %v4385_v27 = vand.u32 4294901760, %v310_v4 }
 0x167   : > { %1560 = vmatprep.mubr.f32.mxu0 %v33848_v3  ;;  %2838 = vmatprep.mubr.f32.mxu1 %v33848_v3  ;;  %v33915_v36 = vand.u32 4294901760, %v27176_v53  ;;  %v3354_v26 = vand.u32 4294901760, %v3353_v16 }
 0x168   : > { %v27254_v17 = vsub.f32 %v308_v41, %v3107_v57 }
 0x169   : > { %438 = vperm.xlu0 %26079, %v404_v43   ;;  %443 = vperm.xlu1 %26080, %v405_v52   ;;  %v27181_v43 = vsub.f32 %v27056_v37, %v4379_v58  ;;  %v27186_v52 = vsub.f32 %v27059_v0, %v4383_v39  ;;  %v409_v37 = vld [vmem:[%s33183_s2 + $0x48] sm:$0xff]  ;;  %v27204_v39 = vld [vmem:[%s26321_s26 + $0x238] sm:$0xff] }
 0x16a   : > { %1562 = vmatmul.mubr.f32.gmra.mrb[10].mxu0 %v26485_v47  ;;  %2840 = vmatmul.mubr.f32.gmra.mrb[10].mxu1 %v26485_v47  ;;  %v27198_v58 = vld [vmem:[%s26321_s26 + $0x228] sm:$0xff]  ;;  %v33920_v54 = vand.u32 4294901760, %v27204_v39 }
 0x16b   : > { %1567 = vmatprep.mubr.f32.mxu0 %v33848_v3  ;;  %2845 = vmatprep.mubr.f32.mxu1 %v33848_v3  ;;  %v27201_v0 = vld [vmem:[%s26321_s26 + $0x328] sm:$0xff]  ;;  %v33916_v44 = vand.u32 4294901760, %v27181_v43  ;;  %v33917_v18 = vand.u32 4294901760, %v27186_v52  ;;  %v33918_v41 = vand.u32 4294901760, %v27198_v58 }
 0x16d   : > { %448 = vperm.xlu0 %26079, %v406_v2   ;;  %453 = vperm.xlu1 %26080, %v407_v10   ;;  %v27207_v2 = vld [vmem:[%s26321_s26 + $0x338] sm:$0xff]  ;;  %v27217_v10 = vpack.c.bf16 %v3107_v57, %v3103_v33  ;;  %v4631_v30 = vsub.f32 %v27181_v43, %v33916_v44  ;;  %v27262_v44 = vsub.f32 %v310_v4, %v4385_v27  ;;  %v33919_v33 = vand.u32 4294901760, %v27201_v0 }
 0x16e   : > { %1569 = vmatmul.mubr.f32.gmra.mrb[12].mxu0 %v26530_v11  ;;  %2847 = vmatmul.mubr.f32.gmra.mrb[12].mxu1 %v26530_v11  ;;  %v4389_v4 = vand.u32 4294901760, %v27233_v35 }
 0x16f   : > { %1574 = vmatprep.mubr.f32.mxu0 %v33848_v3  ;;  %2852 = vmatprep.mubr.f32.mxu1 %v33848_v3  ;;  %v27273_v57 = vpack.c.bf16 %v33919_v33, %v33918_v41  ;;  %v4632_v19 = vand.u32 4294901760, %v4631_v30  ;;  %v33922_v30 = vand.u32 4294901760, %v27227_v29 }
 0x171   : > { %458 = vperm.xlu0 %26079, %v408_v34   ;;  %463 = vperm.xlu1 %26080, %v409_v37   ;;  %v4381_v37 = vand.u32 4294901760, %v278_v1  ;;  %v3365_v34 = vsub.f32 %v27176_v53, %v33915_v36 }
 0x172   : > { %1576 = vmatmul.mubr.f32.gmra.mrb[14].mxu0 %v26532_v59  ;;  %2854 = vmatmul.mubr.f32.gmra.mrb[14].mxu1 %v26532_v59 }
 0x173   : > { %1581 = vmatprep.mubr.f32.mxu0 %v33848_v3  ;;  %2859 = vmatprep.mubr.f32.mxu1 %v33848_v3  ;;  %v27256_v20 = vpack.c.bf16 %v4385_v27, %v4381_v37  ;;  %v27260_v36 = vsub.f32 %v278_v1, %v4381_v37  ;;  %v33921_v1 = vand.u32 4294901760, %v27207_v2  ;;  %v4393_v37 = vand.u32 4294901760, %v27236_v31 }
 0x175   : > { %468 = vperm.xlu0 %26079, %v410_v38   ;;  %v4643_v38 = vsub.f32 %v27186_v52, %v33917_v18  ;;  %v27279_v27 = vpack.c.bf16 %v33921_v1, %v33920_v54  ;;  %473 = vperm.xlu1 %26080, %v411_v40   ;;  %v3366_v18 = vand.u32 4294901760, %v3365_v34  ;;  %v33923_v34 = vand.u32 4294901760, %v27230_v12 }
 0x176   : > { %1583 = vmatmul.mubr.f32.gmra.mrb[16].mxu0 %v26586_v46  ;;  %2861 = vmatmul.mubr.f32.gmra.mrb[16].mxu1 %v26586_v46  ;;  %v27307_v40 = vpack.c.bf16 %v4393_v37, %v4389_v4 }
 0x177   : > { %1588 = vmatprep.mubr.f32.mxu0 %v33848_v3  ;;  %2866 = vmatprep.mubr.f32.mxu1 %v33848_v3  ;;  %v4644_v23 = vand.u32 4294901760, %v4643_v38  ;;  %v27301_v38 = vpack.c.bf16 %v33923_v34, %v33922_v30  ;;  %v22271_v1 = vpack.c.bf16 %v3366_v18, %v3354_v26  ;;  %v412_v30 = vld [vmem:[%s33183_s2 + $0x60] sm:$0xff]  ;;  %v415_v26 = vld [vmem:[%s33183_s2 + $0x78] sm:$0xff]  ;;  %v33926_v18 = vmov %v33918_v41 }
 0x178   : > { %33925 = vst [vmem:[#allocation61_spill] sm:$0xff] %v27307_v40  ;;  %v33927_v34 = vmov %v33919_v33  ;;  %v33930_v33 = vand.u32 4294901760, %v27227_v29 }
 0x179   : > { %33924 = vst [vmem:[#allocation60_spill] sm:$0xff] %v27301_v38  ;;  %v22319_v16 = vpack.c.bf16 %v4644_v23, %v4632_v19  ;;  %v413_v19 = vld [vmem:[%s33183_s2 + $0x68] sm:$0xff]  ;;  %478 = vperm.xlu0 %26079, %v412_v30   ;;  %v414_v23 = vld [vmem:[%s33183_s2 + $0x70] sm:$0xff]  ;;  %v33928_v30 = vmov %v33920_v54 }
 0x17a   : > { %1590 = vmatmul.mubr.f32.gmra.mrb[18].mxu0 %v26646_v61  ;;  %2868 = vmatmul.mubr.f32.gmra.mrb[18].mxu1 %v26646_v61 }
 0x17b   : > { %1595 = vmatprep.mubr.f32.mxu0 %v33848_v3  ;;  %2873 = vmatprep.mubr.f32.mxu1 %v33848_v3 }
 0x17c   : > { %483 = vperm.xlu1 %26080, %v413_v19   ;;  %v27366_v19 = vsub.f32 %v27204_v39, %v33928_v30  ;;  %v27386_v39 = vsub.f32 %v27233_v35, %v4389_v4  ;;  %v33297_v35 = vand.u32 4294901760, %v27252_v28  ;;  %v33298_v4 = vand.u32 4294901760, %v27254_v17 }
 0x17d   : > { %488 = vperm.xlu0 %26079, %v414_v23   ;;  %v33929_v23 = vand.u32 4294901760, %v27207_v2 }
 0x17e   : > { %1597 = vmatmul.mubr.f32.gmra.mrb[20].mxu0 %v26665_v60  ;;  %2875 = vmatmul.mubr.f32.gmra.mrb[20].mxu1 %v26665_v60  ;;  %v33932_v63 = vand.u32 4294901760, %v27366_v19  ;;  %v33936_v14 = vand.u32 4294901760, %v27386_v39 }
 0x17f   : > { %1602 = vmatprep.mubr.f32.mxu0 %v33848_v3  ;;  %2880 = vmatprep.mubr.f32.mxu1 %v33848_v3 }
 0x180   : > { %493 = vperm.xlu1 %26080, %v415_v26   ;;  %v27371_v26 = vsub.f32 %v27207_v2, %v33929_v23  ;;  %v27391_v2 = vsub.f32 %v27236_v31, %v4393_v37  ;;  %v33299_v37 = vand.u32 4294901760, %v27260_v36  ;;  %v4661_v15 = vsub.f32 %v27386_v39, %v33936_v14 }
 0x182   : > { %1604 = vmatmul.mubr.f32.gmra.mrb[22].mxu0 %v26688_v13  ;;  %2882 = vmatmul.mubr.f32.gmra.mrb[22].mxu1 %v26688_v13  ;;  %v33933_v41 = vand.u32 4294901760, %v27371_v26  ;;  %v33937_v7 = vand.u32 4294901760, %v27391_v2 }
 0x183   : > { %1609 = vmatprep.mubr.f32.mxu0 %v33848_v3  ;;  %2887 = vmatprep.mubr.f32.mxu1 %v33848_v3 }
 0x184   : > { %v4673_v55 = vsub.f32 %v27391_v2, %v33937_v7 }
 0x186   : > { %1611 = vmatmul.mubr.f32.gmra.mrb[24].mxu0 %v26695_v9  ;;  %2889 = vmatmul.mubr.f32.gmra.mrb[24].mxu1 %v26695_v9 }
 0x187   : > { %1616 = vmatprep.mubr.f32.mxu0 %v33848_v3  ;;  %2894 = vmatprep.mubr.f32.mxu1 %v33848_v3 }
 0x18a   : > { %1618 = vmatmul.mubr.f32.gmra.mrb[26].mxu0 %v26710_v22  ;;  %2896 = vmatmul.mubr.f32.gmra.mrb[26].mxu1 %v26710_v22 }
 0x18b   : > { %1623 = vmatprep.mubr.f32.mxu0 %v33848_v3  ;;  %2901 = vmatprep.mubr.f32.mxu1 %v33848_v3 }
 0x18e   : > { %1625 = vmatmul.mubr.f32.gmra.mrb[28].mxu0 %v26727_v49  ;;  %2903 = vmatmul.mubr.f32.gmra.mrb[28].mxu1 %v26727_v49 }
 0x18f   : > { %1630 = vmatprep.mubr.f32.mxu0 %v33848_v3  ;;  %2908 = vmatprep.mubr.f32.mxu1 %v33848_v3 }
 0x192   : > { %1632 = vmatmul.mubr.f32.gmra.mrb[30].mxu0 %v26756_v48  ;;  %2910 = vmatmul.mubr.f32.gmra.mrb[30].mxu1 %v26756_v48 }
 0x193   : > { %1710 = vmatprep.mubr.f32.mxu0 %v33848_v3  ;;  %2988 = vmatprep.mubr.f32.mxu1 %v33848_v3 }
 0x196   : > { %1712 = vmatmul.mubr.f32.vlgmr.msra.gmra.mrb[0].mxu0 %v26412_v51  ;;  %2990 = vmatmul.mubr.f32.vlgmr.msra.gmra.mrb[0].mxu1 %v26412_v51 }
 0x197   : > { %22266 = vmatpush1.bf16.msra.mxu0 %v27217_v10  ;;  %22314 = vmatpush1.bf16.msra.mxu1 %v27256_v20 }
 0x198   : > { %1717 = vmatprep.mubr.f32.mxu0 %v33848_v3  ;;  %2995 = vmatprep.mubr.f32.mxu1 %v33848_v3 }
 0x199   : > { %22268 = vmatprep.subr.bf16.mxu0 %v27273_v57  ;;  %22316 = vmatprep.subr.bf16.mxu1 %v27279_v27 }
 0x19a   : > { %1719 = vmatmul.mubr.f32.gmra.mrb[2].mxu0 %v26465_v62  ;;  %2997 = vmatmul.mubr.f32.gmra.mrb[2].mxu1 %v26465_v62 }
 0x19b   : > { %1724 = vmatprep.mubr.f32.mxu0 %v33848_v3  ;;  %3002 = vmatprep.mubr.f32.mxu1 %v33848_v3 }
 0x19c   : > { %22270 = vmatpush1.bf16.msra.mxu0 %v27301_v38  ;;  %22318 = vmatpush1.bf16.msra.mxu1 %v27307_v40  ;;  %v4662_v40 = vand.u32 4294901760, %v4661_v15  ;;  %v4674_v38 = vand.u32 4294901760, %v4673_v55  ;;  %v33940_v55 = vpack.c.bf16 %v27176_v53, %v27171_v50  ;;  %v33943_v15 = vld [vmem:[#allocation25_spill] sm:$0xff] }
 0x19d   : > { %22272 = vmatprep.subr.bf16.mxu0 %v22271_v1  ;;  %22320 = vmatprep.subr.bf16.mxu1 %v22319_v16  ;;  %v27356_v16 = vsub.f32 %v27198_v58, %v33926_v18  ;;  %v27361_v1 = vsub.f32 %v27201_v0, %v33927_v34  ;;  %v27376_v58 = vsub.f32 %v27227_v29, %v33930_v33  ;;  %v33931_v18 = vand.u32 4294901760, %v27230_v12 }
 0x19e   : > { %1726 = vmatmul.mubr.f32.gmra.mrb[4].mxu0 %v26468_v6  ;;  %3004 = vmatmul.mubr.f32.gmra.mrb[4].mxu1 %v26468_v6  ;;  %v33302_v34 = vand.u32 4294901760, %v27262_v44  ;;  %v3359_v33 = vsub.f32 %v27252_v28, %v33297_v35  ;;  %v4637_v29 = vsub.f32 %v27260_v36, %v33299_v37  ;;  %v4667_v35 = vsub.f32 %v27371_v26, %v33933_v41 }
 0x19f   : > { %1731 = vmatprep.mubr.f32.mxu0 %v33848_v3  ;;  %3009 = vmatprep.mubr.f32.mxu1 %v33848_v3  ;;  %v27381_v0 = vsub.f32 %v27230_v12, %v33931_v18  ;;  %v33303_v30 = vand.u32 4294901760, %v27356_v16  ;;  %v33304_v23 = vand.u32 4294901760, %v27361_v1  ;;  %v3371_v12 = vsub.f32 %v27254_v17, %v33298_v4 }
 0x1a0   : > { %v4649_v54 = vsub.f32 %v27262_v44, %v33302_v34  ;;  %v4655_v34 = vsub.f32 %v27366_v19, %v33932_v63  ;;  %v4638_v31 = vand.u32 4294901760, %v4637_v29  ;;  %v33934_v45 = vand.u32 4294901760, %v27376_v58 }
 0x1a1   : > { %v3377_v4 = vsub.f32 %v27356_v16, %v33303_v30  ;;  %v3389_v37 = vsub.f32 %v27361_v1, %v33304_v23  ;;  %v3360_v30 = vand.u32 4294901760, %v3359_v33  ;;  %v3372_v18 = vand.u32 4294901760, %v3371_v12 }
 0x1a2   : > { %1733 = vmatmul.mubr.f32.gmra.mrb[6].mxu0 %v26476_v8  ;;  %3011 = vmatmul.mubr.f32.gmra.mrb[6].mxu1 %v26476_v8  ;;  %v4650_v23 = vand.u32 4294901760, %v4649_v54  ;;  %v3383_v63 = vsub.f32 %v27376_v58, %v33934_v45  ;;  %v33935_v32 = vand.u32 4294901760, %v27381_v0  ;;  %v4656_v29 = vand.u32 4294901760, %v4655_v34  ;;  %v33946_v34 = vld [vmem:[#allocation32_spill] sm:$0xff] }
 0x1a3   : > { %1738 = vmatprep.mubr.f32.mxu0 %v33848_v3  ;;  %3016 = vmatprep.mubr.f32.mxu1 %v33848_v3  ;;  %v3378_v33 = vand.u32 4294901760, %v3377_v4  ;;  %v3390_v12 = vand.u32 4294901760, %v3389_v37  ;;  %v4668_v54 = vand.u32 4294901760, %v4667_v35  ;;  %v33938_v4 = vld [vmem:[#allocation10_spill] sm:$0xff]  ;;  %v22325_v37 = vpack.c.bf16 %v4674_v38, %v4662_v40 }
 0x1a4   : > { %v3395_v41 = vsub.f32 %v27381_v0, %v33935_v32  ;;  %v22273_v32 = vpack.c.bf16 %v3372_v18, %v3360_v30  ;;  %v22321_v45 = vpack.c.bf16 %v4650_v23, %v4638_v31  ;;  %v3384_v24 = vand.u32 4294901760, %v3383_v63  ;;  %v33939_v31 = vld [vmem:[#allocation19_spill] sm:$0xff]  ;;  %v33944_v38 = vld [vmem:[#allocation26_spill] sm:$0xff] }
 0x1a5   : > { %v22275_v5 = vpack.c.bf16 %v3390_v12, %v3378_v33  ;;  %v22323_v7 = vpack.c.bf16 %v4668_v54, %v4656_v29  ;;  %v33945_v40 = vld [vmem:[#allocation30_spill] sm:$0xff]  ;;  %v33949_v18 = vld [vmem:[#allocation43_spill] sm:$0xff]  ;;  %v33952_v33 = vld [vmem:[#allocation53_spill] sm:$0xff] }
 0x1a6   : > { %1740 = vmatmul.mubr.f32.gmra.mrb[8].mxu0 %v26483_v25  ;;  %3018 = vmatmul.mubr.f32.gmra.mrb[8].mxu1 %v26483_v25  ;;  %v3396_v14 = vand.u32 4294901760, %v3395_v41  ;;  %v33947_v30 = vld [vmem:[#allocation34_spill] sm:$0xff]  ;;  %v33950_v63 = vld [vmem:[#allocation47_spill] sm:$0xff]  ;;  %v33953_v12 = vld [vmem:[#allocation56_spill] sm:$0xff] }
 0x1a7   : > { %1745 = vmatprep.mubr.f32.mxu0 %v33848_v3  ;;  %3023 = vmatprep.mubr.f32.mxu1 %v33848_v3  ;;  %v33948_v23 = vld [vmem:[#allocation38_spill] sm:$0xff]  ;;  %v33951_v41 = vld [vmem:[#allocation51_spill] sm:$0xff] }
 0x1a8   : > { %v22277_v35 = vpack.c.bf16 %v3396_v14, %v3384_v24  ;;  %v33941_v24 = vpack.c.bf16 %v27186_v52, %v27181_v43  ;;  %v33954_v29 = vld [vmem:[#allocation58_spill] sm:$0xff]  ;;  %v33955_v54 = vld [vmem:[#allocation59_spill] sm:$0xff]  ;;  %v33958_v14 = vpack.c.bf16 %v27361_v1, %v27356_v16 }
 0x1aa   : > { %1747 = vmatmul.mubr.f32.gmra.mrb[10].mxu0 %v26485_v47  ;;  %3025 = vmatmul.mubr.f32.gmra.mrb[10].mxu1 %v26485_v47 }
 0x1ab   : > { %1752 = vmatprep.mubr.f32.mxu0 %v33848_v3  ;;  %3030 = vmatprep.mubr.f32.mxu1 %v33848_v3 }
 0x1ae   : > { %1754 = vmatmul.mubr.f32.gmra.mrb[12].mxu0 %v26530_v11  ;;  %3032 = vmatmul.mubr.f32.gmra.mrb[12].mxu1 %v26530_v11 }
 0x1af   : > { %1759 = vmatprep.mubr.f32.mxu0 %v33848_v3  ;;  %3037 = vmatprep.mubr.f32.mxu1 %v33848_v3 }
 0x1b2   : > { %1761 = vmatmul.mubr.f32.gmra.mrb[14].mxu0 %v26532_v59  ;;  %3039 = vmatmul.mubr.f32.gmra.mrb[14].mxu1 %v26532_v59 }
 0x1b3   : > { %1766 = vmatprep.mubr.f32.mxu0 %v33848_v3  ;;  %3044 = vmatprep.mubr.f32.mxu1 %v33848_v3 }
 0x1b6   : > { %1768 = vmatmul.mubr.f32.gmra.mrb[16].mxu0 %v26586_v46  ;;  %3046 = vmatmul.mubr.f32.gmra.mrb[16].mxu1 %v26586_v46 }
 0x1b7   : > { %1773 = vmatprep.mubr.f32.mxu0 %v33848_v3  ;;  %3051 = vmatprep.mubr.f32.mxu1 %v33848_v3 }
 0x1ba   : > { %1775 = vmatmul.mubr.f32.gmra.mrb[18].mxu0 %v26646_v61  ;;  %3053 = vmatmul.mubr.f32.gmra.mrb[18].mxu1 %v26646_v61 }
 0x1bb   : > { %1780 = vmatprep.mubr.f32.mxu0 %v33848_v3  ;;  %3058 = vmatprep.mubr.f32.mxu1 %v33848_v3 }
 0x1be   : > { %1782 = vmatmul.mubr.f32.gmra.mrb[20].mxu0 %v26665_v60  ;;  %3060 = vmatmul.mubr.f32.gmra.mrb[20].mxu1 %v26665_v60 }
 0x1bf   : > { %1787 = vmatprep.mubr.f32.mxu0 %v33848_v3  ;;  %3065 = vmatprep.mubr.f32.mxu1 %v33848_v3 }
 0x1c2   : > { %1789 = vmatmul.mubr.f32.gmra.mrb[22].mxu0 %v26688_v13  ;;  %3067 = vmatmul.mubr.f32.gmra.mrb[22].mxu1 %v26688_v13 }
 0x1c3   : > { %1794 = vmatprep.mubr.f32.mxu0 %v33848_v3  ;;  %3072 = vmatprep.mubr.f32.mxu1 %v33848_v3 }
 0x1c6   : > { %1796 = vmatmul.mubr.f32.gmra.mrb[24].mxu0 %v26695_v9  ;;  %3074 = vmatmul.mubr.f32.gmra.mrb[24].mxu1 %v26695_v9 }
 0x1c7   : > { %1801 = vmatprep.mubr.f32.mxu0 %v33848_v3  ;;  %3079 = vmatprep.mubr.f32.mxu1 %v33848_v3 }
 0x1ca   : > { %1803 = vmatmul.mubr.f32.gmra.mrb[26].mxu0 %v26710_v22  ;;  %3081 = vmatmul.mubr.f32.gmra.mrb[26].mxu1 %v26710_v22 }
 0x1cb   : > { %1808 = vmatprep.mubr.f32.mxu0 %v33848_v3  ;;  %3086 = vmatprep.mubr.f32.mxu1 %v33848_v3 }
 0x1ce   : > { %1810 = vmatmul.mubr.f32.gmra.mrb[28].mxu0 %v26727_v49  ;;  %3088 = vmatmul.mubr.f32.gmra.mrb[28].mxu1 %v26727_v49 }
 0x1cf   : > { %1815 = vmatprep.mubr.f32.mxu0 %v33848_v3  ;;  %3093 = vmatprep.mubr.f32.mxu1 %v33848_v3 }
 0x1d2   : > { %1817 = vmatmul.mubr.f32.gmra.mrb[30].mxu0 %v26756_v48  ;;  %3095 = vmatmul.mubr.f32.gmra.mrb[30].mxu1 %v26756_v48 }
 0x1d3   : > { %3173 = vmatprep.mubr.f32.mxu0 %v33848_v3  ;;  %4451 = vmatprep.mubr.f32.mxu1 %v33848_v3 }
 0x1d6   : > { %3179 = vmatmul.mubr.f32.vlgmr.msra.gmra.mrb[32].mxu0 %v33938_v4  ;;  %4457 = vmatmul.mubr.f32.vlgmr.msra.gmra.mrb[32].mxu1 %v33938_v4 }
 0x1d7   : > { %22274 = vmatpush1.bf16.msra.mxu0 %v22273_v32  ;;  %22322 = vmatpush1.bf16.msra.mxu1 %v22321_v45  ;;  %v33956_v32 = vpack.c.bf16 %v27254_v17, %v27252_v28  ;;  %v33957_v45 = vpack.c.bf16 %v27262_v44, %v27260_v36 }
 0x1d8   : > { %3184 = vmatprep.mubr.f32.mxu0 %v33848_v3  ;;  %4462 = vmatprep.mubr.f32.mxu1 %v33848_v3 }
 0x1d9   : > { %22276 = vmatprep.subr.bf16.mxu0 %v22275_v5  ;;  %22324 = vmatprep.subr.bf16.mxu1 %v22323_v7  ;;  %v33942_v5 = vld [vmem:[#allocation20_spill] sm:$0xff]  ;;  %v33959_v7 = vpack.c.bf16 %v27371_v26, %v27366_v19 }
 0x1da   : > { %3190 = vmatmul.mubr.f32.gmra.mrb[34].mxu0 %v33939_v31  ;;  %4468 = vmatmul.mubr.f32.gmra.mrb[34].mxu1 %v33939_v31 }
 0x1db   : > { %3195 = vmatprep.mubr.f32.mxu0 %v33848_v3  ;;  %4473 = vmatprep.mubr.f32.mxu1 %v33848_v3 }
 0x1dc   : > { %22278 = vmatpush1.bf16.msra.mxu0 %v22277_v35  ;;  %22326 = vmatpush1.bf16.msra.mxu1 %v22325_v37  ;;  %v33960_v35 = vpack.c.bf16 %v27381_v0, %v27376_v58  ;;  %v33961_v37 = vpack.c.bf16 %v27391_v2, %v27386_v39 }
 0x1dd   : > { %22280 = vmatprep.subr.bf16.mxu0 %v33940_v55  ;;  %22328 = vmatprep.subr.bf16.mxu1 %v33941_v24  ;;  %v33962_v55 = vand.u32 4294901760, %v27171_v50  ;;  %v33963_v24 = vand.u32 4294901760, %v27176_v53  ;;  %v33968_v50 = vld [vmem:[#allocation61_spill] sm:$0xff]  ;;  %v33969_v53 = vld [vmem:[#allocation12_spill] sm:$0xff] }
 0x1de   : > { %3201 = vmatmul.mubr.f32.gmra.mrb[36].mxu0 %v33942_v5  ;;  %4479 = vmatmul.mubr.f32.gmra.mrb[36].mxu1 %v33942_v5 }
 0x1df   : > { %3206 = vmatprep.mubr.f32.mxu0 %v33848_v3  ;;  %4484 = vmatprep.mubr.f32.mxu1 %v33848_v3 }
 0x1e2   : > { %3212 = vmatmul.mubr.f32.gmra.mrb[38].mxu0 %v33943_v15  ;;  %4490 = vmatmul.mubr.f32.gmra.mrb[38].mxu1 %v33943_v15 }
 0x1e3   : > { %3217 = vmatprep.mubr.f32.mxu0 %v33848_v3  ;;  %4495 = vmatprep.mubr.f32.mxu1 %v33848_v3 }
 0x1e6   : > { %3223 = vmatmul.mubr.f32.gmra.mrb[40].mxu0 %v33944_v38  ;;  %4501 = vmatmul.mubr.f32.gmra.mrb[40].mxu1 %v33944_v38 }
 0x1e7   : > { %3228 = vmatprep.mubr.f32.mxu0 %v33848_v3  ;;  %4506 = vmatprep.mubr.f32.mxu1 %v33848_v3 }
 0x1ea   : > { %3234 = vmatmul.mubr.f32.gmra.mrb[42].mxu0 %v33945_v40  ;;  %4512 = vmatmul.mubr.f32.gmra.mrb[42].mxu1 %v33945_v40 }
 0x1eb   : > { %3239 = vmatprep.mubr.f32.mxu0 %v33848_v3  ;;  %4517 = vmatprep.mubr.f32.mxu1 %v33848_v3 }
 0x1ee   : > { %3245 = vmatmul.mubr.f32.gmra.mrb[44].mxu0 %v33946_v34  ;;  %4523 = vmatmul.mubr.f32.gmra.mrb[44].mxu1 %v33946_v34 }
 0x1ef   : > { %3250 = vmatprep.mubr.f32.mxu0 %v33848_v3  ;;  %4528 = vmatprep.mubr.f32.mxu1 %v33848_v3 }
 0x1f2   : > { %3256 = vmatmul.mubr.f32.gmra.mrb[46].mxu0 %v33947_v30  ;;  %4534 = vmatmul.mubr.f32.gmra.mrb[46].mxu1 %v33947_v30 }
 0x1f3   : > { %3261 = vmatprep.mubr.f32.mxu0 %v33848_v3  ;;  %4539 = vmatprep.mubr.f32.mxu1 %v33848_v3 }
 0x1f6   : > { %3267 = vmatmul.mubr.f32.gmra.mrb[48].mxu0 %v33948_v23  ;;  %4545 = vmatmul.mubr.f32.gmra.mrb[48].mxu1 %v33948_v23 }
 0x1f7   : > { %3272 = vmatprep.mubr.f32.mxu0 %v33848_v3  ;;  %4550 = vmatprep.mubr.f32.mxu1 %v33848_v3 }
 0x1fa   : > { %3278 = vmatmul.mubr.f32.gmra.mrb[50].mxu0 %v33949_v18  ;;  %4556 = vmatmul.mubr.f32.gmra.mrb[50].mxu1 %v33949_v18 }
 0x1fb   : > { %3283 = vmatprep.mubr.f32.mxu0 %v33848_v3  ;;  %4561 = vmatprep.mubr.f32.mxu1 %v33848_v3 }
 0x1fe   : > { %3289 = vmatmul.mubr.f32.gmra.mrb[52].mxu0 %v33950_v63  ;;  %4567 = vmatmul.mubr.f32.gmra.mrb[52].mxu1 %v33950_v63 }
 0x1ff   : > { %3294 = vmatprep.mubr.f32.mxu0 %v33848_v3  ;;  %4572 = vmatprep.mubr.f32.mxu1 %v33848_v3 }
 0x202   : > { %3300 = vmatmul.mubr.f32.gmra.mrb[54].mxu0 %v33951_v41  ;;  %4578 = vmatmul.mubr.f32.gmra.mrb[54].mxu1 %v33951_v41 }
 0x203   : > { %3305 = vmatprep.mubr.f32.mxu0 %v33848_v3  ;;  %4583 = vmatprep.mubr.f32.mxu1 %v33848_v3 }
 0x206   : > { %3311 = vmatmul.mubr.f32.gmra.mrb[56].mxu0 %v33952_v33  ;;  %4589 = vmatmul.mubr.f32.gmra.mrb[56].mxu1 %v33952_v33 }
 0x207   : > { %3316 = vmatprep.mubr.f32.mxu0 %v33848_v3  ;;  %4594 = vmatprep.mubr.f32.mxu1 %v33848_v3 }
 0x20a   : > { %3322 = vmatmul.mubr.f32.gmra.mrb[58].mxu0 %v33953_v12  ;;  %4600 = vmatmul.mubr.f32.gmra.mrb[58].mxu1 %v33953_v12 }
 0x20b   : > { %3327 = vmatprep.mubr.f32.mxu0 %v33848_v3  ;;  %4605 = vmatprep.mubr.f32.mxu1 %v33848_v3 }
 0x20e   : > { %3333 = vmatmul.mubr.f32.gmra.mrb[60].mxu0 %v33954_v29  ;;  %4611 = vmatmul.mubr.f32.gmra.mrb[60].mxu1 %v33954_v29  ;;  %v27684_v29 = vpop.permute.xlu1 %428 }
 0x20f   : > { %3338 = vmatprep.mubr.f32.mxu0 %v33848_v3  ;;  %4616 = vmatprep.mubr.f32.mxu1 %v33848_v3  ;;  %33975 = vst [vmem:[#allocation20_spill] sm:$0xff] %v27684_v29 }
 0x212   : > { %3344 = vmatmul.mubr.f32.gmra.mrb[62].mxu0 %v33955_v54  ;;  %4622 = vmatmul.mubr.f32.gmra.mrb[62].mxu1 %v33955_v54 }
 0x213   : > { %3454 = vmatprep.mubr.f32.mxu0 %v33848_v3  ;;  %4732 = vmatprep.mubr.f32.mxu1 %v33848_v3 }
 0x216   : > { %3456 = vmatmul.mubr.f32.vlgmr.msra.gmra.mrb[32].mxu0 %v26412_v51  ;;  %4734 = vmatmul.mubr.f32.vlgmr.msra.gmra.mrb[32].mxu1 %v26412_v51 }
 0x217   : > { %22282 = vmatpush1.bf16.msra.mxu0 %v33956_v32  ;;  %22330 = vmatpush1.bf16.msra.mxu1 %v33957_v45  ;;  %v22295_v32 = vpack.c.bf16 %v33963_v24, %v33962_v55  ;;  %v33964_v45 = vand.u32 4294901760, %v27181_v43  ;;  %v33970_v43 = vld [vmem:[#allocation14_spill] sm:$0xff]  ;;  %v33972_v55 = vld [vmem:[#allocation17_spill] sm:$0xff] }
 0x218   : > { %3461 = vmatprep.mubr.f32.mxu0 %v33848_v3  ;;  %4739 = vmatprep.mubr.f32.mxu1 %v33848_v3 }
 0x219   : > { %22284 = vmatprep.subr.bf16.mxu0 %v33958_v14  ;;  %22332 = vmatprep.subr.bf16.mxu1 %v33959_v7  ;;  %v33965_v14 = vand.u32 4294901760, %v27186_v52  ;;  %v27665_v52 = vpop.permute.xlu0 %418 }
 0x21a   : > { %3463 = vmatmul.mubr.f32.gmra.mrb[34].mxu0 %v26465_v62  ;;  %4741 = vmatmul.mubr.f32.gmra.mrb[34].mxu1 %v26465_v62  ;;  %33971 = vst [vmem:[#allocation10_spill] sm:$0xff] %v27665_v52 }
 0x21b   : > { %3468 = vmatprep.mubr.f32.mxu0 %v33848_v3  ;;  %4746 = vmatprep.mubr.f32.mxu1 %v33848_v3  ;;  %v22343_v7 = vpack.c.bf16 %v33965_v14, %v33964_v45 }
 0x21c   : > { %22286 = vmatpush1.bf16.msra.mxu0 %v33960_v35  ;;  %22334 = vmatpush1.bf16.msra.mxu1 %v33961_v37  ;;  %v33966_v35 = vld [vmem:[#allocation11_spill] sm:$0xff]  ;;  %v33967_v37 = vld [vmem:[#allocation60_spill] sm:$0xff] }
 0x21d   : > { %22288 = vmatprep.subr.bf16.mxu0 %v27079_v42  ;;  %22336 = vmatprep.subr.bf16.mxu1 %v27085_v21 }
 0x21e   : > { %3470 = vmatmul.mubr.f32.gmra.mrb[36].mxu0 %v26468_v6  ;;  %4748 = vmatmul.mubr.f32.gmra.mrb[36].mxu1 %v26468_v6 }
 0x21f   : > { %3475 = vmatprep.mubr.f32.mxu0 %v33848_v3  ;;  %4753 = vmatprep.mubr.f32.mxu1 %v33848_v3 }
 0x222   : > { %3477 = vmatmul.mubr.f32.gmra.mrb[38].mxu0 %v26476_v8  ;;  %4755 = vmatmul.mubr.f32.gmra.mrb[38].mxu1 %v26476_v8 }
 0x223   : > { %3482 = vmatprep.mubr.f32.mxu0 %v33848_v3  ;;  %4760 = vmatprep.mubr.f32.mxu1 %v33848_v3 }
 0x226   : > { %3484 = vmatmul.mubr.f32.gmra.mrb[40].mxu0 %v26483_v25  ;;  %4762 = vmatmul.mubr.f32.gmra.mrb[40].mxu1 %v26483_v25 }
 0x227   : > { %3489 = vmatprep.mubr.f32.mxu0 %v33848_v3  ;;  %4767 = vmatprep.mubr.f32.mxu1 %v33848_v3 }
 0x22a   : > { %3491 = vmatmul.mubr.f32.gmra.mrb[42].mxu0 %v26485_v47  ;;  %4769 = vmatmul.mubr.f32.gmra.mrb[42].mxu1 %v26485_v47 }
 0x22b   : > { %3496 = vmatprep.mubr.f32.mxu0 %v33848_v3  ;;  %4774 = vmatprep.mubr.f32.mxu1 %v33848_v3 }
 0x22e   : > { %3498 = vmatmul.mubr.f32.gmra.mrb[44].mxu0 %v26530_v11  ;;  %4776 = vmatmul.mubr.f32.gmra.mrb[44].mxu1 %v26530_v11 }
 0x22f   : > { %3503 = vmatprep.mubr.f32.mxu0 %v33848_v3  ;;  %4781 = vmatprep.mubr.f32.mxu1 %v33848_v3 }
 0x232   : > { %3505 = vmatmul.mubr.f32.gmra.mrb[46].mxu0 %v26532_v59  ;;  %4783 = vmatmul.mubr.f32.gmra.mrb[46].mxu1 %v26532_v59 }
 0x233   : > { %3510 = vmatprep.mubr.f32.mxu0 %v33848_v3  ;;  %4788 = vmatprep.mubr.f32.mxu1 %v33848_v3 }
 0x236   : > { %3512 = vmatmul.mubr.f32.gmra.mrb[48].mxu0 %v26586_v46  ;;  %4790 = vmatmul.mubr.f32.gmra.mrb[48].mxu1 %v26586_v46 }
 0x237   : > { %3517 = vmatprep.mubr.f32.mxu0 %v33848_v3  ;;  %4795 = vmatprep.mubr.f32.mxu1 %v33848_v3 }
 0x23a   : > { %3519 = vmatmul.mubr.f32.gmra.mrb[50].mxu0 %v26646_v61  ;;  %4797 = vmatmul.mubr.f32.gmra.mrb[50].mxu1 %v26646_v61 }
 0x23b   : > { %3524 = vmatprep.mubr.f32.mxu0 %v33848_v3  ;;  %4802 = vmatprep.mubr.f32.mxu1 %v33848_v3 }
 0x23e   : > { %3526 = vmatmul.mubr.f32.gmra.mrb[52].mxu0 %v26665_v60  ;;  %4804 = vmatmul.mubr.f32.gmra.mrb[52].mxu1 %v26665_v60 }
 0x23f   : > { %3531 = vmatprep.mubr.f32.mxu0 %v33848_v3  ;;  %4809 = vmatprep.mubr.f32.mxu1 %v33848_v3 }
 0x242   : > { %3533 = vmatmul.mubr.f32.gmra.mrb[54].mxu0 %v26688_v13  ;;  %4811 = vmatmul.mubr.f32.gmra.mrb[54].mxu1 %v26688_v13 }
 0x243   : > { %3538 = vmatprep.mubr.f32.mxu0 %v33848_v3  ;;  %4816 = vmatprep.mubr.f32.mxu1 %v33848_v3 }
 0x246   : > { %3540 = vmatmul.mubr.f32.gmra.mrb[56].mxu0 %v26695_v9  ;;  %4818 = vmatmul.mubr.f32.gmra.mrb[56].mxu1 %v26695_v9 }
 0x247   : > { %3545 = vmatprep.mubr.f32.mxu0 %v33848_v3  ;;  %4823 = vmatprep.mubr.f32.mxu1 %v33848_v3 }
 0x24a   : > { %3547 = vmatmul.mubr.f32.gmra.mrb[58].mxu0 %v26710_v22  ;;  %4825 = vmatmul.mubr.f32.gmra.mrb[58].mxu1 %v26710_v22 }
 0x24b   : > { %3552 = vmatprep.mubr.f32.mxu0 %v33848_v3  ;;  %4830 = vmatprep.mubr.f32.mxu1 %v33848_v3 }
 0x24e   : > { %3554 = vmatmul.mubr.f32.gmra.mrb[60].mxu0 %v26727_v49  ;;  %4832 = vmatmul.mubr.f32.gmra.mrb[60].mxu1 %v26727_v49 }
 0x24f   : > { %3559 = vmatprep.mubr.f32.mxu0 %v33848_v3  ;;  %4837 = vmatprep.mubr.f32.mxu1 %v33848_v3 }
 0x252   : > { %3561 = vmatmul.mubr.f32.gmra.mrb[62].mxu0 %v26756_v48  ;;  %4839 = vmatmul.mubr.f32.gmra.mrb[62].mxu1 %v26756_v48 }
 0x253   : > { %3647 = vmatprep.mubr.f32.mxu0 %v33848_v3  ;;  %4925 = vmatprep.mubr.f32.mxu1 %v33848_v3 }
 0x256   : > { %3650 = vmatmul.mubr.f32.vlgmr.msra.gmra.mrb[32].mxu0 %v26430_v56  ;;  %4928 = vmatmul.mubr.f32.vlgmr.msra.gmra.mrb[32].mxu1 %v26430_v56  ;;  %v27680_v56 = vpop.permute.xlu0 %423 }
 0x257   : > { %22290 = vmatpush1.bf16.msra.mxu0 %v27217_v10  ;;  %22338 = vmatpush1.bf16.msra.mxu1 %v27256_v20  ;;  %33974 = vst [vmem:[#allocation19_spill] sm:$0xff] %v27680_v56 }
 0x258   : > { %3655 = vmatprep.mubr.f32.mxu0 %v33848_v3  ;;  %4933 = vmatprep.mubr.f32.mxu1 %v33848_v3 }
 0x259   : > { %22292 = vmatprep.subr.bf16.mxu0 %v27273_v57  ;;  %22340 = vmatprep.subr.bf16.mxu1 %v27279_v27 }
 0x25a   : > { %3658 = vmatmul.mubr.f32.gmra.mrb[34].mxu0 %v33966_v35  ;;  %4936 = vmatmul.mubr.f32.gmra.mrb[34].mxu1 %v33966_v35 }
 0x25b   : > { %3663 = vmatprep.mubr.f32.mxu0 %v33848_v3  ;;  %4941 = vmatprep.mubr.f32.mxu1 %v33848_v3 }
 0x25c   : > { %22294 = vmatpush1.bf16.msra.mxu0 %v33967_v37  ;;  %22342 = vmatpush1.bf16.msra.mxu1 %v33968_v50 }
 0x25d   : > { %22296 = vmatprep.subr.bf16.mxu0 %v22295_v32  ;;  %22344 = vmatprep.subr.bf16.mxu1 %v22343_v7 }
 0x25e   : > { %3666 = vmatmul.mubr.f32.gmra.mrb[36].mxu0 %v33969_v53  ;;  %4944 = vmatmul.mubr.f32.gmra.mrb[36].mxu1 %v33969_v53  ;;  %v33973_v53 = vld [vmem:[#allocation18_spill] sm:$0xff] }
 0x25f   : > { %3671 = vmatprep.mubr.f32.mxu0 %v33848_v3  ;;  %4949 = vmatprep.mubr.f32.mxu1 %v33848_v3 }
 0x262   : > { %3674 = vmatmul.mubr.f32.gmra.mrb[38].mxu0 %v33970_v43  ;;  %4952 = vmatmul.mubr.f32.gmra.mrb[38].mxu1 %v33970_v43 }
 0x263   : > { %3679 = vmatprep.mubr.f32.mxu0 %v33848_v3  ;;  %4957 = vmatprep.mubr.f32.mxu1 %v33848_v3 }
 0x266   : > { %3682 = vmatmul.mubr.f32.gmra.mrb[40].mxu0 %v33972_v55  ;;  %4960 = vmatmul.mubr.f32.gmra.mrb[40].mxu1 %v33972_v55 }
 0x267   : > { %3687 = vmatprep.mubr.f32.mxu0 %v33848_v3  ;;  %4965 = vmatprep.mubr.f32.mxu1 %v33848_v3 }
 0x269   : > { %v1713_v24 = vpop.f32.mrb[0].mxu0  ;;  %v2991_v32 = vpop.f32.mrb[0].mxu1 }
 0x26a   : > { %v22935_v45 = vadd.f32 %v1713_v24, %v27665_v52  ;;  %v22967_v14 = vadd.f32 %v2991_v32, %v27665_v52  ;;  %v1715_v7 = vpop.f32.mrb[1].mxu0  ;;  %v2993_v43 = vpop.f32.mrb[1].mxu1  ;;  %3690 = vmatmul.mubr.f32.gmra.mrb[42].mxu0 %v33973_v53  ;;  %4968 = vmatmul.mubr.f32.gmra.mrb[42].mxu1 %v33973_v53  ;;  %v33976_v53 = vld [vmem:[#allocation23_spill] sm:$0xff] }
 0x26b   : > { %v22936_v55 = vadd.f32 %v1715_v7, %v27665_v52  ;;  %v22968_v35 = vadd.f32 %v2993_v43, %v27665_v52  ;;  %3695 = vmatprep.mubr.f32.mxu0 %v33848_v3  ;;  %4973 = vmatprep.mubr.f32.mxu1 %v33848_v3 }
 0x26c   : > { %v20993_v54 = vmax.f32 %v22935_v45, 0.0  ;;  %v20995_v24 = vmax.f32 %v22967_v14, 0.0 }
 0x26d   : > { %v20994_v32 = vmax.f32 %v22936_v55, 0.0  ;;  %v20996_v12 = vmax.f32 %v22968_v35, 0.0  ;;  %v1720_v33 = vpop.f32.mrb[2].mxu0  ;;  %v2998_v41 = vpop.f32.mrb[2].mxu1 }
 0x26e   : > { %21505 = vst [vmem:[%s27686_s6] sm:$0xff] %v20993_v54  ;;  %21507 = vst [vmem:[%s27686_s6 + $0x10] sm:$0xff] %v20995_v24  ;;  %v22937_v43 = vadd.f32 %v1720_v33, %v27680_v56  ;;  %v22969_v7 = vadd.f32 %v2998_v41, %v27680_v56  ;;  %v1722_v45 = vpop.f32.mrb[3].mxu0  ;;  %v3000_v14 = vpop.f32.mrb[3].mxu1  ;;  %3698 = vmatmul.mubr.f32.gmra.mrb[44].mxu0 %v33976_v53  ;;  %4976 = vmatmul.mubr.f32.gmra.mrb[44].mxu1 %v33976_v53  ;;  %v33977_v53 = vld [vmem:[#allocation24_spill] sm:$0xff] }
 0x26f   : > { %21506 = vst [vmem:[%s27686_s6 + $0x8] sm:$0xff] %v20994_v32  ;;  %21508 = vst [vmem:[%s27686_s6 + $0x18] sm:$0xff] %v20996_v12  ;;  %v22938_v35 = vadd.f32 %v1722_v45, %v27680_v56  ;;  %v22970_v55 = vadd.f32 %v3000_v14, %v27680_v56  ;;  %3703 = vmatprep.mubr.f32.mxu0 %v33848_v3  ;;  %4981 = vmatprep.mubr.f32.mxu1 %v33848_v3  ;;  %v34001_v56 = vand.u32 4294901760, %v27366_v19 }
 0x270   : > { %v21025_v41 = vmax.f32 %v22937_v43, 0.0  ;;  %v21027_v33 = vmax.f32 %v22969_v7, 0.0 }
 0x271   : > { %v21026_v54 = vmax.f32 %v22938_v35, 0.0  ;;  %v21028_v24 = vmax.f32 %v22970_v55, 0.0  ;;  %v1727_v52 = vpop.f32.mrb[4].mxu0  ;;  %v3005_v63 = vpop.f32.mrb[4].mxu1 }
 0x272   : > { %21537 = vst [vmem:[%s27686_s6 + $0x100] sm:$0xff] %v21025_v41  ;;  %21539 = vst [vmem:[%s27686_s6 + $0x110] sm:$0xff] %v21027_v33  ;;  %v22939_v12 = vadd.f32 %v1727_v52, %v27684_v29  ;;  %v22971_v32 = vadd.f32 %v3005_v63, %v27684_v29  ;;  %v1729_v45 = vpop.f32.mrb[5].mxu0  ;;  %v3007_v14 = vpop.f32.mrb[5].mxu1  ;;  %3706 = vmatmul.mubr.f32.gmra.mrb[46].mxu0 %v33977_v53  ;;  %4984 = vmatmul.mubr.f32.gmra.mrb[46].mxu1 %v33977_v53 }
 0x273   : > { %21538 = vst [vmem:[%s27686_s6 + $0x108] sm:$0xff] %v21026_v54  ;;  %21540 = vst [vmem:[%s27686_s6 + $0x118] sm:$0xff] %v21028_v24  ;;  %v22940_v43 = vadd.f32 %v1729_v45, %v27684_v29  ;;  %v22972_v7 = vadd.f32 %v3007_v14, %v27684_v29  ;;  %v27710_v35 = vpop.permute.xlu1 %433  ;;  %3711 = vmatprep.mubr.f32.mxu0 %v33848_v3  ;;  %4989 = vmatprep.mubr.f32.mxu1 %v33848_v3  ;;  %v33979_v29 = vld [vmem:[#allocation29_spill] sm:$0xff] }
 0x274   : > { %33978 = vst [vmem:[#allocation25_spill] sm:$0xff] %v27710_v35  ;;  %v21057_v63 = vmax.f32 %v22939_v12, 0.0  ;;  %v21059_v52 = vmax.f32 %v22971_v32, 0.0 }
 0x275   : > { %v21058_v55 = vmax.f32 %v22940_v43, 0.0  ;;  %v21060_v41 = vmax.f32 %v22972_v7, 0.0  ;;  %v1734_v33 = vpop.f32.mrb[6].mxu0  ;;  %v3012_v53 = vpop.f32.mrb[6].mxu1 }
 0x276   : > { %21569 = vst [vmem:[%s27686_s6 + $0x200] sm:$0xff] %v21057_v63  ;;  %21571 = vst [vmem:[%s27686_s6 + $0x210] sm:$0xff] %v21059_v52  ;;  %v22941_v54 = vadd.f32 %v1734_v33, %v27710_v35  ;;  %v22973_v24 = vadd.f32 %v3012_v53, %v27710_v35  ;;  %v1736_v45 = vpop.f32.mrb[7].mxu0  ;;  %v3014_v14 = vpop.f32.mrb[7].mxu1  ;;  %3714 = vmatmul.mubr.f32.gmra.mrb[48].mxu0 %v33979_v29  ;;  %4992 = vmatmul.mubr.f32.gmra.mrb[48].mxu1 %v33979_v29 }
 0x277   : > { %21570 = vst [vmem:[%s27686_s6 + $0x208] sm:$0xff] %v21058_v55  ;;  %21572 = vst [vmem:[%s27686_s6 + $0x218] sm:$0xff] %v21060_v41  ;;  %v22942_v12 = vadd.f32 %v1736_v45, %v27710_v35  ;;  %v22974_v32 = vadd.f32 %v3014_v14, %v27710_v35  ;;  %v27724_v43 = vpop.permute.xlu0 %438  ;;  %3719 = vmatprep.mubr.f32.mxu0 %v33848_v3  ;;  %4997 = vmatprep.mubr.f32.mxu1 %v33848_v3  ;;  %v33981_v35 = vld [vmem:[#allocation33_spill] sm:$0xff] }
 0x278   : > { %33980 = vst [vmem:[#allocation26_spill] sm:$0xff] %v27724_v43  ;;  %v21089_v53 = vmax.f32 %v22941_v54, 0.0  ;;  %v21091_v7 = vmax.f32 %v22973_v24, 0.0 }
 0x279   : > { %v21090_v63 = vmax.f32 %v22942_v12, 0.0  ;;  %v21092_v52 = vmax.f32 %v22974_v32, 0.0  ;;  %v1741_v33 = vpop.f32.mrb[8].mxu0  ;;  %v3019_v29 = vpop.f32.mrb[8].mxu1 }
 0x27a   : > { %21601 = vst [vmem:[%s27686_s6 + $0x300] sm:$0xff] %v21089_v53  ;;  %21603 = vst [vmem:[%s27686_s6 + $0x310] sm:$0xff] %v21091_v7  ;;  %v22943_v55 = vadd.f32 %v1741_v33, %v27724_v43  ;;  %v22975_v41 = vadd.f32 %v3019_v29, %v27724_v43  ;;  %v1743_v45 = vpop.f32.mrb[9].mxu0  ;;  %v3021_v14 = vpop.f32.mrb[9].mxu1  ;;  %3722 = vmatmul.mubr.f32.gmra.mrb[50].mxu0 %v33981_v35  ;;  %5000 = vmatmul.mubr.f32.gmra.mrb[50].mxu1 %v33981_v35 }
 0x27b   : > { %21602 = vst [vmem:[%s27686_s6 + $0x308] sm:$0xff] %v21090_v63  ;;  %21604 = vst [vmem:[%s27686_s6 + $0x318] sm:$0xff] %v21092_v52  ;;  %v22944_v54 = vadd.f32 %v1743_v45, %v27724_v43  ;;  %v22976_v24 = vadd.f32 %v3021_v14, %v27724_v43  ;;  %v27738_v12 = vpop.permute.xlu1 %443  ;;  %3727 = vmatprep.mubr.f32.mxu0 %v33848_v3  ;;  %5005 = vmatprep.mubr.f32.mxu1 %v33848_v3  ;;  %v33983_v43 = vld [vmem:[#allocation36_spill] sm:$0xff] }
 0x27c   : > { %33982 = vst [vmem:[#allocation30_spill] sm:$0xff] %v27738_v12  ;;  %v21121_v29 = vmax.f32 %v22943_v55, 0.0  ;;  %v21123_v32 = vmax.f32 %v22975_v41, 0.0 }
 0x27d   : > { %v21122_v53 = vmax.f32 %v22944_v54, 0.0  ;;  %v21124_v7 = vmax.f32 %v22976_v24, 0.0  ;;  %v1748_v33 = vpop.f32.mrb[10].mxu0  ;;  %v3026_v35 = vpop.f32.mrb[10].mxu1 }
 0x27e   : > { %21633 = vst [vmem:[%s27686_s6 + $0x400] sm:$0xff] %v21121_v29  ;;  %21635 = vst [vmem:[%s27686_s6 + $0x410] sm:$0xff] %v21123_v32  ;;  %v22945_v63 = vadd.f32 %v1748_v33, %v27738_v12  ;;  %v22977_v52 = vadd.f32 %v3026_v35, %v27738_v12  ;;  %v1750_v45 = vpop.f32.mrb[11].mxu0  ;;  %v3028_v14 = vpop.f32.mrb[11].mxu1  ;;  %3730 = vmatmul.mubr.f32.gmra.mrb[52].mxu0 %v33983_v43  ;;  %5008 = vmatmul.mubr.f32.gmra.mrb[52].mxu1 %v33983_v43 }
 0x27f   : > { %21634 = vst [vmem:[%s27686_s6 + $0x408] sm:$0xff] %v21122_v53  ;;  %21636 = vst [vmem:[%s27686_s6 + $0x418] sm:$0xff] %v21124_v7  ;;  %v22946_v55 = vadd.f32 %v1750_v45, %v27738_v12  ;;  %v22978_v41 = vadd.f32 %v3028_v14, %v27738_v12  ;;  %v27752_v54 = vpop.permute.xlu0 %448  ;;  %3735 = vmatprep.mubr.f32.mxu0 %v33848_v3  ;;  %5013 = vmatprep.mubr.f32.mxu1 %v33848_v3  ;;  %v33985_v12 = vld [vmem:[#allocation41_spill] sm:$0xff] }
 0x280   : > { %33984 = vst [vmem:[#allocation32_spill] sm:$0xff] %v27752_v54  ;;  %v21153_v35 = vmax.f32 %v22945_v63, 0.0  ;;  %v21155_v24 = vmax.f32 %v22977_v52, 0.0 }
 0x281   : > { %v21154_v29 = vmax.f32 %v22946_v55, 0.0  ;;  %v21156_v32 = vmax.f32 %v22978_v41, 0.0  ;;  %v1755_v33 = vpop.f32.mrb[12].mxu0  ;;  %v3033_v43 = vpop.f32.mrb[12].mxu1 }
 0x282   : > { %21665 = vst [vmem:[%s27686_s6 + $0x500] sm:$0xff] %v21153_v35  ;;  %21667 = vst [vmem:[%s27686_s6 + $0x510] sm:$0xff] %v21155_v24  ;;  %v22947_v53 = vadd.f32 %v1755_v33, %v27752_v54  ;;  %v22979_v7 = vadd.f32 %v3033_v43, %v27752_v54  ;;  %v1757_v45 = vpop.f32.mrb[13].mxu0  ;;  %v3035_v14 = vpop.f32.mrb[13].mxu1  ;;  %3738 = vmatmul.mubr.f32.gmra.mrb[54].mxu0 %v33985_v12  ;;  %5016 = vmatmul.mubr.f32.gmra.mrb[54].mxu1 %v33985_v12 }
 0x283   : > { %21666 = vst [vmem:[%s27686_s6 + $0x508] sm:$0xff] %v21154_v29  ;;  %21668 = vst [vmem:[%s27686_s6 + $0x518] sm:$0xff] %v21156_v32  ;;  %v22948_v63 = vadd.f32 %v1757_v45, %v27752_v54  ;;  %v22980_v52 = vadd.f32 %v3035_v14, %v27752_v54  ;;  %v27766_v55 = vpop.permute.xlu1 %453  ;;  %3743 = vmatprep.mubr.f32.mxu0 %v33848_v3  ;;  %5021 = vmatprep.mubr.f32.mxu1 %v33848_v3  ;;  %v33987_v54 = vld [vmem:[#allocation45_spill] sm:$0xff] }
 0x284   : > { %33986 = vst [vmem:[#allocation34_spill] sm:$0xff] %v27766_v55  ;;  %v21185_v43 = vmax.f32 %v22947_v53, 0.0  ;;  %v21187_v41 = vmax.f32 %v22979_v7, 0.0 }
 0x285   : > { %v21186_v35 = vmax.f32 %v22948_v63, 0.0  ;;  %v21188_v24 = vmax.f32 %v22980_v52, 0.0  ;;  %v1762_v33 = vpop.f32.mrb[14].mxu0  ;;  %v3040_v12 = vpop.f32.mrb[14].mxu1 }
 0x286   : > { %21697 = vst [vmem:[%s27686_s6 + $0x600] sm:$0xff] %v21185_v43  ;;  %21699 = vst [vmem:[%s27686_s6 + $0x610] sm:$0xff] %v21187_v41  ;;  %v22949_v29 = vadd.f32 %v1762_v33, %v27766_v55  ;;  %v22981_v32 = vadd.f32 %v3040_v12, %v27766_v55  ;;  %v1764_v45 = vpop.f32.mrb[15].mxu0  ;;  %v3042_v14 = vpop.f32.mrb[15].mxu1  ;;  %3746 = vmatmul.mubr.f32.gmra.mrb[56].mxu0 %v33987_v54  ;;  %5024 = vmatmul.mubr.f32.gmra.mrb[56].mxu1 %v33987_v54 }
 0x287   : > { %21698 = vst [vmem:[%s27686_s6 + $0x608] sm:$0xff] %v21186_v35  ;;  %21700 = vst [vmem:[%s27686_s6 + $0x618] sm:$0xff] %v21188_v24  ;;  %v22950_v53 = vadd.f32 %v1764_v45, %v27766_v55  ;;  %v22982_v7 = vadd.f32 %v3042_v14, %v27766_v55  ;;  %v27780_v63 = vpop.permute.xlu0 %458  ;;  %3751 = vmatprep.mubr.f32.mxu0 %v33848_v3  ;;  %5029 = vmatprep.mubr.f32.mxu1 %v33848_v3  ;;  %v33989_v55 = vld [vmem:[#allocation49_spill] sm:$0xff] }
 0x288   : > { %33988 = vst [vmem:[#allocation38_spill] sm:$0xff] %v27780_v63  ;;  %v21217_v12 = vmax.f32 %v22949_v29, 0.0  ;;  %v21219_v52 = vmax.f32 %v22981_v32, 0.0 }
 0x289   : > { %v21218_v43 = vmax.f32 %v22950_v53, 0.0  ;;  %v21220_v41 = vmax.f32 %v22982_v7, 0.0  ;;  %v1769_v33 = vpop.f32.mrb[16].mxu0  ;;  %v3047_v54 = vpop.f32.mrb[16].mxu1 }
 0x28a   : > { %21729 = vst [vmem:[%s27686_s6 + $0x700] sm:$0xff] %v21217_v12  ;;  %21731 = vst [vmem:[%s27686_s6 + $0x710] sm:$0xff] %v21219_v52  ;;  %v22951_v35 = vadd.f32 %v1769_v33, %v27780_v63  ;;  %v22983_v24 = vadd.f32 %v3047_v54, %v27780_v63  ;;  %v1771_v45 = vpop.f32.mrb[17].mxu0  ;;  %v3049_v14 = vpop.f32.mrb[17].mxu1  ;;  %3754 = vmatmul.mubr.f32.gmra.mrb[58].mxu0 %v33989_v55  ;;  %5032 = vmatmul.mubr.f32.gmra.mrb[58].mxu1 %v33989_v55 }
 0x28b   : > { %21730 = vst [vmem:[%s27686_s6 + $0x708] sm:$0xff] %v21218_v43  ;;  %21732 = vst [vmem:[%s27686_s6 + $0x718] sm:$0xff] %v21220_v41  ;;  %v22952_v29 = vadd.f32 %v1771_v45, %v27780_v63  ;;  %v22984_v32 = vadd.f32 %v3049_v14, %v27780_v63  ;;  %v27794_v53 = vpop.permute.xlu1 %463  ;;  %3759 = vmatprep.mubr.f32.mxu0 %v33848_v3  ;;  %5037 = vmatprep.mubr.f32.mxu1 %v33848_v3  ;;  %v33991_v63 = vld [vmem:[#allocation50_spill] sm:$0xff] }
 0x28c   : > { %33990 = vst [vmem:[#allocation60_spill] sm:$0xff] %v27794_v53  ;;  %v21249_v54 = vmax.f32 %v22951_v35, 0.0  ;;  %v21251_v7 = vmax.f32 %v22983_v24, 0.0 }
 0x28d   : > { %v21250_v12 = vmax.f32 %v22952_v29, 0.0  ;;  %v21252_v52 = vmax.f32 %v22984_v32, 0.0  ;;  %v1776_v33 = vpop.f32.mrb[18].mxu0  ;;  %v3054_v55 = vpop.f32.mrb[18].mxu1 }
 0x28e   : > { %21761 = vst [vmem:[%s27686_s6 + $0x800] sm:$0xff] %v21249_v54  ;;  %21763 = vst [vmem:[%s27686_s6 + $0x810] sm:$0xff] %v21251_v7  ;;  %v22953_v43 = vadd.f32 %v1776_v33, %v27794_v53  ;;  %v22985_v41 = vadd.f32 %v3054_v55, %v27794_v53  ;;  %v1778_v45 = vpop.f32.mrb[19].mxu0  ;;  %v3056_v14 = vpop.f32.mrb[19].mxu1  ;;  %3762 = vmatmul.mubr.f32.gmra.mrb[60].mxu0 %v33991_v63  ;;  %5040 = vmatmul.mubr.f32.gmra.mrb[60].mxu1 %v33991_v63 }
 0x28f   : > { %21762 = vst [vmem:[%s27686_s6 + $0x808] sm:$0xff] %v21250_v12  ;;  %21764 = vst [vmem:[%s27686_s6 + $0x818] sm:$0xff] %v21252_v52  ;;  %v22954_v35 = vadd.f32 %v1778_v45, %v27794_v53  ;;  %v22986_v24 = vadd.f32 %v3056_v14, %v27794_v53  ;;  %v27808_v29 = vpop.permute.xlu0 %468  ;;  %3767 = vmatprep.mubr.f32.mxu0 %v33848_v3  ;;  %5045 = vmatprep.mubr.f32.mxu1 %v33848_v3  ;;  %v33993_v53 = vld [vmem:[#allocation55_spill] sm:$0xff] }
 0x290   : > { %33992 = vst [vmem:[#allocation61_spill] sm:$0xff] %v27808_v29  ;;  %v21281_v55 = vmax.f32 %v22953_v43, 0.0  ;;  %v21283_v32 = vmax.f32 %v22985_v41, 0.0  ;;  %v33994_v43 = vand.u32 4294901760, %v27252_v28  ;;  %v33995_v41 = vand.u32 4294901760, %v27254_v17 }
 0x291   : > { %v21282_v54 = vmax.f32 %v22954_v35, 0.0  ;;  %v21284_v7 = vmax.f32 %v22986_v24, 0.0  ;;  %v1783_v33 = vpop.f32.mrb[20].mxu0  ;;  %v3061_v63 = vpop.f32.mrb[20].mxu1  ;;  %v33998_v28 = vand.u32 4294901760, %v27262_v44 }
 0x292   : > { %21793 = vst [vmem:[%s27686_s6 + $0x900] sm:$0xff] %v21281_v55  ;;  %21795 = vst [vmem:[%s27686_s6 + $0x910] sm:$0xff] %v21283_v32  ;;  %v22955_v12 = vadd.f32 %v1783_v33, %v27808_v29  ;;  %v22987_v52 = vadd.f32 %v3061_v63, %v27808_v29  ;;  %v1785_v45 = vpop.f32.mrb[21].mxu0  ;;  %v3063_v14 = vpop.f32.mrb[21].mxu1  ;;  %3770 = vmatmul.mubr.f32.gmra.mrb[62].mxu0 %v33993_v53  ;;  %5048 = vmatmul.mubr.f32.gmra.mrb[62].mxu1 %v33993_v53  ;;  %v33997_v32 = vand.u32 4294901760, %v27260_v36 }
 0x293   : > { %v22297_v35 = vpack.c.bf16 %v33995_v41, %v33994_v43  ;;  %21794 = vst [vmem:[%s27686_s6 + $0x908] sm:$0xff] %v21282_v54  ;;  %21796 = vst [vmem:[%s27686_s6 + $0x918] sm:$0xff] %v21284_v7  ;;  %v22956_v24 = vadd.f32 %v1785_v45, %v27808_v29  ;;  %v22988_v55 = vadd.f32 %v3063_v14, %v27808_v29  ;;  %v27826_v63 = vpop.permute.xlu1 %473  ;;  %3848 = vmatprep.mubr.f32.mxu0 %v33848_v3 }
 0x294   : > { %33996 = vst [vmem:[#allocation62_spill] sm:$0xff] %v27826_v63  ;;  %5126 = vmatprep.mubr.f32.mxu1 %v33848_v3  ;;  %v22345_v17 = vpack.c.bf16 %v33998_v28, %v33997_v32  ;;  %v21313_v33 = vmax.f32 %v22955_v12, 0.0  ;;  %v21315_v54 = vmax.f32 %v22987_v52, 0.0  ;;  %v33999_v14 = vand.u32 4294901760, %v27356_v16 }
 0x295   : > { %v21314_v7 = vmax.f32 %v22956_v24, 0.0  ;;  %v21316_v43 = vmax.f32 %v22988_v55, 0.0  ;;  %v1790_v45 = vpop.f32.mrb[22].mxu0  ;;  %v3068_v41 = vpop.f32.mrb[22].mxu1  ;;  %v34000_v53 = vand.u32 4294901760, %v27361_v1  ;;  %v34002_v36 = vand.u32 4294901760, %v27371_v26 }
 0x296   : > { %21825 = vst [vmem:[%s27686_s6 + $0xa00] sm:$0xff] %v21313_v33  ;;  %21827 = vst [vmem:[%s27686_s6 + $0xa10] sm:$0xff] %v21315_v54  ;;  %v22957_v44 = vadd.f32 %v1790_v45, %v27826_v63  ;;  %v22989_v12 = vadd.f32 %v3068_v41, %v27826_v63  ;;  %v1792_v52 = vpop.f32.mrb[23].mxu0  ;;  %v3070_v24 = vpop.f32.mrb[23].mxu1  ;;  %v34003_v55 = vld [vmem:[#allocation9_spill] sm:$0xff]  ;;  %v34006_v32 = vand.u32 4294901760, %v27381_v0 }
 0x297   : > { %v22299_v29 = vpack.c.bf16 %v34000_v53, %v33999_v14  ;;  %v22347_v18 = vpack.c.bf16 %v34002_v36, %v34001_v56  ;;  %3852 = vmatmul.mubr.f32.vlgmr.msra.gmra.mrb[32].mxu0 %v34003_v55  ;;  %5130 = vmatmul.mubr.f32.vlgmr.msra.gmra.mrb[32].mxu1 %v34003_v55  ;;  %21826 = vst [vmem:[%s27686_s6 + $0xa08] sm:$0xff] %v21314_v7  ;;  %21828 = vst [vmem:[%s27686_s6 + $0xa18] sm:$0xff] %v21316_v43  ;;  %v27852_v56 = vpop.permute.xlu0 %478  ;;  %v34005_v53 = vand.u32 4294901760, %v27376_v58 }
 0x298   : > { %v22958_v16 = vadd.f32 %v1792_v52, %v27826_v63  ;;  %v22990_v1 = vadd.f32 %v3070_v24, %v27826_v63  ;;  %22298 = vmatpush1.bf16.msra.mxu0 %v22297_v35  ;;  %22346 = vmatpush1.bf16.msra.mxu1 %v22345_v17  ;;  %34004 = vst [vmem:[#allocation63_spill] sm:$0xff] %v27852_v56  ;;  %v21345_v19 = vmax.f32 %v22957_v44, 0.0  ;;  %v21347_v26 = vmax.f32 %v22989_v12, 0.0 }
 0x299   : > { %3857 = vmatprep.mubr.f32.mxu0 %v33848_v3  ;;  %5135 = vmatprep.mubr.f32.mxu1 %v33848_v3  ;;  %v22301_v28 = vpack.c.bf16 %v34006_v32, %v34005_v53  ;;  %v34007_v33 = vand.u32 4294901760, %v27386_v39  ;;  %v34008_v54 = vand.u32 4294901760, %v27391_v2  ;;  %v1797_v43 = vpop.f32.mrb[24].mxu0  ;;  %v3075_v45 = vpop.f32.mrb[24].mxu1  ;;  %v34009_v39 = vld [vmem:[#allocation13_spill] sm:$0xff]  ;;  %v34011_v32 = vld [vmem:[#allocation15_spill] sm:$0xff] }
 0x29a   : > { %v21346_v17 = vmax.f32 %v22958_v16, 0.0  ;;  %v21348_v7 = vmax.f32 %v22990_v1, 0.0  ;;  %22300 = vmatprep.subr.bf16.mxu0 %v22299_v29  ;;  %22348 = vmatprep.subr.bf16.mxu1 %v22347_v18  ;;  %21857 = vst [vmem:[%s27686_s6 + $0xb00] sm:$0xff] %v21345_v19  ;;  %21859 = vst [vmem:[%s27686_s6 + $0xb10] sm:$0xff] %v21347_v26  ;;  %v22959_v58 = vadd.f32 %v1797_v43, %v27852_v56  ;;  %v1799_v41 = vpop.f32.mrb[25].mxu0  ;;  %v3077_v14 = vpop.f32.mrb[25].mxu1 }
 0x29b   : > { %v22349_v35 = vpack.c.bf16 %v34008_v54, %v34007_v33  ;;  %v22991_v0 = vadd.f32 %v3075_v45, %v27852_v56  ;;  %3861 = vmatmul.mubr.f32.gmra.mrb[34].mxu0 %v34009_v39  ;;  %5139 = vmatmul.mubr.f32.gmra.mrb[34].mxu1 %v34009_v39  ;;  %v22960_v2 = vadd.f32 %v1799_v41, %v27852_v56  ;;  %v27874_v29 = vpop.permute.xlu1 %483 }
 0x29c   : > { %21858 = vst [vmem:[%s27686_s6 + $0xb08] sm:$0xff] %v21346_v17  ;;  %21860 = vst [vmem:[%s27686_s6 + $0xb18] sm:$0xff] %v21348_v7  ;;  %v22992_v18 = vadd.f32 %v3077_v14, %v27852_v56  ;;  %3866 = vmatprep.mubr.f32.mxu0 %v33848_v3  ;;  %5144 = vmatprep.mubr.f32.mxu1 %v33848_v3  ;;  %v21377_v36 = vmax.f32 %v22959_v58, 0.0  ;;  %v34013_v14 = vld [vmem:[#allocation16_spill] sm:$0xff] }
 0x29d   : > { %34010 = vst [vmem:[#allocation64_spill] sm:$0xff] %v27874_v29  ;;  %v21379_v44 = vmax.f32 %v22991_v0, 0.0  ;;  %22302 = vmatpush1.bf16.msra.mxu0 %v22301_v28  ;;  %22350 = vmatpush1.bf16.msra.mxu1 %v22349_v35  ;;  %v21378_v12 = vmax.f32 %v22960_v2, 0.0  ;;  %v1804_v24 = vpop.f32.mrb[26].mxu0  ;;  %v3082_v16 = vpop.f32.mrb[26].mxu1 }
 0x29e   : > { %v21380_v52 = vmax.f32 %v22992_v18, 0.0  ;;  %22304 = vmatprep.subr.bf16.mxu0 %v27079_v42  ;;  %22352 = vmatprep.subr.bf16.mxu1 %v27085_v21  ;;  %21889 = vst [vmem:[%s27686_s6 + $0xc00] sm:$0xff] %v21377_v36  ;;  %v22961_v1 = vadd.f32 %v1804_v24, %v27874_v29  ;;  %v22993_v19 = vadd.f32 %v3082_v16, %v27874_v29  ;;  %v1806_v26 = vpop.f32.mrb[27].mxu0  ;;  %v3084_v53 = vpop.f32.mrb[27].mxu1 }
 0x29f   : > { %21891 = vst [vmem:[%s27686_s6 + $0xc10] sm:$0xff] %v21379_v44  ;;  %3870 = vmatmul.mubr.f32.gmra.mrb[36].mxu0 %v34011_v32  ;;  %5148 = vmatmul.mubr.f32.gmra.mrb[36].mxu1 %v34011_v32  ;;  %21890 = vst [vmem:[%s27686_s6 + $0xc08] sm:$0xff] %v21378_v12  ;;  %v22962_v42 = vadd.f32 %v1806_v26, %v27874_v29  ;;  %v22994_v21 = vadd.f32 %v3084_v53, %v27874_v29  ;;  %v27890_v28 = vpop.permute.xlu0 %488  ;;  %v27904_v36 = vpop.permute.xlu1 %493 }
 0x2a0   : > { %21892 = vst [vmem:[%s27686_s6 + $0xc18] sm:$0xff] %v21380_v52  ;;  %34012 = vst [vmem:[#allocation65_spill] sm:$0xff] %v27890_v28  ;;  %3875 = vmatprep.mubr.f32.mxu0 %v33848_v3  ;;  %5153 = vmatprep.mubr.f32.mxu1 %v33848_v3  ;;  %v21409_v33 = vmax.f32 %v22961_v1, 0.0  ;;  %v21411_v54 = vmax.f32 %v22993_v19, 0.0 }
 0x2a1   : > { %v21410_v35 = vmax.f32 %v22962_v42, 0.0  ;;  %v21412_v17 = vmax.f32 %v22994_v21, 0.0  ;;  %v1811_v7 = vpop.f32.mrb[28].mxu0  ;;  %v3089_v43 = vpop.f32.mrb[28].mxu1  ;;  %34014 = vst [vmem:[#allocation66_spill] sm:$0xff] %v27904_v36  ;;  %v34015_v21 = vld [vmem:[#allocation21_spill] sm:$0xff] }
 0x2a2   : > { %21921 = vst [vmem:[%s27686_s6 + $0xd00] sm:$0xff] %v21409_v33  ;;  %21923 = vst [vmem:[%s27686_s6 + $0xd10] sm:$0xff] %v21411_v54  ;;  %v22963_v45 = vadd.f32 %v1811_v7, %v27890_v28  ;;  %v22995_v58 = vadd.f32 %v3089_v43, %v27890_v28  ;;  %v1813_v0 = vpop.f32.mrb[29].mxu0  ;;  %v3091_v41 = vpop.f32.mrb[29].mxu1 }
 0x2a3   : > { %3879 = vmatmul.mubr.f32.gmra.mrb[38].mxu0 %v34013_v14  ;;  %5157 = vmatmul.mubr.f32.gmra.mrb[38].mxu1 %v34013_v14  ;;  %21922 = vst [vmem:[%s27686_s6 + $0xd08] sm:$0xff] %v21410_v35  ;;  %21924 = vst [vmem:[%s27686_s6 + $0xd18] sm:$0xff] %v21412_v17  ;;  %v22964_v2 = vadd.f32 %v1813_v0, %v27890_v28  ;;  %v22996_v18 = vadd.f32 %v3091_v41, %v27890_v28  ;;  %v34018_v0 = vld [vmem:[#allocation28_spill] sm:$0xff]  ;;  %v34019_v41 = vld [vmem:[#allocation31_spill] sm:$0xff] }
 0x2a4   : > { %3884 = vmatprep.mubr.f32.mxu0 %v33848_v3  ;;  %5162 = vmatprep.mubr.f32.mxu1 %v33848_v3  ;;  %v21441_v44 = vmax.f32 %v22963_v45, 0.0  ;;  %v21443_v12 = vmax.f32 %v22995_v58, 0.0  ;;  %v34016_v45 = vld [vmem:[#allocation22_spill] sm:$0xff]  ;;  %v34017_v58 = vld [vmem:[#allocation27_spill] sm:$0xff] }
 0x2a5   : > { %v21442_v52 = vmax.f32 %v22964_v2, 0.0  ;;  %v21444_v24 = vmax.f32 %v22996_v18, 0.0  ;;  %v1818_v16 = vpop.f32.mrb[30].mxu0  ;;  %v3096_v1 = vpop.f32.mrb[30].mxu1  ;;  %v34020_v2 = vld [vmem:[#allocation35_spill] sm:$0xff]  ;;  %v34021_v18 = vld [vmem:[#allocation40_spill] sm:$0xff] }
 0x2a6   : > { %21953 = vst [vmem:[%s27686_s6 + $0xe00] sm:$0xff] %v21441_v44  ;;  %21955 = vst [vmem:[%s27686_s6 + $0xe10] sm:$0xff] %v21443_v12  ;;  %v22965_v19 = vadd.f32 %v1818_v16, %v27904_v36  ;;  %v22997_v26 = vadd.f32 %v3096_v1, %v27904_v36  ;;  %v1820_v53 = vpop.f32.mrb[31].mxu0  ;;  %v3098_v42 = vpop.f32.mrb[31].mxu1  ;;  %v34022_v44 = vld [vmem:[#allocation44_spill] sm:$0xff]  ;;  %v27965_v16 = vld [vmem:[%s26321_s26 + $0x48] sm:$0xff] }
 0x2a7   : > { %3888 = vmatmul.mubr.f32.gmra.mrb[40].mxu0 %v34015_v21  ;;  %5166 = vmatmul.mubr.f32.gmra.mrb[40].mxu1 %v34015_v21  ;;  %21954 = vst [vmem:[%s27686_s6 + $0xe08] sm:$0xff] %v21442_v52  ;;  %21956 = vst [vmem:[%s27686_s6 + $0xe18] sm:$0xff] %v21444_v24  ;;  %v22966_v33 = vadd.f32 %v1820_v53, %v27904_v36  ;;  %v22998_v54 = vadd.f32 %v3098_v42, %v27904_v36  ;;  %v34023_v12 = vld [vmem:[#allocation48_spill] sm:$0xff]  ;;  %v34025_v24 = vld [vmem:[#allocation54_spill] sm:$0xff]  ;;  %v5657_v42 = vand.u32 4294901760, %v27965_v16 }
 0x2a8   : > { %3893 = vmatprep.mubr.f32.mxu0 %v33848_v3  ;;  %5171 = vmatprep.mubr.f32.mxu1 %v33848_v3  ;;  %v21473_v35 = vmax.f32 %v22965_v19, 0.0  ;;  %v21475_v17 = vmax.f32 %v22997_v26, 0.0  ;;  %v34024_v52 = vld [vmem:[#allocation52_spill] sm:$0xff]  ;;  %v34026_v1 = vld [vmem:[#allocation57_spill] sm:$0xff]  ;;  %v27973_v26 = vld [vmem:[%s26321_s26 + $0x58] sm:$0xff] }
 0x2a9   : > { %v21474_v7 = vmax.f32 %v22966_v33, 0.0  ;;  %v21476_v43 = vmax.f32 %v22998_v54, 0.0  ;;  %v27970_v19 = vld [vmem:[%s26321_s26 + $0x148] sm:$0xff]  ;;  %v27976_v53 = vld [vmem:[%s26321_s26 + $0x158] sm:$0xff]  ;;  %v6935_v54 = vand.u32 4294901760, %v27973_v26 }
 0x2aa   : > { %21985 = vst [vmem:[%s27686_s6 + $0xf00] sm:$0xff] %v21473_v35  ;;  %21987 = vst [vmem:[%s27686_s6 + $0xf10] sm:$0xff] %v21475_v17  ;;  %v5661_v33 = vand.u32 4294901760, %v27970_v19  ;;  %v6939_v35 = vand.u32 4294901760, %v27976_v53 }
 0x2ab   : > { %3897 = vmatmul.mubr.f32.gmra.mrb[42].mxu0 %v34016_v45  ;;  %5175 = vmatmul.mubr.f32.gmra.mrb[42].mxu1 %v34016_v45  ;;  %21986 = vst [vmem:[%s27686_s6 + $0xf08] sm:$0xff] %v21474_v7  ;;  %21988 = vst [vmem:[%s27686_s6 + $0xf18] sm:$0xff] %v21476_v43 }
 0x2ac   : > { %3902 = vmatprep.mubr.f32.mxu0 %v33848_v3  ;;  %5180 = vmatprep.mubr.f32.mxu1 %v33848_v3  ;;  %v27996_v17 = vpack.c.bf16 %v5661_v33, %v5657_v42  ;;  %v28076_v7 = vsub.f32 %v27976_v53, %v6939_v35  ;;  %v28094_v53 = vld [vmem:[%s26321_s26 + $0x358] sm:$0xff] }
 0x2ae   : > { %v34031_v36 = vand.u32 4294901760, %v28076_v7 }
 0x2af   : > { %3906 = vmatmul.mubr.f32.gmra.mrb[44].mxu0 %v34017_v58  ;;  %5184 = vmatmul.mubr.f32.gmra.mrb[44].mxu1 %v34017_v58  ;;  %v28120_v58 = vld [vmem:[%s26321_s26 + $0x350] sm:$0xff] }
 0x2b0   : > { %3911 = vmatprep.mubr.f32.mxu0 %v33848_v3  ;;  %5189 = vmatprep.mubr.f32.mxu1 %v33848_v3  ;;  %v7199_v14 = vsub.f32 %v28076_v7, %v34031_v36 }
 0x2b2   : > { %v7200_v63 = vand.u32 4294901760, %v7199_v14  ;;  %v34044_v14 = vand.u32 4294901760, %v28094_v53 }
 0x2b3   : > { %3915 = vmatmul.mubr.f32.gmra.mrb[46].mxu0 %v34018_v0  ;;  %5193 = vmatmul.mubr.f32.gmra.mrb[46].mxu1 %v34018_v0  ;;  %v28117_v0 = vld [vmem:[%s26321_s26 + $0x250] sm:$0xff] }
 0x2b4   : > { %3920 = vmatprep.mubr.f32.mxu0 %v33848_v3  ;;  %5198 = vmatprep.mubr.f32.mxu1 %v33848_v3 }
 0x2b7   : > { %3924 = vmatmul.mubr.f32.gmra.mrb[48].mxu0 %v34019_v41  ;;  %5202 = vmatmul.mubr.f32.gmra.mrb[48].mxu1 %v34019_v41  ;;  %v28114_v41 = vld [vmem:[%s26321_s26 + $0x340] sm:$0xff] }
 0x2b8   : > { %3929 = vmatprep.mubr.f32.mxu0 %v33848_v3  ;;  %5207 = vmatprep.mubr.f32.mxu1 %v33848_v3  ;;  %v5671_v29 = vand.u32 4294901760, %v28114_v41 }
 0x2bb   : > { %3933 = vmatmul.mubr.f32.gmra.mrb[50].mxu0 %v34020_v2  ;;  %5211 = vmatmul.mubr.f32.gmra.mrb[50].mxu1 %v34020_v2  ;;  %v28111_v2 = vld [vmem:[%s26321_s26 + $0x240] sm:$0xff] }
 0x2bc   : > { %3938 = vmatprep.mubr.f32.mxu0 %v33848_v3  ;;  %5216 = vmatprep.mubr.f32.mxu1 %v33848_v3  ;;  %v5667_v36 = vand.u32 4294901760, %v28111_v2 }
 0x2bf   : > { %3942 = vmatmul.mubr.f32.gmra.mrb[52].mxu0 %v34021_v18  ;;  %5220 = vmatmul.mubr.f32.gmra.mrb[52].mxu1 %v34021_v18 }
 0x2c0   : > { %3947 = vmatprep.mubr.f32.mxu0 %v33848_v3  ;;  %5225 = vmatprep.mubr.f32.mxu1 %v33848_v3 }
 0x2c3   : > { %3951 = vmatmul.mubr.f32.gmra.mrb[54].mxu0 %v34022_v44  ;;  %5229 = vmatmul.mubr.f32.gmra.mrb[54].mxu1 %v34022_v44 }
 0x2c4   : > { %3956 = vmatprep.mubr.f32.mxu0 %v33848_v3  ;;  %5234 = vmatprep.mubr.f32.mxu1 %v33848_v3 }
 0x2c7   : > { %3960 = vmatmul.mubr.f32.gmra.mrb[56].mxu0 %v34023_v12  ;;  %5238 = vmatmul.mubr.f32.gmra.mrb[56].mxu1 %v34023_v12 }
 0x2c8   : > { %3965 = vmatprep.mubr.f32.mxu0 %v33848_v3  ;;  %5243 = vmatprep.mubr.f32.mxu1 %v33848_v3 }
 0x2cb   : > { %3969 = vmatmul.mubr.f32.gmra.mrb[58].mxu0 %v34024_v52  ;;  %5247 = vmatmul.mubr.f32.gmra.mrb[58].mxu1 %v34024_v52 }
 0x2cc   : > { %3974 = vmatprep.mubr.f32.mxu0 %v33848_v3  ;;  %5252 = vmatprep.mubr.f32.mxu1 %v33848_v3 }
 0x2cf   : > { %3978 = vmatmul.mubr.f32.gmra.mrb[60].mxu0 %v34025_v24  ;;  %5256 = vmatmul.mubr.f32.gmra.mrb[60].mxu1 %v34025_v24 }
 0x2d0   : > { %3983 = vmatprep.mubr.f32.mxu0 %v33848_v3  ;;  %5261 = vmatprep.mubr.f32.mxu1 %v33848_v3 }
 0x2d3   : > { %3987 = vmatmul.mubr.f32.gmra.mrb[62].mxu0 %v34026_v1  ;;  %5265 = vmatmul.mubr.f32.gmra.mrb[62].mxu1 %v34026_v1 }
 0x2d4   : > { %4081 = vmatprep.mubr.f32.mxu0 %v33848_v3  ;;  %5359 = vmatprep.mubr.f32.mxu1 %v33848_v3 }
 0x2d7   : > { %4083 = vmatmul.mubr.f32.vlgmr.msra.gmra.mrb[32].mxu0 %v26412_v51  ;;  %5361 = vmatmul.mubr.f32.vlgmr.msra.gmra.mrb[32].mxu1 %v26412_v51 }
 0x2d8   : > { %22306 = vmatpush1.bf16.msra.mxu0 %v27217_v10  ;;  %22354 = vmatpush1.bf16.msra.mxu1 %v27256_v20  ;;  %v28002_v10 = vpack.c.bf16 %v6939_v35, %v6935_v54  ;;  %v280_v20 = vld [vmem:[%s26321_s26 + $0x40] sm:$0xff] }
 0x2d9   : > { %4088 = vmatprep.mubr.f32.mxu0 %v33848_v3  ;;  %5366 = vmatprep.mubr.f32.mxu1 %v33848_v3  ;;  %v5659_v43 = vand.u32 4294901760, %v280_v20 }
 0x2da   : > { %22308 = vmatprep.subr.bf16.mxu0 %v27273_v57  ;;  %22356 = vmatprep.subr.bf16.mxu1 %v27279_v27  ;;  %v312_v57 = vld [vmem:[%s26321_s26 + $0x140] sm:$0xff]  ;;  %v28061_v27 = vsub.f32 %v27965_v16, %v5657_v42  ;;  %v314_v42 = vld [vmem:[%s26321_s26 + $0x150] sm:$0xff] }
 0x2db   : > { %4090 = vmatmul.mubr.f32.gmra.mrb[34].mxu0 %v26465_v62  ;;  %5368 = vmatmul.mubr.f32.gmra.mrb[34].mxu1 %v26465_v62  ;;  %v5663_v16 = vand.u32 4294901760, %v312_v57  ;;  %v6941_v44 = vand.u32 4294901760, %v314_v42  ;;  %v28136_v28 = vsub.f32 %v280_v20, %v5659_v43 }
 0x2dc   : > { %4095 = vmatprep.mubr.f32.mxu0 %v33848_v3  ;;  %5373 = vmatprep.mubr.f32.mxu1 %v33848_v3  ;;  %v34028_v45 = vand.u32 4294901760, %v28061_v27 }
 0x2dd   : > { %22310 = vmatpush1.bf16.msra.mxu0 %v33967_v37  ;;  %22358 = vmatpush1.bf16.msra.mxu1 %v33968_v50  ;;  %v28066_v37 = vsub.f32 %v27970_v19, %v5661_v33  ;;  %v28071_v50 = vsub.f32 %v27973_v26, %v6935_v54  ;;  %v282_v19 = vld [vmem:[%s26321_s26 + $0x50] sm:$0xff]  ;;  %v28085_v33 = vld [vmem:[%s26321_s26 + $0x248] sm:$0xff]  ;;  %v28091_v54 = vld [vmem:[%s26321_s26 + $0x258] sm:$0xff]  ;;  %v28104_v12 = vpack.c.bf16 %v5663_v16, %v5659_v43 }
 0x2de   : > { %22360 = vmatprep.subr.bf16.mxu0 %v27996_v17  ;;  %22408 = vmatprep.subr.bf16.mxu1 %v28002_v10  ;;  %v28088_v26 = vld [vmem:[%s26321_s26 + $0x348] sm:$0xff]  ;;  %v6937_v35 = vand.u32 4294901760, %v282_v19  ;;  %v5909_v21 = vsub.f32 %v28061_v27, %v34028_v45  ;;  %v28138_v32 = vsub.f32 %v312_v57, %v5663_v16  ;;  %v34033_v39 = vand.u32 4294901760, %v28085_v33 }
 0x2df   : > { %4097 = vmatmul.mubr.f32.gmra.mrb[36].mxu0 %v26468_v6  ;;  %5375 = vmatmul.mubr.f32.gmra.mrb[36].mxu1 %v26468_v6  ;;  %34027 = vst [vmem:[#allocation67_spill] sm:$0xff] %v28104_v12  ;;  %v34029_v1 = vand.u32 4294901760, %v28066_v37  ;;  %v34030_v24 = vand.u32 4294901760, %v28071_v50  ;;  %v34034_v20 = vand.u32 4294901760, %v28088_v26  ;;  %v34036_v43 = vand.u32 4294901760, %v28091_v54 }
 0x2e0   : > { %4102 = vmatprep.mubr.f32.mxu0 %v33848_v3  ;;  %5380 = vmatprep.mubr.f32.mxu1 %v33848_v3  ;;  %v28140_v45 = vsub.f32 %v282_v19, %v6937_v35  ;;  %v34037_v16 = vand.u32 4294901760, %v28094_v53 }
 0x2e1   : > { %v5921_v18 = vsub.f32 %v28066_v37, %v34029_v1  ;;  %v7187_v52 = vsub.f32 %v28071_v50, %v34030_v24  ;;  %v28144_v1 = vpack.c.bf16 %v6941_v44, %v6937_v35  ;;  %v28146_v24 = vsub.f32 %v314_v42, %v6941_v44 }
 0x2e2   : > { %v28154_v57 = vpack.c.bf16 %v34034_v20, %v34033_v39  ;;  %v28160_v19 = vpack.c.bf16 %v34037_v16, %v34036_v43  ;;  %v6945_v35 = vand.u32 4294901760, %v28117_v0  ;;  %v6949_v44 = vand.u32 4294901760, %v28120_v58 }
 0x2e3   : > { %4104 = vmatmul.mubr.f32.gmra.mrb[38].mxu0 %v26476_v8  ;;  %5382 = vmatmul.mubr.f32.gmra.mrb[38].mxu1 %v26476_v8  ;;  %34032 = vst [vmem:[#allocation68_spill] sm:$0xff] %v28144_v1  ;;  %v5910_v42 = vand.u32 4294901760, %v5909_v21  ;;  %v5922_v56 = vand.u32 4294901760, %v5921_v18  ;;  %v7188_v55 = vand.u32 4294901760, %v7187_v52  ;;  %v28178_v21 = vpack.c.bf16 %v5671_v29, %v5667_v36 }
 0x2e4   : > { %4109 = vmatprep.mubr.f32.mxu0 %v33848_v3  ;;  %5387 = vmatprep.mubr.f32.mxu1 %v33848_v3  ;;  %34035 = vst [vmem:[#allocation69_spill] sm:$0xff] %v28154_v57  ;;  %34038 = vst [vmem:[#allocation70_spill] sm:$0xff] %v28160_v19  ;;  %v28180_v18 = vpack.c.bf16 %v6949_v44, %v6945_v35 }
 0x2e5   : > { %34039 = vst [vmem:[#allocation71_spill] sm:$0xff] %v28178_v21  ;;  %v22367_v52 = vpack.c.bf16 %v5922_v56, %v5910_v42  ;;  %v22415_v16 = vpack.c.bf16 %v7200_v63, %v7188_v55  ;;  %v34041_v63 = vmov %v34033_v39  ;;  %v34042_v56 = vmov %v34034_v20 }
 0x2e6   : > { %34040 = vst [vmem:[#allocation72_spill] sm:$0xff] %v28180_v18  ;;  %v28217_v55 = vsub.f32 %v28085_v33, %v34041_v63  ;;  %v28222_v42 = vsub.f32 %v28088_v26, %v34042_v56  ;;  %v28235_v20 = vsub.f32 %v28111_v2, %v5667_v36  ;;  %v28238_v33 = vsub.f32 %v28114_v41, %v5671_v29 }
 0x2e7   : > { %4111 = vmatmul.mubr.f32.gmra.mrb[40].mxu0 %v26483_v25  ;;  %5389 = vmatmul.mubr.f32.gmra.mrb[40].mxu1 %v26483_v25  ;;  %v28241_v63 = vsub.f32 %v28117_v0, %v6945_v35  ;;  %v28244_v26 = vsub.f32 %v28120_v58, %v6949_v44  ;;  %v33397_v0 = vand.u32 4294901760, %v28136_v28  ;;  %v33398_v41 = vand.u32 4294901760, %v28138_v32 }
 0x2e8   : > { %4116 = vmatprep.mubr.f32.mxu0 %v33848_v3  ;;  %5394 = vmatprep.mubr.f32.mxu1 %v33848_v3  ;;  %v33400_v36 = vand.u32 4294901760, %v28146_v24  ;;  %v33401_v35 = vand.u32 4294901760, %v28217_v55  ;;  %v33402_v44 = vand.u32 4294901760, %v28222_v42 }
 0x2e9   : > { %v5927_v58 = vsub.f32 %v28138_v32, %v33398_v41 }
 0x2ea   : > { %v7205_v2 = vsub.f32 %v28146_v24, %v33400_v36  ;;  %v5933_v41 = vsub.f32 %v28217_v55, %v33401_v35 }
 0x2eb   : > { %4118 = vmatmul.mubr.f32.gmra.mrb[42].mxu0 %v26485_v47  ;;  %5396 = vmatmul.mubr.f32.gmra.mrb[42].mxu1 %v26485_v47  ;;  %v5928_v56 = vand.u32 4294901760, %v5927_v58 }
 0x2ec   : > { %4123 = vmatprep.mubr.f32.mxu0 %v33848_v3  ;;  %5401 = vmatprep.mubr.f32.mxu1 %v33848_v3 }
 0x2ef   : > { %4125 = vmatmul.mubr.f32.gmra.mrb[44].mxu0 %v26530_v11  ;;  %5403 = vmatmul.mubr.f32.gmra.mrb[44].mxu1 %v26530_v11 }
 0x2f0   : > { %4130 = vmatprep.mubr.f32.mxu0 %v33848_v3  ;;  %5408 = vmatprep.mubr.f32.mxu1 %v33848_v3 }
 0x2f3   : > { %4132 = vmatmul.mubr.f32.gmra.mrb[46].mxu0 %v26532_v59  ;;  %5410 = vmatmul.mubr.f32.gmra.mrb[46].mxu1 %v26532_v59 }
 0x2f4   : > { %4137 = vmatprep.mubr.f32.mxu0 %v33848_v3  ;;  %5415 = vmatprep.mubr.f32.mxu1 %v33848_v3 }
 0x2f7   : > { %4139 = vmatmul.mubr.f32.gmra.mrb[48].mxu0 %v26586_v46  ;;  %5417 = vmatmul.mubr.f32.gmra.mrb[48].mxu1 %v26586_v46 }
 0x2f8   : > { %4144 = vmatprep.mubr.f32.mxu0 %v33848_v3  ;;  %5422 = vmatprep.mubr.f32.mxu1 %v33848_v3 }
 0x2fb   : > { %4146 = vmatmul.mubr.f32.gmra.mrb[50].mxu0 %v26646_v61  ;;  %5424 = vmatmul.mubr.f32.gmra.mrb[50].mxu1 %v26646_v61 }
 0x2fc   : > { %4151 = vmatprep.mubr.f32.mxu0 %v33848_v3  ;;  %5429 = vmatprep.mubr.f32.mxu1 %v33848_v3 }
 0x2ff   : > { %4153 = vmatmul.mubr.f32.gmra.mrb[52].mxu0 %v26665_v60  ;;  %5431 = vmatmul.mubr.f32.gmra.mrb[52].mxu1 %v26665_v60 }
 0x300   : > { %4158 = vmatprep.mubr.f32.mxu0 %v33848_v3  ;;  %5436 = vmatprep.mubr.f32.mxu1 %v33848_v3 }
 0x303   : > { %4160 = vmatmul.mubr.f32.gmra.mrb[54].mxu0 %v26688_v13  ;;  %5438 = vmatmul.mubr.f32.gmra.mrb[54].mxu1 %v26688_v13 }
 0x304   : > { %4165 = vmatprep.mubr.f32.mxu0 %v33848_v3  ;;  %5443 = vmatprep.mubr.f32.mxu1 %v33848_v3 }
 0x307   : > { %4167 = vmatmul.mubr.f32.gmra.mrb[56].mxu0 %v26695_v9  ;;  %5445 = vmatmul.mubr.f32.gmra.mrb[56].mxu1 %v26695_v9 }
 0x308   : > { %4172 = vmatprep.mubr.f32.mxu0 %v33848_v3  ;;  %5450 = vmatprep.mubr.f32.mxu1 %v33848_v3 }
 0x30b   : > { %4174 = vmatmul.mubr.f32.gmra.mrb[58].mxu0 %v26710_v22  ;;  %5452 = vmatmul.mubr.f32.gmra.mrb[58].mxu1 %v26710_v22 }
 0x30c   : > { %4179 = vmatprep.mubr.f32.mxu0 %v33848_v3  ;;  %5457 = vmatprep.mubr.f32.mxu1 %v33848_v3 }
 0x30f   : > { %4181 = vmatmul.mubr.f32.gmra.mrb[60].mxu0 %v26727_v49  ;;  %5459 = vmatmul.mubr.f32.gmra.mrb[60].mxu1 %v26727_v49 }
 0x310   : > { %4186 = vmatprep.mubr.f32.mxu0 %v33848_v3  ;;  %5464 = vmatprep.mubr.f32.mxu1 %v33848_v3 }
 0x313   : > { %4188 = vmatmul.mubr.f32.gmra.mrb[62].mxu0 %v26756_v48  ;;  %5466 = vmatmul.mubr.f32.gmra.mrb[62].mxu1 %v26756_v48 }
 0x314   : > { %4266 = vmatprep.mubr.f32.mxu0 %v33848_v3  ;;  %5544 = vmatprep.mubr.f32.mxu1 %v33848_v3 }
 0x317   : > { %4268 = vmatmul.mubr.f32.vlgmr.msra.gmra.mrb[32].mxu0 %v26412_v51  ;;  %5546 = vmatmul.mubr.f32.vlgmr.msra.gmra.mrb[32].mxu1 %v26412_v51 }
 0x318   : > { %22362 = vmatpush1.bf16.msra.mxu0 %v28104_v12  ;;  %22410 = vmatpush1.bf16.msra.mxu1 %v28144_v1  ;;  %v34049_v1 = vand.u32 4294901760, %v28244_v26 }
 0x319   : > { %4273 = vmatprep.mubr.f32.mxu0 %v33848_v3  ;;  %5551 = vmatprep.mubr.f32.mxu1 %v33848_v3 }
 0x31a   : > { %22364 = vmatprep.subr.bf16.mxu0 %v28154_v57  ;;  %22412 = vmatprep.subr.bf16.mxu1 %v28160_v19  ;;  %v34048_v19 = vand.u32 4294901760, %v28241_v63  ;;  %v7229_v12 = vsub.f32 %v28244_v26, %v34049_v1 }
 0x31b   : > { %4275 = vmatmul.mubr.f32.gmra.mrb[34].mxu0 %v26465_v62  ;;  %5553 = vmatmul.mubr.f32.gmra.mrb[34].mxu1 %v26465_v62 }
 0x31c   : > { %4280 = vmatprep.mubr.f32.mxu0 %v33848_v3  ;;  %5558 = vmatprep.mubr.f32.mxu1 %v33848_v3  ;;  %v7217_v57 = vsub.f32 %v28241_v63, %v34048_v19 }
 0x31d   : > { %22366 = vmatpush1.bf16.msra.mxu0 %v28178_v21  ;;  %22414 = vmatpush1.bf16.msra.mxu1 %v28180_v18  ;;  %v34046_v18 = vand.u32 4294901760, %v28235_v20  ;;  %v34047_v21 = vand.u32 4294901760, %v28238_v33 }
 0x31e   : > { %22368 = vmatprep.subr.bf16.mxu0 %v22367_v52  ;;  %22416 = vmatprep.subr.bf16.mxu1 %v22415_v16  ;;  %v34043_v52 = vmov %v34036_v43  ;;  %v28232_v43 = vsub.f32 %v28094_v53, %v34044_v14  ;;  %v33399_v53 = vand.u32 4294901760, %v28140_v45 }
 0x31f   : > { %4282 = vmatmul.mubr.f32.gmra.mrb[36].mxu0 %v26468_v6  ;;  %5560 = vmatmul.mubr.f32.gmra.mrb[36].mxu1 %v26468_v6  ;;  %v28227_v16 = vsub.f32 %v28091_v54, %v34043_v52  ;;  %v5915_v52 = vsub.f32 %v28136_v28, %v33397_v0 }
 0x320   : > { %4287 = vmatprep.mubr.f32.mxu0 %v33848_v3  ;;  %5565 = vmatprep.mubr.f32.mxu1 %v33848_v3  ;;  %v7193_v29 = vsub.f32 %v28140_v45, %v33399_v53  ;;  %v5945_v53 = vsub.f32 %v28222_v42, %v33402_v44  ;;  %v34045_v54 = vand.u32 4294901760, %v28232_v43  ;;  %v7206_v44 = vand.u32 4294901760, %v7205_v2 }
 0x321   : > { %v33405_v14 = vand.u32 4294901760, %v28227_v16  ;;  %v5916_v35 = vand.u32 4294901760, %v5915_v52  ;;  %v5934_v52 = vand.u32 4294901760, %v5933_v41 }
 0x322   : > { %v7223_v0 = vsub.f32 %v28232_v43, %v34045_v54  ;;  %v7194_v39 = vand.u32 4294901760, %v7193_v29  ;;  %v5951_v54 = vsub.f32 %v28238_v33, %v34047_v21  ;;  %v5946_v58 = vand.u32 4294901760, %v5945_v53  ;;  %v34057_v53 = vld [vmem:[#allocation58_spill] sm:$0xff] }
 0x323   : > { %4289 = vmatmul.mubr.f32.gmra.mrb[38].mxu0 %v26476_v8  ;;  %5567 = vmatmul.mubr.f32.gmra.mrb[38].mxu1 %v26476_v8  ;;  %v7211_v36 = vsub.f32 %v28227_v16, %v33405_v14  ;;  %v5939_v14 = vsub.f32 %v28235_v20, %v34046_v18  ;;  %v22369_v21 = vpack.c.bf16 %v5928_v56, %v5916_v35 }
 0x324   : > { %4294 = vmatprep.mubr.f32.mxu0 %v33848_v3  ;;  %5572 = vmatprep.mubr.f32.mxu1 %v33848_v3  ;;  %v7224_v2 = vand.u32 4294901760, %v7223_v0  ;;  %v22417_v18 = vpack.c.bf16 %v7206_v44, %v7194_v39  ;;  %v5952_v19 = vand.u32 4294901760, %v5951_v54  ;;  %v34056_v39 = vld [vmem:[#allocation56_spill] sm:$0xff]  ;;  %v34059_v35 = vpack.c.bf16 %v28138_v32, %v28136_v28 }
 0x325   : > { %v7212_v29 = vand.u32 4294901760, %v7211_v36  ;;  %v34058_v36 = vld [vmem:[#allocation59_spill] sm:$0xff]  ;;  %v34060_v44 = vpack.c.bf16 %v28146_v24, %v28140_v45  ;;  %v34062_v56 = vpack.c.bf16 %v28232_v43, %v28227_v16  ;;  %v34063_v54 = vpack.c.bf16 %v28238_v33, %v28235_v20 }
 0x327   : > { %4296 = vmatmul.mubr.f32.gmra.mrb[40].mxu0 %v26483_v25  ;;  %5574 = vmatmul.mubr.f32.gmra.mrb[40].mxu1 %v26483_v25  ;;  %v22419_v1 = vpack.c.bf16 %v7224_v2, %v7212_v29  ;;  %v34066_v29 = vld [vmem:[#allocation39_spill] sm:$0xff]  ;;  %v34067_v2 = vld [vmem:[#allocation42_spill] sm:$0xff] }
 0x328   : > { %4301 = vmatprep.mubr.f32.mxu0 %v33848_v3  ;;  %5579 = vmatprep.mubr.f32.mxu1 %v33848_v3 }
 0x32b   : > { %4303 = vmatmul.mubr.f32.gmra.mrb[42].mxu0 %v26485_v47  ;;  %5581 = vmatmul.mubr.f32.gmra.mrb[42].mxu1 %v26485_v47 }
 0x32c   : > { %4308 = vmatprep.mubr.f32.mxu0 %v33848_v3  ;;  %5586 = vmatprep.mubr.f32.mxu1 %v33848_v3 }
 0x32f   : > { %4310 = vmatmul.mubr.f32.gmra.mrb[44].mxu0 %v26530_v11  ;;  %5588 = vmatmul.mubr.f32.gmra.mrb[44].mxu1 %v26530_v11 }
 0x330   : > { %4315 = vmatprep.mubr.f32.mxu0 %v33848_v3  ;;  %5593 = vmatprep.mubr.f32.mxu1 %v33848_v3 }
 0x333   : > { %4317 = vmatmul.mubr.f32.gmra.mrb[46].mxu0 %v26532_v59  ;;  %5595 = vmatmul.mubr.f32.gmra.mrb[46].mxu1 %v26532_v59 }
 0x334   : > { %4322 = vmatprep.mubr.f32.mxu0 %v33848_v3  ;;  %5600 = vmatprep.mubr.f32.mxu1 %v33848_v3 }
 0x337   : > { %4324 = vmatmul.mubr.f32.gmra.mrb[48].mxu0 %v26586_v46  ;;  %5602 = vmatmul.mubr.f32.gmra.mrb[48].mxu1 %v26586_v46 }
 0x338   : > { %4329 = vmatprep.mubr.f32.mxu0 %v33848_v3  ;;  %5607 = vmatprep.mubr.f32.mxu1 %v33848_v3 }
 0x33b   : > { %4331 = vmatmul.mubr.f32.gmra.mrb[50].mxu0 %v26646_v61  ;;  %5609 = vmatmul.mubr.f32.gmra.mrb[50].mxu1 %v26646_v61 }
 0x33c   : > { %4336 = vmatprep.mubr.f32.mxu0 %v33848_v3  ;;  %5614 = vmatprep.mubr.f32.mxu1 %v33848_v3 }
 0x33f   : > { %4338 = vmatmul.mubr.f32.gmra.mrb[52].mxu0 %v26665_v60  ;;  %5616 = vmatmul.mubr.f32.gmra.mrb[52].mxu1 %v26665_v60 }
 0x340   : > { %4343 = vmatprep.mubr.f32.mxu0 %v33848_v3  ;;  %5621 = vmatprep.mubr.f32.mxu1 %v33848_v3 }
 0x343   : > { %4345 = vmatmul.mubr.f32.gmra.mrb[54].mxu0 %v26688_v13  ;;  %5623 = vmatmul.mubr.f32.gmra.mrb[54].mxu1 %v26688_v13  ;;  %v22371_v13 = vpack.c.bf16 %v5946_v58, %v5934_v52  ;;  %v34064_v52 = vpack.c.bf16 %v28244_v26, %v28241_v63  ;;  %v34065_v58 = vld [vmem:[#allocation37_spill] sm:$0xff] }
 0x344   : > { %4350 = vmatprep.mubr.f32.mxu0 %v33848_v3  ;;  %5628 = vmatprep.mubr.f32.mxu1 %v33848_v3 }
 0x347   : > { %4352 = vmatmul.mubr.f32.gmra.mrb[56].mxu0 %v26695_v9  ;;  %5630 = vmatmul.mubr.f32.gmra.mrb[56].mxu1 %v26695_v9  ;;  %v7230_v9 = vand.u32 4294901760, %v7229_v12  ;;  %v34050_v12 = vpack.c.bf16 %v28066_v37, %v28061_v27 }
 0x348   : > { %4357 = vmatprep.mubr.f32.mxu0 %v33848_v3  ;;  %5635 = vmatprep.mubr.f32.mxu1 %v33848_v3 }
 0x34b   : > { %4359 = vmatmul.mubr.f32.gmra.mrb[58].mxu0 %v26710_v22  ;;  %5637 = vmatmul.mubr.f32.gmra.mrb[58].mxu1 %v26710_v22  ;;  %v7218_v22 = vand.u32 4294901760, %v7217_v57  ;;  %v34055_v57 = vld [vmem:[#allocation53_spill] sm:$0xff] }
 0x34c   : > { %4364 = vmatprep.mubr.f32.mxu0 %v33848_v3  ;;  %5642 = vmatprep.mubr.f32.mxu1 %v33848_v3 }
 0x34d   : > { %v22421_v41 = vpack.c.bf16 %v7230_v9, %v7218_v22  ;;  %v34052_v9 = vld [vmem:[#allocation43_spill] sm:$0xff] }
 0x34e   : > { %v34054_v22 = vld [vmem:[#allocation51_spill] sm:$0xff] }
 0x34f   : > { %4366 = vmatmul.mubr.f32.gmra.mrb[60].mxu0 %v26727_v49  ;;  %5644 = vmatmul.mubr.f32.gmra.mrb[60].mxu1 %v26727_v49  ;;  %v5940_v49 = vand.u32 4294901760, %v5939_v14  ;;  %v34061_v14 = vpack.c.bf16 %v28222_v42, %v28217_v55 }
 0x350   : > { %4371 = vmatprep.mubr.f32.mxu0 %v33848_v3  ;;  %5649 = vmatprep.mubr.f32.mxu1 %v33848_v3 }
 0x351   : > { %v22373_v0 = vpack.c.bf16 %v5952_v19, %v5940_v49  ;;  %v34051_v49 = vpack.c.bf16 %v28076_v7, %v28071_v50  ;;  %v34070_v19 = vld [vmem:[#allocation67_spill] sm:$0xff] }
 0x353   : > { %4373 = vmatmul.mubr.f32.gmra.mrb[62].mxu0 %v26756_v48  ;;  %5651 = vmatmul.mubr.f32.gmra.mrb[62].mxu1 %v26756_v48 }
 0x354   : > { %5729 = vmatprep.mubr.f32.mxu0 %v33848_v3  ;;  %7007 = vmatprep.mubr.f32.mxu1 %v33848_v3 }
 0x357   : > { %5735 = vmatmul.mubr.f32.vlgmr.msra.gmra.mrb[64].mxu0 %v33938_v4  ;;  %7013 = vmatmul.mubr.f32.vlgmr.msra.gmra.mrb[64].mxu1 %v33938_v4 }
 0x358   : > { %22370 = vmatpush1.bf16.msra.mxu0 %v22369_v21  ;;  %22418 = vmatpush1.bf16.msra.mxu1 %v22417_v18  ;;  %v34068_v21 = vld [vmem:[#allocation46_spill] sm:$0xff]  ;;  %v34069_v18 = vld [vmem:[#allocation8_spill] sm:$0xff] }
 0x359   : > { %5740 = vmatprep.mubr.f32.mxu0 %v33848_v3  ;;  %7018 = vmatprep.mubr.f32.mxu1 %v33848_v3 }
 0x35a   : > { %22372 = vmatprep.subr.bf16.mxu0 %v22371_v13  ;;  %22420 = vmatprep.subr.bf16.mxu1 %v22419_v1  ;;  %v34053_v13 = vld [vmem:[#allocation47_spill] sm:$0xff]  ;;  %v34071_v1 = vld [vmem:[#allocation68_spill] sm:$0xff] }
 0x35b   : > { %5746 = vmatmul.mubr.f32.gmra.mrb[66].mxu0 %v33939_v31  ;;  %7024 = vmatmul.mubr.f32.gmra.mrb[66].mxu1 %v33939_v31 }
 0x35c   : > { %5751 = vmatprep.mubr.f32.mxu0 %v33848_v3  ;;  %7029 = vmatprep.mubr.f32.mxu1 %v33848_v3 }
 0x35d   : > { %22374 = vmatpush1.bf16.msra.mxu0 %v22373_v0  ;;  %22422 = vmatpush1.bf16.msra.mxu1 %v22421_v41  ;;  %v34072_v0 = vld [vmem:[#allocation69_spill] sm:$0xff]  ;;  %v34073_v41 = vld [vmem:[#allocation70_spill] sm:$0xff] }
 0x35e   : > { %22376 = vmatprep.subr.bf16.mxu0 %v34050_v12  ;;  %22424 = vmatprep.subr.bf16.mxu1 %v34051_v49  ;;  %v34074_v12 = vand.u32 4294901760, %v28061_v27  ;;  %v34075_v49 = vand.u32 4294901760, %v28066_v37  ;;  %v34081_v27 = vld [vmem:[#allocation12_spill] sm:$0xff]  ;;  %v34082_v37 = vld [vmem:[#allocation14_spill] sm:$0xff] }
 0x35f   : > { %5757 = vmatmul.mubr.f32.gmra.mrb[68].mxu0 %v33942_v5  ;;  %7035 = vmatmul.mubr.f32.gmra.mrb[68].mxu1 %v33942_v5 }
 0x360   : > { %5762 = vmatprep.mubr.f32.mxu0 %v33848_v3  ;;  %7040 = vmatprep.mubr.f32.mxu1 %v33848_v3 }
 0x363   : > { %5768 = vmatmul.mubr.f32.gmra.mrb[70].mxu0 %v33943_v15  ;;  %7046 = vmatmul.mubr.f32.gmra.mrb[70].mxu1 %v33943_v15 }
 0x364   : > { %5773 = vmatprep.mubr.f32.mxu0 %v33848_v3  ;;  %7051 = vmatprep.mubr.f32.mxu1 %v33848_v3 }
 0x367   : > { %5779 = vmatmul.mubr.f32.gmra.mrb[72].mxu0 %v33944_v38  ;;  %7057 = vmatmul.mubr.f32.gmra.mrb[72].mxu1 %v33944_v38 }
 0x368   : > { %5784 = vmatprep.mubr.f32.mxu0 %v33848_v3  ;;  %7062 = vmatprep.mubr.f32.mxu1 %v33848_v3 }
 0x36b   : > { %5790 = vmatmul.mubr.f32.gmra.mrb[74].mxu0 %v33945_v40  ;;  %7068 = vmatmul.mubr.f32.gmra.mrb[74].mxu1 %v33945_v40 }
 0x36c   : > { %5795 = vmatprep.mubr.f32.mxu0 %v33848_v3  ;;  %7073 = vmatprep.mubr.f32.mxu1 %v33848_v3 }
 0x36f   : > { %5801 = vmatmul.mubr.f32.gmra.mrb[76].mxu0 %v33946_v34  ;;  %7079 = vmatmul.mubr.f32.gmra.mrb[76].mxu1 %v33946_v34 }
 0x370   : > { %5806 = vmatprep.mubr.f32.mxu0 %v33848_v3  ;;  %7084 = vmatprep.mubr.f32.mxu1 %v33848_v3 }
 0x373   : > { %5812 = vmatmul.mubr.f32.gmra.mrb[78].mxu0 %v33947_v30  ;;  %7090 = vmatmul.mubr.f32.gmra.mrb[78].mxu1 %v33947_v30 }
 0x374   : > { %5817 = vmatprep.mubr.f32.mxu0 %v33848_v3  ;;  %7095 = vmatprep.mubr.f32.mxu1 %v33848_v3 }
 0x377   : > { %5823 = vmatmul.mubr.f32.gmra.mrb[80].mxu0 %v33948_v23  ;;  %7101 = vmatmul.mubr.f32.gmra.mrb[80].mxu1 %v33948_v23 }
 0x378   : > { %5828 = vmatprep.mubr.f32.mxu0 %v33848_v3  ;;  %7106 = vmatprep.mubr.f32.mxu1 %v33848_v3 }
 0x37b   : > { %5834 = vmatmul.mubr.f32.gmra.mrb[82].mxu0 %v34052_v9  ;;  %7112 = vmatmul.mubr.f32.gmra.mrb[82].mxu1 %v34052_v9 }
 0x37c   : > { %5839 = vmatprep.mubr.f32.mxu0 %v33848_v3  ;;  %7117 = vmatprep.mubr.f32.mxu1 %v33848_v3 }
 0x37f   : > { %5845 = vmatmul.mubr.f32.gmra.mrb[84].mxu0 %v34053_v13  ;;  %7123 = vmatmul.mubr.f32.gmra.mrb[84].mxu1 %v34053_v13 }
 0x380   : > { %5850 = vmatprep.mubr.f32.mxu0 %v33848_v3  ;;  %7128 = vmatprep.mubr.f32.mxu1 %v33848_v3 }
 0x383   : > { %5856 = vmatmul.mubr.f32.gmra.mrb[86].mxu0 %v34054_v22  ;;  %7134 = vmatmul.mubr.f32.gmra.mrb[86].mxu1 %v34054_v22 }
 0x384   : > { %5861 = vmatprep.mubr.f32.mxu0 %v33848_v3  ;;  %7139 = vmatprep.mubr.f32.mxu1 %v33848_v3 }
 0x387   : > { %5867 = vmatmul.mubr.f32.gmra.mrb[88].mxu0 %v34055_v57  ;;  %7145 = vmatmul.mubr.f32.gmra.mrb[88].mxu1 %v34055_v57  ;;  %v34086_v57 = vld [vmem:[#allocation19_spill] sm:$0xff] }
 0x388   : > { %5872 = vmatprep.mubr.f32.mxu0 %v33848_v3  ;;  %7150 = vmatprep.mubr.f32.mxu1 %v33848_v3 }
 0x38b   : > { %5878 = vmatmul.mubr.f32.gmra.mrb[90].mxu0 %v34056_v39  ;;  %7156 = vmatmul.mubr.f32.gmra.mrb[90].mxu1 %v34056_v39 }
 0x38c   : > { %5883 = vmatprep.mubr.f32.mxu0 %v33848_v3  ;;  %7161 = vmatprep.mubr.f32.mxu1 %v33848_v3 }
 0x38f   : > { %5889 = vmatmul.mubr.f32.gmra.mrb[92].mxu0 %v34057_v53  ;;  %7167 = vmatmul.mubr.f32.gmra.mrb[92].mxu1 %v34057_v53 }
 0x390   : > { %5894 = vmatprep.mubr.f32.mxu0 %v33848_v3  ;;  %7172 = vmatprep.mubr.f32.mxu1 %v33848_v3 }
 0x393   : > { %5900 = vmatmul.mubr.f32.gmra.mrb[94].mxu0 %v34058_v36  ;;  %7178 = vmatmul.mubr.f32.gmra.mrb[94].mxu1 %v34058_v36 }
 0x394   : > { %6010 = vmatprep.mubr.f32.mxu0 %v33848_v3  ;;  %7288 = vmatprep.mubr.f32.mxu1 %v33848_v3 }
 0x397   : > { %6012 = vmatmul.mubr.f32.vlgmr.msra.gmra.mrb[64].mxu0 %v26412_v51  ;;  %7290 = vmatmul.mubr.f32.vlgmr.msra.gmra.mrb[64].mxu1 %v26412_v51 }
 0x398   : > { %22378 = vmatpush1.bf16.msra.mxu0 %v34059_v35  ;;  %22426 = vmatpush1.bf16.msra.mxu1 %v34060_v44  ;;  %v22391_v35 = vpack.c.bf16 %v34075_v49, %v34074_v12  ;;  %v34076_v44 = vand.u32 4294901760, %v28071_v50  ;;  %v34083_v50 = vld [vmem:[#allocation17_spill] sm:$0xff]  ;;  %v34084_v49 = vld [vmem:[#allocation10_spill] sm:$0xff] }
 0x399   : > { %6017 = vmatprep.mubr.f32.mxu0 %v33848_v3  ;;  %7295 = vmatprep.mubr.f32.mxu1 %v33848_v3 }
 0x39a   : > { %22380 = vmatprep.subr.bf16.mxu0 %v34061_v14  ;;  %22428 = vmatprep.subr.bf16.mxu1 %v34062_v56  ;;  %v34077_v14 = vand.u32 4294901760, %v28076_v7 }
 0x39b   : > { %6019 = vmatmul.mubr.f32.gmra.mrb[66].mxu0 %v26465_v62  ;;  %7297 = vmatmul.mubr.f32.gmra.mrb[66].mxu1 %v26465_v62 }
 0x39c   : > { %6024 = vmatprep.mubr.f32.mxu0 %v33848_v3  ;;  %7302 = vmatprep.mubr.f32.mxu1 %v33848_v3  ;;  %v22439_v56 = vpack.c.bf16 %v34077_v14, %v34076_v44 }
 0x39d   : > { %22382 = vmatpush1.bf16.msra.mxu0 %v34063_v54  ;;  %22430 = vmatpush1.bf16.msra.mxu1 %v34064_v52  ;;  %v34078_v54 = vld [vmem:[#allocation11_spill] sm:$0xff] }
 0x39e   : > { %22384 = vmatprep.subr.bf16.mxu0 %v27996_v17  ;;  %22432 = vmatprep.subr.bf16.mxu1 %v28002_v10  ;;  %v34079_v52 = vld [vmem:[#allocation71_spill] sm:$0xff] }
 0x39f   : > { %6026 = vmatmul.mubr.f32.gmra.mrb[68].mxu0 %v26468_v6  ;;  %7304 = vmatmul.mubr.f32.gmra.mrb[68].mxu1 %v26468_v6 }
 0x3a0   : > { %6031 = vmatprep.mubr.f32.mxu0 %v33848_v3  ;;  %7309 = vmatprep.mubr.f32.mxu1 %v33848_v3 }
 0x3a3   : > { %6033 = vmatmul.mubr.f32.gmra.mrb[70].mxu0 %v26476_v8  ;;  %7311 = vmatmul.mubr.f32.gmra.mrb[70].mxu1 %v26476_v8 }
 0x3a4   : > { %6038 = vmatprep.mubr.f32.mxu0 %v33848_v3  ;;  %7316 = vmatprep.mubr.f32.mxu1 %v33848_v3 }
 0x3a7   : > { %6040 = vmatmul.mubr.f32.gmra.mrb[72].mxu0 %v26483_v25  ;;  %7318 = vmatmul.mubr.f32.gmra.mrb[72].mxu1 %v26483_v25 }
 0x3a8   : > { %6045 = vmatprep.mubr.f32.mxu0 %v33848_v3  ;;  %7323 = vmatprep.mubr.f32.mxu1 %v33848_v3 }
 0x3ab   : > { %6047 = vmatmul.mubr.f32.gmra.mrb[74].mxu0 %v26485_v47  ;;  %7325 = vmatmul.mubr.f32.gmra.mrb[74].mxu1 %v26485_v47 }
 0x3ac   : > { %6052 = vmatprep.mubr.f32.mxu0 %v33848_v3  ;;  %7330 = vmatprep.mubr.f32.mxu1 %v33848_v3 }
 0x3af   : > { %6054 = vmatmul.mubr.f32.gmra.mrb[76].mxu0 %v26530_v11  ;;  %7332 = vmatmul.mubr.f32.gmra.mrb[76].mxu1 %v26530_v11 }
 0x3b0   : > { %6059 = vmatprep.mubr.f32.mxu0 %v33848_v3  ;;  %7337 = vmatprep.mubr.f32.mxu1 %v33848_v3 }
 0x3b3   : > { %6061 = vmatmul.mubr.f32.gmra.mrb[78].mxu0 %v26532_v59  ;;  %7339 = vmatmul.mubr.f32.gmra.mrb[78].mxu1 %v26532_v59 }
 0x3b4   : > { %6066 = vmatprep.mubr.f32.mxu0 %v33848_v3  ;;  %7344 = vmatprep.mubr.f32.mxu1 %v33848_v3 }
 0x3b7   : > { %6068 = vmatmul.mubr.f32.gmra.mrb[80].mxu0 %v26586_v46  ;;  %7346 = vmatmul.mubr.f32.gmra.mrb[80].mxu1 %v26586_v46 }
 0x3b8   : > { %6073 = vmatprep.mubr.f32.mxu0 %v33848_v3  ;;  %7351 = vmatprep.mubr.f32.mxu1 %v33848_v3 }
 0x3bb   : > { %6075 = vmatmul.mubr.f32.gmra.mrb[82].mxu0 %v26646_v61  ;;  %7353 = vmatmul.mubr.f32.gmra.mrb[82].mxu1 %v26646_v61 }
 0x3bc   : > { %6080 = vmatprep.mubr.f32.mxu0 %v33848_v3  ;;  %7358 = vmatprep.mubr.f32.mxu1 %v33848_v3 }
 0x3bf   : > { %6082 = vmatmul.mubr.f32.gmra.mrb[84].mxu0 %v26665_v60  ;;  %7360 = vmatmul.mubr.f32.gmra.mrb[84].mxu1 %v26665_v60 }
 0x3c0   : > { %6087 = vmatprep.mubr.f32.mxu0 %v33848_v3  ;;  %7365 = vmatprep.mubr.f32.mxu1 %v33848_v3 }
 0x3c3   : > { %6089 = vmatmul.mubr.f32.gmra.mrb[86].mxu0 %v34065_v58  ;;  %7367 = vmatmul.mubr.f32.gmra.mrb[86].mxu1 %v34065_v58 }
 0x3c4   : > { %6094 = vmatprep.mubr.f32.mxu0 %v33848_v3  ;;  %7372 = vmatprep.mubr.f32.mxu1 %v33848_v3 }
 0x3c7   : > { %6096 = vmatmul.mubr.f32.gmra.mrb[88].mxu0 %v34066_v29  ;;  %7374 = vmatmul.mubr.f32.gmra.mrb[88].mxu1 %v34066_v29 }
 0x3c8   : > { %6101 = vmatprep.mubr.f32.mxu0 %v33848_v3  ;;  %7379 = vmatprep.mubr.f32.mxu1 %v33848_v3 }
 0x3cb   : > { %6103 = vmatmul.mubr.f32.gmra.mrb[90].mxu0 %v34067_v2  ;;  %7381 = vmatmul.mubr.f32.gmra.mrb[90].mxu1 %v34067_v2 }
 0x3cc   : > { %6108 = vmatprep.mubr.f32.mxu0 %v33848_v3  ;;  %7386 = vmatprep.mubr.f32.mxu1 %v33848_v3 }
 0x3cf   : > { %6110 = vmatmul.mubr.f32.gmra.mrb[92].mxu0 %v34068_v21  ;;  %7388 = vmatmul.mubr.f32.gmra.mrb[92].mxu1 %v34068_v21 }
 0x3d0   : > { %6115 = vmatprep.mubr.f32.mxu0 %v33848_v3  ;;  %7393 = vmatprep.mubr.f32.mxu1 %v33848_v3 }
 0x3d3   : > { %6117 = vmatmul.mubr.f32.gmra.mrb[94].mxu0 %v26756_v48  ;;  %7395 = vmatmul.mubr.f32.gmra.mrb[94].mxu1 %v26756_v48 }
 0x3d4   : > { %6203 = vmatprep.mubr.f32.mxu0 %v33848_v3  ;;  %7481 = vmatprep.mubr.f32.mxu1 %v33848_v3 }
 0x3d7   : > { %6206 = vmatmul.mubr.f32.vlgmr.msra.gmra.mrb[64].mxu0 %v34069_v18  ;;  %7484 = vmatmul.mubr.f32.vlgmr.msra.gmra.mrb[64].mxu1 %v34069_v18  ;;  %v34080_v18 = vld [vmem:[#allocation72_spill] sm:$0xff] }
 0x3d8   : > { %22386 = vmatpush1.bf16.msra.mxu0 %v34070_v19  ;;  %22434 = vmatpush1.bf16.msra.mxu1 %v34071_v1 }
 0x3d9   : > { %6211 = vmatprep.mubr.f32.mxu0 %v33848_v3  ;;  %7489 = vmatprep.mubr.f32.mxu1 %v33848_v3 }
 0x3da   : > { %22388 = vmatprep.subr.bf16.mxu0 %v34072_v0  ;;  %22436 = vmatprep.subr.bf16.mxu1 %v34073_v41 }
 0x3db   : > { %6214 = vmatmul.mubr.f32.gmra.mrb[66].mxu0 %v34078_v54  ;;  %7492 = vmatmul.mubr.f32.gmra.mrb[66].mxu1 %v34078_v54 }
 0x3dc   : > { %6219 = vmatprep.mubr.f32.mxu0 %v33848_v3  ;;  %7497 = vmatprep.mubr.f32.mxu1 %v33848_v3 }
 0x3dd   : > { %22390 = vmatpush1.bf16.msra.mxu0 %v34079_v52  ;;  %22438 = vmatpush1.bf16.msra.mxu1 %v34080_v18 }
 0x3de   : > { %22392 = vmatprep.subr.bf16.mxu0 %v22391_v35  ;;  %22440 = vmatprep.subr.bf16.mxu1 %v22439_v56 }
 0x3df   : > { %6222 = vmatmul.mubr.f32.gmra.mrb[68].mxu0 %v34081_v27  ;;  %7500 = vmatmul.mubr.f32.gmra.mrb[68].mxu1 %v34081_v27 }
 0x3e0   : > { %6227 = vmatprep.mubr.f32.mxu0 %v33848_v3  ;;  %7505 = vmatprep.mubr.f32.mxu1 %v33848_v3 }
 0x3e3   : > { %6230 = vmatmul.mubr.f32.gmra.mrb[70].mxu0 %v34082_v37  ;;  %7508 = vmatmul.mubr.f32.gmra.mrb[70].mxu1 %v34082_v37  ;;  %v34085_v37 = vld [vmem:[#allocation18_spill] sm:$0xff] }
 0x3e4   : > { %6235 = vmatprep.mubr.f32.mxu0 %v33848_v3  ;;  %7513 = vmatprep.mubr.f32.mxu1 %v33848_v3 }
 0x3e7   : > { %6238 = vmatmul.mubr.f32.gmra.mrb[72].mxu0 %v34083_v50  ;;  %7516 = vmatmul.mubr.f32.gmra.mrb[72].mxu1 %v34083_v50 }
 0x3e8   : > { %6243 = vmatprep.mubr.f32.mxu0 %v33848_v3  ;;  %7521 = vmatprep.mubr.f32.mxu1 %v33848_v3 }
 0x3ea   : > { %v4269_v7 = vpop.f32.mrb[32].mxu0  ;;  %v5547_v12 = vpop.f32.mrb[32].mxu1 }
 0x3eb   : > { %v22999_v35 = vadd.f32 %v4269_v7, %v34084_v49  ;;  %v23031_v44 = vadd.f32 %v5547_v12, %v34084_v49  ;;  %v4271_v14 = vpop.f32.mrb[33].mxu0  ;;  %v5549_v56 = vpop.f32.mrb[33].mxu1  ;;  %6246 = vmatmul.mubr.f32.gmra.mrb[74].mxu0 %v34085_v37  ;;  %7524 = vmatmul.mubr.f32.gmra.mrb[74].mxu1 %v34085_v37 }
 0x3ec   : > { %v23000_v50 = vadd.f32 %v4271_v14, %v34084_v49  ;;  %v23032_v27 = vadd.f32 %v5549_v56, %v34084_v49  ;;  %6251 = vmatprep.mubr.f32.mxu0 %v33848_v3  ;;  %7529 = vmatprep.mubr.f32.mxu1 %v33848_v3  ;;  %v34087_v49 = vld [vmem:[#allocation23_spill] sm:$0xff] }
 0x3ed   : > { %v20997_v7 = vmax.f32 %v22999_v35, 0.0  ;;  %v20999_v54 = vmax.f32 %v23031_v44, 0.0 }
 0x3ee   : > { %v20998_v12 = vmax.f32 %v23000_v50, 0.0  ;;  %v21000_v36 = vmax.f32 %v23032_v27, 0.0  ;;  %v4276_v53 = vpop.f32.mrb[34].mxu0  ;;  %v5554_v39 = vpop.f32.mrb[34].mxu1 }
 0x3ef   : > { %21509 = vst [vmem:[%s27686_s6 + $0x20] sm:$0xff] %v20997_v7  ;;  %21511 = vst [vmem:[%s27686_s6 + $0x30] sm:$0xff] %v20999_v54  ;;  %v23001_v37 = vadd.f32 %v4276_v53, %v34086_v57  ;;  %v23033_v14 = vadd.f32 %v5554_v39, %v34086_v57  ;;  %v4278_v22 = vpop.f32.mrb[35].mxu0  ;;  %v5556_v56 = vpop.f32.mrb[35].mxu1  ;;  %6254 = vmatmul.mubr.f32.gmra.mrb[76].mxu0 %v34087_v49  ;;  %7532 = vmatmul.mubr.f32.gmra.mrb[76].mxu1 %v34087_v49 }
 0x3f0   : > { %21510 = vst [vmem:[%s27686_s6 + $0x28] sm:$0xff] %v20998_v12  ;;  %21512 = vst [vmem:[%s27686_s6 + $0x38] sm:$0xff] %v21000_v36  ;;  %v23002_v27 = vadd.f32 %v4278_v22, %v34086_v57  ;;  %v23034_v50 = vadd.f32 %v5556_v56, %v34086_v57  ;;  %6259 = vmatprep.mubr.f32.mxu0 %v33848_v3  ;;  %7537 = vmatprep.mubr.f32.mxu1 %v33848_v3  ;;  %v34088_v12 = vld [vmem:[#allocation20_spill] sm:$0xff] }
 0x3f1   : > { %v21029_v39 = vmax.f32 %v23001_v37, 0.0  ;;  %v21031_v53 = vmax.f32 %v23033_v14, 0.0  ;;  %v34089_v57 = vld [vmem:[#allocation24_spill] sm:$0xff] }
 0x3f2   : > { %v21030_v54 = vmax.f32 %v23002_v27, 0.0  ;;  %v21032_v35 = vmax.f32 %v23034_v50, 0.0  ;;  %v4283_v44 = vpop.f32.mrb[36].mxu0  ;;  %v5561_v7 = vpop.f32.mrb[36].mxu1 }
 0x3f3   : > { %21541 = vst [vmem:[%s27686_s6 + $0x120] sm:$0xff] %v21029_v39  ;;  %21543 = vst [vmem:[%s27686_s6 + $0x130] sm:$0xff] %v21031_v53  ;;  %v23003_v36 = vadd.f32 %v4283_v44, %v34088_v12  ;;  %v23035_v22 = vadd.f32 %v5561_v7, %v34088_v12  ;;  %v4285_v49 = vpop.f32.mrb[37].mxu0  ;;  %v5563_v56 = vpop.f32.mrb[37].mxu1  ;;  %6262 = vmatmul.mubr.f32.gmra.mrb[78].mxu0 %v34089_v57  ;;  %7540 = vmatmul.mubr.f32.gmra.mrb[78].mxu1 %v34089_v57 }
 0x3f4   : > { %21542 = vst [vmem:[%s27686_s6 + $0x128] sm:$0xff] %v21030_v54  ;;  %21544 = vst [vmem:[%s27686_s6 + $0x138] sm:$0xff] %v21032_v35  ;;  %v23004_v37 = vadd.f32 %v4285_v49, %v34088_v12  ;;  %v23036_v14 = vadd.f32 %v5563_v56, %v34088_v12  ;;  %6267 = vmatprep.mubr.f32.mxu0 %v33848_v3  ;;  %7545 = vmatprep.mubr.f32.mxu1 %v33848_v3  ;;  %v34090_v54 = vld [vmem:[#allocation25_spill] sm:$0xff] }
 0x3f5   : > { %v21061_v27 = vmax.f32 %v23003_v36, 0.0  ;;  %v21063_v50 = vmax.f32 %v23035_v22, 0.0  ;;  %v34091_v12 = vld [vmem:[#allocation29_spill] sm:$0xff] }
 0x3f6   : > { %v21062_v39 = vmax.f32 %v23004_v37, 0.0  ;;  %v21064_v53 = vmax.f32 %v23036_v14, 0.0  ;;  %v4290_v44 = vpop.f32.mrb[38].mxu0  ;;  %v5568_v7 = vpop.f32.mrb[38].mxu1 }
 0x3f7   : > { %21573 = vst [vmem:[%s27686_s6 + $0x220] sm:$0xff] %v21061_v27  ;;  %21575 = vst [vmem:[%s27686_s6 + $0x230] sm:$0xff] %v21063_v50  ;;  %v23005_v35 = vadd.f32 %v4290_v44, %v34090_v54  ;;  %v23037_v49 = vadd.f32 %v5568_v7, %v34090_v54  ;;  %v4292_v57 = vpop.f32.mrb[39].mxu0  ;;  %v5570_v56 = vpop.f32.mrb[39].mxu1  ;;  %6270 = vmatmul.mubr.f32.gmra.mrb[80].mxu0 %v34091_v12  ;;  %7548 = vmatmul.mubr.f32.gmra.mrb[80].mxu1 %v34091_v12 }
 0x3f8   : > { %21574 = vst [vmem:[%s27686_s6 + $0x228] sm:$0xff] %v21062_v39  ;;  %21576 = vst [vmem:[%s27686_s6 + $0x238] sm:$0xff] %v21064_v53  ;;  %v23006_v36 = vadd.f32 %v4292_v57, %v34090_v54  ;;  %v23038_v22 = vadd.f32 %v5570_v56, %v34090_v54  ;;  %6275 = vmatprep.mubr.f32.mxu0 %v33848_v3  ;;  %7553 = vmatprep.mubr.f32.mxu1 %v33848_v3  ;;  %v34092_v39 = vld [vmem:[#allocation26_spill] sm:$0xff]  ;;  %v34093_v54 = vld [vmem:[#allocation33_spill] sm:$0xff] }
 0x3f9   : > { %v21093_v37 = vmax.f32 %v23005_v35, 0.0  ;;  %v21095_v14 = vmax.f32 %v23037_v49, 0.0 }
 0x3fa   : > { %v21094_v27 = vmax.f32 %v23006_v36, 0.0  ;;  %v21096_v50 = vmax.f32 %v23038_v22, 0.0  ;;  %v4297_v44 = vpop.f32.mrb[40].mxu0  ;;  %v5575_v7 = vpop.f32.mrb[40].mxu1 }
 0x3fb   : > { %21605 = vst [vmem:[%s27686_s6 + $0x320] sm:$0xff] %v21093_v37  ;;  %21607 = vst [vmem:[%s27686_s6 + $0x330] sm:$0xff] %v21095_v14  ;;  %v23007_v53 = vadd.f32 %v4297_v44, %v34092_v39  ;;  %v23039_v57 = vadd.f32 %v5575_v7, %v34092_v39  ;;  %v4299_v12 = vpop.f32.mrb[41].mxu0  ;;  %v5577_v56 = vpop.f32.mrb[41].mxu1  ;;  %6278 = vmatmul.mubr.f32.gmra.mrb[82].mxu0 %v34093_v54  ;;  %7556 = vmatmul.mubr.f32.gmra.mrb[82].mxu1 %v34093_v54 }
 0x3fc   : > { %21606 = vst [vmem:[%s27686_s6 + $0x328] sm:$0xff] %v21094_v27  ;;  %21608 = vst [vmem:[%s27686_s6 + $0x338] sm:$0xff] %v21096_v50  ;;  %v23008_v35 = vadd.f32 %v4299_v12, %v34092_v39  ;;  %v23040_v49 = vadd.f32 %v5577_v56, %v34092_v39  ;;  %6283 = vmatprep.mubr.f32.mxu0 %v33848_v3  ;;  %7561 = vmatprep.mubr.f32.mxu1 %v33848_v3  ;;  %v34094_v27 = vld [vmem:[#allocation30_spill] sm:$0xff]  ;;  %v34095_v39 = vld [vmem:[#allocation36_spill] sm:$0xff] }
 0x3fd   : > { %v21125_v36 = vmax.f32 %v23007_v53, 0.0  ;;  %v21127_v22 = vmax.f32 %v23039_v57, 0.0 }
 0x3fe   : > { %v21126_v37 = vmax.f32 %v23008_v35, 0.0  ;;  %v21128_v14 = vmax.f32 %v23040_v49, 0.0  ;;  %v4304_v44 = vpop.f32.mrb[42].mxu0  ;;  %v5582_v7 = vpop.f32.mrb[42].mxu1 }
 0x3ff   : > { %21637 = vst [vmem:[%s27686_s6 + $0x420] sm:$0xff] %v21125_v36  ;;  %21639 = vst [vmem:[%s27686_s6 + $0x430] sm:$0xff] %v21127_v22  ;;  %v23009_v50 = vadd.f32 %v4304_v44, %v34094_v27  ;;  %v23041_v12 = vadd.f32 %v5582_v7, %v34094_v27  ;;  %v4306_v54 = vpop.f32.mrb[43].mxu0  ;;  %v5584_v56 = vpop.f32.mrb[43].mxu1  ;;  %6286 = vmatmul.mubr.f32.gmra.mrb[84].mxu0 %v34095_v39  ;;  %7564 = vmatmul.mubr.f32.gmra.mrb[84].mxu1 %v34095_v39 }
 0x400   : > { %21638 = vst [vmem:[%s27686_s6 + $0x428] sm:$0xff] %v21126_v37  ;;  %21640 = vst [vmem:[%s27686_s6 + $0x438] sm:$0xff] %v21128_v14  ;;  %v23010_v53 = vadd.f32 %v4306_v54, %v34094_v27  ;;  %v23042_v57 = vadd.f32 %v5584_v56, %v34094_v27  ;;  %6291 = vmatprep.mubr.f32.mxu0 %v33848_v3  ;;  %7569 = vmatprep.mubr.f32.mxu1 %v33848_v3  ;;  %v34096_v37 = vld [vmem:[#allocation32_spill] sm:$0xff]  ;;  %v34097_v27 = vld [vmem:[#allocation41_spill] sm:$0xff] }
 0x401   : > { %v21157_v35 = vmax.f32 %v23009_v50, 0.0  ;;  %v21159_v49 = vmax.f32 %v23041_v12, 0.0 }
 0x402   : > { %v21158_v36 = vmax.f32 %v23010_v53, 0.0  ;;  %v21160_v22 = vmax.f32 %v23042_v57, 0.0  ;;  %v4311_v44 = vpop.f32.mrb[44].mxu0  ;;  %v5589_v7 = vpop.f32.mrb[44].mxu1 }
 0x403   : > { %21669 = vst [vmem:[%s27686_s6 + $0x520] sm:$0xff] %v21157_v35  ;;  %21671 = vst [vmem:[%s27686_s6 + $0x530] sm:$0xff] %v21159_v49  ;;  %v23011_v14 = vadd.f32 %v4311_v44, %v34096_v37  ;;  %v23043_v54 = vadd.f32 %v5589_v7, %v34096_v37  ;;  %v4313_v39 = vpop.f32.mrb[45].mxu0  ;;  %v5591_v56 = vpop.f32.mrb[45].mxu1  ;;  %6294 = vmatmul.mubr.f32.gmra.mrb[86].mxu0 %v34097_v27  ;;  %7572 = vmatmul.mubr.f32.gmra.mrb[86].mxu1 %v34097_v27 }
 0x404   : > { %21670 = vst [vmem:[%s27686_s6 + $0x528] sm:$0xff] %v21158_v36  ;;  %21672 = vst [vmem:[%s27686_s6 + $0x538] sm:$0xff] %v21160_v22  ;;  %v23012_v50 = vadd.f32 %v4313_v39, %v34096_v37  ;;  %v23044_v12 = vadd.f32 %v5591_v56, %v34096_v37  ;;  %6299 = vmatprep.mubr.f32.mxu0 %v33848_v3  ;;  %7577 = vmatprep.mubr.f32.mxu1 %v33848_v3  ;;  %v34098_v36 = vld [vmem:[#allocation34_spill] sm:$0xff]  ;;  %v34099_v37 = vld [vmem:[#allocation45_spill] sm:$0xff] }
 0x405   : > { %v21189_v53 = vmax.f32 %v23011_v14, 0.0  ;;  %v21191_v57 = vmax.f32 %v23043_v54, 0.0 }
 0x406   : > { %v21190_v35 = vmax.f32 %v23012_v50, 0.0  ;;  %v21192_v49 = vmax.f32 %v23044_v12, 0.0  ;;  %v4318_v44 = vpop.f32.mrb[46].mxu0  ;;  %v5596_v7 = vpop.f32.mrb[46].mxu1 }
 0x407   : > { %21701 = vst [vmem:[%s27686_s6 + $0x620] sm:$0xff] %v21189_v53  ;;  %21703 = vst [vmem:[%s27686_s6 + $0x630] sm:$0xff] %v21191_v57  ;;  %v23013_v22 = vadd.f32 %v4318_v44, %v34098_v36  ;;  %v23045_v39 = vadd.f32 %v5596_v7, %v34098_v36  ;;  %v4320_v27 = vpop.f32.mrb[47].mxu0  ;;  %v5598_v56 = vpop.f32.mrb[47].mxu1  ;;  %6302 = vmatmul.mubr.f32.gmra.mrb[88].mxu0 %v34099_v37  ;;  %7580 = vmatmul.mubr.f32.gmra.mrb[88].mxu1 %v34099_v37 }
 0x408   : > { %21702 = vst [vmem:[%s27686_s6 + $0x628] sm:$0xff] %v21190_v35  ;;  %21704 = vst [vmem:[%s27686_s6 + $0x638] sm:$0xff] %v21192_v49  ;;  %v23014_v14 = vadd.f32 %v4320_v27, %v34098_v36  ;;  %v23046_v54 = vadd.f32 %v5598_v56, %v34098_v36  ;;  %6307 = vmatprep.mubr.f32.mxu0 %v33848_v3  ;;  %7585 = vmatprep.mubr.f32.mxu1 %v33848_v3  ;;  %v34100_v35 = vld [vmem:[#allocation38_spill] sm:$0xff]  ;;  %v34101_v36 = vld [vmem:[#allocation49_spill] sm:$0xff] }
 0x409   : > { %v21221_v50 = vmax.f32 %v23013_v22, 0.0  ;;  %v21223_v12 = vmax.f32 %v23045_v39, 0.0 }
 0x40a   : > { %v21222_v53 = vmax.f32 %v23014_v14, 0.0  ;;  %v21224_v57 = vmax.f32 %v23046_v54, 0.0  ;;  %v4325_v44 = vpop.f32.mrb[48].mxu0  ;;  %v5603_v7 = vpop.f32.mrb[48].mxu1 }
 0x40b   : > { %21733 = vst [vmem:[%s27686_s6 + $0x720] sm:$0xff] %v21221_v50  ;;  %21735 = vst [vmem:[%s27686_s6 + $0x730] sm:$0xff] %v21223_v12  ;;  %v23015_v49 = vadd.f32 %v4325_v44, %v34100_v35  ;;  %v23047_v27 = vadd.f32 %v5603_v7, %v34100_v35  ;;  %v4327_v37 = vpop.f32.mrb[49].mxu0  ;;  %v5605_v56 = vpop.f32.mrb[49].mxu1  ;;  %6310 = vmatmul.mubr.f32.gmra.mrb[90].mxu0 %v34101_v36  ;;  %7588 = vmatmul.mubr.f32.gmra.mrb[90].mxu1 %v34101_v36 }
 0x40c   : > { %21734 = vst [vmem:[%s27686_s6 + $0x728] sm:$0xff] %v21222_v53  ;;  %21736 = vst [vmem:[%s27686_s6 + $0x738] sm:$0xff] %v21224_v57  ;;  %v23016_v22 = vadd.f32 %v4327_v37, %v34100_v35  ;;  %v23048_v39 = vadd.f32 %v5605_v56, %v34100_v35  ;;  %6315 = vmatprep.mubr.f32.mxu0 %v33848_v3  ;;  %7593 = vmatprep.mubr.f32.mxu1 %v33848_v3  ;;  %v34102_v53 = vld [vmem:[#allocation60_spill] sm:$0xff]  ;;  %v34103_v35 = vld [vmem:[#allocation50_spill] sm:$0xff] }
 0x40d   : > { %v21253_v14 = vmax.f32 %v23015_v49, 0.0  ;;  %v21255_v54 = vmax.f32 %v23047_v27, 0.0 }
 0x40e   : > { %v21254_v50 = vmax.f32 %v23016_v22, 0.0  ;;  %v21256_v12 = vmax.f32 %v23048_v39, 0.0  ;;  %v4332_v44 = vpop.f32.mrb[50].mxu0  ;;  %v5610_v7 = vpop.f32.mrb[50].mxu1 }
 0x40f   : > { %21765 = vst [vmem:[%s27686_s6 + $0x820] sm:$0xff] %v21253_v14  ;;  %21767 = vst [vmem:[%s27686_s6 + $0x830] sm:$0xff] %v21255_v54  ;;  %v23017_v57 = vadd.f32 %v4332_v44, %v34102_v53  ;;  %v23049_v37 = vadd.f32 %v5610_v7, %v34102_v53  ;;  %v4334_v36 = vpop.f32.mrb[51].mxu0  ;;  %v5612_v56 = vpop.f32.mrb[51].mxu1  ;;  %6318 = vmatmul.mubr.f32.gmra.mrb[92].mxu0 %v34103_v35  ;;  %7596 = vmatmul.mubr.f32.gmra.mrb[92].mxu1 %v34103_v35 }
 0x410   : > { %21766 = vst [vmem:[%s27686_s6 + $0x828] sm:$0xff] %v21254_v50  ;;  %21768 = vst [vmem:[%s27686_s6 + $0x838] sm:$0xff] %v21256_v12  ;;  %v23018_v49 = vadd.f32 %v4334_v36, %v34102_v53  ;;  %v23050_v27 = vadd.f32 %v5612_v56, %v34102_v53  ;;  %6323 = vmatprep.mubr.f32.mxu0 %v33848_v3  ;;  %7601 = vmatprep.mubr.f32.mxu1 %v33848_v3  ;;  %v34104_v50 = vld [vmem:[#allocation61_spill] sm:$0xff]  ;;  %v34105_v53 = vld [vmem:[#allocation55_spill] sm:$0xff] }
 0x411   : > { %v21285_v22 = vmax.f32 %v23017_v57, 0.0  ;;  %v21287_v39 = vmax.f32 %v23049_v37, 0.0  ;;  %v34106_v57 = vand.u32 4294901760, %v28136_v28  ;;  %v34107_v37 = vand.u32 4294901760, %v28138_v32 }
 0x412   : > { %v21286_v14 = vmax.f32 %v23018_v49, 0.0  ;;  %v21288_v54 = vmax.f32 %v23050_v27, 0.0  ;;  %v4339_v44 = vpop.f32.mrb[52].mxu0  ;;  %v5617_v7 = vpop.f32.mrb[52].mxu1 }
 0x413   : > { %21797 = vst [vmem:[%s27686_s6 + $0x920] sm:$0xff] %v21285_v22  ;;  %21799 = vst [vmem:[%s27686_s6 + $0x930] sm:$0xff] %v21287_v39  ;;  %v23019_v12 = vadd.f32 %v4339_v44, %v34104_v50  ;;  %v23051_v36 = vadd.f32 %v5617_v7, %v34104_v50  ;;  %v4341_v35 = vpop.f32.mrb[53].mxu0  ;;  %v5619_v56 = vpop.f32.mrb[53].mxu1  ;;  %6326 = vmatmul.mubr.f32.gmra.mrb[94].mxu0 %v34105_v53  ;;  %7604 = vmatmul.mubr.f32.gmra.mrb[94].mxu1 %v34105_v53  ;;  %v34108_v39 = vand.u32 4294901760, %v28140_v45 }
 0x414   : > { %v22393_v49 = vpack.c.bf16 %v34107_v37, %v34106_v57  ;;  %21798 = vst [vmem:[%s27686_s6 + $0x928] sm:$0xff] %v21286_v14  ;;  %21800 = vst [vmem:[%s27686_s6 + $0x938] sm:$0xff] %v21288_v54  ;;  %v23020_v27 = vadd.f32 %v4341_v35, %v34104_v50  ;;  %v23052_v22 = vadd.f32 %v5619_v56, %v34104_v50  ;;  %6404 = vmatprep.mubr.f32.mxu0 %v33848_v3 }
 0x415   : > { %7682 = vmatprep.mubr.f32.mxu1 %v33848_v3  ;;  %v34109_v44 = vand.u32 4294901760, %v28146_v24  ;;  %v21317_v7 = vmax.f32 %v23019_v12, 0.0  ;;  %v21319_v32 = vmax.f32 %v23051_v36, 0.0  ;;  %v34110_v35 = vand.u32 4294901760, %v28217_v55  ;;  %v34114_v24 = vld [vmem:[#allocation62_spill] sm:$0xff] }
 0x416   : > { %v21318_v14 = vmax.f32 %v23020_v27, 0.0  ;;  %v21320_v57 = vmax.f32 %v23052_v22, 0.0  ;;  %v4346_v54 = vpop.f32.mrb[54].mxu0  ;;  %v5624_v37 = vpop.f32.mrb[54].mxu1  ;;  %v34111_v56 = vand.u32 4294901760, %v28222_v42  ;;  %v34112_v50 = vand.u32 4294901760, %v28227_v16 }
 0x417   : > { %v22441_v28 = vpack.c.bf16 %v34109_v44, %v34108_v39  ;;  %v34113_v45 = vand.u32 4294901760, %v28232_v43  ;;  %21829 = vst [vmem:[%s27686_s6 + $0xa20] sm:$0xff] %v21317_v7  ;;  %21831 = vst [vmem:[%s27686_s6 + $0xa30] sm:$0xff] %v21319_v32  ;;  %v23021_v12 = vadd.f32 %v4346_v54, %v34114_v24  ;;  %v23053_v36 = vadd.f32 %v5624_v37, %v34114_v24  ;;  %v4348_v27 = vpop.f32.mrb[55].mxu0  ;;  %v5626_v22 = vpop.f32.mrb[55].mxu1  ;;  %v34115_v39 = vld [vmem:[#allocation9_spill] sm:$0xff] }
 0x418   : > { %v22395_v53 = vpack.c.bf16 %v34111_v56, %v34110_v35  ;;  %6408 = vmatmul.mubr.f32.vlgmr.msra.gmra.mrb[64].mxu0 %v34115_v39  ;;  %7686 = vmatmul.mubr.f32.vlgmr.msra.gmra.mrb[64].mxu1 %v34115_v39  ;;  %21830 = vst [vmem:[%s27686_s6 + $0xa28] sm:$0xff] %v21318_v14  ;;  %21832 = vst [vmem:[%s27686_s6 + $0xa38] sm:$0xff] %v21320_v57  ;;  %v23022_v55 = vadd.f32 %v4348_v27, %v34114_v24  ;;  %v34117_v44 = vand.u32 4294901760, %v28238_v33  ;;  %v34120_v35 = vld [vmem:[#allocation63_spill] sm:$0xff] }
 0x419   : > { %v22443_v13 = vpack.c.bf16 %v34113_v45, %v34112_v50  ;;  %v23054_v43 = vadd.f32 %v5626_v22, %v34114_v24  ;;  %22394 = vmatpush1.bf16.msra.mxu0 %v22393_v49  ;;  %22442 = vmatpush1.bf16.msra.mxu1 %v22441_v28  ;;  %v21349_v42 = vmax.f32 %v23021_v12, 0.0  ;;  %v21351_v16 = vmax.f32 %v23053_v36, 0.0 }
 0x41a   : > { %6413 = vmatprep.mubr.f32.mxu0 %v33848_v3  ;;  %7691 = vmatprep.mubr.f32.mxu1 %v33848_v3  ;;  %v34116_v50 = vand.u32 4294901760, %v28235_v20  ;;  %v34118_v32 = vand.u32 4294901760, %v28241_v63  ;;  %v34119_v14 = vand.u32 4294901760, %v28244_v26  ;;  %v21350_v49 = vmax.f32 %v23022_v55, 0.0  ;;  %v4353_v54 = vpop.f32.mrb[56].mxu0  ;;  %v5631_v37 = vpop.f32.mrb[56].mxu1 }
 0x41b   : > { %v21352_v28 = vmax.f32 %v23054_v43, 0.0  ;;  %22396 = vmatprep.subr.bf16.mxu0 %v22395_v53  ;;  %22444 = vmatprep.subr.bf16.mxu1 %v22443_v13  ;;  %21861 = vst [vmem:[%s27686_s6 + $0xb20] sm:$0xff] %v21349_v42  ;;  %21863 = vst [vmem:[%s27686_s6 + $0xb30] sm:$0xff] %v21351_v16  ;;  %v23023_v20 = vadd.f32 %v4353_v54, %v34120_v35  ;;  %v23055_v33 = vadd.f32 %v5631_v37, %v34120_v35  ;;  %v4355_v56 = vpop.f32.mrb[57].mxu0  ;;  %v5633_v45 = vpop.f32.mrb[57].mxu1  ;;  %v34121_v63 = vld [vmem:[#allocation13_spill] sm:$0xff] }
 0x41c   : > { %v22397_v7 = vpack.c.bf16 %v34117_v44, %v34116_v50  ;;  %v22445_v57 = vpack.c.bf16 %v34119_v14, %v34118_v32  ;;  %6417 = vmatmul.mubr.f32.gmra.mrb[66].mxu0 %v34121_v63  ;;  %7695 = vmatmul.mubr.f32.gmra.mrb[66].mxu1 %v34121_v63  ;;  %21862 = vst [vmem:[%s27686_s6 + $0xb28] sm:$0xff] %v21350_v49  ;;  %v34122_v43 = vld [vmem:[#allocation64_spill] sm:$0xff]  ;;  %v34124_v37 = vld [vmem:[#allocation65_spill] sm:$0xff] }
 0x41d   : > { %21864 = vst [vmem:[%s27686_s6 + $0xb38] sm:$0xff] %v21352_v28  ;;  %v23024_v26 = vadd.f32 %v4355_v56, %v34120_v35  ;;  %v23056_v13 = vadd.f32 %v5633_v45, %v34120_v35  ;;  %6422 = vmatprep.mubr.f32.mxu0 %v33848_v3  ;;  %7700 = vmatprep.mubr.f32.mxu1 %v33848_v3  ;;  %v21381_v53 = vmax.f32 %v23023_v20, 0.0  ;;  %v21383_v12 = vmax.f32 %v23055_v33, 0.0 }
 0x41e   : > { %22398 = vmatpush1.bf16.msra.mxu0 %v22397_v7  ;;  %22446 = vmatpush1.bf16.msra.mxu1 %v22445_v57  ;;  %v4360_v22 = vpop.f32.mrb[58].mxu0  ;;  %v5638_v55 = vpop.f32.mrb[58].mxu1  ;;  %v34123_v7 = vld [vmem:[#allocation15_spill] sm:$0xff] }
 0x41f   : > { %v21382_v36 = vmax.f32 %v23024_v26, 0.0  ;;  %v21384_v27 = vmax.f32 %v23056_v13, 0.0  ;;  %22400 = vmatprep.subr.bf16.mxu0 %v27996_v17  ;;  %22448 = vmatprep.subr.bf16.mxu1 %v28002_v10  ;;  %21893 = vst [vmem:[%s27686_s6 + $0xc20] sm:$0xff] %v21381_v53  ;;  %21895 = vst [vmem:[%s27686_s6 + $0xc30] sm:$0xff] %v21383_v12  ;;  %v23025_v42 = vadd.f32 %v4360_v22, %v34122_v43  ;;  %v4362_v50 = vpop.f32.mrb[59].mxu0  ;;  %v5640_v44 = vpop.f32.mrb[59].mxu1 }
 0x420   : > { %v23057_v16 = vadd.f32 %v5638_v55, %v34122_v43  ;;  %6426 = vmatmul.mubr.f32.gmra.mrb[68].mxu0 %v34123_v7  ;;  %7704 = vmatmul.mubr.f32.gmra.mrb[68].mxu1 %v34123_v7  ;;  %v23026_v17 = vadd.f32 %v4362_v50, %v34122_v43  ;;  %v23058_v10 = vadd.f32 %v5640_v44, %v34122_v43  ;;  %v34125_v26 = vld [vmem:[#allocation16_spill] sm:$0xff] }
 0x421   : > { %21894 = vst [vmem:[%s27686_s6 + $0xc28] sm:$0xff] %v21382_v36  ;;  %21896 = vst [vmem:[%s27686_s6 + $0xc38] sm:$0xff] %v21384_v27  ;;  %6431 = vmatprep.mubr.f32.mxu0 %v33848_v3  ;;  %7709 = vmatprep.mubr.f32.mxu1 %v33848_v3  ;;  %v21413_v32 = vmax.f32 %v23025_v42, 0.0 }
 0x422   : > { %v21415_v14 = vmax.f32 %v23057_v16, 0.0  ;;  %v21414_v57 = vmax.f32 %v23026_v17, 0.0  ;;  %v21416_v49 = vmax.f32 %v23058_v10, 0.0  ;;  %v4367_v28 = vpop.f32.mrb[60].mxu0  ;;  %v5645_v54 = vpop.f32.mrb[60].mxu1  ;;  %v34126_v16 = vld [vmem:[#allocation66_spill] sm:$0xff] }
 0x423   : > { %21925 = vst [vmem:[%s27686_s6 + $0xd20] sm:$0xff] %v21413_v32  ;;  %v23027_v20 = vadd.f32 %v4367_v28, %v34124_v37  ;;  %v23059_v33 = vadd.f32 %v5645_v54, %v34124_v37  ;;  %v4369_v56 = vpop.f32.mrb[61].mxu0  ;;  %v5647_v45 = vpop.f32.mrb[61].mxu1  ;;  %v34127_v32 = vld [vmem:[#allocation21_spill] sm:$0xff] }
 0x424   : > { %21927 = vst [vmem:[%s27686_s6 + $0xd30] sm:$0xff] %v21415_v14  ;;  %6435 = vmatmul.mubr.f32.gmra.mrb[70].mxu0 %v34125_v26  ;;  %7713 = vmatmul.mubr.f32.gmra.mrb[70].mxu1 %v34125_v26  ;;  %21926 = vst [vmem:[%s27686_s6 + $0xd28] sm:$0xff] %v21414_v57  ;;  %v23028_v13 = vadd.f32 %v4369_v56, %v34124_v37  ;;  %v23060_v53 = vadd.f32 %v5647_v45, %v34124_v37  ;;  %v34129_v56 = vld [vmem:[#allocation27_spill] sm:$0xff]  ;;  %v34130_v45 = vld [vmem:[#allocation28_spill] sm:$0xff] }
 0x425   : > { %21928 = vst [vmem:[%s27686_s6 + $0xd38] sm:$0xff] %v21416_v49  ;;  %6440 = vmatprep.mubr.f32.mxu0 %v33848_v3  ;;  %7718 = vmatprep.mubr.f32.mxu1 %v33848_v3  ;;  %v21445_v12 = vmax.f32 %v23027_v20, 0.0  ;;  %v21447_v36 = vmax.f32 %v23059_v33, 0.0  ;;  %v34128_v33 = vld [vmem:[#allocation22_spill] sm:$0xff] }
 0x426   : > { %v21446_v27 = vmax.f32 %v23028_v13, 0.0  ;;  %v21448_v22 = vmax.f32 %v23060_v53, 0.0  ;;  %v4374_v55 = vpop.f32.mrb[62].mxu0  ;;  %v5652_v42 = vpop.f32.mrb[62].mxu1  ;;  %v34131_v13 = vld [vmem:[#allocation31_spill] sm:$0xff] }
 0x427   : > { %21957 = vst [vmem:[%s27686_s6 + $0xe20] sm:$0xff] %v21445_v12  ;;  %21959 = vst [vmem:[%s27686_s6 + $0xe30] sm:$0xff] %v21447_v36  ;;  %v23029_v50 = vadd.f32 %v4374_v55, %v34126_v16  ;;  %v23061_v44 = vadd.f32 %v5652_v42, %v34126_v16  ;;  %v4376_v17 = vpop.f32.mrb[63].mxu0  ;;  %v5654_v10 = vpop.f32.mrb[63].mxu1  ;;  %v34132_v53 = vld [vmem:[#allocation35_spill] sm:$0xff]  ;;  %v34133_v12 = vld [vmem:[#allocation40_spill] sm:$0xff] }
 0x428   : > { %6444 = vmatmul.mubr.f32.gmra.mrb[72].mxu0 %v34127_v32  ;;  %7722 = vmatmul.mubr.f32.gmra.mrb[72].mxu1 %v34127_v32  ;;  %21958 = vst [vmem:[%s27686_s6 + $0xe28] sm:$0xff] %v21446_v27  ;;  %21960 = vst [vmem:[%s27686_s6 + $0xe38] sm:$0xff] %v21448_v22  ;;  %v23030_v14 = vadd.f32 %v4376_v17, %v34126_v16  ;;  %v23062_v57 = vadd.f32 %v5654_v10, %v34126_v16  ;;  %v34134_v36 = vld [vmem:[#allocation44_spill] sm:$0xff]  ;;  %v34137_v55 = vld [vmem:[#allocation54_spill] sm:$0xff] }
 0x429   : > { %6449 = vmatprep.mubr.f32.mxu0 %v33848_v3  ;;  %7727 = vmatprep.mubr.f32.mxu1 %v33848_v3  ;;  %v21477_v49 = vmax.f32 %v23029_v50, 0.0  ;;  %v21479_v28 = vmax.f32 %v23061_v44, 0.0  ;;  %v34135_v27 = vld [vmem:[#allocation48_spill] sm:$0xff]  ;;  %v28781_v42 = vld [vmem:[%s26321_s26 + $0x68] sm:$0xff]  ;;  %v28789_v17 = vld [vmem:[%s26321_s26 + $0x78] sm:$0xff] }
 0x42a   : > { %v21478_v54 = vmax.f32 %v23030_v14, 0.0  ;;  %v21480_v20 = vmax.f32 %v23062_v57, 0.0  ;;  %v34136_v22 = vld [vmem:[#allocation52_spill] sm:$0xff]  ;;  %v34138_v50 = vld [vmem:[#allocation57_spill] sm:$0xff]  ;;  %v28792_v10 = vld [vmem:[%s26321_s26 + $0x178] sm:$0xff]  ;;  %v8213_v14 = vand.u32 4294901760, %v28781_v42 }
 0x42b   : > { %21989 = vst [vmem:[%s27686_s6 + $0xf20] sm:$0xff] %v21477_v49  ;;  %21991 = vst [vmem:[%s27686_s6 + $0xf30] sm:$0xff] %v21479_v28  ;;  %v28786_v44 = vld [vmem:[%s26321_s26 + $0x168] sm:$0xff]  ;;  %v9491_v49 = vand.u32 4294901760, %v28789_v17  ;;  %v9495_v28 = vand.u32 4294901760, %v28792_v10 }
 0x42c   : > { %6453 = vmatmul.mubr.f32.gmra.mrb[74].mxu0 %v34128_v33  ;;  %7731 = vmatmul.mubr.f32.gmra.mrb[74].mxu1 %v34128_v33  ;;  %21990 = vst [vmem:[%s27686_s6 + $0xf28] sm:$0xff] %v21478_v54  ;;  %21992 = vst [vmem:[%s27686_s6 + $0xf38] sm:$0xff] %v21480_v20  ;;  %v8217_v57 = vand.u32 4294901760, %v28786_v44  ;;  %v28936_v33 = vld [vmem:[%s26321_s26 + $0x370] sm:$0xff] }
 0x42d   : > { %6458 = vmatprep.mubr.f32.mxu0 %v33848_v3  ;;  %7736 = vmatprep.mubr.f32.mxu1 %v33848_v3  ;;  %v28892_v20 = vsub.f32 %v28792_v10, %v9495_v28  ;;  %v28910_v10 = vld [vmem:[%s26321_s26 + $0x378] sm:$0xff] }
 0x42e   : > { %v28812_v54 = vpack.c.bf16 %v8217_v57, %v8213_v14 }
 0x42f   : > { %v34144_v26 = vand.u32 4294901760, %v28892_v20 }
 0x430   : > { %6462 = vmatmul.mubr.f32.gmra.mrb[76].mxu0 %v34129_v56  ;;  %7740 = vmatmul.mubr.f32.gmra.mrb[76].mxu1 %v34129_v56  ;;  %v28933_v56 = vld [vmem:[%s26321_s26 + $0x270] sm:$0xff] }
 0x431   : > { %6467 = vmatprep.mubr.f32.mxu0 %v33848_v3  ;;  %7745 = vmatprep.mubr.f32.mxu1 %v33848_v3  ;;  %v9755_v37 = vsub.f32 %v28892_v20, %v34144_v26 }
 0x434   : > { %6471 = vmatmul.mubr.f32.gmra.mrb[78].mxu0 %v34130_v45  ;;  %7749 = vmatmul.mubr.f32.gmra.mrb[78].mxu1 %v34130_v45  ;;  %v28930_v45 = vld [vmem:[%s26321_s26 + $0x360] sm:$0xff] }
 0x435   : > { %6476 = vmatprep.mubr.f32.mxu0 %v33848_v3  ;;  %7754 = vmatprep.mubr.f32.mxu1 %v33848_v3  ;;  %v8227_v63 = vand.u32 4294901760, %v28930_v45 }
 0x438   : > { %6480 = vmatmul.mubr.f32.gmra.mrb[80].mxu0 %v34131_v13  ;;  %7758 = vmatmul.mubr.f32.gmra.mrb[80].mxu1 %v34131_v13  ;;  %v28927_v13 = vld [vmem:[%s26321_s26 + $0x260] sm:$0xff] }
 0x439   : > { %6485 = vmatprep.mubr.f32.mxu0 %v33848_v3  ;;  %7763 = vmatprep.mubr.f32.mxu1 %v33848_v3  ;;  %v8223_v26 = vand.u32 4294901760, %v28927_v13 }
 0x43c   : > { %6489 = vmatmul.mubr.f32.gmra.mrb[82].mxu0 %v34132_v53  ;;  %7767 = vmatmul.mubr.f32.gmra.mrb[82].mxu1 %v34132_v53 }
 0x43d   : > { %6494 = vmatprep.mubr.f32.mxu0 %v33848_v3  ;;  %7772 = vmatprep.mubr.f32.mxu1 %v33848_v3 }
 0x440   : > { %6498 = vmatmul.mubr.f32.gmra.mrb[84].mxu0 %v34133_v12  ;;  %7776 = vmatmul.mubr.f32.gmra.mrb[84].mxu1 %v34133_v12 }
 0x441   : > { %6503 = vmatprep.mubr.f32.mxu0 %v33848_v3  ;;  %7781 = vmatprep.mubr.f32.mxu1 %v33848_v3 }
 0x444   : > { %6507 = vmatmul.mubr.f32.gmra.mrb[86].mxu0 %v34134_v36  ;;  %7785 = vmatmul.mubr.f32.gmra.mrb[86].mxu1 %v34134_v36 }
 0x445   : > { %6512 = vmatprep.mubr.f32.mxu0 %v33848_v3  ;;  %7790 = vmatprep.mubr.f32.mxu1 %v33848_v3 }
 0x448   : > { %6516 = vmatmul.mubr.f32.gmra.mrb[88].mxu0 %v34135_v27  ;;  %7794 = vmatmul.mubr.f32.gmra.mrb[88].mxu1 %v34135_v27 }
 0x449   : > { %6521 = vmatprep.mubr.f32.mxu0 %v33848_v3  ;;  %7799 = vmatprep.mubr.f32.mxu1 %v33848_v3 }
 0x44c   : > { %6525 = vmatmul.mubr.f32.gmra.mrb[90].mxu0 %v34136_v22  ;;  %7803 = vmatmul.mubr.f32.gmra.mrb[90].mxu1 %v34136_v22 }
 0x44d   : > { %6530 = vmatprep.mubr.f32.mxu0 %v33848_v3  ;;  %7808 = vmatprep.mubr.f32.mxu1 %v33848_v3 }
 0x450   : > { %6534 = vmatmul.mubr.f32.gmra.mrb[92].mxu0 %v34137_v55  ;;  %7812 = vmatmul.mubr.f32.gmra.mrb[92].mxu1 %v34137_v55 }
 0x451   : > { %6539 = vmatprep.mubr.f32.mxu0 %v33848_v3  ;;  %7817 = vmatprep.mubr.f32.mxu1 %v33848_v3 }
 0x454   : > { %6543 = vmatmul.mubr.f32.gmra.mrb[94].mxu0 %v34138_v50  ;;  %7821 = vmatmul.mubr.f32.gmra.mrb[94].mxu1 %v34138_v50  ;;  %v28901_v50 = vld [vmem:[%s26321_s26 + $0x268] sm:$0xff] }
 0x455   : > { %6637 = vmatprep.mubr.f32.mxu0 %v33848_v3  ;;  %7915 = vmatprep.mubr.f32.mxu1 %v33848_v3  ;;  %v34146_v35 = vand.u32 4294901760, %v28901_v50 }
 0x458   : > { %6639 = vmatmul.mubr.f32.vlgmr.msra.gmra.mrb[64].mxu0 %v26412_v51  ;;  %7917 = vmatmul.mubr.f32.vlgmr.msra.gmra.mrb[64].mxu1 %v26412_v51 }
 0x459   : > { %22402 = vmatpush1.bf16.msra.mxu0 %v34070_v19  ;;  %22450 = vmatpush1.bf16.msra.mxu1 %v34071_v1  ;;  %v28818_v19 = vpack.c.bf16 %v9495_v28, %v9491_v49  ;;  %v316_v1 = vld [vmem:[%s26321_s26 + $0x160] sm:$0xff] }
 0x45a   : > { %6644 = vmatprep.mubr.f32.mxu0 %v33848_v3  ;;  %7922 = vmatprep.mubr.f32.mxu1 %v33848_v3 }
 0x45b   : > { %22404 = vmatprep.subr.bf16.mxu0 %v34072_v0  ;;  %22452 = vmatprep.subr.bf16.mxu1 %v34073_v41  ;;  %34139 = vst [vmem:[#allocation43_spill] sm:$0xff] %v28818_v19  ;;  %v28877_v0 = vsub.f32 %v28781_v42, %v8213_v14  ;;  %v28882_v41 = vsub.f32 %v28786_v44, %v8217_v57  ;;  %v8219_v44 = vand.u32 4294901760, %v316_v1  ;;  %v286_v14 = vld [vmem:[%s26321_s26 + $0x70] sm:$0xff] }
 0x45c   : > { %6646 = vmatmul.mubr.f32.gmra.mrb[66].mxu0 %v26465_v62  ;;  %7924 = vmatmul.mubr.f32.gmra.mrb[66].mxu1 %v26465_v62  ;;  %v318_v57 = vld [vmem:[%s26321_s26 + $0x170] sm:$0xff]  ;;  %v9493_v28 = vand.u32 4294901760, %v286_v14 }
 0x45d   : > { %6651 = vmatprep.mubr.f32.mxu0 %v33848_v3  ;;  %7929 = vmatprep.mubr.f32.mxu1 %v33848_v3  ;;  %v9497_v12 = vand.u32 4294901760, %v318_v57  ;;  %v34141_v32 = vand.u32 4294901760, %v28877_v0  ;;  %v34142_v55 = vand.u32 4294901760, %v28882_v41  ;;  %v28954_v43 = vsub.f32 %v316_v1, %v8219_v44 }
 0x45e   : > { %22406 = vmatpush1.bf16.msra.mxu0 %v34079_v52  ;;  %22454 = vmatpush1.bf16.msra.mxu1 %v34080_v18  ;;  %v284_v18 = vld [vmem:[%s26321_s26 + $0x60] sm:$0xff]  ;;  %v28887_v52 = vsub.f32 %v28789_v17, %v9491_v49  ;;  %v28904_v17 = vld [vmem:[%s26321_s26 + $0x368] sm:$0xff]  ;;  %v28907_v49 = vld [vmem:[%s26321_s26 + $0x278] sm:$0xff] }
 0x45f   : > { %22456 = vmatprep.subr.bf16.mxu0 %v28812_v54  ;;  %22504 = vmatprep.subr.bf16.mxu1 %v28818_v19  ;;  %v8215_v42 = vand.u32 4294901760, %v284_v18  ;;  %v8465_v16 = vsub.f32 %v28877_v0, %v34141_v32  ;;  %v8477_v53 = vsub.f32 %v28882_v41, %v34142_v55  ;;  %v28956_v32 = vsub.f32 %v286_v14, %v9493_v28 }
 0x460   : > { %6653 = vmatmul.mubr.f32.gmra.mrb[68].mxu0 %v26468_v6  ;;  %7931 = vmatmul.mubr.f32.gmra.mrb[68].mxu1 %v26468_v6  ;;  %v34143_v22 = vand.u32 4294901760, %v28887_v52  ;;  %v28960_v55 = vpack.c.bf16 %v9497_v12, %v9493_v28  ;;  %v9501_v28 = vand.u32 4294901760, %v28933_v56  ;;  %v9756_v19 = vand.u32 4294901760, %v9755_v37 }
 0x461   : > { %6658 = vmatprep.mubr.f32.mxu0 %v33848_v3  ;;  %7936 = vmatprep.mubr.f32.mxu1 %v33848_v3  ;;  %v28920_v36 = vpack.c.bf16 %v8219_v44, %v8215_v42  ;;  %v28952_v7 = vsub.f32 %v284_v18, %v8215_v42  ;;  %v34147_v18 = vand.u32 4294901760, %v28904_v17  ;;  %v34149_v42 = vand.u32 4294901760, %v28907_v49 }
 0x462   : > { %v9743_v27 = vsub.f32 %v28887_v52, %v34143_v22  ;;  %34145 = vst [vmem:[#allocation68_spill] sm:$0xff] %v28960_v55  ;;  %v28962_v22 = vsub.f32 %v318_v57, %v9497_v12  ;;  %v34150_v44 = vand.u32 4294901760, %v28910_v10  ;;  %v9505_v12 = vand.u32 4294901760, %v28936_v33 }
 0x463   : > { %34140 = vst [vmem:[#allocation67_spill] sm:$0xff] %v28920_v36  ;;  %v28970_v1 = vpack.c.bf16 %v34147_v18, %v34146_v35  ;;  %v8466_v57 = vand.u32 4294901760, %v8465_v16  ;;  %v8478_v39 = vand.u32 4294901760, %v8477_v53  ;;  %v28994_v16 = vpack.c.bf16 %v8227_v63, %v8223_v26 }
 0x464   : > { %6660 = vmatmul.mubr.f32.gmra.mrb[70].mxu0 %v26476_v8  ;;  %7938 = vmatmul.mubr.f32.gmra.mrb[70].mxu1 %v26476_v8  ;;  %v28976_v14 = vpack.c.bf16 %v34150_v44, %v34149_v42  ;;  %v9744_v24 = vand.u32 4294901760, %v9743_v27  ;;  %v28996_v53 = vpack.c.bf16 %v9505_v12, %v9501_v28  ;;  %v34157_v37 = vand.u32 4294901760, %v28910_v10 }
 0x465   : > { %6665 = vmatprep.mubr.f32.mxu0 %v33848_v3  ;;  %7943 = vmatprep.mubr.f32.mxu1 %v33848_v3  ;;  %34148 = vst [vmem:[#allocation69_spill] sm:$0xff] %v28970_v1  ;;  %34152 = vst [vmem:[#allocation71_spill] sm:$0xff] %v28994_v16  ;;  %v22463_v27 = vpack.c.bf16 %v8478_v39, %v8466_v57 }
 0x466   : > { %34151 = vst [vmem:[#allocation70_spill] sm:$0xff] %v28976_v14  ;;  %34153 = vst [vmem:[#allocation72_spill] sm:$0xff] %v28996_v53  ;;  %v22511_v44 = vpack.c.bf16 %v9756_v19, %v9744_v24  ;;  %v34154_v24 = vmov %v34146_v35  ;;  %v34155_v19 = vmov %v34147_v18  ;;  %v29051_v18 = vsub.f32 %v28927_v13, %v8223_v26 }
 0x467   : > { %v29033_v39 = vsub.f32 %v28901_v50, %v34154_v24  ;;  %v29038_v57 = vsub.f32 %v28904_v17, %v34155_v19  ;;  %v29054_v50 = vsub.f32 %v28930_v45, %v8227_v63  ;;  %v29057_v24 = vsub.f32 %v28933_v56, %v9501_v28 }
 0x468   : > { %6667 = vmatmul.mubr.f32.gmra.mrb[72].mxu0 %v26483_v25  ;;  %7945 = vmatmul.mubr.f32.gmra.mrb[72].mxu1 %v26483_v25  ;;  %v29060_v17 = vsub.f32 %v28936_v33, %v9505_v12  ;;  %v33480_v56 = vand.u32 4294901760, %v28952_v7  ;;  %v33481_v45 = vand.u32 4294901760, %v28954_v43  ;;  %v33483_v26 = vand.u32 4294901760, %v28962_v22 }
 0x469   : > { %6672 = vmatprep.mubr.f32.mxu0 %v33848_v3  ;;  %7950 = vmatprep.mubr.f32.mxu1 %v33848_v3  ;;  %v33484_v28 = vand.u32 4294901760, %v29033_v39  ;;  %v33485_v12 = vand.u32 4294901760, %v29038_v57 }
 0x46a   : > { %v8483_v33 = vsub.f32 %v28954_v43, %v33481_v45  ;;  %v9761_v13 = vsub.f32 %v28962_v22, %v33483_v26 }
 0x46b   : > { %v8489_v45 = vsub.f32 %v29033_v39, %v33484_v28 }
 0x46c   : > { %6674 = vmatmul.mubr.f32.gmra.mrb[74].mxu0 %v26485_v47  ;;  %7952 = vmatmul.mubr.f32.gmra.mrb[74].mxu1 %v26485_v47  ;;  %v8484_v19 = vand.u32 4294901760, %v8483_v33 }
 0x46d   : > { %6679 = vmatprep.mubr.f32.mxu0 %v33848_v3  ;;  %7957 = vmatprep.mubr.f32.mxu1 %v33848_v3 }
 0x470   : > { %6681 = vmatmul.mubr.f32.gmra.mrb[76].mxu0 %v26530_v11  ;;  %7959 = vmatmul.mubr.f32.gmra.mrb[76].mxu1 %v26530_v11 }
 0x471   : > { %6686 = vmatprep.mubr.f32.mxu0 %v33848_v3  ;;  %7964 = vmatprep.mubr.f32.mxu1 %v33848_v3 }
 0x474   : > { %6688 = vmatmul.mubr.f32.gmra.mrb[78].mxu0 %v26532_v59  ;;  %7966 = vmatmul.mubr.f32.gmra.mrb[78].mxu1 %v26532_v59 }
 0x475   : > { %6693 = vmatprep.mubr.f32.mxu0 %v33848_v3  ;;  %7971 = vmatprep.mubr.f32.mxu1 %v33848_v3 }
 0x478   : > { %6695 = vmatmul.mubr.f32.gmra.mrb[80].mxu0 %v26586_v46  ;;  %7973 = vmatmul.mubr.f32.gmra.mrb[80].mxu1 %v26586_v46 }
 0x479   : > { %6700 = vmatprep.mubr.f32.mxu0 %v33848_v3  ;;  %7978 = vmatprep.mubr.f32.mxu1 %v33848_v3 }
 0x47c   : > { %6702 = vmatmul.mubr.f32.gmra.mrb[82].mxu0 %v26646_v61  ;;  %7980 = vmatmul.mubr.f32.gmra.mrb[82].mxu1 %v26646_v61 }
 0x47d   : > { %6707 = vmatprep.mubr.f32.mxu0 %v33848_v3  ;;  %7985 = vmatprep.mubr.f32.mxu1 %v33848_v3 }
 0x480   : > { %6709 = vmatmul.mubr.f32.gmra.mrb[84].mxu0 %v26665_v60  ;;  %7987 = vmatmul.mubr.f32.gmra.mrb[84].mxu1 %v26665_v60 }
 0x481   : > { %6714 = vmatprep.mubr.f32.mxu0 %v33848_v3  ;;  %7992 = vmatprep.mubr.f32.mxu1 %v33848_v3 }
 0x484   : > { %6716 = vmatmul.mubr.f32.gmra.mrb[86].mxu0 %v34065_v58  ;;  %7994 = vmatmul.mubr.f32.gmra.mrb[86].mxu1 %v34065_v58 }
 0x485   : > { %6721 = vmatprep.mubr.f32.mxu0 %v33848_v3  ;;  %7999 = vmatprep.mubr.f32.mxu1 %v33848_v3 }
 0x488   : > { %6723 = vmatmul.mubr.f32.gmra.mrb[88].mxu0 %v34066_v29  ;;  %8001 = vmatmul.mubr.f32.gmra.mrb[88].mxu1 %v34066_v29 }
 0x489   : > { %6728 = vmatprep.mubr.f32.mxu0 %v33848_v3  ;;  %8006 = vmatprep.mubr.f32.mxu1 %v33848_v3 }
 0x48c   : > { %6730 = vmatmul.mubr.f32.gmra.mrb[90].mxu0 %v34067_v2  ;;  %8008 = vmatmul.mubr.f32.gmra.mrb[90].mxu1 %v34067_v2 }
 0x48d   : > { %6735 = vmatprep.mubr.f32.mxu0 %v33848_v3  ;;  %8013 = vmatprep.mubr.f32.mxu1 %v33848_v3 }
 0x490   : > { %6737 = vmatmul.mubr.f32.gmra.mrb[92].mxu0 %v34068_v21  ;;  %8015 = vmatmul.mubr.f32.gmra.mrb[92].mxu1 %v34068_v21 }
 0x491   : > { %6742 = vmatprep.mubr.f32.mxu0 %v33848_v3  ;;  %8020 = vmatprep.mubr.f32.mxu1 %v33848_v3 }
 0x494   : > { %6744 = vmatmul.mubr.f32.gmra.mrb[94].mxu0 %v26756_v48  ;;  %8022 = vmatmul.mubr.f32.gmra.mrb[94].mxu1 %v26756_v48 }
 0x495   : > { %6822 = vmatprep.mubr.f32.mxu0 %v33848_v3  ;;  %8100 = vmatprep.mubr.f32.mxu1 %v33848_v3 }
 0x498   : > { %6824 = vmatmul.mubr.f32.vlgmr.msra.gmra.mrb[64].mxu0 %v26412_v51  ;;  %8102 = vmatmul.mubr.f32.vlgmr.msra.gmra.mrb[64].mxu1 %v26412_v51 }
 0x499   : > { %22458 = vmatpush1.bf16.msra.mxu0 %v28920_v36  ;;  %22506 = vmatpush1.bf16.msra.mxu1 %v28960_v55  ;;  %v34162_v55 = vand.u32 4294901760, %v29060_v17 }
 0x49a   : > { %6829 = vmatprep.mubr.f32.mxu0 %v33848_v3  ;;  %8107 = vmatprep.mubr.f32.mxu1 %v33848_v3 }
 0x49b   : > { %22460 = vmatprep.subr.bf16.mxu0 %v28970_v1  ;;  %22508 = vmatprep.subr.bf16.mxu1 %v28976_v14  ;;  %v34161_v14 = vand.u32 4294901760, %v29057_v24  ;;  %v9785_v36 = vsub.f32 %v29060_v17, %v34162_v55 }
 0x49c   : > { %6831 = vmatmul.mubr.f32.gmra.mrb[66].mxu0 %v26465_v62  ;;  %8109 = vmatmul.mubr.f32.gmra.mrb[66].mxu1 %v26465_v62 }
 0x49d   : > { %6836 = vmatprep.mubr.f32.mxu0 %v33848_v3  ;;  %8114 = vmatprep.mubr.f32.mxu1 %v33848_v3  ;;  %v9773_v1 = vsub.f32 %v29057_v24, %v34161_v14 }
 0x49e   : > { %22462 = vmatpush1.bf16.msra.mxu0 %v28994_v16  ;;  %22510 = vmatpush1.bf16.msra.mxu1 %v28996_v53  ;;  %v34159_v53 = vand.u32 4294901760, %v29051_v18  ;;  %v34160_v16 = vand.u32 4294901760, %v29054_v50 }
 0x49f   : > { %22464 = vmatprep.subr.bf16.mxu0 %v22463_v27  ;;  %22512 = vmatprep.subr.bf16.mxu1 %v22511_v44  ;;  %v34156_v27 = vmov %v34149_v42  ;;  %v29048_v42 = vsub.f32 %v28910_v10, %v34157_v37  ;;  %v33482_v10 = vand.u32 4294901760, %v28956_v32 }
 0x4a0   : > { %6838 = vmatmul.mubr.f32.gmra.mrb[68].mxu0 %v26468_v6  ;;  %8116 = vmatmul.mubr.f32.gmra.mrb[68].mxu1 %v26468_v6  ;;  %v29043_v44 = vsub.f32 %v28907_v49, %v34156_v27  ;;  %v8471_v27 = vsub.f32 %v28952_v7, %v33480_v56 }
 0x4a1   : > { %6843 = vmatprep.mubr.f32.mxu0 %v33848_v3  ;;  %8121 = vmatprep.mubr.f32.mxu1 %v33848_v3  ;;  %v9749_v63 = vsub.f32 %v28956_v32, %v33482_v10  ;;  %v8501_v10 = vsub.f32 %v29038_v57, %v33485_v12  ;;  %v34158_v49 = vand.u32 4294901760, %v29048_v42  ;;  %v9762_v12 = vand.u32 4294901760, %v9761_v13 }
 0x4a2   : > { %v33488_v37 = vand.u32 4294901760, %v29043_v44  ;;  %v8472_v28 = vand.u32 4294901760, %v8471_v27  ;;  %v8490_v27 = vand.u32 4294901760, %v8489_v45 }
 0x4a3   : > { %v9779_v56 = vsub.f32 %v29048_v42, %v34158_v49  ;;  %v9750_v35 = vand.u32 4294901760, %v9749_v63  ;;  %v8507_v49 = vsub.f32 %v29054_v50, %v34160_v16  ;;  %v8502_v33 = vand.u32 4294901760, %v8501_v10  ;;  %v34170_v10 = vld [vmem:[#allocation59_spill] sm:$0xff] }
 0x4a4   : > { %6845 = vmatmul.mubr.f32.gmra.mrb[70].mxu0 %v26476_v8  ;;  %8123 = vmatmul.mubr.f32.gmra.mrb[70].mxu1 %v26476_v8  ;;  %v9767_v26 = vsub.f32 %v29043_v44, %v33488_v37  ;;  %v8495_v37 = vsub.f32 %v29051_v18, %v34159_v53  ;;  %v22465_v16 = vpack.c.bf16 %v8484_v19, %v8472_v28 }
 0x4a5   : > { %6850 = vmatprep.mubr.f32.mxu0 %v33848_v3  ;;  %8128 = vmatprep.mubr.f32.mxu1 %v33848_v3  ;;  %v9780_v13 = vand.u32 4294901760, %v9779_v56  ;;  %v22513_v53 = vpack.c.bf16 %v9762_v12, %v9750_v35  ;;  %v8508_v14 = vand.u32 4294901760, %v8507_v49  ;;  %v34169_v35 = vld [vmem:[#allocation58_spill] sm:$0xff]  ;;  %v34172_v28 = vpack.c.bf16 %v28962_v22, %v28956_v32 }
 0x4a6   : > { %v9768_v63 = vand.u32 4294901760, %v9767_v26  ;;  %v34171_v26 = vpack.c.bf16 %v28954_v43, %v28952_v7  ;;  %v34173_v12 = vpack.c.bf16 %v29038_v57, %v29033_v39  ;;  %v34175_v19 = vpack.c.bf16 %v29054_v50, %v29051_v18 }
 0x4a7   : > { %v34176_v49 = vpack.c.bf16 %v29060_v17, %v29057_v24 }
 0x4a8   : > { %6852 = vmatmul.mubr.f32.gmra.mrb[72].mxu0 %v26483_v25  ;;  %8130 = vmatmul.mubr.f32.gmra.mrb[72].mxu1 %v26483_v25  ;;  %v22515_v55 = vpack.c.bf16 %v9780_v13, %v9768_v63  ;;  %v34179_v63 = vld [vmem:[#allocation39_spill] sm:$0xff]  ;;  %v34180_v13 = vld [vmem:[#allocation42_spill] sm:$0xff] }
 0x4a9   : > { %6857 = vmatprep.mubr.f32.mxu0 %v33848_v3  ;;  %8135 = vmatprep.mubr.f32.mxu1 %v33848_v3 }
 0x4ac   : > { %6859 = vmatmul.mubr.f32.gmra.mrb[74].mxu0 %v26485_v47  ;;  %8137 = vmatmul.mubr.f32.gmra.mrb[74].mxu1 %v26485_v47 }
 0x4ad   : > { %6864 = vmatprep.mubr.f32.mxu0 %v33848_v3  ;;  %8142 = vmatprep.mubr.f32.mxu1 %v33848_v3 }
 0x4b0   : > { %6866 = vmatmul.mubr.f32.gmra.mrb[76].mxu0 %v26530_v11  ;;  %8144 = vmatmul.mubr.f32.gmra.mrb[76].mxu1 %v26530_v11 }
 0x4b1   : > { %6871 = vmatprep.mubr.f32.mxu0 %v33848_v3  ;;  %8149 = vmatprep.mubr.f32.mxu1 %v33848_v3 }
 0x4b4   : > { %6873 = vmatmul.mubr.f32.gmra.mrb[78].mxu0 %v26532_v59  ;;  %8151 = vmatmul.mubr.f32.gmra.mrb[78].mxu1 %v26532_v59 }
 0x4b5   : > { %6878 = vmatprep.mubr.f32.mxu0 %v33848_v3  ;;  %8156 = vmatprep.mubr.f32.mxu1 %v33848_v3 }
 0x4b8   : > { %6880 = vmatmul.mubr.f32.gmra.mrb[80].mxu0 %v26586_v46  ;;  %8158 = vmatmul.mubr.f32.gmra.mrb[80].mxu1 %v26586_v46 }
 0x4b9   : > { %6885 = vmatprep.mubr.f32.mxu0 %v33848_v3  ;;  %8163 = vmatprep.mubr.f32.mxu1 %v33848_v3 }
 0x4bc   : > { %6887 = vmatmul.mubr.f32.gmra.mrb[82].mxu0 %v26646_v61  ;;  %8165 = vmatmul.mubr.f32.gmra.mrb[82].mxu1 %v26646_v61 }
 0x4bd   : > { %6892 = vmatprep.mubr.f32.mxu0 %v33848_v3  ;;  %8170 = vmatprep.mubr.f32.mxu1 %v33848_v3 }
 0x4c0   : > { %6894 = vmatmul.mubr.f32.gmra.mrb[84].mxu0 %v26665_v60  ;;  %8172 = vmatmul.mubr.f32.gmra.mrb[84].mxu1 %v26665_v60 }
 0x4c1   : > { %6899 = vmatprep.mubr.f32.mxu0 %v33848_v3  ;;  %8177 = vmatprep.mubr.f32.mxu1 %v33848_v3 }
 0x4c4   : > { %6901 = vmatmul.mubr.f32.gmra.mrb[86].mxu0 %v34065_v58  ;;  %8179 = vmatmul.mubr.f32.gmra.mrb[86].mxu1 %v34065_v58  ;;  %v22467_v58 = vpack.c.bf16 %v8502_v33, %v8490_v27  ;;  %v34177_v27 = vld [vmem:[#allocation43_spill] sm:$0xff]  ;;  %v34178_v33 = vld [vmem:[#allocation37_spill] sm:$0xff] }
 0x4c5   : > { %6906 = vmatprep.mubr.f32.mxu0 %v33848_v3  ;;  %8184 = vmatprep.mubr.f32.mxu1 %v33848_v3 }
 0x4c8   : > { %6908 = vmatmul.mubr.f32.gmra.mrb[88].mxu0 %v34066_v29  ;;  %8186 = vmatmul.mubr.f32.gmra.mrb[88].mxu1 %v34066_v29  ;;  %v9786_v29 = vand.u32 4294901760, %v9785_v36  ;;  %v34163_v36 = vpack.c.bf16 %v28882_v41, %v28877_v0 }
 0x4c9   : > { %6913 = vmatprep.mubr.f32.mxu0 %v33848_v3  ;;  %8191 = vmatprep.mubr.f32.mxu1 %v33848_v3 }
 0x4cc   : > { %6915 = vmatmul.mubr.f32.gmra.mrb[90].mxu0 %v34067_v2  ;;  %8193 = vmatmul.mubr.f32.gmra.mrb[90].mxu1 %v34067_v2  ;;  %v9774_v2 = vand.u32 4294901760, %v9773_v1  ;;  %v34168_v1 = vld [vmem:[#allocation56_spill] sm:$0xff] }
 0x4cd   : > { %6920 = vmatprep.mubr.f32.mxu0 %v33848_v3  ;;  %8198 = vmatprep.mubr.f32.mxu1 %v33848_v3 }
 0x4ce   : > { %v22517_v45 = vpack.c.bf16 %v9786_v29, %v9774_v2  ;;  %v34166_v29 = vld [vmem:[#allocation51_spill] sm:$0xff]  ;;  %v34167_v2 = vld [vmem:[#allocation53_spill] sm:$0xff] }
 0x4d0   : > { %6922 = vmatmul.mubr.f32.gmra.mrb[92].mxu0 %v34068_v21  ;;  %8200 = vmatmul.mubr.f32.gmra.mrb[92].mxu1 %v34068_v21  ;;  %v8496_v21 = vand.u32 4294901760, %v8495_v37  ;;  %v34174_v37 = vpack.c.bf16 %v29048_v42, %v29043_v44 }
 0x4d1   : > { %6927 = vmatprep.mubr.f32.mxu0 %v33848_v3  ;;  %8205 = vmatprep.mubr.f32.mxu1 %v33848_v3 }
 0x4d2   : > { %v22469_v56 = vpack.c.bf16 %v8508_v14, %v8496_v21  ;;  %v34164_v21 = vpack.c.bf16 %v28892_v20, %v28887_v52  ;;  %v34183_v14 = vld [vmem:[#allocation67_spill] sm:$0xff] }
 0x4d4   : > { %6929 = vmatmul.mubr.f32.gmra.mrb[94].mxu0 %v26756_v48  ;;  %8207 = vmatmul.mubr.f32.gmra.mrb[94].mxu1 %v26756_v48 }
 0x4d5   : > { %8285 = vmatprep.mubr.f32.mxu0 %v33848_v3  ;;  %9563 = vmatprep.mubr.f32.mxu1 %v33848_v3 }
 0x4d8   : > { %8291 = vmatmul.mubr.f32.vlgmr.msra.gmra.mrb[96].mxu0 %v33938_v4  ;;  %9569 = vmatmul.mubr.f32.vlgmr.msra.gmra.mrb[96].mxu1 %v33938_v4 }
 0x4d9   : > { %22466 = vmatpush1.bf16.msra.mxu0 %v22465_v16  ;;  %22514 = vmatpush1.bf16.msra.mxu1 %v22513_v53  ;;  %v34181_v16 = vld [vmem:[#allocation46_spill] sm:$0xff]  ;;  %v34182_v53 = vld [vmem:[#allocation8_spill] sm:$0xff] }
 0x4da   : > { %8296 = vmatprep.mubr.f32.mxu0 %v33848_v3  ;;  %9574 = vmatprep.mubr.f32.mxu1 %v33848_v3 }
 0x4db   : > { %22468 = vmatprep.subr.bf16.mxu0 %v22467_v58  ;;  %22516 = vmatprep.subr.bf16.mxu1 %v22515_v55  ;;  %v34165_v58 = vld [vmem:[#allocation47_spill] sm:$0xff]  ;;  %v34184_v55 = vld [vmem:[#allocation68_spill] sm:$0xff] }
 0x4dc   : > { %8302 = vmatmul.mubr.f32.gmra.mrb[98].mxu0 %v33939_v31  ;;  %9580 = vmatmul.mubr.f32.gmra.mrb[98].mxu1 %v33939_v31 }
 0x4dd   : > { %8307 = vmatprep.mubr.f32.mxu0 %v33848_v3  ;;  %9585 = vmatprep.mubr.f32.mxu1 %v33848_v3 }
 0x4de   : > { %22470 = vmatpush1.bf16.msra.mxu0 %v22469_v56  ;;  %22518 = vmatpush1.bf16.msra.mxu1 %v22517_v45  ;;  %v34185_v56 = vld [vmem:[#allocation69_spill] sm:$0xff]  ;;  %v34186_v45 = vld [vmem:[#allocation70_spill] sm:$0xff] }
 0x4df   : > { %22472 = vmatprep.subr.bf16.mxu0 %v34163_v36  ;;  %22520 = vmatprep.subr.bf16.mxu1 %v34164_v21  ;;  %v34187_v36 = vand.u32 4294901760, %v28877_v0  ;;  %v34188_v21 = vand.u32 4294901760, %v28882_v41  ;;  %v34194_v0 = vld [vmem:[#allocation12_spill] sm:$0xff]  ;;  %v34195_v41 = vld [vmem:[#allocation14_spill] sm:$0xff] }
 0x4e0   : > { %8313 = vmatmul.mubr.f32.gmra.mrb[100].mxu0 %v33942_v5  ;;  %9591 = vmatmul.mubr.f32.gmra.mrb[100].mxu1 %v33942_v5 }
 0x4e1   : > { %8318 = vmatprep.mubr.f32.mxu0 %v33848_v3  ;;  %9596 = vmatprep.mubr.f32.mxu1 %v33848_v3 }
 0x4e4   : > { %8324 = vmatmul.mubr.f32.gmra.mrb[102].mxu0 %v33943_v15  ;;  %9602 = vmatmul.mubr.f32.gmra.mrb[102].mxu1 %v33943_v15 }
 0x4e5   : > { %8329 = vmatprep.mubr.f32.mxu0 %v33848_v3  ;;  %9607 = vmatprep.mubr.f32.mxu1 %v33848_v3 }
 0x4e8   : > { %8335 = vmatmul.mubr.f32.gmra.mrb[104].mxu0 %v33944_v38  ;;  %9613 = vmatmul.mubr.f32.gmra.mrb[104].mxu1 %v33944_v38 }
 0x4e9   : > { %8340 = vmatprep.mubr.f32.mxu0 %v33848_v3  ;;  %9618 = vmatprep.mubr.f32.mxu1 %v33848_v3 }
 0x4ec   : > { %8346 = vmatmul.mubr.f32.gmra.mrb[106].mxu0 %v33945_v40  ;;  %9624 = vmatmul.mubr.f32.gmra.mrb[106].mxu1 %v33945_v40 }
 0x4ed   : > { %8351 = vmatprep.mubr.f32.mxu0 %v33848_v3  ;;  %9629 = vmatprep.mubr.f32.mxu1 %v33848_v3 }
 0x4f0   : > { %8357 = vmatmul.mubr.f32.gmra.mrb[108].mxu0 %v33946_v34  ;;  %9635 = vmatmul.mubr.f32.gmra.mrb[108].mxu1 %v33946_v34 }
 0x4f1   : > { %8362 = vmatprep.mubr.f32.mxu0 %v33848_v3  ;;  %9640 = vmatprep.mubr.f32.mxu1 %v33848_v3 }
 0x4f4   : > { %8368 = vmatmul.mubr.f32.gmra.mrb[110].mxu0 %v33947_v30  ;;  %9646 = vmatmul.mubr.f32.gmra.mrb[110].mxu1 %v33947_v30 }
 0x4f5   : > { %8373 = vmatprep.mubr.f32.mxu0 %v33848_v3  ;;  %9651 = vmatprep.mubr.f32.mxu1 %v33848_v3 }
 0x4f8   : > { %8379 = vmatmul.mubr.f32.gmra.mrb[112].mxu0 %v33948_v23  ;;  %9657 = vmatmul.mubr.f32.gmra.mrb[112].mxu1 %v33948_v23 }
 0x4f9   : > { %8384 = vmatprep.mubr.f32.mxu0 %v33848_v3  ;;  %9662 = vmatprep.mubr.f32.mxu1 %v33848_v3 }
 0x4fc   : > { %8390 = vmatmul.mubr.f32.gmra.mrb[114].mxu0 %v34052_v9  ;;  %9668 = vmatmul.mubr.f32.gmra.mrb[114].mxu1 %v34052_v9 }
 0x4fd   : > { %8395 = vmatprep.mubr.f32.mxu0 %v33848_v3  ;;  %9673 = vmatprep.mubr.f32.mxu1 %v33848_v3 }
 0x500   : > { %8401 = vmatmul.mubr.f32.gmra.mrb[116].mxu0 %v34165_v58  ;;  %9679 = vmatmul.mubr.f32.gmra.mrb[116].mxu1 %v34165_v58 }
 0x501   : > { %8406 = vmatprep.mubr.f32.mxu0 %v33848_v3  ;;  %9684 = vmatprep.mubr.f32.mxu1 %v33848_v3 }
 0x504   : > { %8412 = vmatmul.mubr.f32.gmra.mrb[118].mxu0 %v34166_v29  ;;  %9690 = vmatmul.mubr.f32.gmra.mrb[118].mxu1 %v34166_v29 }
 0x505   : > { %8417 = vmatprep.mubr.f32.mxu0 %v33848_v3  ;;  %9695 = vmatprep.mubr.f32.mxu1 %v33848_v3 }
 0x508   : > { %8423 = vmatmul.mubr.f32.gmra.mrb[120].mxu0 %v34167_v2  ;;  %9701 = vmatmul.mubr.f32.gmra.mrb[120].mxu1 %v34167_v2  ;;  %v34199_v2 = vld [vmem:[#allocation19_spill] sm:$0xff] }
 0x509   : > { %8428 = vmatprep.mubr.f32.mxu0 %v33848_v3  ;;  %9706 = vmatprep.mubr.f32.mxu1 %v33848_v3 }
 0x50c   : > { %8434 = vmatmul.mubr.f32.gmra.mrb[122].mxu0 %v34168_v1  ;;  %9712 = vmatmul.mubr.f32.gmra.mrb[122].mxu1 %v34168_v1 }
 0x50d   : > { %8439 = vmatprep.mubr.f32.mxu0 %v33848_v3  ;;  %9717 = vmatprep.mubr.f32.mxu1 %v33848_v3 }
 0x510   : > { %8445 = vmatmul.mubr.f32.gmra.mrb[124].mxu0 %v34169_v35  ;;  %9723 = vmatmul.mubr.f32.gmra.mrb[124].mxu1 %v34169_v35 }
 0x511   : > { %8450 = vmatprep.mubr.f32.mxu0 %v33848_v3  ;;  %9728 = vmatprep.mubr.f32.mxu1 %v33848_v3 }
 0x514   : > { %8456 = vmatmul.mubr.f32.gmra.mrb[126].mxu0 %v34170_v10  ;;  %9734 = vmatmul.mubr.f32.gmra.mrb[126].mxu1 %v34170_v10 }
 0x515   : > { %8566 = vmatprep.mubr.f32.mxu0 %v33848_v3  ;;  %9844 = vmatprep.mubr.f32.mxu1 %v33848_v3 }
 0x518   : > { %8568 = vmatmul.mubr.f32.vlgmr.msra.gmra.mrb[96].mxu0 %v26412_v51  ;;  %9846 = vmatmul.mubr.f32.vlgmr.msra.gmra.mrb[96].mxu1 %v26412_v51 }
 0x519   : > { %22474 = vmatpush1.bf16.msra.mxu0 %v34171_v26  ;;  %22522 = vmatpush1.bf16.msra.mxu1 %v34172_v28  ;;  %v22487_v26 = vpack.c.bf16 %v34188_v21, %v34187_v36  ;;  %v34189_v28 = vand.u32 4294901760, %v28887_v52  ;;  %v34196_v52 = vld [vmem:[#allocation17_spill] sm:$0xff]  ;;  %v34197_v21 = vld [vmem:[#allocation10_spill] sm:$0xff] }
 0x51a   : > { %8573 = vmatprep.mubr.f32.mxu0 %v33848_v3  ;;  %9851 = vmatprep.mubr.f32.mxu1 %v33848_v3 }
 0x51b   : > { %22476 = vmatprep.subr.bf16.mxu0 %v34173_v12  ;;  %22524 = vmatprep.subr.bf16.mxu1 %v34174_v37  ;;  %v34190_v12 = vand.u32 4294901760, %v28892_v20 }
 0x51c   : > { %8575 = vmatmul.mubr.f32.gmra.mrb[98].mxu0 %v26465_v62  ;;  %9853 = vmatmul.mubr.f32.gmra.mrb[98].mxu1 %v26465_v62 }
 0x51d   : > { %8580 = vmatprep.mubr.f32.mxu0 %v33848_v3  ;;  %9858 = vmatprep.mubr.f32.mxu1 %v33848_v3  ;;  %v22535_v37 = vpack.c.bf16 %v34190_v12, %v34189_v28 }
 0x51e   : > { %22478 = vmatpush1.bf16.msra.mxu0 %v34175_v19  ;;  %22526 = vmatpush1.bf16.msra.mxu1 %v34176_v49  ;;  %v34191_v19 = vld [vmem:[#allocation11_spill] sm:$0xff] }
 0x51f   : > { %22480 = vmatprep.subr.bf16.mxu0 %v28812_v54  ;;  %22528 = vmatprep.subr.bf16.mxu1 %v34177_v27  ;;  %v34192_v49 = vld [vmem:[#allocation71_spill] sm:$0xff] }
 0x520   : > { %8582 = vmatmul.mubr.f32.gmra.mrb[100].mxu0 %v26468_v6  ;;  %9860 = vmatmul.mubr.f32.gmra.mrb[100].mxu1 %v26468_v6 }
 0x521   : > { %8587 = vmatprep.mubr.f32.mxu0 %v33848_v3  ;;  %9865 = vmatprep.mubr.f32.mxu1 %v33848_v3 }
 0x524   : > { %8589 = vmatmul.mubr.f32.gmra.mrb[102].mxu0 %v26476_v8  ;;  %9867 = vmatmul.mubr.f32.gmra.mrb[102].mxu1 %v26476_v8 }
 0x525   : > { %8594 = vmatprep.mubr.f32.mxu0 %v33848_v3  ;;  %9872 = vmatprep.mubr.f32.mxu1 %v33848_v3 }
 0x528   : > { %8596 = vmatmul.mubr.f32.gmra.mrb[104].mxu0 %v26483_v25  ;;  %9874 = vmatmul.mubr.f32.gmra.mrb[104].mxu1 %v26483_v25 }
 0x529   : > { %8601 = vmatprep.mubr.f32.mxu0 %v33848_v3  ;;  %9879 = vmatprep.mubr.f32.mxu1 %v33848_v3 }
 0x52c   : > { %8603 = vmatmul.mubr.f32.gmra.mrb[106].mxu0 %v26485_v47  ;;  %9881 = vmatmul.mubr.f32.gmra.mrb[106].mxu1 %v26485_v47 }
 0x52d   : > { %8608 = vmatprep.mubr.f32.mxu0 %v33848_v3  ;;  %9886 = vmatprep.mubr.f32.mxu1 %v33848_v3 }
 0x530   : > { %8610 = vmatmul.mubr.f32.gmra.mrb[108].mxu0 %v26530_v11  ;;  %9888 = vmatmul.mubr.f32.gmra.mrb[108].mxu1 %v26530_v11 }
 0x531   : > { %8615 = vmatprep.mubr.f32.mxu0 %v33848_v3  ;;  %9893 = vmatprep.mubr.f32.mxu1 %v33848_v3 }
 0x534   : > { %8617 = vmatmul.mubr.f32.gmra.mrb[110].mxu0 %v26532_v59  ;;  %9895 = vmatmul.mubr.f32.gmra.mrb[110].mxu1 %v26532_v59 }
 0x535   : > { %8622 = vmatprep.mubr.f32.mxu0 %v33848_v3  ;;  %9900 = vmatprep.mubr.f32.mxu1 %v33848_v3 }
 0x538   : > { %8624 = vmatmul.mubr.f32.gmra.mrb[112].mxu0 %v26586_v46  ;;  %9902 = vmatmul.mubr.f32.gmra.mrb[112].mxu1 %v26586_v46 }
 0x539   : > { %8629 = vmatprep.mubr.f32.mxu0 %v33848_v3  ;;  %9907 = vmatprep.mubr.f32.mxu1 %v33848_v3 }
 0x53c   : > { %8631 = vmatmul.mubr.f32.gmra.mrb[114].mxu0 %v26646_v61  ;;  %9909 = vmatmul.mubr.f32.gmra.mrb[114].mxu1 %v26646_v61 }
 0x53d   : > { %8636 = vmatprep.mubr.f32.mxu0 %v33848_v3  ;;  %9914 = vmatprep.mubr.f32.mxu1 %v33848_v3 }
 0x540   : > { %8638 = vmatmul.mubr.f32.gmra.mrb[116].mxu0 %v26665_v60  ;;  %9916 = vmatmul.mubr.f32.gmra.mrb[116].mxu1 %v26665_v60 }
 0x541   : > { %8643 = vmatprep.mubr.f32.mxu0 %v33848_v3  ;;  %9921 = vmatprep.mubr.f32.mxu1 %v33848_v3 }
 0x544   : > { %8645 = vmatmul.mubr.f32.gmra.mrb[118].mxu0 %v34178_v33  ;;  %9923 = vmatmul.mubr.f32.gmra.mrb[118].mxu1 %v34178_v33 }
 0x545   : > { %8650 = vmatprep.mubr.f32.mxu0 %v33848_v3  ;;  %9928 = vmatprep.mubr.f32.mxu1 %v33848_v3 }
 0x548   : > { %8652 = vmatmul.mubr.f32.gmra.mrb[120].mxu0 %v34179_v63  ;;  %9930 = vmatmul.mubr.f32.gmra.mrb[120].mxu1 %v34179_v63 }
 0x549   : > { %8657 = vmatprep.mubr.f32.mxu0 %v33848_v3  ;;  %9935 = vmatprep.mubr.f32.mxu1 %v33848_v3 }
 0x54c   : > { %8659 = vmatmul.mubr.f32.gmra.mrb[122].mxu0 %v34180_v13  ;;  %9937 = vmatmul.mubr.f32.gmra.mrb[122].mxu1 %v34180_v13 }
 0x54d   : > { %8664 = vmatprep.mubr.f32.mxu0 %v33848_v3  ;;  %9942 = vmatprep.mubr.f32.mxu1 %v33848_v3 }
 0x550   : > { %8666 = vmatmul.mubr.f32.gmra.mrb[124].mxu0 %v34181_v16  ;;  %9944 = vmatmul.mubr.f32.gmra.mrb[124].mxu1 %v34181_v16 }
 0x551   : > { %8671 = vmatprep.mubr.f32.mxu0 %v33848_v3  ;;  %9949 = vmatprep.mubr.f32.mxu1 %v33848_v3 }
 0x554   : > { %8673 = vmatmul.mubr.f32.gmra.mrb[126].mxu0 %v26756_v48  ;;  %9951 = vmatmul.mubr.f32.gmra.mrb[126].mxu1 %v26756_v48 }
 0x555   : > { %8759 = vmatprep.mubr.f32.mxu0 %v33848_v3  ;;  %10037 = vmatprep.mubr.f32.mxu1 %v33848_v3 }
 0x558   : > { %8762 = vmatmul.mubr.f32.vlgmr.msra.gmra.mrb[96].mxu0 %v34182_v53  ;;  %10040 = vmatmul.mubr.f32.vlgmr.msra.gmra.mrb[96].mxu1 %v34182_v53  ;;  %v34193_v53 = vld [vmem:[#allocation72_spill] sm:$0xff] }
 0x559   : > { %22482 = vmatpush1.bf16.msra.mxu0 %v34183_v14  ;;  %22530 = vmatpush1.bf16.msra.mxu1 %v34184_v55 }
 0x55a   : > { %8767 = vmatprep.mubr.f32.mxu0 %v33848_v3  ;;  %10045 = vmatprep.mubr.f32.mxu1 %v33848_v3 }
 0x55b   : > { %22484 = vmatprep.subr.bf16.mxu0 %v34185_v56  ;;  %22532 = vmatprep.subr.bf16.mxu1 %v34186_v45 }
 0x55c   : > { %8770 = vmatmul.mubr.f32.gmra.mrb[98].mxu0 %v34191_v19  ;;  %10048 = vmatmul.mubr.f32.gmra.mrb[98].mxu1 %v34191_v19 }
 0x55d   : > { %8775 = vmatprep.mubr.f32.mxu0 %v33848_v3  ;;  %10053 = vmatprep.mubr.f32.mxu1 %v33848_v3 }
 0x55e   : > { %22486 = vmatpush1.bf16.msra.mxu0 %v34192_v49  ;;  %22534 = vmatpush1.bf16.msra.mxu1 %v34193_v53 }
 0x55f   : > { %22488 = vmatprep.subr.bf16.mxu0 %v22487_v26  ;;  %22536 = vmatprep.subr.bf16.mxu1 %v22535_v37 }
 0x560   : > { %8778 = vmatmul.mubr.f32.gmra.mrb[100].mxu0 %v34194_v0  ;;  %10056 = vmatmul.mubr.f32.gmra.mrb[100].mxu1 %v34194_v0 }
 0x561   : > { %8783 = vmatprep.mubr.f32.mxu0 %v33848_v3  ;;  %10061 = vmatprep.mubr.f32.mxu1 %v33848_v3 }
 0x564   : > { %8786 = vmatmul.mubr.f32.gmra.mrb[102].mxu0 %v34195_v41  ;;  %10064 = vmatmul.mubr.f32.gmra.mrb[102].mxu1 %v34195_v41  ;;  %v34198_v41 = vld [vmem:[#allocation18_spill] sm:$0xff] }
 0x565   : > { %8791 = vmatprep.mubr.f32.mxu0 %v33848_v3  ;;  %10069 = vmatprep.mubr.f32.mxu1 %v33848_v3 }
 0x568   : > { %8794 = vmatmul.mubr.f32.gmra.mrb[104].mxu0 %v34196_v52  ;;  %10072 = vmatmul.mubr.f32.gmra.mrb[104].mxu1 %v34196_v52 }
 0x569   : > { %8799 = vmatprep.mubr.f32.mxu0 %v33848_v3  ;;  %10077 = vmatprep.mubr.f32.mxu1 %v33848_v3 }
 0x56b   : > { %v6825_v20 = vpop.f32.mrb[64].mxu0  ;;  %v8103_v36 = vpop.f32.mrb[64].mxu1 }
 0x56c   : > { %v23063_v26 = vadd.f32 %v6825_v20, %v34197_v21  ;;  %v23095_v28 = vadd.f32 %v8103_v36, %v34197_v21  ;;  %v6827_v12 = vpop.f32.mrb[65].mxu0  ;;  %v8105_v37 = vpop.f32.mrb[65].mxu1  ;;  %8802 = vmatmul.mubr.f32.gmra.mrb[106].mxu0 %v34198_v41  ;;  %10080 = vmatmul.mubr.f32.gmra.mrb[106].mxu1 %v34198_v41 }
 0x56d   : > { %v23064_v52 = vadd.f32 %v6827_v12, %v34197_v21  ;;  %v23096_v0 = vadd.f32 %v8105_v37, %v34197_v21  ;;  %8807 = vmatprep.mubr.f32.mxu0 %v33848_v3  ;;  %10085 = vmatprep.mubr.f32.mxu1 %v33848_v3  ;;  %v34200_v21 = vld [vmem:[#allocation23_spill] sm:$0xff] }
 0x56e   : > { %v21001_v20 = vmax.f32 %v23063_v26, 0.0  ;;  %v21003_v19 = vmax.f32 %v23095_v28, 0.0 }
 0x56f   : > { %v21002_v36 = vmax.f32 %v23064_v52, 0.0  ;;  %v21004_v10 = vmax.f32 %v23096_v0, 0.0  ;;  %v6832_v35 = vpop.f32.mrb[66].mxu0  ;;  %v8110_v1 = vpop.f32.mrb[66].mxu1 }
 0x570   : > { %21513 = vst [vmem:[%s27686_s6 + $0x40] sm:$0xff] %v21001_v20  ;;  %21515 = vst [vmem:[%s27686_s6 + $0x50] sm:$0xff] %v21003_v19  ;;  %v23065_v41 = vadd.f32 %v6832_v35, %v34199_v2  ;;  %v23097_v12 = vadd.f32 %v8110_v1, %v34199_v2  ;;  %v6834_v29 = vpop.f32.mrb[67].mxu0  ;;  %v8112_v37 = vpop.f32.mrb[67].mxu1  ;;  %8810 = vmatmul.mubr.f32.gmra.mrb[108].mxu0 %v34200_v21  ;;  %10088 = vmatmul.mubr.f32.gmra.mrb[108].mxu1 %v34200_v21 }
 0x571   : > { %21514 = vst [vmem:[%s27686_s6 + $0x48] sm:$0xff] %v21002_v36  ;;  %21516 = vst [vmem:[%s27686_s6 + $0x58] sm:$0xff] %v21004_v10  ;;  %v23066_v0 = vadd.f32 %v6834_v29, %v34199_v2  ;;  %v23098_v52 = vadd.f32 %v8112_v37, %v34199_v2  ;;  %8815 = vmatprep.mubr.f32.mxu0 %v33848_v3  ;;  %10093 = vmatprep.mubr.f32.mxu1 %v33848_v3  ;;  %v34201_v36 = vld [vmem:[#allocation20_spill] sm:$0xff] }
 0x572   : > { %v21033_v1 = vmax.f32 %v23065_v41, 0.0  ;;  %v21035_v35 = vmax.f32 %v23097_v12, 0.0  ;;  %v34202_v2 = vld [vmem:[#allocation24_spill] sm:$0xff] }
 0x573   : > { %v21034_v19 = vmax.f32 %v23066_v0, 0.0  ;;  %v21036_v26 = vmax.f32 %v23098_v52, 0.0  ;;  %v6839_v28 = vpop.f32.mrb[68].mxu0  ;;  %v8117_v20 = vpop.f32.mrb[68].mxu1 }
 0x574   : > { %21545 = vst [vmem:[%s27686_s6 + $0x140] sm:$0xff] %v21033_v1  ;;  %21547 = vst [vmem:[%s27686_s6 + $0x150] sm:$0xff] %v21035_v35  ;;  %v23067_v10 = vadd.f32 %v6839_v28, %v34201_v36  ;;  %v23099_v29 = vadd.f32 %v8117_v20, %v34201_v36  ;;  %v6841_v21 = vpop.f32.mrb[69].mxu0  ;;  %v8119_v37 = vpop.f32.mrb[69].mxu1  ;;  %8818 = vmatmul.mubr.f32.gmra.mrb[110].mxu0 %v34202_v2  ;;  %10096 = vmatmul.mubr.f32.gmra.mrb[110].mxu1 %v34202_v2 }
 0x575   : > { %21546 = vst [vmem:[%s27686_s6 + $0x148] sm:$0xff] %v21034_v19  ;;  %21548 = vst [vmem:[%s27686_s6 + $0x158] sm:$0xff] %v21036_v26  ;;  %v23068_v41 = vadd.f32 %v6841_v21, %v34201_v36  ;;  %v23100_v12 = vadd.f32 %v8119_v37, %v34201_v36  ;;  %8823 = vmatprep.mubr.f32.mxu0 %v33848_v3  ;;  %10101 = vmatprep.mubr.f32.mxu1 %v33848_v3  ;;  %v34203_v19 = vld [vmem:[#allocation25_spill] sm:$0xff] }
 0x576   : > { %v21065_v0 = vmax.f32 %v23067_v10, 0.0  ;;  %v21067_v52 = vmax.f32 %v23099_v29, 0.0  ;;  %v34204_v36 = vld [vmem:[#allocation29_spill] sm:$0xff] }
 0x577   : > { %v21066_v1 = vmax.f32 %v23068_v41, 0.0  ;;  %v21068_v35 = vmax.f32 %v23100_v12, 0.0  ;;  %v6846_v28 = vpop.f32.mrb[70].mxu0  ;;  %v8124_v20 = vpop.f32.mrb[70].mxu1 }
 0x578   : > { %21577 = vst [vmem:[%s27686_s6 + $0x240] sm:$0xff] %v21065_v0  ;;  %21579 = vst [vmem:[%s27686_s6 + $0x250] sm:$0xff] %v21067_v52  ;;  %v23069_v26 = vadd.f32 %v6846_v28, %v34203_v19  ;;  %v23101_v21 = vadd.f32 %v8124_v20, %v34203_v19  ;;  %v6848_v2 = vpop.f32.mrb[71].mxu0  ;;  %v8126_v37 = vpop.f32.mrb[71].mxu1  ;;  %8826 = vmatmul.mubr.f32.gmra.mrb[112].mxu0 %v34204_v36  ;;  %10104 = vmatmul.mubr.f32.gmra.mrb[112].mxu1 %v34204_v36 }
 0x579   : > { %21578 = vst [vmem:[%s27686_s6 + $0x248] sm:$0xff] %v21066_v1  ;;  %21580 = vst [vmem:[%s27686_s6 + $0x258] sm:$0xff] %v21068_v35  ;;  %v23070_v10 = vadd.f32 %v6848_v2, %v34203_v19  ;;  %v23102_v29 = vadd.f32 %v8126_v37, %v34203_v19  ;;  %8831 = vmatprep.mubr.f32.mxu0 %v33848_v3  ;;  %10109 = vmatprep.mubr.f32.mxu1 %v33848_v3  ;;  %v34205_v1 = vld [vmem:[#allocation26_spill] sm:$0xff]  ;;  %v34206_v19 = vld [vmem:[#allocation33_spill] sm:$0xff] }
 0x57a   : > { %v21097_v41 = vmax.f32 %v23069_v26, 0.0  ;;  %v21099_v12 = vmax.f32 %v23101_v21, 0.0 }
 0x57b   : > { %v21098_v0 = vmax.f32 %v23070_v10, 0.0  ;;  %v21100_v52 = vmax.f32 %v23102_v29, 0.0  ;;  %v6853_v28 = vpop.f32.mrb[72].mxu0  ;;  %v8131_v20 = vpop.f32.mrb[72].mxu1 }
 0x57c   : > { %21609 = vst [vmem:[%s27686_s6 + $0x340] sm:$0xff] %v21097_v41  ;;  %21611 = vst [vmem:[%s27686_s6 + $0x350] sm:$0xff] %v21099_v12  ;;  %v23071_v35 = vadd.f32 %v6853_v28, %v34205_v1  ;;  %v23103_v2 = vadd.f32 %v8131_v20, %v34205_v1  ;;  %v6855_v36 = vpop.f32.mrb[73].mxu0  ;;  %v8133_v37 = vpop.f32.mrb[73].mxu1  ;;  %8834 = vmatmul.mubr.f32.gmra.mrb[114].mxu0 %v34206_v19  ;;  %10112 = vmatmul.mubr.f32.gmra.mrb[114].mxu1 %v34206_v19 }
 0x57d   : > { %21610 = vst [vmem:[%s27686_s6 + $0x348] sm:$0xff] %v21098_v0  ;;  %21612 = vst [vmem:[%s27686_s6 + $0x358] sm:$0xff] %v21100_v52  ;;  %v23072_v26 = vadd.f32 %v6855_v36, %v34205_v1  ;;  %v23104_v21 = vadd.f32 %v8133_v37, %v34205_v1  ;;  %8839 = vmatprep.mubr.f32.mxu0 %v33848_v3  ;;  %10117 = vmatprep.mubr.f32.mxu1 %v33848_v3  ;;  %v34207_v0 = vld [vmem:[#allocation30_spill] sm:$0xff]  ;;  %v34208_v1 = vld [vmem:[#allocation36_spill] sm:$0xff] }
 0x57e   : > { %v21129_v10 = vmax.f32 %v23071_v35, 0.0  ;;  %v21131_v29 = vmax.f32 %v23103_v2, 0.0 }
 0x57f   : > { %v21130_v41 = vmax.f32 %v23072_v26, 0.0  ;;  %v21132_v12 = vmax.f32 %v23104_v21, 0.0  ;;  %v6860_v28 = vpop.f32.mrb[74].mxu0  ;;  %v8138_v20 = vpop.f32.mrb[74].mxu1 }
 0x580   : > { %21641 = vst [vmem:[%s27686_s6 + $0x440] sm:$0xff] %v21129_v10  ;;  %21643 = vst [vmem:[%s27686_s6 + $0x450] sm:$0xff] %v21131_v29  ;;  %v23073_v52 = vadd.f32 %v6860_v28, %v34207_v0  ;;  %v23105_v36 = vadd.f32 %v8138_v20, %v34207_v0  ;;  %v6862_v19 = vpop.f32.mrb[75].mxu0  ;;  %v8140_v37 = vpop.f32.mrb[75].mxu1  ;;  %8842 = vmatmul.mubr.f32.gmra.mrb[116].mxu0 %v34208_v1  ;;  %10120 = vmatmul.mubr.f32.gmra.mrb[116].mxu1 %v34208_v1 }
 0x581   : > { %21642 = vst [vmem:[%s27686_s6 + $0x448] sm:$0xff] %v21130_v41  ;;  %21644 = vst [vmem:[%s27686_s6 + $0x458] sm:$0xff] %v21132_v12  ;;  %v23074_v35 = vadd.f32 %v6862_v19, %v34207_v0  ;;  %v23106_v2 = vadd.f32 %v8140_v37, %v34207_v0  ;;  %8847 = vmatprep.mubr.f32.mxu0 %v33848_v3  ;;  %10125 = vmatprep.mubr.f32.mxu1 %v33848_v3  ;;  %v34209_v41 = vld [vmem:[#allocation32_spill] sm:$0xff]  ;;  %v34210_v0 = vld [vmem:[#allocation41_spill] sm:$0xff] }
 0x582   : > { %v21161_v26 = vmax.f32 %v23073_v52, 0.0  ;;  %v21163_v21 = vmax.f32 %v23105_v36, 0.0 }
 0x583   : > { %v21162_v10 = vmax.f32 %v23074_v35, 0.0  ;;  %v21164_v29 = vmax.f32 %v23106_v2, 0.0  ;;  %v6867_v28 = vpop.f32.mrb[76].mxu0  ;;  %v8145_v20 = vpop.f32.mrb[76].mxu1 }
 0x584   : > { %21673 = vst [vmem:[%s27686_s6 + $0x540] sm:$0xff] %v21161_v26  ;;  %21675 = vst [vmem:[%s27686_s6 + $0x550] sm:$0xff] %v21163_v21  ;;  %v23075_v12 = vadd.f32 %v6867_v28, %v34209_v41  ;;  %v23107_v19 = vadd.f32 %v8145_v20, %v34209_v41  ;;  %v6869_v1 = vpop.f32.mrb[77].mxu0  ;;  %v8147_v37 = vpop.f32.mrb[77].mxu1  ;;  %8850 = vmatmul.mubr.f32.gmra.mrb[118].mxu0 %v34210_v0  ;;  %10128 = vmatmul.mubr.f32.gmra.mrb[118].mxu1 %v34210_v0 }
 0x585   : > { %21674 = vst [vmem:[%s27686_s6 + $0x548] sm:$0xff] %v21162_v10  ;;  %21676 = vst [vmem:[%s27686_s6 + $0x558] sm:$0xff] %v21164_v29  ;;  %v23076_v52 = vadd.f32 %v6869_v1, %v34209_v41  ;;  %v23108_v36 = vadd.f32 %v8147_v37, %v34209_v41  ;;  %8855 = vmatprep.mubr.f32.mxu0 %v33848_v3  ;;  %10133 = vmatprep.mubr.f32.mxu1 %v33848_v3  ;;  %v34211_v10 = vld [vmem:[#allocation34_spill] sm:$0xff]  ;;  %v34212_v41 = vld [vmem:[#allocation45_spill] sm:$0xff] }
 0x586   : > { %v21193_v35 = vmax.f32 %v23075_v12, 0.0  ;;  %v21195_v2 = vmax.f32 %v23107_v19, 0.0 }
 0x587   : > { %v21194_v26 = vmax.f32 %v23076_v52, 0.0  ;;  %v21196_v21 = vmax.f32 %v23108_v36, 0.0  ;;  %v6874_v28 = vpop.f32.mrb[78].mxu0  ;;  %v8152_v20 = vpop.f32.mrb[78].mxu1 }
 0x588   : > { %21705 = vst [vmem:[%s27686_s6 + $0x640] sm:$0xff] %v21193_v35  ;;  %21707 = vst [vmem:[%s27686_s6 + $0x650] sm:$0xff] %v21195_v2  ;;  %v23077_v29 = vadd.f32 %v6874_v28, %v34211_v10  ;;  %v23109_v1 = vadd.f32 %v8152_v20, %v34211_v10  ;;  %v6876_v0 = vpop.f32.mrb[79].mxu0  ;;  %v8154_v37 = vpop.f32.mrb[79].mxu1  ;;  %8858 = vmatmul.mubr.f32.gmra.mrb[120].mxu0 %v34212_v41  ;;  %10136 = vmatmul.mubr.f32.gmra.mrb[120].mxu1 %v34212_v41 }
 0x589   : > { %21706 = vst [vmem:[%s27686_s6 + $0x648] sm:$0xff] %v21194_v26  ;;  %21708 = vst [vmem:[%s27686_s6 + $0x658] sm:$0xff] %v21196_v21  ;;  %v23078_v12 = vadd.f32 %v6876_v0, %v34211_v10  ;;  %v23110_v19 = vadd.f32 %v8154_v37, %v34211_v10  ;;  %8863 = vmatprep.mubr.f32.mxu0 %v33848_v3  ;;  %10141 = vmatprep.mubr.f32.mxu1 %v33848_v3  ;;  %v34213_v26 = vld [vmem:[#allocation38_spill] sm:$0xff]  ;;  %v34214_v10 = vld [vmem:[#allocation49_spill] sm:$0xff] }
 0x58a   : > { %v21225_v52 = vmax.f32 %v23077_v29, 0.0  ;;  %v21227_v36 = vmax.f32 %v23109_v1, 0.0 }
 0x58b   : > { %v21226_v35 = vmax.f32 %v23078_v12, 0.0  ;;  %v21228_v2 = vmax.f32 %v23110_v19, 0.0  ;;  %v6881_v28 = vpop.f32.mrb[80].mxu0  ;;  %v8159_v20 = vpop.f32.mrb[80].mxu1 }
 0x58c   : > { %21737 = vst [vmem:[%s27686_s6 + $0x740] sm:$0xff] %v21225_v52  ;;  %21739 = vst [vmem:[%s27686_s6 + $0x750] sm:$0xff] %v21227_v36  ;;  %v23079_v21 = vadd.f32 %v6881_v28, %v34213_v26  ;;  %v23111_v0 = vadd.f32 %v8159_v20, %v34213_v26  ;;  %v6883_v41 = vpop.f32.mrb[81].mxu0  ;;  %v8161_v37 = vpop.f32.mrb[81].mxu1  ;;  %8866 = vmatmul.mubr.f32.gmra.mrb[122].mxu0 %v34214_v10  ;;  %10144 = vmatmul.mubr.f32.gmra.mrb[122].mxu1 %v34214_v10 }
 0x58d   : > { %21738 = vst [vmem:[%s27686_s6 + $0x748] sm:$0xff] %v21226_v35  ;;  %21740 = vst [vmem:[%s27686_s6 + $0x758] sm:$0xff] %v21228_v2  ;;  %v23080_v29 = vadd.f32 %v6883_v41, %v34213_v26  ;;  %v23112_v1 = vadd.f32 %v8161_v37, %v34213_v26  ;;  %8871 = vmatprep.mubr.f32.mxu0 %v33848_v3  ;;  %10149 = vmatprep.mubr.f32.mxu1 %v33848_v3  ;;  %v34215_v35 = vld [vmem:[#allocation60_spill] sm:$0xff]  ;;  %v34216_v26 = vld [vmem:[#allocation50_spill] sm:$0xff] }
 0x58e   : > { %v21257_v12 = vmax.f32 %v23079_v21, 0.0  ;;  %v21259_v19 = vmax.f32 %v23111_v0, 0.0 }
 0x58f   : > { %v21258_v52 = vmax.f32 %v23080_v29, 0.0  ;;  %v21260_v36 = vmax.f32 %v23112_v1, 0.0  ;;  %v6888_v28 = vpop.f32.mrb[82].mxu0  ;;  %v8166_v20 = vpop.f32.mrb[82].mxu1 }
 0x590   : > { %21769 = vst [vmem:[%s27686_s6 + $0x840] sm:$0xff] %v21257_v12  ;;  %21771 = vst [vmem:[%s27686_s6 + $0x850] sm:$0xff] %v21259_v19  ;;  %v23081_v2 = vadd.f32 %v6888_v28, %v34215_v35  ;;  %v23113_v41 = vadd.f32 %v8166_v20, %v34215_v35  ;;  %v6890_v10 = vpop.f32.mrb[83].mxu0  ;;  %v8168_v37 = vpop.f32.mrb[83].mxu1  ;;  %8874 = vmatmul.mubr.f32.gmra.mrb[124].mxu0 %v34216_v26  ;;  %10152 = vmatmul.mubr.f32.gmra.mrb[124].mxu1 %v34216_v26 }
 0x591   : > { %21770 = vst [vmem:[%s27686_s6 + $0x848] sm:$0xff] %v21258_v52  ;;  %21772 = vst [vmem:[%s27686_s6 + $0x858] sm:$0xff] %v21260_v36  ;;  %v23082_v21 = vadd.f32 %v6890_v10, %v34215_v35  ;;  %v23114_v0 = vadd.f32 %v8168_v37, %v34215_v35  ;;  %8879 = vmatprep.mubr.f32.mxu0 %v33848_v3  ;;  %10157 = vmatprep.mubr.f32.mxu1 %v33848_v3  ;;  %v34217_v52 = vld [vmem:[#allocation61_spill] sm:$0xff]  ;;  %v34218_v35 = vld [vmem:[#allocation55_spill] sm:$0xff] }
 0x592   : > { %v21289_v29 = vmax.f32 %v23081_v2, 0.0  ;;  %v21291_v1 = vmax.f32 %v23113_v41, 0.0  ;;  %v34219_v2 = vand.u32 4294901760, %v28952_v7  ;;  %v34220_v41 = vand.u32 4294901760, %v28954_v43 }
 0x593   : > { %v21290_v12 = vmax.f32 %v23082_v21, 0.0  ;;  %v21292_v19 = vmax.f32 %v23114_v0, 0.0  ;;  %v6895_v28 = vpop.f32.mrb[84].mxu0  ;;  %v8173_v20 = vpop.f32.mrb[84].mxu1 }
 0x594   : > { %21801 = vst [vmem:[%s27686_s6 + $0x940] sm:$0xff] %v21289_v29  ;;  %21803 = vst [vmem:[%s27686_s6 + $0x950] sm:$0xff] %v21291_v1  ;;  %v23083_v36 = vadd.f32 %v6895_v28, %v34217_v52  ;;  %v23115_v10 = vadd.f32 %v8173_v20, %v34217_v52  ;;  %v6897_v26 = vpop.f32.mrb[85].mxu0  ;;  %v8175_v37 = vpop.f32.mrb[85].mxu1  ;;  %8882 = vmatmul.mubr.f32.gmra.mrb[126].mxu0 %v34218_v35  ;;  %10160 = vmatmul.mubr.f32.gmra.mrb[126].mxu1 %v34218_v35  ;;  %v34221_v1 = vand.u32 4294901760, %v28956_v32 }
 0x595   : > { %v22489_v21 = vpack.c.bf16 %v34220_v41, %v34219_v2  ;;  %21802 = vst [vmem:[%s27686_s6 + $0x948] sm:$0xff] %v21290_v12  ;;  %21804 = vst [vmem:[%s27686_s6 + $0x958] sm:$0xff] %v21292_v19  ;;  %v23084_v0 = vadd.f32 %v6897_v26, %v34217_v52  ;;  %v23116_v29 = vadd.f32 %v8175_v37, %v34217_v52  ;;  %8960 = vmatprep.mubr.f32.mxu0 %v33848_v3 }
 0x596   : > { %10238 = vmatprep.mubr.f32.mxu1 %v33848_v3  ;;  %v34222_v28 = vand.u32 4294901760, %v28962_v22  ;;  %v21321_v20 = vmax.f32 %v23083_v36, 0.0  ;;  %v21323_v43 = vmax.f32 %v23115_v10, 0.0  ;;  %v34223_v26 = vand.u32 4294901760, %v29033_v39  ;;  %v34227_v22 = vld [vmem:[#allocation62_spill] sm:$0xff] }
 0x597   : > { %v21322_v12 = vmax.f32 %v23084_v0, 0.0  ;;  %v21324_v2 = vmax.f32 %v23116_v29, 0.0  ;;  %v6902_v19 = vpop.f32.mrb[86].mxu0  ;;  %v8180_v41 = vpop.f32.mrb[86].mxu1  ;;  %v34224_v37 = vand.u32 4294901760, %v29038_v57  ;;  %v34225_v52 = vand.u32 4294901760, %v29043_v44 }
 0x598   : > { %v22537_v7 = vpack.c.bf16 %v34222_v28, %v34221_v1  ;;  %v34226_v32 = vand.u32 4294901760, %v29048_v42  ;;  %21833 = vst [vmem:[%s27686_s6 + $0xa40] sm:$0xff] %v21321_v20  ;;  %21835 = vst [vmem:[%s27686_s6 + $0xa50] sm:$0xff] %v21323_v43  ;;  %v23085_v36 = vadd.f32 %v6902_v19, %v34227_v22  ;;  %v23117_v10 = vadd.f32 %v8180_v41, %v34227_v22  ;;  %v6904_v0 = vpop.f32.mrb[87].mxu0  ;;  %v8182_v29 = vpop.f32.mrb[87].mxu1  ;;  %v34228_v1 = vld [vmem:[#allocation9_spill] sm:$0xff] }
 0x599   : > { %v22491_v35 = vpack.c.bf16 %v34224_v37, %v34223_v26  ;;  %8964 = vmatmul.mubr.f32.vlgmr.msra.gmra.mrb[96].mxu0 %v34228_v1  ;;  %10242 = vmatmul.mubr.f32.vlgmr.msra.gmra.mrb[96].mxu1 %v34228_v1  ;;  %21834 = vst [vmem:[%s27686_s6 + $0xa48] sm:$0xff] %v21322_v12  ;;  %21836 = vst [vmem:[%s27686_s6 + $0xa58] sm:$0xff] %v21324_v2  ;;  %v23086_v39 = vadd.f32 %v6904_v0, %v34227_v22  ;;  %v34230_v28 = vand.u32 4294901760, %v29054_v50  ;;  %v34233_v26 = vld [vmem:[#allocation63_spill] sm:$0xff] }
 0x59a   : > { %v22539_v58 = vpack.c.bf16 %v34226_v32, %v34225_v52  ;;  %v23118_v42 = vadd.f32 %v8182_v29, %v34227_v22  ;;  %22490 = vmatpush1.bf16.msra.mxu0 %v22489_v21  ;;  %22538 = vmatpush1.bf16.msra.mxu1 %v22537_v7  ;;  %v21353_v57 = vmax.f32 %v23085_v36, 0.0  ;;  %v21355_v44 = vmax.f32 %v23117_v10, 0.0 }
 0x59b   : > { %8969 = vmatprep.mubr.f32.mxu0 %v33848_v3  ;;  %10247 = vmatprep.mubr.f32.mxu1 %v33848_v3  ;;  %v34229_v52 = vand.u32 4294901760, %v29051_v18  ;;  %v34231_v43 = vand.u32 4294901760, %v29057_v24  ;;  %v34232_v12 = vand.u32 4294901760, %v29060_v17  ;;  %v21354_v21 = vmax.f32 %v23086_v39, 0.0  ;;  %v6909_v19 = vpop.f32.mrb[88].mxu0  ;;  %v8187_v41 = vpop.f32.mrb[88].mxu1 }
 0x59c   : > { %v21356_v7 = vmax.f32 %v23118_v42, 0.0  ;;  %22492 = vmatprep.subr.bf16.mxu0 %v22491_v35  ;;  %22540 = vmatprep.subr.bf16.mxu1 %v22539_v58  ;;  %21865 = vst [vmem:[%s27686_s6 + $0xb40] sm:$0xff] %v21353_v57  ;;  %21867 = vst [vmem:[%s27686_s6 + $0xb50] sm:$0xff] %v21355_v44  ;;  %v23087_v18 = vadd.f32 %v6909_v19, %v34233_v26  ;;  %v23119_v50 = vadd.f32 %v8187_v41, %v34233_v26  ;;  %v6911_v37 = vpop.f32.mrb[89].mxu0  ;;  %v8189_v32 = vpop.f32.mrb[89].mxu1  ;;  %v34234_v24 = vld [vmem:[#allocation13_spill] sm:$0xff] }
 0x59d   : > { %v22493_v20 = vpack.c.bf16 %v34230_v28, %v34229_v52  ;;  %v22541_v2 = vpack.c.bf16 %v34232_v12, %v34231_v43  ;;  %8973 = vmatmul.mubr.f32.gmra.mrb[98].mxu0 %v34234_v24  ;;  %10251 = vmatmul.mubr.f32.gmra.mrb[98].mxu1 %v34234_v24  ;;  %21866 = vst [vmem:[%s27686_s6 + $0xb48] sm:$0xff] %v21354_v21  ;;  %v34235_v42 = vld [vmem:[#allocation64_spill] sm:$0xff]  ;;  %v34237_v41 = vld [vmem:[#allocation65_spill] sm:$0xff] }
 0x59e   : > { %21868 = vst [vmem:[%s27686_s6 + $0xb58] sm:$0xff] %v21356_v7  ;;  %v23088_v17 = vadd.f32 %v6911_v37, %v34233_v26  ;;  %v23120_v58 = vadd.f32 %v8189_v32, %v34233_v26  ;;  %8978 = vmatprep.mubr.f32.mxu0 %v33848_v3  ;;  %10256 = vmatprep.mubr.f32.mxu1 %v33848_v3  ;;  %v21385_v35 = vmax.f32 %v23087_v18, 0.0  ;;  %v21387_v36 = vmax.f32 %v23119_v50, 0.0 }
 0x59f   : > { %22494 = vmatpush1.bf16.msra.mxu0 %v22493_v20  ;;  %22542 = vmatpush1.bf16.msra.mxu1 %v22541_v2  ;;  %v6916_v29 = vpop.f32.mrb[90].mxu0  ;;  %v8194_v39 = vpop.f32.mrb[90].mxu1  ;;  %v34236_v20 = vld [vmem:[#allocation15_spill] sm:$0xff] }
 0x5a0   : > { %v21386_v10 = vmax.f32 %v23088_v17, 0.0  ;;  %v21388_v0 = vmax.f32 %v23120_v58, 0.0  ;;  %22496 = vmatprep.subr.bf16.mxu0 %v28812_v54  ;;  %22544 = vmatprep.subr.bf16.mxu1 %v34177_v27  ;;  %21897 = vst [vmem:[%s27686_s6 + $0xc40] sm:$0xff] %v21385_v35  ;;  %21899 = vst [vmem:[%s27686_s6 + $0xc50] sm:$0xff] %v21387_v36  ;;  %v23089_v57 = vadd.f32 %v6916_v29, %v34235_v42  ;;  %v6918_v52 = vpop.f32.mrb[91].mxu0  ;;  %v8196_v28 = vpop.f32.mrb[91].mxu1 }
 0x5a1   : > { %v23121_v44 = vadd.f32 %v8194_v39, %v34235_v42  ;;  %8982 = vmatmul.mubr.f32.gmra.mrb[100].mxu0 %v34236_v20  ;;  %10260 = vmatmul.mubr.f32.gmra.mrb[100].mxu1 %v34236_v20  ;;  %v23090_v54 = vadd.f32 %v6918_v52, %v34235_v42  ;;  %v23122_v27 = vadd.f32 %v8196_v28, %v34235_v42  ;;  %v34238_v17 = vld [vmem:[#allocation16_spill] sm:$0xff] }
 0x5a2   : > { %21898 = vst [vmem:[%s27686_s6 + $0xc48] sm:$0xff] %v21386_v10  ;;  %21900 = vst [vmem:[%s27686_s6 + $0xc58] sm:$0xff] %v21388_v0  ;;  %8987 = vmatprep.mubr.f32.mxu0 %v33848_v3  ;;  %10265 = vmatprep.mubr.f32.mxu1 %v33848_v3  ;;  %v21417_v43 = vmax.f32 %v23089_v57, 0.0 }
 0x5a3   : > { %v21419_v12 = vmax.f32 %v23121_v44, 0.0  ;;  %v21418_v2 = vmax.f32 %v23090_v54, 0.0  ;;  %v21420_v21 = vmax.f32 %v23122_v27, 0.0  ;;  %v6923_v7 = vpop.f32.mrb[92].mxu0  ;;  %v8201_v19 = vpop.f32.mrb[92].mxu1  ;;  %v34239_v44 = vld [vmem:[#allocation66_spill] sm:$0xff] }
 0x5a4   : > { %21929 = vst [vmem:[%s27686_s6 + $0xd40] sm:$0xff] %v21417_v43  ;;  %v23091_v18 = vadd.f32 %v6923_v7, %v34237_v41  ;;  %v23123_v50 = vadd.f32 %v8201_v19, %v34237_v41  ;;  %v6925_v37 = vpop.f32.mrb[93].mxu0  ;;  %v8203_v32 = vpop.f32.mrb[93].mxu1  ;;  %v34240_v43 = vld [vmem:[#allocation21_spill] sm:$0xff] }
 0x5a5   : > { %21931 = vst [vmem:[%s27686_s6 + $0xd50] sm:$0xff] %v21419_v12  ;;  %8991 = vmatmul.mubr.f32.gmra.mrb[102].mxu0 %v34238_v17  ;;  %10269 = vmatmul.mubr.f32.gmra.mrb[102].mxu1 %v34238_v17  ;;  %21930 = vst [vmem:[%s27686_s6 + $0xd48] sm:$0xff] %v21418_v2  ;;  %v23092_v58 = vadd.f32 %v6925_v37, %v34237_v41  ;;  %v23124_v35 = vadd.f32 %v8203_v32, %v34237_v41  ;;  %v34242_v37 = vld [vmem:[#allocation27_spill] sm:$0xff]  ;;  %v34243_v32 = vld [vmem:[#allocation28_spill] sm:$0xff] }
 0x5a6   : > { %21932 = vst [vmem:[%s27686_s6 + $0xd58] sm:$0xff] %v21420_v21  ;;  %8996 = vmatprep.mubr.f32.mxu0 %v33848_v3  ;;  %10274 = vmatprep.mubr.f32.mxu1 %v33848_v3  ;;  %v21449_v36 = vmax.f32 %v23091_v18, 0.0  ;;  %v21451_v10 = vmax.f32 %v23123_v50, 0.0  ;;  %v34241_v50 = vld [vmem:[#allocation22_spill] sm:$0xff] }
 0x5a7   : > { %v21450_v0 = vmax.f32 %v23092_v58, 0.0  ;;  %v21452_v29 = vmax.f32 %v23124_v35, 0.0  ;;  %v6930_v39 = vpop.f32.mrb[94].mxu0  ;;  %v8208_v57 = vpop.f32.mrb[94].mxu1  ;;  %v34244_v58 = vld [vmem:[#allocation31_spill] sm:$0xff] }
 0x5a8   : > { %21961 = vst [vmem:[%s27686_s6 + $0xe40] sm:$0xff] %v21449_v36  ;;  %21963 = vst [vmem:[%s27686_s6 + $0xe50] sm:$0xff] %v21451_v10  ;;  %v23093_v52 = vadd.f32 %v6930_v39, %v34239_v44  ;;  %v23125_v28 = vadd.f32 %v8208_v57, %v34239_v44  ;;  %v6932_v54 = vpop.f32.mrb[95].mxu0  ;;  %v8210_v27 = vpop.f32.mrb[95].mxu1  ;;  %v34245_v35 = vld [vmem:[#allocation35_spill] sm:$0xff]  ;;  %v34246_v36 = vld [vmem:[#allocation40_spill] sm:$0xff] }
 0x5a9   : > { %9000 = vmatmul.mubr.f32.gmra.mrb[104].mxu0 %v34240_v43  ;;  %10278 = vmatmul.mubr.f32.gmra.mrb[104].mxu1 %v34240_v43  ;;  %21962 = vst [vmem:[%s27686_s6 + $0xe48] sm:$0xff] %v21450_v0  ;;  %21964 = vst [vmem:[%s27686_s6 + $0xe58] sm:$0xff] %v21452_v29  ;;  %v23094_v12 = vadd.f32 %v6932_v54, %v34239_v44  ;;  %v23126_v2 = vadd.f32 %v8210_v27, %v34239_v44  ;;  %v34247_v10 = vld [vmem:[#allocation44_spill] sm:$0xff]  ;;  %v34250_v39 = vld [vmem:[#allocation54_spill] sm:$0xff] }
 0x5aa   : > { %9005 = vmatprep.mubr.f32.mxu0 %v33848_v3  ;;  %10283 = vmatprep.mubr.f32.mxu1 %v33848_v3  ;;  %v21481_v21 = vmax.f32 %v23093_v52, 0.0  ;;  %v21483_v7 = vmax.f32 %v23125_v28, 0.0  ;;  %v34248_v0 = vld [vmem:[#allocation48_spill] sm:$0xff]  ;;  %v29597_v57 = vld [vmem:[%s26321_s26 + $0x88] sm:$0xff]  ;;  %v29605_v54 = vld [vmem:[%s26321_s26 + $0x98] sm:$0xff] }
 0x5ab   : > { %v21482_v19 = vmax.f32 %v23094_v12, 0.0  ;;  %v21484_v18 = vmax.f32 %v23126_v2, 0.0  ;;  %v34249_v29 = vld [vmem:[#allocation52_spill] sm:$0xff]  ;;  %v34251_v52 = vld [vmem:[#allocation57_spill] sm:$0xff]  ;;  %v29608_v27 = vld [vmem:[%s26321_s26 + $0x198] sm:$0xff]  ;;  %v10769_v12 = vand.u32 4294901760, %v29597_v57 }
 0x5ac   : > { %21993 = vst [vmem:[%s27686_s6 + $0xf40] sm:$0xff] %v21481_v21  ;;  %21995 = vst [vmem:[%s27686_s6 + $0xf50] sm:$0xff] %v21483_v7  ;;  %v29602_v28 = vld [vmem:[%s26321_s26 + $0x188] sm:$0xff]  ;;  %v12047_v21 = vand.u32 4294901760, %v29605_v54  ;;  %v12051_v7 = vand.u32 4294901760, %v29608_v27 }
 0x5ad   : > { %9009 = vmatmul.mubr.f32.gmra.mrb[106].mxu0 %v34241_v50  ;;  %10287 = vmatmul.mubr.f32.gmra.mrb[106].mxu1 %v34241_v50  ;;  %21994 = vst [vmem:[%s27686_s6 + $0xf48] sm:$0xff] %v21482_v19  ;;  %21996 = vst [vmem:[%s27686_s6 + $0xf58] sm:$0xff] %v21484_v18  ;;  %v10773_v2 = vand.u32 4294901760, %v29602_v28  ;;  %v29752_v50 = vld [vmem:[%s26321_s26 + $0x390] sm:$0xff] }
 0x5ae   : > { %9014 = vmatprep.mubr.f32.mxu0 %v33848_v3  ;;  %10292 = vmatprep.mubr.f32.mxu1 %v33848_v3  ;;  %v29708_v18 = vsub.f32 %v29608_v27, %v12051_v7  ;;  %v29726_v27 = vld [vmem:[%s26321_s26 + $0x398] sm:$0xff] }
 0x5af   : > { %v29628_v19 = vpack.c.bf16 %v10773_v2, %v10769_v12 }
 0x5b0   : > { %v34257_v17 = vand.u32 4294901760, %v29708_v18 }
 0x5b1   : > { %9018 = vmatmul.mubr.f32.gmra.mrb[108].mxu0 %v34242_v37  ;;  %10296 = vmatmul.mubr.f32.gmra.mrb[108].mxu1 %v34242_v37  ;;  %v29749_v37 = vld [vmem:[%s26321_s26 + $0x290] sm:$0xff] }
 0x5b2   : > { %9023 = vmatprep.mubr.f32.mxu0 %v33848_v3  ;;  %10301 = vmatprep.mubr.f32.mxu1 %v33848_v3  ;;  %v12311_v41 = vsub.f32 %v29708_v18, %v34257_v17 }
 0x5b5   : > { %9027 = vmatmul.mubr.f32.gmra.mrb[110].mxu0 %v34243_v32  ;;  %10305 = vmatmul.mubr.f32.gmra.mrb[110].mxu1 %v34243_v32  ;;  %v29746_v32 = vld [vmem:[%s26321_s26 + $0x380] sm:$0xff] }
 0x5b6   : > { %9032 = vmatprep.mubr.f32.mxu0 %v33848_v3  ;;  %10310 = vmatprep.mubr.f32.mxu1 %v33848_v3  ;;  %v10783_v24 = vand.u32 4294901760, %v29746_v32 }
 0x5b9   : > { %9036 = vmatmul.mubr.f32.gmra.mrb[112].mxu0 %v34244_v58  ;;  %10314 = vmatmul.mubr.f32.gmra.mrb[112].mxu1 %v34244_v58  ;;  %v29743_v58 = vld [vmem:[%s26321_s26 + $0x280] sm:$0xff] }
 0x5ba   : > { %9041 = vmatprep.mubr.f32.mxu0 %v33848_v3  ;;  %10319 = vmatprep.mubr.f32.mxu1 %v33848_v3  ;;  %v10779_v17 = vand.u32 4294901760, %v29743_v58 }
 0x5bd   : > { %9045 = vmatmul.mubr.f32.gmra.mrb[114].mxu0 %v34245_v35  ;;  %10323 = vmatmul.mubr.f32.gmra.mrb[114].mxu1 %v34245_v35 }
 0x5be   : > { %9050 = vmatprep.mubr.f32.mxu0 %v33848_v3  ;;  %10328 = vmatprep.mubr.f32.mxu1 %v33848_v3 }
 0x5c1   : > { %9054 = vmatmul.mubr.f32.gmra.mrb[116].mxu0 %v34246_v36  ;;  %10332 = vmatmul.mubr.f32.gmra.mrb[116].mxu1 %v34246_v36 }
 0x5c2   : > { %9059 = vmatprep.mubr.f32.mxu0 %v33848_v3  ;;  %10337 = vmatprep.mubr.f32.mxu1 %v33848_v3 }
 0x5c5   : > { %9063 = vmatmul.mubr.f32.gmra.mrb[118].mxu0 %v34247_v10  ;;  %10341 = vmatmul.mubr.f32.gmra.mrb[118].mxu1 %v34247_v10 }
 0x5c6   : > { %9068 = vmatprep.mubr.f32.mxu0 %v33848_v3  ;;  %10346 = vmatprep.mubr.f32.mxu1 %v33848_v3 }
 0x5c9   : > { %9072 = vmatmul.mubr.f32.gmra.mrb[120].mxu0 %v34248_v0  ;;  %10350 = vmatmul.mubr.f32.gmra.mrb[120].mxu1 %v34248_v0 }
 0x5ca   : > { %9077 = vmatprep.mubr.f32.mxu0 %v33848_v3  ;;  %10355 = vmatprep.mubr.f32.mxu1 %v33848_v3 }
 0x5cd   : > { %9081 = vmatmul.mubr.f32.gmra.mrb[122].mxu0 %v34249_v29  ;;  %10359 = vmatmul.mubr.f32.gmra.mrb[122].mxu1 %v34249_v29 }
 0x5ce   : > { %9086 = vmatprep.mubr.f32.mxu0 %v33848_v3  ;;  %10364 = vmatprep.mubr.f32.mxu1 %v33848_v3 }
 0x5d1   : > { %9090 = vmatmul.mubr.f32.gmra.mrb[124].mxu0 %v34250_v39  ;;  %10368 = vmatmul.mubr.f32.gmra.mrb[124].mxu1 %v34250_v39 }
 0x5d2   : > { %9095 = vmatprep.mubr.f32.mxu0 %v33848_v3  ;;  %10373 = vmatprep.mubr.f32.mxu1 %v33848_v3 }
 0x5d5   : > { %9099 = vmatmul.mubr.f32.gmra.mrb[126].mxu0 %v34251_v52  ;;  %10377 = vmatmul.mubr.f32.gmra.mrb[126].mxu1 %v34251_v52  ;;  %v29717_v52 = vld [vmem:[%s26321_s26 + $0x288] sm:$0xff] }
 0x5d6   : > { %9193 = vmatprep.mubr.f32.mxu0 %v33848_v3  ;;  %10471 = vmatprep.mubr.f32.mxu1 %v33848_v3  ;;  %v34259_v26 = vand.u32 4294901760, %v29717_v52 }
 0x5d9   : > { %9195 = vmatmul.mubr.f32.vlgmr.msra.gmra.mrb[96].mxu0 %v26412_v51  ;;  %10473 = vmatmul.mubr.f32.vlgmr.msra.gmra.mrb[96].mxu1 %v26412_v51 }
 0x5da   : > { %22498 = vmatpush1.bf16.msra.mxu0 %v34183_v14  ;;  %22546 = vmatpush1.bf16.msra.mxu1 %v34184_v55  ;;  %v29634_v14 = vpack.c.bf16 %v12051_v7, %v12047_v21  ;;  %v320_v55 = vld [vmem:[%s26321_s26 + $0x180] sm:$0xff] }
 0x5db   : > { %9200 = vmatprep.mubr.f32.mxu0 %v33848_v3  ;;  %10478 = vmatprep.mubr.f32.mxu1 %v33848_v3 }
 0x5dc   : > { %22500 = vmatprep.subr.bf16.mxu0 %v34185_v56  ;;  %22548 = vmatprep.subr.bf16.mxu1 %v34186_v45  ;;  %34252 = vst [vmem:[#allocation43_spill] sm:$0xff] %v29634_v14  ;;  %v29693_v56 = vsub.f32 %v29597_v57, %v10769_v12  ;;  %v29698_v45 = vsub.f32 %v29602_v28, %v10773_v2  ;;  %v10775_v28 = vand.u32 4294901760, %v320_v55  ;;  %v290_v12 = vld [vmem:[%s26321_s26 + $0x90] sm:$0xff] }
 0x5dd   : > { %9202 = vmatmul.mubr.f32.gmra.mrb[98].mxu0 %v26465_v62  ;;  %10480 = vmatmul.mubr.f32.gmra.mrb[98].mxu1 %v26465_v62  ;;  %v322_v2 = vld [vmem:[%s26321_s26 + $0x190] sm:$0xff]  ;;  %v12049_v7 = vand.u32 4294901760, %v290_v12 }
 0x5de   : > { %9207 = vmatprep.mubr.f32.mxu0 %v33848_v3  ;;  %10485 = vmatprep.mubr.f32.mxu1 %v33848_v3  ;;  %v12053_v36 = vand.u32 4294901760, %v322_v2  ;;  %v34254_v43 = vand.u32 4294901760, %v29693_v56  ;;  %v34255_v39 = vand.u32 4294901760, %v29698_v45  ;;  %v29770_v42 = vsub.f32 %v320_v55, %v10775_v28 }
 0x5df   : > { %22502 = vmatpush1.bf16.msra.mxu0 %v34192_v49  ;;  %22550 = vmatpush1.bf16.msra.mxu1 %v34193_v53  ;;  %v288_v53 = vld [vmem:[%s26321_s26 + $0x80] sm:$0xff]  ;;  %v29703_v49 = vsub.f32 %v29605_v54, %v12047_v21  ;;  %v29720_v54 = vld [vmem:[%s26321_s26 + $0x388] sm:$0xff]  ;;  %v29723_v21 = vld [vmem:[%s26321_s26 + $0x298] sm:$0xff] }
 0x5e0   : > { %22552 = vmatprep.subr.bf16.mxu0 %v29628_v19  ;;  %22600 = vmatprep.subr.bf16.mxu1 %v29634_v14  ;;  %v10771_v57 = vand.u32 4294901760, %v288_v53  ;;  %v11021_v44 = vsub.f32 %v29693_v56, %v34254_v43  ;;  %v11033_v35 = vsub.f32 %v29698_v45, %v34255_v39  ;;  %v29772_v43 = vsub.f32 %v290_v12, %v12049_v7 }
 0x5e1   : > { %9209 = vmatmul.mubr.f32.gmra.mrb[100].mxu0 %v26468_v6  ;;  %10487 = vmatmul.mubr.f32.gmra.mrb[100].mxu1 %v26468_v6  ;;  %v34256_v29 = vand.u32 4294901760, %v29703_v49  ;;  %v29776_v39 = vpack.c.bf16 %v12053_v36, %v12049_v7  ;;  %v12057_v7 = vand.u32 4294901760, %v29749_v37  ;;  %v12312_v14 = vand.u32 4294901760, %v12311_v41 }
 0x5e2   : > { %9214 = vmatprep.mubr.f32.mxu0 %v33848_v3  ;;  %10492 = vmatprep.mubr.f32.mxu1 %v33848_v3  ;;  %v29736_v10 = vpack.c.bf16 %v10775_v28, %v10771_v57  ;;  %v29768_v20 = vsub.f32 %v288_v53, %v10771_v57  ;;  %v34260_v53 = vand.u32 4294901760, %v29720_v54  ;;  %v34262_v57 = vand.u32 4294901760, %v29723_v21 }
 0x5e3   : > { %v12299_v0 = vsub.f32 %v29703_v49, %v34256_v29  ;;  %34258 = vst [vmem:[#allocation68_spill] sm:$0xff] %v29776_v39  ;;  %v29778_v29 = vsub.f32 %v322_v2, %v12053_v36  ;;  %v34263_v28 = vand.u32 4294901760, %v29726_v27  ;;  %v12061_v36 = vand.u32 4294901760, %v29752_v50 }
 0x5e4   : > { %34253 = vst [vmem:[#allocation67_spill] sm:$0xff] %v29736_v10  ;;  %v29786_v55 = vpack.c.bf16 %v34260_v53, %v34259_v26  ;;  %v11022_v2 = vand.u32 4294901760, %v11021_v44  ;;  %v11034_v1 = vand.u32 4294901760, %v11033_v35  ;;  %v29810_v44 = vpack.c.bf16 %v10783_v24, %v10779_v17 }
 0x5e5   : > { %9216 = vmatmul.mubr.f32.gmra.mrb[102].mxu0 %v26476_v8  ;;  %10494 = vmatmul.mubr.f32.gmra.mrb[102].mxu1 %v26476_v8  ;;  %v29792_v12 = vpack.c.bf16 %v34263_v28, %v34262_v57  ;;  %v12300_v22 = vand.u32 4294901760, %v12299_v0  ;;  %v29812_v35 = vpack.c.bf16 %v12061_v36, %v12057_v7  ;;  %v34270_v41 = vand.u32 4294901760, %v29726_v27 }
 0x5e6   : > { %9221 = vmatprep.mubr.f32.mxu0 %v33848_v3  ;;  %10499 = vmatprep.mubr.f32.mxu1 %v33848_v3  ;;  %34261 = vst [vmem:[#allocation69_spill] sm:$0xff] %v29786_v55  ;;  %34265 = vst [vmem:[#allocation71_spill] sm:$0xff] %v29810_v44  ;;  %v22559_v0 = vpack.c.bf16 %v11034_v1, %v11022_v2 }
 0x5e7   : > { %34264 = vst [vmem:[#allocation70_spill] sm:$0xff] %v29792_v12  ;;  %34266 = vst [vmem:[#allocation72_spill] sm:$0xff] %v29812_v35  ;;  %v22607_v28 = vpack.c.bf16 %v12312_v14, %v12300_v22  ;;  %v34267_v22 = vmov %v34259_v26  ;;  %v34268_v14 = vmov %v34260_v53  ;;  %v29867_v53 = vsub.f32 %v29743_v58, %v10779_v17 }
 0x5e8   : > { %v29849_v1 = vsub.f32 %v29717_v52, %v34267_v22  ;;  %v29854_v2 = vsub.f32 %v29720_v54, %v34268_v14  ;;  %v29870_v52 = vsub.f32 %v29746_v32, %v10783_v24  ;;  %v29873_v22 = vsub.f32 %v29749_v37, %v12057_v7 }
 0x5e9   : > { %9223 = vmatmul.mubr.f32.gmra.mrb[104].mxu0 %v26483_v25  ;;  %10501 = vmatmul.mubr.f32.gmra.mrb[104].mxu1 %v26483_v25  ;;  %v29876_v54 = vsub.f32 %v29752_v50, %v12061_v36  ;;  %v33559_v37 = vand.u32 4294901760, %v29768_v20  ;;  %v33560_v32 = vand.u32 4294901760, %v29770_v42  ;;  %v33562_v17 = vand.u32 4294901760, %v29778_v29 }
 0x5ea   : > { %9228 = vmatprep.mubr.f32.mxu0 %v33848_v3  ;;  %10506 = vmatprep.mubr.f32.mxu1 %v33848_v3  ;;  %v33563_v7 = vand.u32 4294901760, %v29849_v1  ;;  %v33564_v36 = vand.u32 4294901760, %v29854_v2 }
 0x5eb   : > { %v11039_v50 = vsub.f32 %v29770_v42, %v33560_v32  ;;  %v12317_v58 = vsub.f32 %v29778_v29, %v33562_v17 }
 0x5ec   : > { %v11045_v32 = vsub.f32 %v29849_v1, %v33563_v7 }
 0x5ed   : > { %9230 = vmatmul.mubr.f32.gmra.mrb[106].mxu0 %v26485_v47  ;;  %10508 = vmatmul.mubr.f32.gmra.mrb[106].mxu1 %v26485_v47  ;;  %v11040_v14 = vand.u32 4294901760, %v11039_v50 }
 0x5ee   : > { %9235 = vmatprep.mubr.f32.mxu0 %v33848_v3  ;;  %10513 = vmatprep.mubr.f32.mxu1 %v33848_v3 }
 0x5f1   : > { %9237 = vmatmul.mubr.f32.gmra.mrb[108].mxu0 %v26530_v11  ;;  %10515 = vmatmul.mubr.f32.gmra.mrb[108].mxu1 %v26530_v11 }
 0x5f2   : > { %9242 = vmatprep.mubr.f32.mxu0 %v33848_v3  ;;  %10520 = vmatprep.mubr.f32.mxu1 %v33848_v3 }
 0x5f5   : > { %9244 = vmatmul.mubr.f32.gmra.mrb[110].mxu0 %v26532_v59  ;;  %10522 = vmatmul.mubr.f32.gmra.mrb[110].mxu1 %v26532_v59 }
 0x5f6   : > { %9249 = vmatprep.mubr.f32.mxu0 %v33848_v3  ;;  %10527 = vmatprep.mubr.f32.mxu1 %v33848_v3 }
 0x5f9   : > { %9251 = vmatmul.mubr.f32.gmra.mrb[112].mxu0 %v26586_v46  ;;  %10529 = vmatmul.mubr.f32.gmra.mrb[112].mxu1 %v26586_v46 }
 0x5fa   : > { %9256 = vmatprep.mubr.f32.mxu0 %v33848_v3  ;;  %10534 = vmatprep.mubr.f32.mxu1 %v33848_v3 }
 0x5fd   : > { %9258 = vmatmul.mubr.f32.gmra.mrb[114].mxu0 %v26646_v61  ;;  %10536 = vmatmul.mubr.f32.gmra.mrb[114].mxu1 %v26646_v61 }
 0x5fe   : > { %9263 = vmatprep.mubr.f32.mxu0 %v33848_v3  ;;  %10541 = vmatprep.mubr.f32.mxu1 %v33848_v3 }
 0x601   : > { %9265 = vmatmul.mubr.f32.gmra.mrb[116].mxu0 %v26665_v60  ;;  %10543 = vmatmul.mubr.f32.gmra.mrb[116].mxu1 %v26665_v60 }
 0x602   : > { %9270 = vmatprep.mubr.f32.mxu0 %v33848_v3  ;;  %10548 = vmatprep.mubr.f32.mxu1 %v33848_v3 }
 0x605   : > { %9272 = vmatmul.mubr.f32.gmra.mrb[118].mxu0 %v34178_v33  ;;  %10550 = vmatmul.mubr.f32.gmra.mrb[118].mxu1 %v34178_v33 }
 0x606   : > { %9277 = vmatprep.mubr.f32.mxu0 %v33848_v3  ;;  %10555 = vmatprep.mubr.f32.mxu1 %v33848_v3 }
 0x609   : > { %9279 = vmatmul.mubr.f32.gmra.mrb[120].mxu0 %v34179_v63  ;;  %10557 = vmatmul.mubr.f32.gmra.mrb[120].mxu1 %v34179_v63 }
 0x60a   : > { %9284 = vmatprep.mubr.f32.mxu0 %v33848_v3  ;;  %10562 = vmatprep.mubr.f32.mxu1 %v33848_v3 }
 0x60d   : > { %9286 = vmatmul.mubr.f32.gmra.mrb[122].mxu0 %v34180_v13  ;;  %10564 = vmatmul.mubr.f32.gmra.mrb[122].mxu1 %v34180_v13 }
 0x60e   : > { %9291 = vmatprep.mubr.f32.mxu0 %v33848_v3  ;;  %10569 = vmatprep.mubr.f32.mxu1 %v33848_v3 }
 0x611   : > { %9293 = vmatmul.mubr.f32.gmra.mrb[124].mxu0 %v34181_v16  ;;  %10571 = vmatmul.mubr.f32.gmra.mrb[124].mxu1 %v34181_v16 }
 0x612   : > { %9298 = vmatprep.mubr.f32.mxu0 %v33848_v3  ;;  %10576 = vmatprep.mubr.f32.mxu1 %v33848_v3 }
 0x615   : > { %9300 = vmatmul.mubr.f32.gmra.mrb[126].mxu0 %v26756_v48  ;;  %10578 = vmatmul.mubr.f32.gmra.mrb[126].mxu1 %v26756_v48 }
 0x616   : > { %9378 = vmatprep.mubr.f32.mxu0 %v33848_v3  ;;  %10656 = vmatprep.mubr.f32.mxu1 %v33848_v3 }
 0x619   : > { %9380 = vmatmul.mubr.f32.vlgmr.msra.gmra.mrb[96].mxu0 %v26412_v51  ;;  %10658 = vmatmul.mubr.f32.vlgmr.msra.gmra.mrb[96].mxu1 %v26412_v51 }
 0x61a   : > { %22554 = vmatpush1.bf16.msra.mxu0 %v29736_v10  ;;  %22602 = vmatpush1.bf16.msra.mxu1 %v29776_v39  ;;  %v34275_v39 = vand.u32 4294901760, %v29876_v54 }
 0x61b   : > { %9385 = vmatprep.mubr.f32.mxu0 %v33848_v3  ;;  %10663 = vmatprep.mubr.f32.mxu1 %v33848_v3 }
 0x61c   : > { %22556 = vmatprep.subr.bf16.mxu0 %v29786_v55  ;;  %22604 = vmatprep.subr.bf16.mxu1 %v29792_v12  ;;  %v34274_v12 = vand.u32 4294901760, %v29873_v22  ;;  %v12341_v10 = vsub.f32 %v29876_v54, %v34275_v39 }
 0x61d   : > { %9387 = vmatmul.mubr.f32.gmra.mrb[98].mxu0 %v26465_v62  ;;  %10665 = vmatmul.mubr.f32.gmra.mrb[98].mxu1 %v26465_v62 }
 0x61e   : > { %9392 = vmatprep.mubr.f32.mxu0 %v33848_v3  ;;  %10670 = vmatprep.mubr.f32.mxu1 %v33848_v3  ;;  %v12329_v55 = vsub.f32 %v29873_v22, %v34274_v12 }
 0x61f   : > { %22558 = vmatpush1.bf16.msra.mxu0 %v29810_v44  ;;  %22606 = vmatpush1.bf16.msra.mxu1 %v29812_v35  ;;  %v34272_v35 = vand.u32 4294901760, %v29867_v53  ;;  %v34273_v44 = vand.u32 4294901760, %v29870_v52 }
 0x620   : > { %22560 = vmatprep.subr.bf16.mxu0 %v22559_v0  ;;  %22608 = vmatprep.subr.bf16.mxu1 %v22607_v28  ;;  %v34269_v0 = vmov %v34262_v57  ;;  %v29864_v57 = vsub.f32 %v29726_v27, %v34270_v41  ;;  %v33561_v27 = vand.u32 4294901760, %v29772_v43 }
 0x621   : > { %9394 = vmatmul.mubr.f32.gmra.mrb[100].mxu0 %v26468_v6  ;;  %10672 = vmatmul.mubr.f32.gmra.mrb[100].mxu1 %v26468_v6  ;;  %v29859_v28 = vsub.f32 %v29723_v21, %v34269_v0  ;;  %v11027_v0 = vsub.f32 %v29768_v20, %v33559_v37 }
 0x622   : > { %9399 = vmatprep.mubr.f32.mxu0 %v33848_v3  ;;  %10677 = vmatprep.mubr.f32.mxu1 %v33848_v3  ;;  %v12305_v24 = vsub.f32 %v29772_v43, %v33561_v27  ;;  %v11057_v27 = vsub.f32 %v29854_v2, %v33564_v36  ;;  %v34271_v21 = vand.u32 4294901760, %v29864_v57  ;;  %v12318_v36 = vand.u32 4294901760, %v12317_v58 }
 0x623   : > { %v33567_v41 = vand.u32 4294901760, %v29859_v28  ;;  %v11028_v7 = vand.u32 4294901760, %v11027_v0  ;;  %v11046_v0 = vand.u32 4294901760, %v11045_v32 }
 0x624   : > { %v12335_v37 = vsub.f32 %v29864_v57, %v34271_v21  ;;  %v12306_v26 = vand.u32 4294901760, %v12305_v24  ;;  %v11063_v21 = vsub.f32 %v29870_v52, %v34273_v44  ;;  %v11058_v50 = vand.u32 4294901760, %v11057_v27  ;;  %v34283_v27 = vld [vmem:[#allocation59_spill] sm:$0xff] }
 0x625   : > { %9401 = vmatmul.mubr.f32.gmra.mrb[102].mxu0 %v26476_v8  ;;  %10679 = vmatmul.mubr.f32.gmra.mrb[102].mxu1 %v26476_v8  ;;  %v12323_v17 = vsub.f32 %v29859_v28, %v33567_v41  ;;  %v11051_v41 = vsub.f32 %v29867_v53, %v34272_v35  ;;  %v22561_v44 = vpack.c.bf16 %v11040_v14, %v11028_v7 }
 0x626   : > { %9406 = vmatprep.mubr.f32.mxu0 %v33848_v3  ;;  %10684 = vmatprep.mubr.f32.mxu1 %v33848_v3  ;;  %v12336_v58 = vand.u32 4294901760, %v12335_v37  ;;  %v22609_v35 = vpack.c.bf16 %v12318_v36, %v12306_v26  ;;  %v11064_v12 = vand.u32 4294901760, %v11063_v21  ;;  %v34282_v26 = vld [vmem:[#allocation58_spill] sm:$0xff]  ;;  %v34285_v7 = vpack.c.bf16 %v29778_v29, %v29772_v43 }
 0x627   : > { %v12324_v24 = vand.u32 4294901760, %v12323_v17  ;;  %v34284_v17 = vpack.c.bf16 %v29770_v42, %v29768_v20  ;;  %v34286_v36 = vpack.c.bf16 %v29854_v2, %v29849_v1  ;;  %v34288_v14 = vpack.c.bf16 %v29870_v52, %v29867_v53 }
 0x628   : > { %v34289_v21 = vpack.c.bf16 %v29876_v54, %v29873_v22 }
 0x629   : > { %9408 = vmatmul.mubr.f32.gmra.mrb[104].mxu0 %v26483_v25  ;;  %10686 = vmatmul.mubr.f32.gmra.mrb[104].mxu1 %v26483_v25  ;;  %v22611_v39 = vpack.c.bf16 %v12336_v58, %v12324_v24  ;;  %v34292_v24 = vld [vmem:[#allocation39_spill] sm:$0xff]  ;;  %v34293_v58 = vld [vmem:[#allocation42_spill] sm:$0xff] }
 0x62a   : > { %9413 = vmatprep.mubr.f32.mxu0 %v33848_v3  ;;  %10691 = vmatprep.mubr.f32.mxu1 %v33848_v3 }
 0x62d   : > { %9415 = vmatmul.mubr.f32.gmra.mrb[106].mxu0 %v26485_v47  ;;  %10693 = vmatmul.mubr.f32.gmra.mrb[106].mxu1 %v26485_v47 }
 0x62e   : > { %9420 = vmatprep.mubr.f32.mxu0 %v33848_v3  ;;  %10698 = vmatprep.mubr.f32.mxu1 %v33848_v3 }
 0x631   : > { %9422 = vmatmul.mubr.f32.gmra.mrb[108].mxu0 %v26530_v11  ;;  %10700 = vmatmul.mubr.f32.gmra.mrb[108].mxu1 %v26530_v11 }
 0x632   : > { %9427 = vmatprep.mubr.f32.mxu0 %v33848_v3  ;;  %10705 = vmatprep.mubr.f32.mxu1 %v33848_v3 }
 0x635   : > { %9429 = vmatmul.mubr.f32.gmra.mrb[110].mxu0 %v26532_v59  ;;  %10707 = vmatmul.mubr.f32.gmra.mrb[110].mxu1 %v26532_v59 }
 0x636   : > { %9434 = vmatprep.mubr.f32.mxu0 %v33848_v3  ;;  %10712 = vmatprep.mubr.f32.mxu1 %v33848_v3 }
 0x639   : > { %9436 = vmatmul.mubr.f32.gmra.mrb[112].mxu0 %v26586_v46  ;;  %10714 = vmatmul.mubr.f32.gmra.mrb[112].mxu1 %v26586_v46 }
 0x63a   : > { %9441 = vmatprep.mubr.f32.mxu0 %v33848_v3  ;;  %10719 = vmatprep.mubr.f32.mxu1 %v33848_v3 }
 0x63d   : > { %9443 = vmatmul.mubr.f32.gmra.mrb[114].mxu0 %v26646_v61  ;;  %10721 = vmatmul.mubr.f32.gmra.mrb[114].mxu1 %v26646_v61 }
 0x63e   : > { %9448 = vmatprep.mubr.f32.mxu0 %v33848_v3  ;;  %10726 = vmatprep.mubr.f32.mxu1 %v33848_v3 }
 0x641   : > { %9450 = vmatmul.mubr.f32.gmra.mrb[116].mxu0 %v26665_v60  ;;  %10728 = vmatmul.mubr.f32.gmra.mrb[116].mxu1 %v26665_v60 }
 0x642   : > { %9455 = vmatprep.mubr.f32.mxu0 %v33848_v3  ;;  %10733 = vmatprep.mubr.f32.mxu1 %v33848_v3 }
 0x645   : > { %9457 = vmatmul.mubr.f32.gmra.mrb[118].mxu0 %v34178_v33  ;;  %10735 = vmatmul.mubr.f32.gmra.mrb[118].mxu1 %v34178_v33  ;;  %v22563_v33 = vpack.c.bf16 %v11058_v50, %v11046_v0  ;;  %v34290_v0 = vld [vmem:[#allocation43_spill] sm:$0xff]  ;;  %v34291_v50 = vld [vmem:[#allocation37_spill] sm:$0xff] }
 0x646   : > { %9462 = vmatprep.mubr.f32.mxu0 %v33848_v3  ;;  %10740 = vmatprep.mubr.f32.mxu1 %v33848_v3 }
 0x649   : > { %9464 = vmatmul.mubr.f32.gmra.mrb[120].mxu0 %v34179_v63  ;;  %10742 = vmatmul.mubr.f32.gmra.mrb[120].mxu1 %v34179_v63  ;;  %v12342_v63 = vand.u32 4294901760, %v12341_v10  ;;  %v34276_v10 = vpack.c.bf16 %v29698_v45, %v29693_v56 }
 0x64a   : > { %9469 = vmatprep.mubr.f32.mxu0 %v33848_v3  ;;  %10747 = vmatprep.mubr.f32.mxu1 %v33848_v3 }
 0x64d   : > { %9471 = vmatmul.mubr.f32.gmra.mrb[122].mxu0 %v34180_v13  ;;  %10749 = vmatmul.mubr.f32.gmra.mrb[122].mxu1 %v34180_v13  ;;  %v12330_v13 = vand.u32 4294901760, %v12329_v55  ;;  %v34281_v55 = vld [vmem:[#allocation56_spill] sm:$0xff] }
 0x64e   : > { %9476 = vmatprep.mubr.f32.mxu0 %v33848_v3  ;;  %10754 = vmatprep.mubr.f32.mxu1 %v33848_v3 }
 0x64f   : > { %v22613_v32 = vpack.c.bf16 %v12342_v63, %v12330_v13  ;;  %v34279_v63 = vld [vmem:[#allocation51_spill] sm:$0xff]  ;;  %v34280_v13 = vld [vmem:[#allocation53_spill] sm:$0xff] }
 0x651   : > { %9478 = vmatmul.mubr.f32.gmra.mrb[124].mxu0 %v34181_v16  ;;  %10756 = vmatmul.mubr.f32.gmra.mrb[124].mxu1 %v34181_v16  ;;  %v11052_v16 = vand.u32 4294901760, %v11051_v41  ;;  %v34287_v41 = vpack.c.bf16 %v29864_v57, %v29859_v28 }
 0x652   : > { %9483 = vmatprep.mubr.f32.mxu0 %v33848_v3  ;;  %10761 = vmatprep.mubr.f32.mxu1 %v33848_v3 }
 0x653   : > { %v22565_v37 = vpack.c.bf16 %v11064_v12, %v11052_v16  ;;  %v34277_v16 = vpack.c.bf16 %v29708_v18, %v29703_v49  ;;  %v34296_v12 = vld [vmem:[#allocation67_spill] sm:$0xff] }
 0x655   : > { %9485 = vmatmul.mubr.f32.gmra.mrb[126].mxu0 %v26756_v48  ;;  %10763 = vmatmul.mubr.f32.gmra.mrb[126].mxu1 %v26756_v48 }
 0x656   : > { %10841 = vmatprep.mubr.f32.mxu0 %v33848_v3  ;;  %12119 = vmatprep.mubr.f32.mxu1 %v33848_v3 }
 0x659   : > { %10847 = vmatmul.mubr.f32.vlgmr.msra.gmra.mrb[128].mxu0 %v33938_v4  ;;  %12125 = vmatmul.mubr.f32.vlgmr.msra.gmra.mrb[128].mxu1 %v33938_v4 }
 0x65a   : > { %22562 = vmatpush1.bf16.msra.mxu0 %v22561_v44  ;;  %22610 = vmatpush1.bf16.msra.mxu1 %v22609_v35  ;;  %v34294_v44 = vld [vmem:[#allocation46_spill] sm:$0xff]  ;;  %v34295_v35 = vld [vmem:[#allocation8_spill] sm:$0xff] }
 0x65b   : > { %10852 = vmatprep.mubr.f32.mxu0 %v33848_v3  ;;  %12130 = vmatprep.mubr.f32.mxu1 %v33848_v3 }
 0x65c   : > { %22564 = vmatprep.subr.bf16.mxu0 %v22563_v33  ;;  %22612 = vmatprep.subr.bf16.mxu1 %v22611_v39  ;;  %v34278_v33 = vld [vmem:[#allocation47_spill] sm:$0xff]  ;;  %v34297_v39 = vld [vmem:[#allocation68_spill] sm:$0xff] }
 0x65d   : > { %10858 = vmatmul.mubr.f32.gmra.mrb[130].mxu0 %v33939_v31  ;;  %12136 = vmatmul.mubr.f32.gmra.mrb[130].mxu1 %v33939_v31 }
 0x65e   : > { %10863 = vmatprep.mubr.f32.mxu0 %v33848_v3  ;;  %12141 = vmatprep.mubr.f32.mxu1 %v33848_v3 }
 0x65f   : > { %22566 = vmatpush1.bf16.msra.mxu0 %v22565_v37  ;;  %22614 = vmatpush1.bf16.msra.mxu1 %v22613_v32  ;;  %v34298_v37 = vld [vmem:[#allocation69_spill] sm:$0xff]  ;;  %v34299_v32 = vld [vmem:[#allocation70_spill] sm:$0xff] }
 0x660   : > { %22568 = vmatprep.subr.bf16.mxu0 %v34276_v10  ;;  %22616 = vmatprep.subr.bf16.mxu1 %v34277_v16  ;;  %v34300_v10 = vand.u32 4294901760, %v29693_v56  ;;  %v34301_v16 = vand.u32 4294901760, %v29698_v45  ;;  %v34307_v56 = vld [vmem:[#allocation12_spill] sm:$0xff]  ;;  %v34308_v45 = vld [vmem:[#allocation14_spill] sm:$0xff] }
 0x661   : > { %10869 = vmatmul.mubr.f32.gmra.mrb[132].mxu0 %v33942_v5  ;;  %12147 = vmatmul.mubr.f32.gmra.mrb[132].mxu1 %v33942_v5 }
 0x662   : > { %10874 = vmatprep.mubr.f32.mxu0 %v33848_v3  ;;  %12152 = vmatprep.mubr.f32.mxu1 %v33848_v3 }
 0x665   : > { %10880 = vmatmul.mubr.f32.gmra.mrb[134].mxu0 %v33943_v15  ;;  %12158 = vmatmul.mubr.f32.gmra.mrb[134].mxu1 %v33943_v15 }
 0x666   : > { %10885 = vmatprep.mubr.f32.mxu0 %v33848_v3  ;;  %12163 = vmatprep.mubr.f32.mxu1 %v33848_v3 }
 0x669   : > { %10891 = vmatmul.mubr.f32.gmra.mrb[136].mxu0 %v33944_v38  ;;  %12169 = vmatmul.mubr.f32.gmra.mrb[136].mxu1 %v33944_v38 }
 0x66a   : > { %10896 = vmatprep.mubr.f32.mxu0 %v33848_v3  ;;  %12174 = vmatprep.mubr.f32.mxu1 %v33848_v3 }
 0x66d   : > { %10902 = vmatmul.mubr.f32.gmra.mrb[138].mxu0 %v33945_v40  ;;  %12180 = vmatmul.mubr.f32.gmra.mrb[138].mxu1 %v33945_v40 }
 0x66e   : > { %10907 = vmatprep.mubr.f32.mxu0 %v33848_v3  ;;  %12185 = vmatprep.mubr.f32.mxu1 %v33848_v3 }
 0x671   : > { %10913 = vmatmul.mubr.f32.gmra.mrb[140].mxu0 %v33946_v34  ;;  %12191 = vmatmul.mubr.f32.gmra.mrb[140].mxu1 %v33946_v34 }
 0x672   : > { %10918 = vmatprep.mubr.f32.mxu0 %v33848_v3  ;;  %12196 = vmatprep.mubr.f32.mxu1 %v33848_v3 }
 0x675   : > { %10924 = vmatmul.mubr.f32.gmra.mrb[142].mxu0 %v33947_v30  ;;  %12202 = vmatmul.mubr.f32.gmra.mrb[142].mxu1 %v33947_v30 }
 0x676   : > { %10929 = vmatprep.mubr.f32.mxu0 %v33848_v3  ;;  %12207 = vmatprep.mubr.f32.mxu1 %v33848_v3 }
 0x679   : > { %10935 = vmatmul.mubr.f32.gmra.mrb[144].mxu0 %v33948_v23  ;;  %12213 = vmatmul.mubr.f32.gmra.mrb[144].mxu1 %v33948_v23 }
 0x67a   : > { %10940 = vmatprep.mubr.f32.mxu0 %v33848_v3  ;;  %12218 = vmatprep.mubr.f32.mxu1 %v33848_v3 }
 0x67d   : > { %10946 = vmatmul.mubr.f32.gmra.mrb[146].mxu0 %v34052_v9  ;;  %12224 = vmatmul.mubr.f32.gmra.mrb[146].mxu1 %v34052_v9 }
 0x67e   : > { %10951 = vmatprep.mubr.f32.mxu0 %v33848_v3  ;;  %12229 = vmatprep.mubr.f32.mxu1 %v33848_v3 }
 0x681   : > { %10957 = vmatmul.mubr.f32.gmra.mrb[148].mxu0 %v34278_v33  ;;  %12235 = vmatmul.mubr.f32.gmra.mrb[148].mxu1 %v34278_v33 }
 0x682   : > { %10962 = vmatprep.mubr.f32.mxu0 %v33848_v3  ;;  %12240 = vmatprep.mubr.f32.mxu1 %v33848_v3 }
 0x685   : > { %10968 = vmatmul.mubr.f32.gmra.mrb[150].mxu0 %v34279_v63  ;;  %12246 = vmatmul.mubr.f32.gmra.mrb[150].mxu1 %v34279_v63 }
 0x686   : > { %10973 = vmatprep.mubr.f32.mxu0 %v33848_v3  ;;  %12251 = vmatprep.mubr.f32.mxu1 %v33848_v3 }
 0x689   : > { %10979 = vmatmul.mubr.f32.gmra.mrb[152].mxu0 %v34280_v13  ;;  %12257 = vmatmul.mubr.f32.gmra.mrb[152].mxu1 %v34280_v13  ;;  %v34312_v13 = vld [vmem:[#allocation19_spill] sm:$0xff] }
 0x68a   : > { %10984 = vmatprep.mubr.f32.mxu0 %v33848_v3  ;;  %12262 = vmatprep.mubr.f32.mxu1 %v33848_v3 }
 0x68d   : > { %10990 = vmatmul.mubr.f32.gmra.mrb[154].mxu0 %v34281_v55  ;;  %12268 = vmatmul.mubr.f32.gmra.mrb[154].mxu1 %v34281_v55 }
 0x68e   : > { %10995 = vmatprep.mubr.f32.mxu0 %v33848_v3  ;;  %12273 = vmatprep.mubr.f32.mxu1 %v33848_v3 }
 0x691   : > { %11001 = vmatmul.mubr.f32.gmra.mrb[156].mxu0 %v34282_v26  ;;  %12279 = vmatmul.mubr.f32.gmra.mrb[156].mxu1 %v34282_v26 }
 0x692   : > { %11006 = vmatprep.mubr.f32.mxu0 %v33848_v3  ;;  %12284 = vmatprep.mubr.f32.mxu1 %v33848_v3 }
 0x695   : > { %11012 = vmatmul.mubr.f32.gmra.mrb[158].mxu0 %v34283_v27  ;;  %12290 = vmatmul.mubr.f32.gmra.mrb[158].mxu1 %v34283_v27 }
 0x696   : > { %11122 = vmatprep.mubr.f32.mxu0 %v33848_v3  ;;  %12400 = vmatprep.mubr.f32.mxu1 %v33848_v3 }
 0x699   : > { %11124 = vmatmul.mubr.f32.vlgmr.msra.gmra.mrb[128].mxu0 %v26412_v51  ;;  %12402 = vmatmul.mubr.f32.vlgmr.msra.gmra.mrb[128].mxu1 %v26412_v51 }
 0x69a   : > { %22570 = vmatpush1.bf16.msra.mxu0 %v34284_v17  ;;  %22618 = vmatpush1.bf16.msra.mxu1 %v34285_v7  ;;  %v22583_v17 = vpack.c.bf16 %v34301_v16, %v34300_v10  ;;  %v34302_v7 = vand.u32 4294901760, %v29703_v49  ;;  %v34309_v49 = vld [vmem:[#allocation17_spill] sm:$0xff]  ;;  %v34310_v16 = vld [vmem:[#allocation10_spill] sm:$0xff] }
 0x69b   : > { %11129 = vmatprep.mubr.f32.mxu0 %v33848_v3  ;;  %12407 = vmatprep.mubr.f32.mxu1 %v33848_v3 }
 0x69c   : > { %22572 = vmatprep.subr.bf16.mxu0 %v34286_v36  ;;  %22620 = vmatprep.subr.bf16.mxu1 %v34287_v41  ;;  %v34303_v36 = vand.u32 4294901760, %v29708_v18 }
 0x69d   : > { %11131 = vmatmul.mubr.f32.gmra.mrb[130].mxu0 %v26465_v62  ;;  %12409 = vmatmul.mubr.f32.gmra.mrb[130].mxu1 %v26465_v62 }
 0x69e   : > { %11136 = vmatprep.mubr.f32.mxu0 %v33848_v3  ;;  %12414 = vmatprep.mubr.f32.mxu1 %v33848_v3  ;;  %v22631_v41 = vpack.c.bf16 %v34303_v36, %v34302_v7 }
 0x69f   : > { %22574 = vmatpush1.bf16.msra.mxu0 %v34288_v14  ;;  %22622 = vmatpush1.bf16.msra.mxu1 %v34289_v21  ;;  %v34304_v14 = vld [vmem:[#allocation11_spill] sm:$0xff] }
 0x6a0   : > { %22576 = vmatprep.subr.bf16.mxu0 %v29628_v19  ;;  %22624 = vmatprep.subr.bf16.mxu1 %v34290_v0  ;;  %v34305_v21 = vld [vmem:[#allocation71_spill] sm:$0xff] }
 0x6a1   : > { %11138 = vmatmul.mubr.f32.gmra.mrb[132].mxu0 %v26468_v6  ;;  %12416 = vmatmul.mubr.f32.gmra.mrb[132].mxu1 %v26468_v6 }
 0x6a2   : > { %11143 = vmatprep.mubr.f32.mxu0 %v33848_v3  ;;  %12421 = vmatprep.mubr.f32.mxu1 %v33848_v3 }
 0x6a5   : > { %11145 = vmatmul.mubr.f32.gmra.mrb[134].mxu0 %v26476_v8  ;;  %12423 = vmatmul.mubr.f32.gmra.mrb[134].mxu1 %v26476_v8 }
 0x6a6   : > { %11150 = vmatprep.mubr.f32.mxu0 %v33848_v3  ;;  %12428 = vmatprep.mubr.f32.mxu1 %v33848_v3 }
 0x6a9   : > { %11152 = vmatmul.mubr.f32.gmra.mrb[136].mxu0 %v26483_v25  ;;  %12430 = vmatmul.mubr.f32.gmra.mrb[136].mxu1 %v26483_v25 }
 0x6aa   : > { %11157 = vmatprep.mubr.f32.mxu0 %v33848_v3  ;;  %12435 = vmatprep.mubr.f32.mxu1 %v33848_v3 }
 0x6ad   : > { %11159 = vmatmul.mubr.f32.gmra.mrb[138].mxu0 %v26485_v47  ;;  %12437 = vmatmul.mubr.f32.gmra.mrb[138].mxu1 %v26485_v47 }
 0x6ae   : > { %11164 = vmatprep.mubr.f32.mxu0 %v33848_v3  ;;  %12442 = vmatprep.mubr.f32.mxu1 %v33848_v3 }
 0x6b1   : > { %11166 = vmatmul.mubr.f32.gmra.mrb[140].mxu0 %v26530_v11  ;;  %12444 = vmatmul.mubr.f32.gmra.mrb[140].mxu1 %v26530_v11 }
 0x6b2   : > { %11171 = vmatprep.mubr.f32.mxu0 %v33848_v3  ;;  %12449 = vmatprep.mubr.f32.mxu1 %v33848_v3 }
 0x6b5   : > { %11173 = vmatmul.mubr.f32.gmra.mrb[142].mxu0 %v26532_v59  ;;  %12451 = vmatmul.mubr.f32.gmra.mrb[142].mxu1 %v26532_v59 }
 0x6b6   : > { %11178 = vmatprep.mubr.f32.mxu0 %v33848_v3  ;;  %12456 = vmatprep.mubr.f32.mxu1 %v33848_v3 }
 0x6b9   : > { %11180 = vmatmul.mubr.f32.gmra.mrb[144].mxu0 %v26586_v46  ;;  %12458 = vmatmul.mubr.f32.gmra.mrb[144].mxu1 %v26586_v46 }
 0x6ba   : > { %11185 = vmatprep.mubr.f32.mxu0 %v33848_v3  ;;  %12463 = vmatprep.mubr.f32.mxu1 %v33848_v3 }
 0x6bd   : > { %11187 = vmatmul.mubr.f32.gmra.mrb[146].mxu0 %v26646_v61  ;;  %12465 = vmatmul.mubr.f32.gmra.mrb[146].mxu1 %v26646_v61 }
 0x6be   : > { %11192 = vmatprep.mubr.f32.mxu0 %v33848_v3  ;;  %12470 = vmatprep.mubr.f32.mxu1 %v33848_v3 }
 0x6c1   : > { %11194 = vmatmul.mubr.f32.gmra.mrb[148].mxu0 %v26665_v60  ;;  %12472 = vmatmul.mubr.f32.gmra.mrb[148].mxu1 %v26665_v60 }
 0x6c2   : > { %11199 = vmatprep.mubr.f32.mxu0 %v33848_v3  ;;  %12477 = vmatprep.mubr.f32.mxu1 %v33848_v3 }
 0x6c5   : > { %11201 = vmatmul.mubr.f32.gmra.mrb[150].mxu0 %v34291_v50  ;;  %12479 = vmatmul.mubr.f32.gmra.mrb[150].mxu1 %v34291_v50 }
 0x6c6   : > { %11206 = vmatprep.mubr.f32.mxu0 %v33848_v3  ;;  %12484 = vmatprep.mubr.f32.mxu1 %v33848_v3 }
 0x6c9   : > { %11208 = vmatmul.mubr.f32.gmra.mrb[152].mxu0 %v34292_v24  ;;  %12486 = vmatmul.mubr.f32.gmra.mrb[152].mxu1 %v34292_v24 }
 0x6ca   : > { %11213 = vmatprep.mubr.f32.mxu0 %v33848_v3  ;;  %12491 = vmatprep.mubr.f32.mxu1 %v33848_v3 }
 0x6cd   : > { %11215 = vmatmul.mubr.f32.gmra.mrb[154].mxu0 %v34293_v58  ;;  %12493 = vmatmul.mubr.f32.gmra.mrb[154].mxu1 %v34293_v58 }
 0x6ce   : > { %11220 = vmatprep.mubr.f32.mxu0 %v33848_v3  ;;  %12498 = vmatprep.mubr.f32.mxu1 %v33848_v3 }
 0x6d1   : > { %11222 = vmatmul.mubr.f32.gmra.mrb[156].mxu0 %v34294_v44  ;;  %12500 = vmatmul.mubr.f32.gmra.mrb[156].mxu1 %v34294_v44 }
 0x6d2   : > { %11227 = vmatprep.mubr.f32.mxu0 %v33848_v3  ;;  %12505 = vmatprep.mubr.f32.mxu1 %v33848_v3 }
 0x6d5   : > { %11229 = vmatmul.mubr.f32.gmra.mrb[158].mxu0 %v26756_v48  ;;  %12507 = vmatmul.mubr.f32.gmra.mrb[158].mxu1 %v26756_v48 }
 0x6d6   : > { %11315 = vmatprep.mubr.f32.mxu0 %v33848_v3  ;;  %12593 = vmatprep.mubr.f32.mxu1 %v33848_v3 }
 0x6d9   : > { %11318 = vmatmul.mubr.f32.vlgmr.msra.gmra.mrb[128].mxu0 %v34295_v35  ;;  %12596 = vmatmul.mubr.f32.vlgmr.msra.gmra.mrb[128].mxu1 %v34295_v35  ;;  %v34306_v35 = vld [vmem:[#allocation72_spill] sm:$0xff] }
 0x6da   : > { %22578 = vmatpush1.bf16.msra.mxu0 %v34296_v12  ;;  %22626 = vmatpush1.bf16.msra.mxu1 %v34297_v39 }
 0x6db   : > { %11323 = vmatprep.mubr.f32.mxu0 %v33848_v3  ;;  %12601 = vmatprep.mubr.f32.mxu1 %v33848_v3 }
 0x6dc   : > { %22580 = vmatprep.subr.bf16.mxu0 %v34298_v37  ;;  %22628 = vmatprep.subr.bf16.mxu1 %v34299_v32 }
 0x6dd   : > { %11326 = vmatmul.mubr.f32.gmra.mrb[130].mxu0 %v34304_v14  ;;  %12604 = vmatmul.mubr.f32.gmra.mrb[130].mxu1 %v34304_v14 }
 0x6de   : > { %11331 = vmatprep.mubr.f32.mxu0 %v33848_v3  ;;  %12609 = vmatprep.mubr.f32.mxu1 %v33848_v3 }
 0x6df   : > { %22582 = vmatpush1.bf16.msra.mxu0 %v34305_v21  ;;  %22630 = vmatpush1.bf16.msra.mxu1 %v34306_v35 }
 0x6e0   : > { %22584 = vmatprep.subr.bf16.mxu0 %v22583_v17  ;;  %22632 = vmatprep.subr.bf16.mxu1 %v22631_v41 }
 0x6e1   : > { %11334 = vmatmul.mubr.f32.gmra.mrb[132].mxu0 %v34307_v56  ;;  %12612 = vmatmul.mubr.f32.gmra.mrb[132].mxu1 %v34307_v56 }
 0x6e2   : > { %11339 = vmatprep.mubr.f32.mxu0 %v33848_v3  ;;  %12617 = vmatprep.mubr.f32.mxu1 %v33848_v3 }
 0x6e5   : > { %11342 = vmatmul.mubr.f32.gmra.mrb[134].mxu0 %v34308_v45  ;;  %12620 = vmatmul.mubr.f32.gmra.mrb[134].mxu1 %v34308_v45  ;;  %v34311_v45 = vld [vmem:[#allocation18_spill] sm:$0xff] }
 0x6e6   : > { %11347 = vmatprep.mubr.f32.mxu0 %v33848_v3  ;;  %12625 = vmatprep.mubr.f32.mxu1 %v33848_v3 }
 0x6e9   : > { %11350 = vmatmul.mubr.f32.gmra.mrb[136].mxu0 %v34309_v49  ;;  %12628 = vmatmul.mubr.f32.gmra.mrb[136].mxu1 %v34309_v49 }
 0x6ea   : > { %11355 = vmatprep.mubr.f32.mxu0 %v33848_v3  ;;  %12633 = vmatprep.mubr.f32.mxu1 %v33848_v3 }
 0x6ec   : > { %v9381_v18 = vpop.f32.mrb[96].mxu0  ;;  %v10659_v10 = vpop.f32.mrb[96].mxu1 }
 0x6ed   : > { %v23127_v17 = vadd.f32 %v9381_v18, %v34310_v16  ;;  %v23159_v7 = vadd.f32 %v10659_v10, %v34310_v16  ;;  %v9383_v36 = vpop.f32.mrb[97].mxu0  ;;  %v10661_v41 = vpop.f32.mrb[97].mxu1  ;;  %11358 = vmatmul.mubr.f32.gmra.mrb[138].mxu0 %v34311_v45  ;;  %12636 = vmatmul.mubr.f32.gmra.mrb[138].mxu1 %v34311_v45 }
 0x6ee   : > { %v23128_v49 = vadd.f32 %v9383_v36, %v34310_v16  ;;  %v23160_v56 = vadd.f32 %v10661_v41, %v34310_v16  ;;  %11363 = vmatprep.mubr.f32.mxu0 %v33848_v3  ;;  %12641 = vmatprep.mubr.f32.mxu1 %v33848_v3  ;;  %v34313_v16 = vld [vmem:[#allocation23_spill] sm:$0xff] }
 0x6ef   : > { %v21005_v18 = vmax.f32 %v23127_v17, 0.0  ;;  %v21007_v14 = vmax.f32 %v23159_v7, 0.0 }
 0x6f0   : > { %v21006_v10 = vmax.f32 %v23128_v49, 0.0  ;;  %v21008_v27 = vmax.f32 %v23160_v56, 0.0  ;;  %v9388_v26 = vpop.f32.mrb[98].mxu0  ;;  %v10666_v55 = vpop.f32.mrb[98].mxu1 }
 0x6f1   : > { %21517 = vst [vmem:[%s27686_s6 + $0x60] sm:$0xff] %v21005_v18  ;;  %21519 = vst [vmem:[%s27686_s6 + $0x70] sm:$0xff] %v21007_v14  ;;  %v23129_v45 = vadd.f32 %v9388_v26, %v34312_v13  ;;  %v23161_v36 = vadd.f32 %v10666_v55, %v34312_v13  ;;  %v9390_v63 = vpop.f32.mrb[99].mxu0  ;;  %v10668_v41 = vpop.f32.mrb[99].mxu1  ;;  %11366 = vmatmul.mubr.f32.gmra.mrb[140].mxu0 %v34313_v16  ;;  %12644 = vmatmul.mubr.f32.gmra.mrb[140].mxu1 %v34313_v16 }
 0x6f2   : > { %21518 = vst [vmem:[%s27686_s6 + $0x68] sm:$0xff] %v21006_v10  ;;  %21520 = vst [vmem:[%s27686_s6 + $0x78] sm:$0xff] %v21008_v27  ;;  %v23130_v56 = vadd.f32 %v9390_v63, %v34312_v13  ;;  %v23162_v49 = vadd.f32 %v10668_v41, %v34312_v13  ;;  %11371 = vmatprep.mubr.f32.mxu0 %v33848_v3  ;;  %12649 = vmatprep.mubr.f32.mxu1 %v33848_v3  ;;  %v34314_v10 = vld [vmem:[#allocation20_spill] sm:$0xff] }
 0x6f3   : > { %v21037_v55 = vmax.f32 %v23129_v45, 0.0  ;;  %v21039_v26 = vmax.f32 %v23161_v36, 0.0  ;;  %v34315_v13 = vld [vmem:[#allocation24_spill] sm:$0xff] }
 0x6f4   : > { %v21038_v14 = vmax.f32 %v23130_v56, 0.0  ;;  %v21040_v17 = vmax.f32 %v23162_v49, 0.0  ;;  %v9395_v7 = vpop.f32.mrb[100].mxu0  ;;  %v10673_v18 = vpop.f32.mrb[100].mxu1 }
 0x6f5   : > { %21549 = vst [vmem:[%s27686_s6 + $0x160] sm:$0xff] %v21037_v55  ;;  %21551 = vst [vmem:[%s27686_s6 + $0x170] sm:$0xff] %v21039_v26  ;;  %v23131_v27 = vadd.f32 %v9395_v7, %v34314_v10  ;;  %v23163_v63 = vadd.f32 %v10673_v18, %v34314_v10  ;;  %v9397_v16 = vpop.f32.mrb[101].mxu0  ;;  %v10675_v41 = vpop.f32.mrb[101].mxu1  ;;  %11374 = vmatmul.mubr.f32.gmra.mrb[142].mxu0 %v34315_v13  ;;  %12652 = vmatmul.mubr.f32.gmra.mrb[142].mxu1 %v34315_v13 }
 0x6f6   : > { %21550 = vst [vmem:[%s27686_s6 + $0x168] sm:$0xff] %v21038_v14  ;;  %21552 = vst [vmem:[%s27686_s6 + $0x178] sm:$0xff] %v21040_v17  ;;  %v23132_v45 = vadd.f32 %v9397_v16, %v34314_v10  ;;  %v23164_v36 = vadd.f32 %v10675_v41, %v34314_v10  ;;  %11379 = vmatprep.mubr.f32.mxu0 %v33848_v3  ;;  %12657 = vmatprep.mubr.f32.mxu1 %v33848_v3  ;;  %v34316_v14 = vld [vmem:[#allocation25_spill] sm:$0xff] }
 0x6f7   : > { %v21069_v56 = vmax.f32 %v23131_v27, 0.0  ;;  %v21071_v49 = vmax.f32 %v23163_v63, 0.0  ;;  %v34317_v10 = vld [vmem:[#allocation29_spill] sm:$0xff] }
 0x6f8   : > { %v21070_v55 = vmax.f32 %v23132_v45, 0.0  ;;  %v21072_v26 = vmax.f32 %v23164_v36, 0.0  ;;  %v9402_v7 = vpop.f32.mrb[102].mxu0  ;;  %v10680_v18 = vpop.f32.mrb[102].mxu1 }
 0x6f9   : > { %21581 = vst [vmem:[%s27686_s6 + $0x260] sm:$0xff] %v21069_v56  ;;  %21583 = vst [vmem:[%s27686_s6 + $0x270] sm:$0xff] %v21071_v49  ;;  %v23133_v17 = vadd.f32 %v9402_v7, %v34316_v14  ;;  %v23165_v16 = vadd.f32 %v10680_v18, %v34316_v14  ;;  %v9404_v13 = vpop.f32.mrb[103].mxu0  ;;  %v10682_v41 = vpop.f32.mrb[103].mxu1  ;;  %11382 = vmatmul.mubr.f32.gmra.mrb[144].mxu0 %v34317_v10  ;;  %12660 = vmatmul.mubr.f32.gmra.mrb[144].mxu1 %v34317_v10 }
 0x6fa   : > { %21582 = vst [vmem:[%s27686_s6 + $0x268] sm:$0xff] %v21070_v55  ;;  %21584 = vst [vmem:[%s27686_s6 + $0x278] sm:$0xff] %v21072_v26  ;;  %v23134_v27 = vadd.f32 %v9404_v13, %v34316_v14  ;;  %v23166_v63 = vadd.f32 %v10682_v41, %v34316_v14  ;;  %11387 = vmatprep.mubr.f32.mxu0 %v33848_v3  ;;  %12665 = vmatprep.mubr.f32.mxu1 %v33848_v3  ;;  %v34318_v55 = vld [vmem:[#allocation26_spill] sm:$0xff]  ;;  %v34319_v14 = vld [vmem:[#allocation33_spill] sm:$0xff] }
 0x6fb   : > { %v21101_v45 = vmax.f32 %v23133_v17, 0.0  ;;  %v21103_v36 = vmax.f32 %v23165_v16, 0.0 }
 0x6fc   : > { %v21102_v56 = vmax.f32 %v23134_v27, 0.0  ;;  %v21104_v49 = vmax.f32 %v23166_v63, 0.0  ;;  %v9409_v7 = vpop.f32.mrb[104].mxu0  ;;  %v10687_v18 = vpop.f32.mrb[104].mxu1 }
 0x6fd   : > { %21613 = vst [vmem:[%s27686_s6 + $0x360] sm:$0xff] %v21101_v45  ;;  %21615 = vst [vmem:[%s27686_s6 + $0x370] sm:$0xff] %v21103_v36  ;;  %v23135_v26 = vadd.f32 %v9409_v7, %v34318_v55  ;;  %v23167_v13 = vadd.f32 %v10687_v18, %v34318_v55  ;;  %v9411_v10 = vpop.f32.mrb[105].mxu0  ;;  %v10689_v41 = vpop.f32.mrb[105].mxu1  ;;  %11390 = vmatmul.mubr.f32.gmra.mrb[146].mxu0 %v34319_v14  ;;  %12668 = vmatmul.mubr.f32.gmra.mrb[146].mxu1 %v34319_v14 }
 0x6fe   : > { %21614 = vst [vmem:[%s27686_s6 + $0x368] sm:$0xff] %v21102_v56  ;;  %21616 = vst [vmem:[%s27686_s6 + $0x378] sm:$0xff] %v21104_v49  ;;  %v23136_v17 = vadd.f32 %v9411_v10, %v34318_v55  ;;  %v23168_v16 = vadd.f32 %v10689_v41, %v34318_v55  ;;  %11395 = vmatprep.mubr.f32.mxu0 %v33848_v3  ;;  %12673 = vmatprep.mubr.f32.mxu1 %v33848_v3  ;;  %v34320_v56 = vld [vmem:[#allocation30_spill] sm:$0xff]  ;;  %v34321_v55 = vld [vmem:[#allocation36_spill] sm:$0xff] }
 0x6ff   : > { %v21133_v27 = vmax.f32 %v23135_v26, 0.0  ;;  %v21135_v63 = vmax.f32 %v23167_v13, 0.0 }
 0x700   : > { %v21134_v45 = vmax.f32 %v23136_v17, 0.0  ;;  %v21136_v36 = vmax.f32 %v23168_v16, 0.0  ;;  %v9416_v7 = vpop.f32.mrb[106].mxu0  ;;  %v10694_v18 = vpop.f32.mrb[106].mxu1 }
 0x701   : > { %21645 = vst [vmem:[%s27686_s6 + $0x460] sm:$0xff] %v21133_v27  ;;  %21647 = vst [vmem:[%s27686_s6 + $0x470] sm:$0xff] %v21135_v63  ;;  %v23137_v49 = vadd.f32 %v9416_v7, %v34320_v56  ;;  %v23169_v10 = vadd.f32 %v10694_v18, %v34320_v56  ;;  %v9418_v14 = vpop.f32.mrb[107].mxu0  ;;  %v10696_v41 = vpop.f32.mrb[107].mxu1  ;;  %11398 = vmatmul.mubr.f32.gmra.mrb[148].mxu0 %v34321_v55  ;;  %12676 = vmatmul.mubr.f32.gmra.mrb[148].mxu1 %v34321_v55 }
 0x702   : > { %21646 = vst [vmem:[%s27686_s6 + $0x468] sm:$0xff] %v21134_v45  ;;  %21648 = vst [vmem:[%s27686_s6 + $0x478] sm:$0xff] %v21136_v36  ;;  %v23138_v26 = vadd.f32 %v9418_v14, %v34320_v56  ;;  %v23170_v13 = vadd.f32 %v10696_v41, %v34320_v56  ;;  %11403 = vmatprep.mubr.f32.mxu0 %v33848_v3  ;;  %12681 = vmatprep.mubr.f32.mxu1 %v33848_v3  ;;  %v34322_v45 = vld [vmem:[#allocation32_spill] sm:$0xff]  ;;  %v34323_v56 = vld [vmem:[#allocation41_spill] sm:$0xff] }
 0x703   : > { %v21165_v17 = vmax.f32 %v23137_v49, 0.0  ;;  %v21167_v16 = vmax.f32 %v23169_v10, 0.0 }
 0x704   : > { %v21166_v27 = vmax.f32 %v23138_v26, 0.0  ;;  %v21168_v63 = vmax.f32 %v23170_v13, 0.0  ;;  %v9423_v7 = vpop.f32.mrb[108].mxu0  ;;  %v10701_v18 = vpop.f32.mrb[108].mxu1 }
 0x705   : > { %21677 = vst [vmem:[%s27686_s6 + $0x560] sm:$0xff] %v21165_v17  ;;  %21679 = vst [vmem:[%s27686_s6 + $0x570] sm:$0xff] %v21167_v16  ;;  %v23139_v36 = vadd.f32 %v9423_v7, %v34322_v45  ;;  %v23171_v14 = vadd.f32 %v10701_v18, %v34322_v45  ;;  %v9425_v55 = vpop.f32.mrb[109].mxu0  ;;  %v10703_v41 = vpop.f32.mrb[109].mxu1  ;;  %11406 = vmatmul.mubr.f32.gmra.mrb[150].mxu0 %v34323_v56  ;;  %12684 = vmatmul.mubr.f32.gmra.mrb[150].mxu1 %v34323_v56 }
 0x706   : > { %21678 = vst [vmem:[%s27686_s6 + $0x568] sm:$0xff] %v21166_v27  ;;  %21680 = vst [vmem:[%s27686_s6 + $0x578] sm:$0xff] %v21168_v63  ;;  %v23140_v49 = vadd.f32 %v9425_v55, %v34322_v45  ;;  %v23172_v10 = vadd.f32 %v10703_v41, %v34322_v45  ;;  %11411 = vmatprep.mubr.f32.mxu0 %v33848_v3  ;;  %12689 = vmatprep.mubr.f32.mxu1 %v33848_v3  ;;  %v34324_v27 = vld [vmem:[#allocation34_spill] sm:$0xff]  ;;  %v34325_v45 = vld [vmem:[#allocation45_spill] sm:$0xff] }
 0x707   : > { %v21197_v26 = vmax.f32 %v23139_v36, 0.0  ;;  %v21199_v13 = vmax.f32 %v23171_v14, 0.0 }
 0x708   : > { %v21198_v17 = vmax.f32 %v23140_v49, 0.0  ;;  %v21200_v16 = vmax.f32 %v23172_v10, 0.0  ;;  %v9430_v7 = vpop.f32.mrb[110].mxu0  ;;  %v10708_v18 = vpop.f32.mrb[110].mxu1 }
 0x709   : > { %21709 = vst [vmem:[%s27686_s6 + $0x660] sm:$0xff] %v21197_v26  ;;  %21711 = vst [vmem:[%s27686_s6 + $0x670] sm:$0xff] %v21199_v13  ;;  %v23141_v63 = vadd.f32 %v9430_v7, %v34324_v27  ;;  %v23173_v55 = vadd.f32 %v10708_v18, %v34324_v27  ;;  %v9432_v56 = vpop.f32.mrb[111].mxu0  ;;  %v10710_v41 = vpop.f32.mrb[111].mxu1  ;;  %11414 = vmatmul.mubr.f32.gmra.mrb[152].mxu0 %v34325_v45  ;;  %12692 = vmatmul.mubr.f32.gmra.mrb[152].mxu1 %v34325_v45 }
 0x70a   : > { %21710 = vst [vmem:[%s27686_s6 + $0x668] sm:$0xff] %v21198_v17  ;;  %21712 = vst [vmem:[%s27686_s6 + $0x678] sm:$0xff] %v21200_v16  ;;  %v23142_v36 = vadd.f32 %v9432_v56, %v34324_v27  ;;  %v23174_v14 = vadd.f32 %v10710_v41, %v34324_v27  ;;  %11419 = vmatprep.mubr.f32.mxu0 %v33848_v3  ;;  %12697 = vmatprep.mubr.f32.mxu1 %v33848_v3  ;;  %v34326_v17 = vld [vmem:[#allocation38_spill] sm:$0xff]  ;;  %v34327_v27 = vld [vmem:[#allocation49_spill] sm:$0xff] }
 0x70b   : > { %v21229_v49 = vmax.f32 %v23141_v63, 0.0  ;;  %v21231_v10 = vmax.f32 %v23173_v55, 0.0 }
 0x70c   : > { %v21230_v26 = vmax.f32 %v23142_v36, 0.0  ;;  %v21232_v13 = vmax.f32 %v23174_v14, 0.0  ;;  %v9437_v7 = vpop.f32.mrb[112].mxu0  ;;  %v10715_v18 = vpop.f32.mrb[112].mxu1 }
 0x70d   : > { %21741 = vst [vmem:[%s27686_s6 + $0x760] sm:$0xff] %v21229_v49  ;;  %21743 = vst [vmem:[%s27686_s6 + $0x770] sm:$0xff] %v21231_v10  ;;  %v23143_v16 = vadd.f32 %v9437_v7, %v34326_v17  ;;  %v23175_v56 = vadd.f32 %v10715_v18, %v34326_v17  ;;  %v9439_v45 = vpop.f32.mrb[113].mxu0  ;;  %v10717_v41 = vpop.f32.mrb[113].mxu1  ;;  %11422 = vmatmul.mubr.f32.gmra.mrb[154].mxu0 %v34327_v27  ;;  %12700 = vmatmul.mubr.f32.gmra.mrb[154].mxu1 %v34327_v27 }
 0x70e   : > { %21742 = vst [vmem:[%s27686_s6 + $0x768] sm:$0xff] %v21230_v26  ;;  %21744 = vst [vmem:[%s27686_s6 + $0x778] sm:$0xff] %v21232_v13  ;;  %v23144_v63 = vadd.f32 %v9439_v45, %v34326_v17  ;;  %v23176_v55 = vadd.f32 %v10717_v41, %v34326_v17  ;;  %11427 = vmatprep.mubr.f32.mxu0 %v33848_v3  ;;  %12705 = vmatprep.mubr.f32.mxu1 %v33848_v3  ;;  %v34328_v26 = vld [vmem:[#allocation60_spill] sm:$0xff]  ;;  %v34329_v17 = vld [vmem:[#allocation50_spill] sm:$0xff] }
 0x70f   : > { %v21261_v36 = vmax.f32 %v23143_v16, 0.0  ;;  %v21263_v14 = vmax.f32 %v23175_v56, 0.0 }
 0x710   : > { %v21262_v49 = vmax.f32 %v23144_v63, 0.0  ;;  %v21264_v10 = vmax.f32 %v23176_v55, 0.0  ;;  %v9444_v7 = vpop.f32.mrb[114].mxu0  ;;  %v10722_v18 = vpop.f32.mrb[114].mxu1 }
 0x711   : > { %21773 = vst [vmem:[%s27686_s6 + $0x860] sm:$0xff] %v21261_v36  ;;  %21775 = vst [vmem:[%s27686_s6 + $0x870] sm:$0xff] %v21263_v14  ;;  %v23145_v13 = vadd.f32 %v9444_v7, %v34328_v26  ;;  %v23177_v45 = vadd.f32 %v10722_v18, %v34328_v26  ;;  %v9446_v27 = vpop.f32.mrb[115].mxu0  ;;  %v10724_v41 = vpop.f32.mrb[115].mxu1  ;;  %11430 = vmatmul.mubr.f32.gmra.mrb[156].mxu0 %v34329_v17  ;;  %12708 = vmatmul.mubr.f32.gmra.mrb[156].mxu1 %v34329_v17 }
 0x712   : > { %21774 = vst [vmem:[%s27686_s6 + $0x868] sm:$0xff] %v21262_v49  ;;  %21776 = vst [vmem:[%s27686_s6 + $0x878] sm:$0xff] %v21264_v10  ;;  %v23146_v16 = vadd.f32 %v9446_v27, %v34328_v26  ;;  %v23178_v56 = vadd.f32 %v10724_v41, %v34328_v26  ;;  %11435 = vmatprep.mubr.f32.mxu0 %v33848_v3  ;;  %12713 = vmatprep.mubr.f32.mxu1 %v33848_v3  ;;  %v34330_v49 = vld [vmem:[#allocation61_spill] sm:$0xff]  ;;  %v34331_v26 = vld [vmem:[#allocation55_spill] sm:$0xff] }
 0x713   : > { %v21293_v63 = vmax.f32 %v23145_v13, 0.0  ;;  %v21295_v55 = vmax.f32 %v23177_v45, 0.0  ;;  %v34332_v13 = vand.u32 4294901760, %v29768_v20  ;;  %v34333_v45 = vand.u32 4294901760, %v29770_v42 }
 0x714   : > { %v21294_v36 = vmax.f32 %v23146_v16, 0.0  ;;  %v21296_v14 = vmax.f32 %v23178_v56, 0.0  ;;  %v9451_v7 = vpop.f32.mrb[116].mxu0  ;;  %v10729_v18 = vpop.f32.mrb[116].mxu1 }
 0x715   : > { %21805 = vst [vmem:[%s27686_s6 + $0x960] sm:$0xff] %v21293_v63  ;;  %21807 = vst [vmem:[%s27686_s6 + $0x970] sm:$0xff] %v21295_v55  ;;  %v23147_v10 = vadd.f32 %v9451_v7, %v34330_v49  ;;  %v23179_v27 = vadd.f32 %v10729_v18, %v34330_v49  ;;  %v9453_v17 = vpop.f32.mrb[117].mxu0  ;;  %v10731_v41 = vpop.f32.mrb[117].mxu1  ;;  %11438 = vmatmul.mubr.f32.gmra.mrb[158].mxu0 %v34331_v26  ;;  %12716 = vmatmul.mubr.f32.gmra.mrb[158].mxu1 %v34331_v26  ;;  %v34334_v55 = vand.u32 4294901760, %v29772_v43 }
 0x716   : > { %v22585_v16 = vpack.c.bf16 %v34333_v45, %v34332_v13  ;;  %21806 = vst [vmem:[%s27686_s6 + $0x968] sm:$0xff] %v21294_v36  ;;  %21808 = vst [vmem:[%s27686_s6 + $0x978] sm:$0xff] %v21296_v14  ;;  %v23148_v56 = vadd.f32 %v9453_v17, %v34330_v49  ;;  %v23180_v63 = vadd.f32 %v10731_v41, %v34330_v49  ;;  %11516 = vmatprep.mubr.f32.mxu0 %v33848_v3 }
 0x717   : > { %12794 = vmatprep.mubr.f32.mxu1 %v33848_v3  ;;  %v34335_v7 = vand.u32 4294901760, %v29778_v29  ;;  %v21325_v18 = vmax.f32 %v23147_v10, 0.0  ;;  %v21327_v42 = vmax.f32 %v23179_v27, 0.0  ;;  %v34336_v17 = vand.u32 4294901760, %v29849_v1  ;;  %v34340_v29 = vld [vmem:[#allocation62_spill] sm:$0xff] }
 0x718   : > { %v21326_v36 = vmax.f32 %v23148_v56, 0.0  ;;  %v21328_v13 = vmax.f32 %v23180_v63, 0.0  ;;  %v9458_v14 = vpop.f32.mrb[118].mxu0  ;;  %v10736_v45 = vpop.f32.mrb[118].mxu1  ;;  %v34337_v41 = vand.u32 4294901760, %v29854_v2  ;;  %v34338_v49 = vand.u32 4294901760, %v29859_v28 }
 0x719   : > { %v22633_v20 = vpack.c.bf16 %v34335_v7, %v34334_v55  ;;  %v34339_v43 = vand.u32 4294901760, %v29864_v57  ;;  %21837 = vst [vmem:[%s27686_s6 + $0xa60] sm:$0xff] %v21325_v18  ;;  %21839 = vst [vmem:[%s27686_s6 + $0xa70] sm:$0xff] %v21327_v42  ;;  %v23149_v10 = vadd.f32 %v9458_v14, %v34340_v29  ;;  %v23181_v27 = vadd.f32 %v10736_v45, %v34340_v29  ;;  %v9460_v56 = vpop.f32.mrb[119].mxu0  ;;  %v10738_v63 = vpop.f32.mrb[119].mxu1  ;;  %v34341_v55 = vld [vmem:[#allocation9_spill] sm:$0xff] }
 0x71a   : > { %v22587_v26 = vpack.c.bf16 %v34337_v41, %v34336_v17  ;;  %11520 = vmatmul.mubr.f32.vlgmr.msra.gmra.mrb[128].mxu0 %v34341_v55  ;;  %12798 = vmatmul.mubr.f32.vlgmr.msra.gmra.mrb[128].mxu1 %v34341_v55  ;;  %21838 = vst [vmem:[%s27686_s6 + $0xa68] sm:$0xff] %v21326_v36  ;;  %21840 = vst [vmem:[%s27686_s6 + $0xa78] sm:$0xff] %v21328_v13  ;;  %v23150_v1 = vadd.f32 %v9460_v56, %v34340_v29  ;;  %v34343_v7 = vand.u32 4294901760, %v29870_v52  ;;  %v34346_v17 = vld [vmem:[#allocation63_spill] sm:$0xff] }
 0x71b   : > { %v22635_v33 = vpack.c.bf16 %v34339_v43, %v34338_v49  ;;  %v23182_v57 = vadd.f32 %v10738_v63, %v34340_v29  ;;  %22586 = vmatpush1.bf16.msra.mxu0 %v22585_v16  ;;  %22634 = vmatpush1.bf16.msra.mxu1 %v22633_v20  ;;  %v21357_v2 = vmax.f32 %v23149_v10, 0.0  ;;  %v21359_v28 = vmax.f32 %v23181_v27, 0.0 }
 0x71c   : > { %11525 = vmatprep.mubr.f32.mxu0 %v33848_v3  ;;  %12803 = vmatprep.mubr.f32.mxu1 %v33848_v3  ;;  %v34342_v49 = vand.u32 4294901760, %v29867_v53  ;;  %v34344_v42 = vand.u32 4294901760, %v29873_v22  ;;  %v34345_v36 = vand.u32 4294901760, %v29876_v54  ;;  %v21358_v16 = vmax.f32 %v23150_v1, 0.0  ;;  %v9465_v14 = vpop.f32.mrb[120].mxu0  ;;  %v10743_v45 = vpop.f32.mrb[120].mxu1 }
 0x71d   : > { %v21360_v20 = vmax.f32 %v23182_v57, 0.0  ;;  %22588 = vmatprep.subr.bf16.mxu0 %v22587_v26  ;;  %22636 = vmatprep.subr.bf16.mxu1 %v22635_v33  ;;  %21869 = vst [vmem:[%s27686_s6 + $0xb60] sm:$0xff] %v21357_v2  ;;  %21871 = vst [vmem:[%s27686_s6 + $0xb70] sm:$0xff] %v21359_v28  ;;  %v23151_v53 = vadd.f32 %v9465_v14, %v34346_v17  ;;  %v23183_v52 = vadd.f32 %v10743_v45, %v34346_v17  ;;  %v9467_v41 = vpop.f32.mrb[121].mxu0  ;;  %v10745_v43 = vpop.f32.mrb[121].mxu1  ;;  %v34347_v22 = vld [vmem:[#allocation13_spill] sm:$0xff] }
 0x71e   : > { %v22589_v18 = vpack.c.bf16 %v34343_v7, %v34342_v49  ;;  %v22637_v13 = vpack.c.bf16 %v34345_v36, %v34344_v42  ;;  %11529 = vmatmul.mubr.f32.gmra.mrb[130].mxu0 %v34347_v22  ;;  %12807 = vmatmul.mubr.f32.gmra.mrb[130].mxu1 %v34347_v22  ;;  %21870 = vst [vmem:[%s27686_s6 + $0xb68] sm:$0xff] %v21358_v16  ;;  %v34348_v57 = vld [vmem:[#allocation64_spill] sm:$0xff]  ;;  %v34350_v45 = vld [vmem:[#allocation65_spill] sm:$0xff] }
 0x71f   : > { %21872 = vst [vmem:[%s27686_s6 + $0xb78] sm:$0xff] %v21360_v20  ;;  %v23152_v54 = vadd.f32 %v9467_v41, %v34346_v17  ;;  %v23184_v33 = vadd.f32 %v10745_v43, %v34346_v17  ;;  %11534 = vmatprep.mubr.f32.mxu0 %v33848_v3  ;;  %12812 = vmatprep.mubr.f32.mxu1 %v33848_v3  ;;  %v21389_v26 = vmax.f32 %v23151_v53, 0.0  ;;  %v21391_v10 = vmax.f32 %v23183_v52, 0.0 }
 0x720   : > { %22590 = vmatpush1.bf16.msra.mxu0 %v22589_v18  ;;  %22638 = vmatpush1.bf16.msra.mxu1 %v22637_v13  ;;  %v9472_v63 = vpop.f32.mrb[122].mxu0  ;;  %v10750_v1 = vpop.f32.mrb[122].mxu1  ;;  %v34349_v18 = vld [vmem:[#allocation15_spill] sm:$0xff] }
 0x721   : > { %v21390_v27 = vmax.f32 %v23152_v54, 0.0  ;;  %v21392_v56 = vmax.f32 %v23184_v33, 0.0  ;;  %22592 = vmatprep.subr.bf16.mxu0 %v29628_v19  ;;  %22640 = vmatprep.subr.bf16.mxu1 %v34290_v0  ;;  %21901 = vst [vmem:[%s27686_s6 + $0xc60] sm:$0xff] %v21389_v26  ;;  %21903 = vst [vmem:[%s27686_s6 + $0xc70] sm:$0xff] %v21391_v10  ;;  %v23153_v2 = vadd.f32 %v9472_v63, %v34348_v57  ;;  %v9474_v49 = vpop.f32.mrb[123].mxu0  ;;  %v10752_v7 = vpop.f32.mrb[123].mxu1 }
 0x722   : > { %v23185_v28 = vadd.f32 %v10750_v1, %v34348_v57  ;;  %11538 = vmatmul.mubr.f32.gmra.mrb[132].mxu0 %v34349_v18  ;;  %12816 = vmatmul.mubr.f32.gmra.mrb[132].mxu1 %v34349_v18  ;;  %v23154_v19 = vadd.f32 %v9474_v49, %v34348_v57  ;;  %v23186_v0 = vadd.f32 %v10752_v7, %v34348_v57  ;;  %v34351_v54 = vld [vmem:[#allocation16_spill] sm:$0xff] }
 0x723   : > { %21902 = vst [vmem:[%s27686_s6 + $0xc68] sm:$0xff] %v21390_v27  ;;  %21904 = vst [vmem:[%s27686_s6 + $0xc78] sm:$0xff] %v21392_v56  ;;  %11543 = vmatprep.mubr.f32.mxu0 %v33848_v3  ;;  %12821 = vmatprep.mubr.f32.mxu1 %v33848_v3  ;;  %v21421_v42 = vmax.f32 %v23153_v2, 0.0 }
 0x724   : > { %v21423_v36 = vmax.f32 %v23185_v28, 0.0  ;;  %v21422_v13 = vmax.f32 %v23154_v19, 0.0  ;;  %v21424_v16 = vmax.f32 %v23186_v0, 0.0  ;;  %v9479_v20 = vpop.f32.mrb[124].mxu0  ;;  %v10757_v14 = vpop.f32.mrb[124].mxu1  ;;  %v34352_v28 = vld [vmem:[#allocation66_spill] sm:$0xff] }
 0x725   : > { %21933 = vst [vmem:[%s27686_s6 + $0xd60] sm:$0xff] %v21421_v42  ;;  %v23155_v53 = vadd.f32 %v9479_v20, %v34350_v45  ;;  %v23187_v52 = vadd.f32 %v10757_v14, %v34350_v45  ;;  %v9481_v41 = vpop.f32.mrb[125].mxu0  ;;  %v10759_v43 = vpop.f32.mrb[125].mxu1  ;;  %v34353_v42 = vld [vmem:[#allocation21_spill] sm:$0xff] }
 0x726   : > { %21935 = vst [vmem:[%s27686_s6 + $0xd70] sm:$0xff] %v21423_v36  ;;  %11547 = vmatmul.mubr.f32.gmra.mrb[134].mxu0 %v34351_v54  ;;  %12825 = vmatmul.mubr.f32.gmra.mrb[134].mxu1 %v34351_v54  ;;  %21934 = vst [vmem:[%s27686_s6 + $0xd68] sm:$0xff] %v21422_v13  ;;  %v23156_v33 = vadd.f32 %v9481_v41, %v34350_v45  ;;  %v23188_v26 = vadd.f32 %v10759_v43, %v34350_v45  ;;  %v34355_v41 = vld [vmem:[#allocation27_spill] sm:$0xff]  ;;  %v34356_v43 = vld [vmem:[#allocation28_spill] sm:$0xff] }
 0x727   : > { %21936 = vst [vmem:[%s27686_s6 + $0xd78] sm:$0xff] %v21424_v16  ;;  %11552 = vmatprep.mubr.f32.mxu0 %v33848_v3  ;;  %12830 = vmatprep.mubr.f32.mxu1 %v33848_v3  ;;  %v21453_v10 = vmax.f32 %v23155_v53, 0.0  ;;  %v21455_v27 = vmax.f32 %v23187_v52, 0.0  ;;  %v34354_v52 = vld [vmem:[#allocation22_spill] sm:$0xff] }
 0x728   : > { %v21454_v56 = vmax.f32 %v23156_v33, 0.0  ;;  %v21456_v63 = vmax.f32 %v23188_v26, 0.0  ;;  %v9486_v1 = vpop.f32.mrb[126].mxu0  ;;  %v10764_v2 = vpop.f32.mrb[126].mxu1  ;;  %v34357_v33 = vld [vmem:[#allocation31_spill] sm:$0xff] }
 0x729   : > { %21965 = vst [vmem:[%s27686_s6 + $0xe60] sm:$0xff] %v21453_v10  ;;  %21967 = vst [vmem:[%s27686_s6 + $0xe70] sm:$0xff] %v21455_v27  ;;  %v23157_v49 = vadd.f32 %v9486_v1, %v34352_v28  ;;  %v23189_v7 = vadd.f32 %v10764_v2, %v34352_v28  ;;  %v9488_v19 = vpop.f32.mrb[127].mxu0  ;;  %v10766_v0 = vpop.f32.mrb[127].mxu1  ;;  %v34358_v26 = vld [vmem:[#allocation35_spill] sm:$0xff]  ;;  %v34359_v10 = vld [vmem:[#allocation40_spill] sm:$0xff] }
 0x72a   : > { %11556 = vmatmul.mubr.f32.gmra.mrb[136].mxu0 %v34353_v42  ;;  %12834 = vmatmul.mubr.f32.gmra.mrb[136].mxu1 %v34353_v42  ;;  %21966 = vst [vmem:[%s27686_s6 + $0xe68] sm:$0xff] %v21454_v56  ;;  %21968 = vst [vmem:[%s27686_s6 + $0xe78] sm:$0xff] %v21456_v63  ;;  %v23158_v36 = vadd.f32 %v9488_v19, %v34352_v28  ;;  %v23190_v13 = vadd.f32 %v10766_v0, %v34352_v28  ;;  %v34360_v27 = vld [vmem:[#allocation44_spill] sm:$0xff]  ;;  %v34363_v1 = vld [vmem:[#allocation54_spill] sm:$0xff] }
 0x72b   : > { %11561 = vmatprep.mubr.f32.mxu0 %v33848_v3  ;;  %12839 = vmatprep.mubr.f32.mxu1 %v33848_v3  ;;  %v21485_v16 = vmax.f32 %v23157_v49, 0.0  ;;  %v21487_v20 = vmax.f32 %v23189_v7, 0.0  ;;  %v34361_v56 = vld [vmem:[#allocation48_spill] sm:$0xff]  ;;  %v30413_v2 = vld [vmem:[%s26321_s26 + $0xa8] sm:$0xff]  ;;  %v30421_v19 = vld [vmem:[%s26321_s26 + $0xb8] sm:$0xff] }
 0x72c   : > { %v21486_v14 = vmax.f32 %v23158_v36, 0.0  ;;  %v21488_v53 = vmax.f32 %v23190_v13, 0.0  ;;  %v34362_v63 = vld [vmem:[#allocation52_spill] sm:$0xff]  ;;  %v34364_v49 = vld [vmem:[#allocation57_spill] sm:$0xff]  ;;  %v30424_v0 = vld [vmem:[%s26321_s26 + $0x1b8] sm:$0xff]  ;;  %v13325_v36 = vand.u32 4294901760, %v30413_v2 }
 0x72d   : > { %21997 = vst [vmem:[%s27686_s6 + $0xf60] sm:$0xff] %v21485_v16  ;;  %21999 = vst [vmem:[%s27686_s6 + $0xf70] sm:$0xff] %v21487_v20  ;;  %v30418_v7 = vld [vmem:[%s26321_s26 + $0x1a8] sm:$0xff]  ;;  %v14603_v16 = vand.u32 4294901760, %v30421_v19  ;;  %v14607_v20 = vand.u32 4294901760, %v30424_v0 }
 0x72e   : > { %11565 = vmatmul.mubr.f32.gmra.mrb[138].mxu0 %v34354_v52  ;;  %12843 = vmatmul.mubr.f32.gmra.mrb[138].mxu1 %v34354_v52  ;;  %21998 = vst [vmem:[%s27686_s6 + $0xf68] sm:$0xff] %v21486_v14  ;;  %22000 = vst [vmem:[%s27686_s6 + $0xf78] sm:$0xff] %v21488_v53  ;;  %v13329_v13 = vand.u32 4294901760, %v30418_v7  ;;  %v30568_v52 = vld [vmem:[%s26321_s26 + $0x3b0] sm:$0xff] }
 0x72f   : > { %11570 = vmatprep.mubr.f32.mxu0 %v33848_v3  ;;  %12848 = vmatprep.mubr.f32.mxu1 %v33848_v3  ;;  %v30524_v53 = vsub.f32 %v30424_v0, %v14607_v20  ;;  %v30542_v0 = vld [vmem:[%s26321_s26 + $0x3b8] sm:$0xff] }
 0x730   : > { %v30444_v14 = vpack.c.bf16 %v13329_v13, %v13325_v36 }
 0x731   : > { %v34370_v54 = vand.u32 4294901760, %v30524_v53 }
 0x732   : > { %11574 = vmatmul.mubr.f32.gmra.mrb[140].mxu0 %v34355_v41  ;;  %12852 = vmatmul.mubr.f32.gmra.mrb[140].mxu1 %v34355_v41  ;;  %v30565_v41 = vld [vmem:[%s26321_s26 + $0x2b0] sm:$0xff] }
 0x733   : > { %11579 = vmatprep.mubr.f32.mxu0 %v33848_v3  ;;  %12857 = vmatprep.mubr.f32.mxu1 %v33848_v3  ;;  %v14867_v45 = vsub.f32 %v30524_v53, %v34370_v54 }
 0x736   : > { %11583 = vmatmul.mubr.f32.gmra.mrb[142].mxu0 %v34356_v43  ;;  %12861 = vmatmul.mubr.f32.gmra.mrb[142].mxu1 %v34356_v43  ;;  %v30562_v43 = vld [vmem:[%s26321_s26 + $0x3a0] sm:$0xff] }
 0x737   : > { %11588 = vmatprep.mubr.f32.mxu0 %v33848_v3  ;;  %12866 = vmatprep.mubr.f32.mxu1 %v33848_v3  ;;  %v13339_v22 = vand.u32 4294901760, %v30562_v43 }
 0x73a   : > { %11592 = vmatmul.mubr.f32.gmra.mrb[144].mxu0 %v34357_v33  ;;  %12870 = vmatmul.mubr.f32.gmra.mrb[144].mxu1 %v34357_v33  ;;  %v30559_v33 = vld [vmem:[%s26321_s26 + $0x2a0] sm:$0xff] }
 0x73b   : > { %11597 = vmatprep.mubr.f32.mxu0 %v33848_v3  ;;  %12875 = vmatprep.mubr.f32.mxu1 %v33848_v3  ;;  %v13335_v54 = vand.u32 4294901760, %v30559_v33 }
 0x73e   : > { %11601 = vmatmul.mubr.f32.gmra.mrb[146].mxu0 %v34358_v26  ;;  %12879 = vmatmul.mubr.f32.gmra.mrb[146].mxu1 %v34358_v26 }
 0x73f   : > { %11606 = vmatprep.mubr.f32.mxu0 %v33848_v3  ;;  %12884 = vmatprep.mubr.f32.mxu1 %v33848_v3 }
 0x742   : > { %11610 = vmatmul.mubr.f32.gmra.mrb[148].mxu0 %v34359_v10  ;;  %12888 = vmatmul.mubr.f32.gmra.mrb[148].mxu1 %v34359_v10 }
 0x743   : > { %11615 = vmatprep.mubr.f32.mxu0 %v33848_v3  ;;  %12893 = vmatprep.mubr.f32.mxu1 %v33848_v3 }
 0x746   : > { %11619 = vmatmul.mubr.f32.gmra.mrb[150].mxu0 %v34360_v27  ;;  %12897 = vmatmul.mubr.f32.gmra.mrb[150].mxu1 %v34360_v27 }
 0x747   : > { %11624 = vmatprep.mubr.f32.mxu0 %v33848_v3  ;;  %12902 = vmatprep.mubr.f32.mxu1 %v33848_v3 }
 0x74a   : > { %11628 = vmatmul.mubr.f32.gmra.mrb[152].mxu0 %v34361_v56  ;;  %12906 = vmatmul.mubr.f32.gmra.mrb[152].mxu1 %v34361_v56 }
 0x74b   : > { %11633 = vmatprep.mubr.f32.mxu0 %v33848_v3  ;;  %12911 = vmatprep.mubr.f32.mxu1 %v33848_v3 }
 0x74e   : > { %11637 = vmatmul.mubr.f32.gmra.mrb[154].mxu0 %v34362_v63  ;;  %12915 = vmatmul.mubr.f32.gmra.mrb[154].mxu1 %v34362_v63 }
 0x74f   : > { %11642 = vmatprep.mubr.f32.mxu0 %v33848_v3  ;;  %12920 = vmatprep.mubr.f32.mxu1 %v33848_v3 }
 0x752   : > { %11646 = vmatmul.mubr.f32.gmra.mrb[156].mxu0 %v34363_v1  ;;  %12924 = vmatmul.mubr.f32.gmra.mrb[156].mxu1 %v34363_v1 }
 0x753   : > { %11651 = vmatprep.mubr.f32.mxu0 %v33848_v3  ;;  %12929 = vmatprep.mubr.f32.mxu1 %v33848_v3 }
 0x756   : > { %11655 = vmatmul.mubr.f32.gmra.mrb[158].mxu0 %v34364_v49  ;;  %12933 = vmatmul.mubr.f32.gmra.mrb[158].mxu1 %v34364_v49  ;;  %v30533_v49 = vld [vmem:[%s26321_s26 + $0x2a8] sm:$0xff] }
 0x757   : > { %11749 = vmatprep.mubr.f32.mxu0 %v33848_v3  ;;  %13027 = vmatprep.mubr.f32.mxu1 %v33848_v3  ;;  %v34372_v17 = vand.u32 4294901760, %v30533_v49 }
 0x75a   : > { %11751 = vmatmul.mubr.f32.vlgmr.msra.gmra.mrb[128].mxu0 %v26412_v51  ;;  %13029 = vmatmul.mubr.f32.vlgmr.msra.gmra.mrb[128].mxu1 %v26412_v51 }
 0x75b   : > { %22594 = vmatpush1.bf16.msra.mxu0 %v34296_v12  ;;  %22642 = vmatpush1.bf16.msra.mxu1 %v34297_v39  ;;  %v30450_v12 = vpack.c.bf16 %v14607_v20, %v14603_v16  ;;  %v324_v39 = vld [vmem:[%s26321_s26 + $0x1a0] sm:$0xff] }
 0x75c   : > { %11756 = vmatprep.mubr.f32.mxu0 %v33848_v3  ;;  %13034 = vmatprep.mubr.f32.mxu1 %v33848_v3 }
 0x75d   : > { %22596 = vmatprep.subr.bf16.mxu0 %v34298_v37  ;;  %22644 = vmatprep.subr.bf16.mxu1 %v34299_v32  ;;  %34365 = vst [vmem:[#allocation43_spill] sm:$0xff] %v30450_v12  ;;  %v30509_v37 = vsub.f32 %v30413_v2, %v13325_v36  ;;  %v30514_v32 = vsub.f32 %v30418_v7, %v13329_v13  ;;  %v13331_v7 = vand.u32 4294901760, %v324_v39  ;;  %v294_v36 = vld [vmem:[%s26321_s26 + $0xb0] sm:$0xff] }
 0x75e   : > { %11758 = vmatmul.mubr.f32.gmra.mrb[130].mxu0 %v26465_v62  ;;  %13036 = vmatmul.mubr.f32.gmra.mrb[130].mxu1 %v26465_v62  ;;  %v326_v13 = vld [vmem:[%s26321_s26 + $0x1b0] sm:$0xff]  ;;  %v14605_v20 = vand.u32 4294901760, %v294_v36 }
 0x75f   : > { %11763 = vmatprep.mubr.f32.mxu0 %v33848_v3  ;;  %13041 = vmatprep.mubr.f32.mxu1 %v33848_v3  ;;  %v14609_v10 = vand.u32 4294901760, %v326_v13  ;;  %v34367_v42 = vand.u32 4294901760, %v30509_v37  ;;  %v34368_v1 = vand.u32 4294901760, %v30514_v32  ;;  %v30586_v57 = vsub.f32 %v324_v39, %v13331_v7 }
 0x760   : > { %22598 = vmatpush1.bf16.msra.mxu0 %v34305_v21  ;;  %22646 = vmatpush1.bf16.msra.mxu1 %v34306_v35  ;;  %v292_v35 = vld [vmem:[%s26321_s26 + $0xa0] sm:$0xff]  ;;  %v30519_v21 = vsub.f32 %v30421_v19, %v14603_v16  ;;  %v30536_v19 = vld [vmem:[%s26321_s26 + $0x3a8] sm:$0xff]  ;;  %v30539_v16 = vld [vmem:[%s26321_s26 + $0x2b8] sm:$0xff] }
 0x761   : > { %22648 = vmatprep.subr.bf16.mxu0 %v30444_v14  ;;  %22696 = vmatprep.subr.bf16.mxu1 %v30450_v12  ;;  %v13327_v2 = vand.u32 4294901760, %v292_v35  ;;  %v13577_v28 = vsub.f32 %v30509_v37, %v34367_v42  ;;  %v13589_v26 = vsub.f32 %v30514_v32, %v34368_v1  ;;  %v30588_v42 = vsub.f32 %v294_v36, %v14605_v20 }
 0x762   : > { %11765 = vmatmul.mubr.f32.gmra.mrb[132].mxu0 %v26468_v6  ;;  %13043 = vmatmul.mubr.f32.gmra.mrb[132].mxu1 %v26468_v6  ;;  %v34369_v63 = vand.u32 4294901760, %v30519_v21  ;;  %v30592_v1 = vpack.c.bf16 %v14609_v10, %v14605_v20  ;;  %v14613_v20 = vand.u32 4294901760, %v30565_v41  ;;  %v14868_v12 = vand.u32 4294901760, %v14867_v45 }
 0x763   : > { %11770 = vmatprep.mubr.f32.mxu0 %v33848_v3  ;;  %13048 = vmatprep.mubr.f32.mxu1 %v33848_v3  ;;  %v30552_v27 = vpack.c.bf16 %v13331_v7, %v13327_v2  ;;  %v30584_v18 = vsub.f32 %v292_v35, %v13327_v2  ;;  %v34373_v35 = vand.u32 4294901760, %v30536_v19  ;;  %v34375_v2 = vand.u32 4294901760, %v30539_v16 }
 0x764   : > { %v14855_v56 = vsub.f32 %v30519_v21, %v34369_v63  ;;  %34371 = vst [vmem:[#allocation68_spill] sm:$0xff] %v30592_v1  ;;  %v30594_v63 = vsub.f32 %v326_v13, %v14609_v10  ;;  %v34376_v7 = vand.u32 4294901760, %v30542_v0  ;;  %v14617_v10 = vand.u32 4294901760, %v30568_v52 }
 0x765   : > { %34366 = vst [vmem:[#allocation67_spill] sm:$0xff] %v30552_v27  ;;  %v30602_v39 = vpack.c.bf16 %v34373_v35, %v34372_v17  ;;  %v13578_v13 = vand.u32 4294901760, %v13577_v28  ;;  %v13590_v55 = vand.u32 4294901760, %v13589_v26  ;;  %v30626_v28 = vpack.c.bf16 %v13339_v22, %v13335_v54 }
 0x766   : > { %11772 = vmatmul.mubr.f32.gmra.mrb[134].mxu0 %v26476_v8  ;;  %13050 = vmatmul.mubr.f32.gmra.mrb[134].mxu1 %v26476_v8  ;;  %v30608_v36 = vpack.c.bf16 %v34376_v7, %v34375_v2  ;;  %v14856_v29 = vand.u32 4294901760, %v14855_v56  ;;  %v30628_v26 = vpack.c.bf16 %v14617_v10, %v14613_v20  ;;  %v34383_v45 = vand.u32 4294901760, %v30542_v0 }
 0x767   : > { %11777 = vmatprep.mubr.f32.mxu0 %v33848_v3  ;;  %13055 = vmatprep.mubr.f32.mxu1 %v33848_v3  ;;  %34374 = vst [vmem:[#allocation69_spill] sm:$0xff] %v30602_v39  ;;  %34378 = vst [vmem:[#allocation71_spill] sm:$0xff] %v30626_v28  ;;  %v22655_v56 = vpack.c.bf16 %v13590_v55, %v13578_v13 }
 0x768   : > { %34377 = vst [vmem:[#allocation70_spill] sm:$0xff] %v30608_v36  ;;  %34379 = vst [vmem:[#allocation72_spill] sm:$0xff] %v30628_v26  ;;  %v22703_v7 = vpack.c.bf16 %v14868_v12, %v14856_v29  ;;  %v34380_v29 = vmov %v34372_v17  ;;  %v34381_v12 = vmov %v34373_v35  ;;  %v30683_v35 = vsub.f32 %v30559_v33, %v13335_v54 }
 0x769   : > { %v30665_v55 = vsub.f32 %v30533_v49, %v34380_v29  ;;  %v30670_v13 = vsub.f32 %v30536_v19, %v34381_v12  ;;  %v30686_v49 = vsub.f32 %v30562_v43, %v13339_v22  ;;  %v30689_v29 = vsub.f32 %v30565_v41, %v14613_v20 }
 0x76a   : > { %11779 = vmatmul.mubr.f32.gmra.mrb[136].mxu0 %v26483_v25  ;;  %13057 = vmatmul.mubr.f32.gmra.mrb[136].mxu1 %v26483_v25  ;;  %v30692_v19 = vsub.f32 %v30568_v52, %v14617_v10  ;;  %v33638_v41 = vand.u32 4294901760, %v30584_v18  ;;  %v33639_v43 = vand.u32 4294901760, %v30586_v57  ;;  %v33641_v54 = vand.u32 4294901760, %v30594_v63 }
 0x76b   : > { %11784 = vmatprep.mubr.f32.mxu0 %v33848_v3  ;;  %13062 = vmatprep.mubr.f32.mxu1 %v33848_v3  ;;  %v33642_v20 = vand.u32 4294901760, %v30665_v55  ;;  %v33643_v10 = vand.u32 4294901760, %v30670_v13 }
 0x76c   : > { %v13595_v52 = vsub.f32 %v30586_v57, %v33639_v43  ;;  %v14873_v33 = vsub.f32 %v30594_v63, %v33641_v54 }
 0x76d   : > { %v13601_v43 = vsub.f32 %v30665_v55, %v33642_v20 }
 0x76e   : > { %11786 = vmatmul.mubr.f32.gmra.mrb[138].mxu0 %v26485_v47  ;;  %13064 = vmatmul.mubr.f32.gmra.mrb[138].mxu1 %v26485_v47  ;;  %v13596_v12 = vand.u32 4294901760, %v13595_v52 }
 0x76f   : > { %11791 = vmatprep.mubr.f32.mxu0 %v33848_v3  ;;  %13069 = vmatprep.mubr.f32.mxu1 %v33848_v3 }
 0x772   : > { %11793 = vmatmul.mubr.f32.gmra.mrb[140].mxu0 %v26530_v11  ;;  %13071 = vmatmul.mubr.f32.gmra.mrb[140].mxu1 %v26530_v11 }
 0x773   : > { %11798 = vmatprep.mubr.f32.mxu0 %v33848_v3  ;;  %13076 = vmatprep.mubr.f32.mxu1 %v33848_v3 }
 0x776   : > { %11800 = vmatmul.mubr.f32.gmra.mrb[142].mxu0 %v26532_v59  ;;  %13078 = vmatmul.mubr.f32.gmra.mrb[142].mxu1 %v26532_v59 }
 0x777   : > { %11805 = vmatprep.mubr.f32.mxu0 %v33848_v3  ;;  %13083 = vmatprep.mubr.f32.mxu1 %v33848_v3 }
 0x77a   : > { %11807 = vmatmul.mubr.f32.gmra.mrb[144].mxu0 %v26586_v46  ;;  %13085 = vmatmul.mubr.f32.gmra.mrb[144].mxu1 %v26586_v46 }
 0x77b   : > { %11812 = vmatprep.mubr.f32.mxu0 %v33848_v3  ;;  %13090 = vmatprep.mubr.f32.mxu1 %v33848_v3 }
 0x77e   : > { %11814 = vmatmul.mubr.f32.gmra.mrb[146].mxu0 %v26646_v61  ;;  %13092 = vmatmul.mubr.f32.gmra.mrb[146].mxu1 %v26646_v61 }
 0x77f   : > { %11819 = vmatprep.mubr.f32.mxu0 %v33848_v3  ;;  %13097 = vmatprep.mubr.f32.mxu1 %v33848_v3 }
 0x782   : > { %11821 = vmatmul.mubr.f32.gmra.mrb[148].mxu0 %v26665_v60  ;;  %13099 = vmatmul.mubr.f32.gmra.mrb[148].mxu1 %v26665_v60 }
 0x783   : > { %11826 = vmatprep.mubr.f32.mxu0 %v33848_v3  ;;  %13104 = vmatprep.mubr.f32.mxu1 %v33848_v3 }
 0x786   : > { %11828 = vmatmul.mubr.f32.gmra.mrb[150].mxu0 %v34291_v50  ;;  %13106 = vmatmul.mubr.f32.gmra.mrb[150].mxu1 %v34291_v50 }
 0x787   : > { %11833 = vmatprep.mubr.f32.mxu0 %v33848_v3  ;;  %13111 = vmatprep.mubr.f32.mxu1 %v33848_v3 }
 0x78a   : > { %11835 = vmatmul.mubr.f32.gmra.mrb[152].mxu0 %v34292_v24  ;;  %13113 = vmatmul.mubr.f32.gmra.mrb[152].mxu1 %v34292_v24 }
 0x78b   : > { %11840 = vmatprep.mubr.f32.mxu0 %v33848_v3  ;;  %13118 = vmatprep.mubr.f32.mxu1 %v33848_v3 }
 0x78e   : > { %11842 = vmatmul.mubr.f32.gmra.mrb[154].mxu0 %v34293_v58  ;;  %13120 = vmatmul.mubr.f32.gmra.mrb[154].mxu1 %v34293_v58 }
 0x78f   : > { %11847 = vmatprep.mubr.f32.mxu0 %v33848_v3  ;;  %13125 = vmatprep.mubr.f32.mxu1 %v33848_v3 }
 0x792   : > { %11849 = vmatmul.mubr.f32.gmra.mrb[156].mxu0 %v34294_v44  ;;  %13127 = vmatmul.mubr.f32.gmra.mrb[156].mxu1 %v34294_v44 }
 0x793   : > { %11854 = vmatprep.mubr.f32.mxu0 %v33848_v3  ;;  %13132 = vmatprep.mubr.f32.mxu1 %v33848_v3 }
 0x796   : > { %11856 = vmatmul.mubr.f32.gmra.mrb[158].mxu0 %v26756_v48  ;;  %13134 = vmatmul.mubr.f32.gmra.mrb[158].mxu1 %v26756_v48 }
 0x797   : > { %11934 = vmatprep.mubr.f32.mxu0 %v33848_v3  ;;  %13212 = vmatprep.mubr.f32.mxu1 %v33848_v3 }
 0x79a   : > { %11936 = vmatmul.mubr.f32.vlgmr.msra.gmra.mrb[128].mxu0 %v26412_v51  ;;  %13214 = vmatmul.mubr.f32.vlgmr.msra.gmra.mrb[128].mxu1 %v26412_v51 }
 0x79b   : > { %22650 = vmatpush1.bf16.msra.mxu0 %v30552_v27  ;;  %22698 = vmatpush1.bf16.msra.mxu1 %v30592_v1  ;;  %v34388_v1 = vand.u32 4294901760, %v30692_v19 }
 0x79c   : > { %11941 = vmatprep.mubr.f32.mxu0 %v33848_v3  ;;  %13219 = vmatprep.mubr.f32.mxu1 %v33848_v3 }
 0x79d   : > { %22652 = vmatprep.subr.bf16.mxu0 %v30602_v39  ;;  %22700 = vmatprep.subr.bf16.mxu1 %v30608_v36  ;;  %v34387_v36 = vand.u32 4294901760, %v30689_v29  ;;  %v14897_v27 = vsub.f32 %v30692_v19, %v34388_v1 }
 0x79e   : > { %11943 = vmatmul.mubr.f32.gmra.mrb[130].mxu0 %v26465_v62  ;;  %13221 = vmatmul.mubr.f32.gmra.mrb[130].mxu1 %v26465_v62 }
 0x79f   : > { %11948 = vmatprep.mubr.f32.mxu0 %v33848_v3  ;;  %13226 = vmatprep.mubr.f32.mxu1 %v33848_v3  ;;  %v14885_v39 = vsub.f32 %v30689_v29, %v34387_v36 }
 0x7a0   : > { %22654 = vmatpush1.bf16.msra.mxu0 %v30626_v28  ;;  %22702 = vmatpush1.bf16.msra.mxu1 %v30628_v26  ;;  %v34385_v26 = vand.u32 4294901760, %v30683_v35  ;;  %v34386_v28 = vand.u32 4294901760, %v30686_v49 }
 0x7a1   : > { %22656 = vmatprep.subr.bf16.mxu0 %v22655_v56  ;;  %22704 = vmatprep.subr.bf16.mxu1 %v22703_v7  ;;  %v34382_v56 = vmov %v34375_v2  ;;  %v30680_v2 = vsub.f32 %v30542_v0, %v34383_v45  ;;  %v33640_v0 = vand.u32 4294901760, %v30588_v42 }
 0x7a2   : > { %11950 = vmatmul.mubr.f32.gmra.mrb[132].mxu0 %v26468_v6  ;;  %13228 = vmatmul.mubr.f32.gmra.mrb[132].mxu1 %v26468_v6  ;;  %v30675_v7 = vsub.f32 %v30539_v16, %v34382_v56  ;;  %v13583_v56 = vsub.f32 %v30584_v18, %v33638_v41 }
 0x7a3   : > { %11955 = vmatprep.mubr.f32.mxu0 %v33848_v3  ;;  %13233 = vmatprep.mubr.f32.mxu1 %v33848_v3  ;;  %v14861_v22 = vsub.f32 %v30588_v42, %v33640_v0  ;;  %v13613_v0 = vsub.f32 %v30670_v13, %v33643_v10  ;;  %v34384_v16 = vand.u32 4294901760, %v30680_v2  ;;  %v14874_v10 = vand.u32 4294901760, %v14873_v33 }
 0x7a4   : > { %v33646_v45 = vand.u32 4294901760, %v30675_v7  ;;  %v13584_v20 = vand.u32 4294901760, %v13583_v56  ;;  %v13602_v56 = vand.u32 4294901760, %v13601_v43 }
 0x7a5   : > { %v14891_v41 = vsub.f32 %v30680_v2, %v34384_v16  ;;  %v14862_v17 = vand.u32 4294901760, %v14861_v22  ;;  %v13619_v16 = vsub.f32 %v30686_v49, %v34386_v28  ;;  %v13614_v52 = vand.u32 4294901760, %v13613_v0  ;;  %v34396_v0 = vld [vmem:[#allocation59_spill] sm:$0xff] }
 0x7a6   : > { %11957 = vmatmul.mubr.f32.gmra.mrb[134].mxu0 %v26476_v8  ;;  %13235 = vmatmul.mubr.f32.gmra.mrb[134].mxu1 %v26476_v8  ;;  %v14879_v54 = vsub.f32 %v30675_v7, %v33646_v45  ;;  %v13607_v45 = vsub.f32 %v30683_v35, %v34385_v26  ;;  %v22657_v28 = vpack.c.bf16 %v13596_v12, %v13584_v20 }
 0x7a7   : > { %11962 = vmatprep.mubr.f32.mxu0 %v33848_v3  ;;  %13240 = vmatprep.mubr.f32.mxu1 %v33848_v3  ;;  %v14892_v33 = vand.u32 4294901760, %v14891_v41  ;;  %v22705_v26 = vpack.c.bf16 %v14874_v10, %v14862_v17  ;;  %v13620_v36 = vand.u32 4294901760, %v13619_v16  ;;  %v34395_v17 = vld [vmem:[#allocation58_spill] sm:$0xff]  ;;  %v34398_v20 = vpack.c.bf16 %v30594_v63, %v30588_v42 }
 0x7a8   : > { %v14880_v22 = vand.u32 4294901760, %v14879_v54  ;;  %v34397_v54 = vpack.c.bf16 %v30586_v57, %v30584_v18  ;;  %v34399_v10 = vpack.c.bf16 %v30670_v13, %v30665_v55  ;;  %v34401_v12 = vpack.c.bf16 %v30686_v49, %v30683_v35 }
 0x7a9   : > { %v34402_v16 = vpack.c.bf16 %v30692_v19, %v30689_v29 }
 0x7aa   : > { %11964 = vmatmul.mubr.f32.gmra.mrb[136].mxu0 %v26483_v25  ;;  %13242 = vmatmul.mubr.f32.gmra.mrb[136].mxu1 %v26483_v25  ;;  %v22707_v1 = vpack.c.bf16 %v14892_v33, %v14880_v22  ;;  %v34405_v22 = vld [vmem:[#allocation39_spill] sm:$0xff]  ;;  %v34406_v33 = vld [vmem:[#allocation42_spill] sm:$0xff] }
 0x7ab   : > { %11969 = vmatprep.mubr.f32.mxu0 %v33848_v3  ;;  %13247 = vmatprep.mubr.f32.mxu1 %v33848_v3 }
 0x7ae   : > { %11971 = vmatmul.mubr.f32.gmra.mrb[138].mxu0 %v26485_v47  ;;  %13249 = vmatmul.mubr.f32.gmra.mrb[138].mxu1 %v26485_v47 }
 0x7af   : > { %11976 = vmatprep.mubr.f32.mxu0 %v33848_v3  ;;  %13254 = vmatprep.mubr.f32.mxu1 %v33848_v3 }
 0x7b2   : > { %11978 = vmatmul.mubr.f32.gmra.mrb[140].mxu0 %v26530_v11  ;;  %13256 = vmatmul.mubr.f32.gmra.mrb[140].mxu1 %v26530_v11 }
 0x7b3   : > { %11983 = vmatprep.mubr.f32.mxu0 %v33848_v3  ;;  %13261 = vmatprep.mubr.f32.mxu1 %v33848_v3 }
 0x7b6   : > { %11985 = vmatmul.mubr.f32.gmra.mrb[142].mxu0 %v26532_v59  ;;  %13263 = vmatmul.mubr.f32.gmra.mrb[142].mxu1 %v26532_v59 }
 0x7b7   : > { %11990 = vmatprep.mubr.f32.mxu0 %v33848_v3  ;;  %13268 = vmatprep.mubr.f32.mxu1 %v33848_v3 }
 0x7ba   : > { %11992 = vmatmul.mubr.f32.gmra.mrb[144].mxu0 %v26586_v46  ;;  %13270 = vmatmul.mubr.f32.gmra.mrb[144].mxu1 %v26586_v46 }
 0x7bb   : > { %11997 = vmatprep.mubr.f32.mxu0 %v33848_v3  ;;  %13275 = vmatprep.mubr.f32.mxu1 %v33848_v3 }
 0x7be   : > { %11999 = vmatmul.mubr.f32.gmra.mrb[146].mxu0 %v26646_v61  ;;  %13277 = vmatmul.mubr.f32.gmra.mrb[146].mxu1 %v26646_v61 }
 0x7bf   : > { %12004 = vmatprep.mubr.f32.mxu0 %v33848_v3  ;;  %13282 = vmatprep.mubr.f32.mxu1 %v33848_v3 }
 0x7c2   : > { %12006 = vmatmul.mubr.f32.gmra.mrb[148].mxu0 %v26665_v60  ;;  %13284 = vmatmul.mubr.f32.gmra.mrb[148].mxu1 %v26665_v60 }
 0x7c3   : > { %12011 = vmatprep.mubr.f32.mxu0 %v33848_v3  ;;  %13289 = vmatprep.mubr.f32.mxu1 %v33848_v3 }
 0x7c6   : > { %12013 = vmatmul.mubr.f32.gmra.mrb[150].mxu0 %v34291_v50  ;;  %13291 = vmatmul.mubr.f32.gmra.mrb[150].mxu1 %v34291_v50  ;;  %v22659_v50 = vpack.c.bf16 %v13614_v52, %v13602_v56  ;;  %v34403_v56 = vld [vmem:[#allocation43_spill] sm:$0xff]  ;;  %v34404_v52 = vld [vmem:[#allocation37_spill] sm:$0xff] }
 0x7c7   : > { %12018 = vmatprep.mubr.f32.mxu0 %v33848_v3  ;;  %13296 = vmatprep.mubr.f32.mxu1 %v33848_v3 }
 0x7ca   : > { %12020 = vmatmul.mubr.f32.gmra.mrb[152].mxu0 %v34292_v24  ;;  %13298 = vmatmul.mubr.f32.gmra.mrb[152].mxu1 %v34292_v24  ;;  %v14898_v24 = vand.u32 4294901760, %v14897_v27  ;;  %v34389_v27 = vpack.c.bf16 %v30514_v32, %v30509_v37 }
 0x7cb   : > { %12025 = vmatprep.mubr.f32.mxu0 %v33848_v3  ;;  %13303 = vmatprep.mubr.f32.mxu1 %v33848_v3 }
 0x7ce   : > { %12027 = vmatmul.mubr.f32.gmra.mrb[154].mxu0 %v34293_v58  ;;  %13305 = vmatmul.mubr.f32.gmra.mrb[154].mxu1 %v34293_v58  ;;  %v14886_v58 = vand.u32 4294901760, %v14885_v39  ;;  %v34394_v39 = vld [vmem:[#allocation56_spill] sm:$0xff] }
 0x7cf   : > { %12032 = vmatprep.mubr.f32.mxu0 %v33848_v3  ;;  %13310 = vmatprep.mubr.f32.mxu1 %v33848_v3 }
 0x7d0   : > { %v22709_v43 = vpack.c.bf16 %v14898_v24, %v14886_v58  ;;  %v34392_v24 = vld [vmem:[#allocation51_spill] sm:$0xff]  ;;  %v34393_v58 = vld [vmem:[#allocation53_spill] sm:$0xff] }
 0x7d2   : > { %12034 = vmatmul.mubr.f32.gmra.mrb[156].mxu0 %v34294_v44  ;;  %13312 = vmatmul.mubr.f32.gmra.mrb[156].mxu1 %v34294_v44  ;;  %v13608_v44 = vand.u32 4294901760, %v13607_v45  ;;  %v34400_v45 = vpack.c.bf16 %v30680_v2, %v30675_v7 }
 0x7d3   : > { %12039 = vmatprep.mubr.f32.mxu0 %v33848_v3  ;;  %13317 = vmatprep.mubr.f32.mxu1 %v33848_v3 }
 0x7d4   : > { %v22661_v41 = vpack.c.bf16 %v13620_v36, %v13608_v44  ;;  %v34390_v44 = vpack.c.bf16 %v30524_v53, %v30519_v21  ;;  %v34409_v36 = vld [vmem:[#allocation67_spill] sm:$0xff] }
 0x7d6   : > { %12041 = vmatmul.mubr.f32.gmra.mrb[158].mxu0 %v26756_v48  ;;  %13319 = vmatmul.mubr.f32.gmra.mrb[158].mxu1 %v26756_v48 }
 0x7d7   : > { %13397 = vmatprep.mubr.f32.mxu0 %v33848_v3  ;;  %14675 = vmatprep.mubr.f32.mxu1 %v33848_v3 }
 0x7da   : > { %13403 = vmatmul.mubr.f32.vlgmr.msra.gmra.mrb[160].mxu0 %v33938_v4  ;;  %14681 = vmatmul.mubr.f32.vlgmr.msra.gmra.mrb[160].mxu1 %v33938_v4 }
 0x7db   : > { %22658 = vmatpush1.bf16.msra.mxu0 %v22657_v28  ;;  %22706 = vmatpush1.bf16.msra.mxu1 %v22705_v26  ;;  %v34407_v28 = vld [vmem:[#allocation46_spill] sm:$0xff]  ;;  %v34408_v26 = vld [vmem:[#allocation8_spill] sm:$0xff] }
 0x7dc   : > { %13408 = vmatprep.mubr.f32.mxu0 %v33848_v3  ;;  %14686 = vmatprep.mubr.f32.mxu1 %v33848_v3 }
 0x7dd   : > { %22660 = vmatprep.subr.bf16.mxu0 %v22659_v50  ;;  %22708 = vmatprep.subr.bf16.mxu1 %v22707_v1  ;;  %v34391_v50 = vld [vmem:[#allocation47_spill] sm:$0xff]  ;;  %v34410_v1 = vld [vmem:[#allocation68_spill] sm:$0xff] }
 0x7de   : > { %13414 = vmatmul.mubr.f32.gmra.mrb[162].mxu0 %v33939_v31  ;;  %14692 = vmatmul.mubr.f32.gmra.mrb[162].mxu1 %v33939_v31 }
 0x7df   : > { %13419 = vmatprep.mubr.f32.mxu0 %v33848_v3  ;;  %14697 = vmatprep.mubr.f32.mxu1 %v33848_v3 }
 0x7e0   : > { %22662 = vmatpush1.bf16.msra.mxu0 %v22661_v41  ;;  %22710 = vmatpush1.bf16.msra.mxu1 %v22709_v43  ;;  %v34411_v41 = vld [vmem:[#allocation69_spill] sm:$0xff]  ;;  %v34412_v43 = vld [vmem:[#allocation70_spill] sm:$0xff] }
 0x7e1   : > { %22664 = vmatprep.subr.bf16.mxu0 %v34389_v27  ;;  %22712 = vmatprep.subr.bf16.mxu1 %v34390_v44  ;;  %v34413_v27 = vand.u32 4294901760, %v30509_v37  ;;  %v34414_v44 = vand.u32 4294901760, %v30514_v32  ;;  %v34420_v37 = vld [vmem:[#allocation12_spill] sm:$0xff]  ;;  %v34421_v32 = vld [vmem:[#allocation14_spill] sm:$0xff] }
 0x7e2   : > { %13425 = vmatmul.mubr.f32.gmra.mrb[164].mxu0 %v33942_v5  ;;  %14703 = vmatmul.mubr.f32.gmra.mrb[164].mxu1 %v33942_v5 }
 0x7e3   : > { %13430 = vmatprep.mubr.f32.mxu0 %v33848_v3  ;;  %14708 = vmatprep.mubr.f32.mxu1 %v33848_v3 }
 0x7e6   : > { %13436 = vmatmul.mubr.f32.gmra.mrb[166].mxu0 %v33943_v15  ;;  %14714 = vmatmul.mubr.f32.gmra.mrb[166].mxu1 %v33943_v15 }
 0x7e7   : > { %13441 = vmatprep.mubr.f32.mxu0 %v33848_v3  ;;  %14719 = vmatprep.mubr.f32.mxu1 %v33848_v3 }
 0x7ea   : > { %13447 = vmatmul.mubr.f32.gmra.mrb[168].mxu0 %v33944_v38  ;;  %14725 = vmatmul.mubr.f32.gmra.mrb[168].mxu1 %v33944_v38 }
 0x7eb   : > { %13452 = vmatprep.mubr.f32.mxu0 %v33848_v3  ;;  %14730 = vmatprep.mubr.f32.mxu1 %v33848_v3 }
 0x7ee   : > { %13458 = vmatmul.mubr.f32.gmra.mrb[170].mxu0 %v33945_v40  ;;  %14736 = vmatmul.mubr.f32.gmra.mrb[170].mxu1 %v33945_v40 }
 0x7ef   : > { %13463 = vmatprep.mubr.f32.mxu0 %v33848_v3  ;;  %14741 = vmatprep.mubr.f32.mxu1 %v33848_v3 }
 0x7f2   : > { %13469 = vmatmul.mubr.f32.gmra.mrb[172].mxu0 %v33946_v34  ;;  %14747 = vmatmul.mubr.f32.gmra.mrb[172].mxu1 %v33946_v34 }
 0x7f3   : > { %13474 = vmatprep.mubr.f32.mxu0 %v33848_v3  ;;  %14752 = vmatprep.mubr.f32.mxu1 %v33848_v3 }
 0x7f6   : > { %13480 = vmatmul.mubr.f32.gmra.mrb[174].mxu0 %v33947_v30  ;;  %14758 = vmatmul.mubr.f32.gmra.mrb[174].mxu1 %v33947_v30 }
 0x7f7   : > { %13485 = vmatprep.mubr.f32.mxu0 %v33848_v3  ;;  %14763 = vmatprep.mubr.f32.mxu1 %v33848_v3 }
 0x7fa   : > { %13491 = vmatmul.mubr.f32.gmra.mrb[176].mxu0 %v33948_v23  ;;  %14769 = vmatmul.mubr.f32.gmra.mrb[176].mxu1 %v33948_v23 }
 0x7fb   : > { %13496 = vmatprep.mubr.f32.mxu0 %v33848_v3  ;;  %14774 = vmatprep.mubr.f32.mxu1 %v33848_v3 }
 0x7fe   : > { %13502 = vmatmul.mubr.f32.gmra.mrb[178].mxu0 %v34052_v9  ;;  %14780 = vmatmul.mubr.f32.gmra.mrb[178].mxu1 %v34052_v9 }
 0x7ff   : > { %13507 = vmatprep.mubr.f32.mxu0 %v33848_v3  ;;  %14785 = vmatprep.mubr.f32.mxu1 %v33848_v3 }
 0x802   : > { %13513 = vmatmul.mubr.f32.gmra.mrb[180].mxu0 %v34391_v50  ;;  %14791 = vmatmul.mubr.f32.gmra.mrb[180].mxu1 %v34391_v50 }
 0x803   : > { %13518 = vmatprep.mubr.f32.mxu0 %v33848_v3  ;;  %14796 = vmatprep.mubr.f32.mxu1 %v33848_v3 }
 0x806   : > { %13524 = vmatmul.mubr.f32.gmra.mrb[182].mxu0 %v34392_v24  ;;  %14802 = vmatmul.mubr.f32.gmra.mrb[182].mxu1 %v34392_v24 }
 0x807   : > { %13529 = vmatprep.mubr.f32.mxu0 %v33848_v3  ;;  %14807 = vmatprep.mubr.f32.mxu1 %v33848_v3 }
 0x80a   : > { %13535 = vmatmul.mubr.f32.gmra.mrb[184].mxu0 %v34393_v58  ;;  %14813 = vmatmul.mubr.f32.gmra.mrb[184].mxu1 %v34393_v58  ;;  %v34425_v58 = vld [vmem:[#allocation19_spill] sm:$0xff] }
 0x80b   : > { %13540 = vmatprep.mubr.f32.mxu0 %v33848_v3  ;;  %14818 = vmatprep.mubr.f32.mxu1 %v33848_v3 }
 0x80e   : > { %13546 = vmatmul.mubr.f32.gmra.mrb[186].mxu0 %v34394_v39  ;;  %14824 = vmatmul.mubr.f32.gmra.mrb[186].mxu1 %v34394_v39 }
 0x80f   : > { %13551 = vmatprep.mubr.f32.mxu0 %v33848_v3  ;;  %14829 = vmatprep.mubr.f32.mxu1 %v33848_v3 }
 0x812   : > { %13557 = vmatmul.mubr.f32.gmra.mrb[188].mxu0 %v34395_v17  ;;  %14835 = vmatmul.mubr.f32.gmra.mrb[188].mxu1 %v34395_v17 }
 0x813   : > { %13562 = vmatprep.mubr.f32.mxu0 %v33848_v3  ;;  %14840 = vmatprep.mubr.f32.mxu1 %v33848_v3 }
 0x816   : > { %13568 = vmatmul.mubr.f32.gmra.mrb[190].mxu0 %v34396_v0  ;;  %14846 = vmatmul.mubr.f32.gmra.mrb[190].mxu1 %v34396_v0 }
 0x817   : > { %13678 = vmatprep.mubr.f32.mxu0 %v33848_v3  ;;  %14956 = vmatprep.mubr.f32.mxu1 %v33848_v3 }
 0x81a   : > { %13680 = vmatmul.mubr.f32.vlgmr.msra.gmra.mrb[160].mxu0 %v26412_v51  ;;  %14958 = vmatmul.mubr.f32.vlgmr.msra.gmra.mrb[160].mxu1 %v26412_v51 }
 0x81b   : > { %22666 = vmatpush1.bf16.msra.mxu0 %v34397_v54  ;;  %22714 = vmatpush1.bf16.msra.mxu1 %v34398_v20  ;;  %v22679_v54 = vpack.c.bf16 %v34414_v44, %v34413_v27  ;;  %v34415_v20 = vand.u32 4294901760, %v30519_v21  ;;  %v34422_v21 = vld [vmem:[#allocation17_spill] sm:$0xff]  ;;  %v34423_v44 = vld [vmem:[#allocation10_spill] sm:$0xff] }
 0x81c   : > { %13685 = vmatprep.mubr.f32.mxu0 %v33848_v3  ;;  %14963 = vmatprep.mubr.f32.mxu1 %v33848_v3 }
 0x81d   : > { %22668 = vmatprep.subr.bf16.mxu0 %v34399_v10  ;;  %22716 = vmatprep.subr.bf16.mxu1 %v34400_v45  ;;  %v34416_v10 = vand.u32 4294901760, %v30524_v53 }
 0x81e   : > { %13687 = vmatmul.mubr.f32.gmra.mrb[162].mxu0 %v26465_v62  ;;  %14965 = vmatmul.mubr.f32.gmra.mrb[162].mxu1 %v26465_v62 }
 0x81f   : > { %13692 = vmatprep.mubr.f32.mxu0 %v33848_v3  ;;  %14970 = vmatprep.mubr.f32.mxu1 %v33848_v3  ;;  %v22727_v45 = vpack.c.bf16 %v34416_v10, %v34415_v20 }
 0x820   : > { %22670 = vmatpush1.bf16.msra.mxu0 %v34401_v12  ;;  %22718 = vmatpush1.bf16.msra.mxu1 %v34402_v16  ;;  %v34417_v12 = vld [vmem:[#allocation11_spill] sm:$0xff] }
 0x821   : > { %22672 = vmatprep.subr.bf16.mxu0 %v30444_v14  ;;  %22720 = vmatprep.subr.bf16.mxu1 %v34403_v56  ;;  %v34418_v16 = vld [vmem:[#allocation71_spill] sm:$0xff] }
 0x822   : > { %13694 = vmatmul.mubr.f32.gmra.mrb[164].mxu0 %v26468_v6  ;;  %14972 = vmatmul.mubr.f32.gmra.mrb[164].mxu1 %v26468_v6 }
 0x823   : > { %13699 = vmatprep.mubr.f32.mxu0 %v33848_v3  ;;  %14977 = vmatprep.mubr.f32.mxu1 %v33848_v3 }
 0x826   : > { %13701 = vmatmul.mubr.f32.gmra.mrb[166].mxu0 %v26476_v8  ;;  %14979 = vmatmul.mubr.f32.gmra.mrb[166].mxu1 %v26476_v8 }
 0x827   : > { %13706 = vmatprep.mubr.f32.mxu0 %v33848_v3  ;;  %14984 = vmatprep.mubr.f32.mxu1 %v33848_v3 }
 0x82a   : > { %13708 = vmatmul.mubr.f32.gmra.mrb[168].mxu0 %v26483_v25  ;;  %14986 = vmatmul.mubr.f32.gmra.mrb[168].mxu1 %v26483_v25 }
 0x82b   : > { %13713 = vmatprep.mubr.f32.mxu0 %v33848_v3  ;;  %14991 = vmatprep.mubr.f32.mxu1 %v33848_v3 }
 0x82e   : > { %13715 = vmatmul.mubr.f32.gmra.mrb[170].mxu0 %v26485_v47  ;;  %14993 = vmatmul.mubr.f32.gmra.mrb[170].mxu1 %v26485_v47 }
 0x82f   : > { %13720 = vmatprep.mubr.f32.mxu0 %v33848_v3  ;;  %14998 = vmatprep.mubr.f32.mxu1 %v33848_v3 }
 0x832   : > { %13722 = vmatmul.mubr.f32.gmra.mrb[172].mxu0 %v26530_v11  ;;  %15000 = vmatmul.mubr.f32.gmra.mrb[172].mxu1 %v26530_v11 }
 0x833   : > { %13727 = vmatprep.mubr.f32.mxu0 %v33848_v3  ;;  %15005 = vmatprep.mubr.f32.mxu1 %v33848_v3 }
 0x836   : > { %13729 = vmatmul.mubr.f32.gmra.mrb[174].mxu0 %v26532_v59  ;;  %15007 = vmatmul.mubr.f32.gmra.mrb[174].mxu1 %v26532_v59 }
 0x837   : > { %13734 = vmatprep.mubr.f32.mxu0 %v33848_v3  ;;  %15012 = vmatprep.mubr.f32.mxu1 %v33848_v3 }
 0x83a   : > { %13736 = vmatmul.mubr.f32.gmra.mrb[176].mxu0 %v26586_v46  ;;  %15014 = vmatmul.mubr.f32.gmra.mrb[176].mxu1 %v26586_v46 }
 0x83b   : > { %13741 = vmatprep.mubr.f32.mxu0 %v33848_v3  ;;  %15019 = vmatprep.mubr.f32.mxu1 %v33848_v3 }
 0x83e   : > { %13743 = vmatmul.mubr.f32.gmra.mrb[178].mxu0 %v26646_v61  ;;  %15021 = vmatmul.mubr.f32.gmra.mrb[178].mxu1 %v26646_v61 }
 0x83f   : > { %13748 = vmatprep.mubr.f32.mxu0 %v33848_v3  ;;  %15026 = vmatprep.mubr.f32.mxu1 %v33848_v3 }
 0x842   : > { %13750 = vmatmul.mubr.f32.gmra.mrb[180].mxu0 %v26665_v60  ;;  %15028 = vmatmul.mubr.f32.gmra.mrb[180].mxu1 %v26665_v60 }
 0x843   : > { %13755 = vmatprep.mubr.f32.mxu0 %v33848_v3  ;;  %15033 = vmatprep.mubr.f32.mxu1 %v33848_v3 }
 0x846   : > { %13757 = vmatmul.mubr.f32.gmra.mrb[182].mxu0 %v34404_v52  ;;  %15035 = vmatmul.mubr.f32.gmra.mrb[182].mxu1 %v34404_v52 }
 0x847   : > { %13762 = vmatprep.mubr.f32.mxu0 %v33848_v3  ;;  %15040 = vmatprep.mubr.f32.mxu1 %v33848_v3 }
 0x84a   : > { %13764 = vmatmul.mubr.f32.gmra.mrb[184].mxu0 %v34405_v22  ;;  %15042 = vmatmul.mubr.f32.gmra.mrb[184].mxu1 %v34405_v22 }
 0x84b   : > { %13769 = vmatprep.mubr.f32.mxu0 %v33848_v3  ;;  %15047 = vmatprep.mubr.f32.mxu1 %v33848_v3 }
 0x84e   : > { %13771 = vmatmul.mubr.f32.gmra.mrb[186].mxu0 %v34406_v33  ;;  %15049 = vmatmul.mubr.f32.gmra.mrb[186].mxu1 %v34406_v33 }
 0x84f   : > { %13776 = vmatprep.mubr.f32.mxu0 %v33848_v3  ;;  %15054 = vmatprep.mubr.f32.mxu1 %v33848_v3 }
 0x852   : > { %13778 = vmatmul.mubr.f32.gmra.mrb[188].mxu0 %v34407_v28  ;;  %15056 = vmatmul.mubr.f32.gmra.mrb[188].mxu1 %v34407_v28 }
 0x853   : > { %13783 = vmatprep.mubr.f32.mxu0 %v33848_v3  ;;  %15061 = vmatprep.mubr.f32.mxu1 %v33848_v3 }
 0x856   : > { %13785 = vmatmul.mubr.f32.gmra.mrb[190].mxu0 %v26756_v48  ;;  %15063 = vmatmul.mubr.f32.gmra.mrb[190].mxu1 %v26756_v48 }
 0x857   : > { %13871 = vmatprep.mubr.f32.mxu0 %v33848_v3  ;;  %15149 = vmatprep.mubr.f32.mxu1 %v33848_v3 }
 0x85a   : > { %13874 = vmatmul.mubr.f32.vlgmr.msra.gmra.mrb[160].mxu0 %v34408_v26  ;;  %15152 = vmatmul.mubr.f32.vlgmr.msra.gmra.mrb[160].mxu1 %v34408_v26  ;;  %v34419_v26 = vld [vmem:[#allocation72_spill] sm:$0xff] }
 0x85b   : > { %22674 = vmatpush1.bf16.msra.mxu0 %v34409_v36  ;;  %22722 = vmatpush1.bf16.msra.mxu1 %v34410_v1 }
 0x85c   : > { %13879 = vmatprep.mubr.f32.mxu0 %v33848_v3  ;;  %15157 = vmatprep.mubr.f32.mxu1 %v33848_v3 }
 0x85d   : > { %22676 = vmatprep.subr.bf16.mxu0 %v34411_v41  ;;  %22724 = vmatprep.subr.bf16.mxu1 %v34412_v43 }
 0x85e   : > { %13882 = vmatmul.mubr.f32.gmra.mrb[162].mxu0 %v34417_v12  ;;  %15160 = vmatmul.mubr.f32.gmra.mrb[162].mxu1 %v34417_v12 }
 0x85f   : > { %13887 = vmatprep.mubr.f32.mxu0 %v33848_v3  ;;  %15165 = vmatprep.mubr.f32.mxu1 %v33848_v3 }
 0x860   : > { %22678 = vmatpush1.bf16.msra.mxu0 %v34418_v16  ;;  %22726 = vmatpush1.bf16.msra.mxu1 %v34419_v26 }
 0x861   : > { %22680 = vmatprep.subr.bf16.mxu0 %v22679_v54  ;;  %22728 = vmatprep.subr.bf16.mxu1 %v22727_v45 }
 0x862   : > { %13890 = vmatmul.mubr.f32.gmra.mrb[164].mxu0 %v34420_v37  ;;  %15168 = vmatmul.mubr.f32.gmra.mrb[164].mxu1 %v34420_v37 }
 0x863   : > { %13895 = vmatprep.mubr.f32.mxu0 %v33848_v3  ;;  %15173 = vmatprep.mubr.f32.mxu1 %v33848_v3 }
 0x866   : > { %13898 = vmatmul.mubr.f32.gmra.mrb[166].mxu0 %v34421_v32  ;;  %15176 = vmatmul.mubr.f32.gmra.mrb[166].mxu1 %v34421_v32  ;;  %v34424_v32 = vld [vmem:[#allocation18_spill] sm:$0xff] }
 0x867   : > { %13903 = vmatprep.mubr.f32.mxu0 %v33848_v3  ;;  %15181 = vmatprep.mubr.f32.mxu1 %v33848_v3 }
 0x86a   : > { %13906 = vmatmul.mubr.f32.gmra.mrb[168].mxu0 %v34422_v21  ;;  %15184 = vmatmul.mubr.f32.gmra.mrb[168].mxu1 %v34422_v21 }
 0x86b   : > { %13911 = vmatprep.mubr.f32.mxu0 %v33848_v3  ;;  %15189 = vmatprep.mubr.f32.mxu1 %v33848_v3 }
 0x86d   : > { %v11937_v53 = vpop.f32.mrb[128].mxu0  ;;  %v13215_v27 = vpop.f32.mrb[128].mxu1 }
 0x86e   : > { %v23191_v54 = vadd.f32 %v11937_v53, %v34423_v44  ;;  %v23223_v20 = vadd.f32 %v13215_v27, %v34423_v44  ;;  %v11939_v10 = vpop.f32.mrb[129].mxu0  ;;  %v13217_v45 = vpop.f32.mrb[129].mxu1  ;;  %13914 = vmatmul.mubr.f32.gmra.mrb[170].mxu0 %v34424_v32  ;;  %15192 = vmatmul.mubr.f32.gmra.mrb[170].mxu1 %v34424_v32 }
 0x86f   : > { %v23192_v21 = vadd.f32 %v11939_v10, %v34423_v44  ;;  %v23224_v37 = vadd.f32 %v13217_v45, %v34423_v44  ;;  %13919 = vmatprep.mubr.f32.mxu0 %v33848_v3  ;;  %15197 = vmatprep.mubr.f32.mxu1 %v33848_v3  ;;  %v34426_v44 = vld [vmem:[#allocation23_spill] sm:$0xff] }
 0x870   : > { %v21009_v53 = vmax.f32 %v23191_v54, 0.0  ;;  %v21011_v12 = vmax.f32 %v23223_v20, 0.0 }
 0x871   : > { %v21010_v27 = vmax.f32 %v23192_v21, 0.0  ;;  %v21012_v0 = vmax.f32 %v23224_v37, 0.0  ;;  %v11944_v17 = vpop.f32.mrb[130].mxu0  ;;  %v13222_v39 = vpop.f32.mrb[130].mxu1 }
 0x872   : > { %21521 = vst [vmem:[%s27686_s6 + $0x80] sm:$0xff] %v21009_v53  ;;  %21523 = vst [vmem:[%s27686_s6 + $0x90] sm:$0xff] %v21011_v12  ;;  %v23193_v32 = vadd.f32 %v11944_v17, %v34425_v58  ;;  %v23225_v10 = vadd.f32 %v13222_v39, %v34425_v58  ;;  %v11946_v24 = vpop.f32.mrb[131].mxu0  ;;  %v13224_v45 = vpop.f32.mrb[131].mxu1  ;;  %13922 = vmatmul.mubr.f32.gmra.mrb[172].mxu0 %v34426_v44  ;;  %15200 = vmatmul.mubr.f32.gmra.mrb[172].mxu1 %v34426_v44 }
 0x873   : > { %21522 = vst [vmem:[%s27686_s6 + $0x88] sm:$0xff] %v21010_v27  ;;  %21524 = vst [vmem:[%s27686_s6 + $0x98] sm:$0xff] %v21012_v0  ;;  %v23194_v37 = vadd.f32 %v11946_v24, %v34425_v58  ;;  %v23226_v21 = vadd.f32 %v13224_v45, %v34425_v58  ;;  %13927 = vmatprep.mubr.f32.mxu0 %v33848_v3  ;;  %15205 = vmatprep.mubr.f32.mxu1 %v33848_v3  ;;  %v34427_v27 = vld [vmem:[#allocation20_spill] sm:$0xff] }
 0x874   : > { %v21041_v39 = vmax.f32 %v23193_v32, 0.0  ;;  %v21043_v17 = vmax.f32 %v23225_v10, 0.0  ;;  %v34428_v58 = vld [vmem:[#allocation24_spill] sm:$0xff] }
 0x875   : > { %v21042_v12 = vmax.f32 %v23194_v37, 0.0  ;;  %v21044_v54 = vmax.f32 %v23226_v21, 0.0  ;;  %v11951_v20 = vpop.f32.mrb[132].mxu0  ;;  %v13229_v53 = vpop.f32.mrb[132].mxu1 }
 0x876   : > { %21553 = vst [vmem:[%s27686_s6 + $0x180] sm:$0xff] %v21041_v39  ;;  %21555 = vst [vmem:[%s27686_s6 + $0x190] sm:$0xff] %v21043_v17  ;;  %v23195_v0 = vadd.f32 %v11951_v20, %v34427_v27  ;;  %v23227_v24 = vadd.f32 %v13229_v53, %v34427_v27  ;;  %v11953_v44 = vpop.f32.mrb[133].mxu0  ;;  %v13231_v45 = vpop.f32.mrb[133].mxu1  ;;  %13930 = vmatmul.mubr.f32.gmra.mrb[174].mxu0 %v34428_v58  ;;  %15208 = vmatmul.mubr.f32.gmra.mrb[174].mxu1 %v34428_v58 }
 0x877   : > { %21554 = vst [vmem:[%s27686_s6 + $0x188] sm:$0xff] %v21042_v12  ;;  %21556 = vst [vmem:[%s27686_s6 + $0x198] sm:$0xff] %v21044_v54  ;;  %v23196_v32 = vadd.f32 %v11953_v44, %v34427_v27  ;;  %v23228_v10 = vadd.f32 %v13231_v45, %v34427_v27  ;;  %13935 = vmatprep.mubr.f32.mxu0 %v33848_v3  ;;  %15213 = vmatprep.mubr.f32.mxu1 %v33848_v3  ;;  %v34429_v12 = vld [vmem:[#allocation25_spill] sm:$0xff] }
 0x878   : > { %v21073_v37 = vmax.f32 %v23195_v0, 0.0  ;;  %v21075_v21 = vmax.f32 %v23227_v24, 0.0  ;;  %v34430_v27 = vld [vmem:[#allocation29_spill] sm:$0xff] }
 0x879   : > { %v21074_v39 = vmax.f32 %v23196_v32, 0.0  ;;  %v21076_v17 = vmax.f32 %v23228_v10, 0.0  ;;  %v11958_v20 = vpop.f32.mrb[134].mxu0  ;;  %v13236_v53 = vpop.f32.mrb[134].mxu1 }
 0x87a   : > { %21585 = vst [vmem:[%s27686_s6 + $0x280] sm:$0xff] %v21073_v37  ;;  %21587 = vst [vmem:[%s27686_s6 + $0x290] sm:$0xff] %v21075_v21  ;;  %v23197_v54 = vadd.f32 %v11958_v20, %v34429_v12  ;;  %v23229_v44 = vadd.f32 %v13236_v53, %v34429_v12  ;;  %v11960_v58 = vpop.f32.mrb[135].mxu0  ;;  %v13238_v45 = vpop.f32.mrb[135].mxu1  ;;  %13938 = vmatmul.mubr.f32.gmra.mrb[176].mxu0 %v34430_v27  ;;  %15216 = vmatmul.mubr.f32.gmra.mrb[176].mxu1 %v34430_v27 }
 0x87b   : > { %21586 = vst [vmem:[%s27686_s6 + $0x288] sm:$0xff] %v21074_v39  ;;  %21588 = vst [vmem:[%s27686_s6 + $0x298] sm:$0xff] %v21076_v17  ;;  %v23198_v0 = vadd.f32 %v11960_v58, %v34429_v12  ;;  %v23230_v24 = vadd.f32 %v13238_v45, %v34429_v12  ;;  %13943 = vmatprep.mubr.f32.mxu0 %v33848_v3  ;;  %15221 = vmatprep.mubr.f32.mxu1 %v33848_v3  ;;  %v34431_v39 = vld [vmem:[#allocation26_spill] sm:$0xff]  ;;  %v34432_v12 = vld [vmem:[#allocation33_spill] sm:$0xff] }
 0x87c   : > { %v21105_v32 = vmax.f32 %v23197_v54, 0.0  ;;  %v21107_v10 = vmax.f32 %v23229_v44, 0.0 }
 0x87d   : > { %v21106_v37 = vmax.f32 %v23198_v0, 0.0  ;;  %v21108_v21 = vmax.f32 %v23230_v24, 0.0  ;;  %v11965_v20 = vpop.f32.mrb[136].mxu0  ;;  %v13243_v53 = vpop.f32.mrb[136].mxu1 }
 0x87e   : > { %21617 = vst [vmem:[%s27686_s6 + $0x380] sm:$0xff] %v21105_v32  ;;  %21619 = vst [vmem:[%s27686_s6 + $0x390] sm:$0xff] %v21107_v10  ;;  %v23199_v17 = vadd.f32 %v11965_v20, %v34431_v39  ;;  %v23231_v58 = vadd.f32 %v13243_v53, %v34431_v39  ;;  %v11967_v27 = vpop.f32.mrb[137].mxu0  ;;  %v13245_v45 = vpop.f32.mrb[137].mxu1  ;;  %13946 = vmatmul.mubr.f32.gmra.mrb[178].mxu0 %v34432_v12  ;;  %15224 = vmatmul.mubr.f32.gmra.mrb[178].mxu1 %v34432_v12 }
 0x87f   : > { %21618 = vst [vmem:[%s27686_s6 + $0x388] sm:$0xff] %v21106_v37  ;;  %21620 = vst [vmem:[%s27686_s6 + $0x398] sm:$0xff] %v21108_v21  ;;  %v23200_v54 = vadd.f32 %v11967_v27, %v34431_v39  ;;  %v23232_v44 = vadd.f32 %v13245_v45, %v34431_v39  ;;  %13951 = vmatprep.mubr.f32.mxu0 %v33848_v3  ;;  %15229 = vmatprep.mubr.f32.mxu1 %v33848_v3  ;;  %v34433_v37 = vld [vmem:[#allocation30_spill] sm:$0xff]  ;;  %v34434_v39 = vld [vmem:[#allocation36_spill] sm:$0xff] }
 0x880   : > { %v21137_v0 = vmax.f32 %v23199_v17, 0.0  ;;  %v21139_v24 = vmax.f32 %v23231_v58, 0.0 }
 0x881   : > { %v21138_v32 = vmax.f32 %v23200_v54, 0.0  ;;  %v21140_v10 = vmax.f32 %v23232_v44, 0.0  ;;  %v11972_v20 = vpop.f32.mrb[138].mxu0  ;;  %v13250_v53 = vpop.f32.mrb[138].mxu1 }
 0x882   : > { %21649 = vst [vmem:[%s27686_s6 + $0x480] sm:$0xff] %v21137_v0  ;;  %21651 = vst [vmem:[%s27686_s6 + $0x490] sm:$0xff] %v21139_v24  ;;  %v23201_v21 = vadd.f32 %v11972_v20, %v34433_v37  ;;  %v23233_v27 = vadd.f32 %v13250_v53, %v34433_v37  ;;  %v11974_v12 = vpop.f32.mrb[139].mxu0  ;;  %v13252_v45 = vpop.f32.mrb[139].mxu1  ;;  %13954 = vmatmul.mubr.f32.gmra.mrb[180].mxu0 %v34434_v39  ;;  %15232 = vmatmul.mubr.f32.gmra.mrb[180].mxu1 %v34434_v39 }
 0x883   : > { %21650 = vst [vmem:[%s27686_s6 + $0x488] sm:$0xff] %v21138_v32  ;;  %21652 = vst [vmem:[%s27686_s6 + $0x498] sm:$0xff] %v21140_v10  ;;  %v23202_v17 = vadd.f32 %v11974_v12, %v34433_v37  ;;  %v23234_v58 = vadd.f32 %v13252_v45, %v34433_v37  ;;  %13959 = vmatprep.mubr.f32.mxu0 %v33848_v3  ;;  %15237 = vmatprep.mubr.f32.mxu1 %v33848_v3  ;;  %v34435_v32 = vld [vmem:[#allocation32_spill] sm:$0xff]  ;;  %v34436_v37 = vld [vmem:[#allocation41_spill] sm:$0xff] }
 0x884   : > { %v21169_v54 = vmax.f32 %v23201_v21, 0.0  ;;  %v21171_v44 = vmax.f32 %v23233_v27, 0.0 }
 0x885   : > { %v21170_v0 = vmax.f32 %v23202_v17, 0.0  ;;  %v21172_v24 = vmax.f32 %v23234_v58, 0.0  ;;  %v11979_v20 = vpop.f32.mrb[140].mxu0  ;;  %v13257_v53 = vpop.f32.mrb[140].mxu1 }
 0x886   : > { %21681 = vst [vmem:[%s27686_s6 + $0x580] sm:$0xff] %v21169_v54  ;;  %21683 = vst [vmem:[%s27686_s6 + $0x590] sm:$0xff] %v21171_v44  ;;  %v23203_v10 = vadd.f32 %v11979_v20, %v34435_v32  ;;  %v23235_v12 = vadd.f32 %v13257_v53, %v34435_v32  ;;  %v11981_v39 = vpop.f32.mrb[141].mxu0  ;;  %v13259_v45 = vpop.f32.mrb[141].mxu1  ;;  %13962 = vmatmul.mubr.f32.gmra.mrb[182].mxu0 %v34436_v37  ;;  %15240 = vmatmul.mubr.f32.gmra.mrb[182].mxu1 %v34436_v37 }
 0x887   : > { %21682 = vst [vmem:[%s27686_s6 + $0x588] sm:$0xff] %v21170_v0  ;;  %21684 = vst [vmem:[%s27686_s6 + $0x598] sm:$0xff] %v21172_v24  ;;  %v23204_v21 = vadd.f32 %v11981_v39, %v34435_v32  ;;  %v23236_v27 = vadd.f32 %v13259_v45, %v34435_v32  ;;  %13967 = vmatprep.mubr.f32.mxu0 %v33848_v3  ;;  %15245 = vmatprep.mubr.f32.mxu1 %v33848_v3  ;;  %v34437_v0 = vld [vmem:[#allocation34_spill] sm:$0xff]  ;;  %v34438_v32 = vld [vmem:[#allocation45_spill] sm:$0xff] }
 0x888   : > { %v21201_v17 = vmax.f32 %v23203_v10, 0.0  ;;  %v21203_v58 = vmax.f32 %v23235_v12, 0.0 }
 0x889   : > { %v21202_v54 = vmax.f32 %v23204_v21, 0.0  ;;  %v21204_v44 = vmax.f32 %v23236_v27, 0.0  ;;  %v11986_v20 = vpop.f32.mrb[142].mxu0  ;;  %v13264_v53 = vpop.f32.mrb[142].mxu1 }
 0x88a   : > { %21713 = vst [vmem:[%s27686_s6 + $0x680] sm:$0xff] %v21201_v17  ;;  %21715 = vst [vmem:[%s27686_s6 + $0x690] sm:$0xff] %v21203_v58  ;;  %v23205_v24 = vadd.f32 %v11986_v20, %v34437_v0  ;;  %v23237_v39 = vadd.f32 %v13264_v53, %v34437_v0  ;;  %v11988_v37 = vpop.f32.mrb[143].mxu0  ;;  %v13266_v45 = vpop.f32.mrb[143].mxu1  ;;  %13970 = vmatmul.mubr.f32.gmra.mrb[184].mxu0 %v34438_v32  ;;  %15248 = vmatmul.mubr.f32.gmra.mrb[184].mxu1 %v34438_v32 }
 0x88b   : > { %21714 = vst [vmem:[%s27686_s6 + $0x688] sm:$0xff] %v21202_v54  ;;  %21716 = vst [vmem:[%s27686_s6 + $0x698] sm:$0xff] %v21204_v44  ;;  %v23206_v10 = vadd.f32 %v11988_v37, %v34437_v0  ;;  %v23238_v12 = vadd.f32 %v13266_v45, %v34437_v0  ;;  %13975 = vmatprep.mubr.f32.mxu0 %v33848_v3  ;;  %15253 = vmatprep.mubr.f32.mxu1 %v33848_v3  ;;  %v34439_v54 = vld [vmem:[#allocation38_spill] sm:$0xff]  ;;  %v34440_v0 = vld [vmem:[#allocation49_spill] sm:$0xff] }
 0x88c   : > { %v21233_v21 = vmax.f32 %v23205_v24, 0.0  ;;  %v21235_v27 = vmax.f32 %v23237_v39, 0.0 }
 0x88d   : > { %v21234_v17 = vmax.f32 %v23206_v10, 0.0  ;;  %v21236_v58 = vmax.f32 %v23238_v12, 0.0  ;;  %v11993_v20 = vpop.f32.mrb[144].mxu0  ;;  %v13271_v53 = vpop.f32.mrb[144].mxu1 }
 0x88e   : > { %21745 = vst [vmem:[%s27686_s6 + $0x780] sm:$0xff] %v21233_v21  ;;  %21747 = vst [vmem:[%s27686_s6 + $0x790] sm:$0xff] %v21235_v27  ;;  %v23207_v44 = vadd.f32 %v11993_v20, %v34439_v54  ;;  %v23239_v37 = vadd.f32 %v13271_v53, %v34439_v54  ;;  %v11995_v32 = vpop.f32.mrb[145].mxu0  ;;  %v13273_v45 = vpop.f32.mrb[145].mxu1  ;;  %13978 = vmatmul.mubr.f32.gmra.mrb[186].mxu0 %v34440_v0  ;;  %15256 = vmatmul.mubr.f32.gmra.mrb[186].mxu1 %v34440_v0 }
 0x88f   : > { %21746 = vst [vmem:[%s27686_s6 + $0x788] sm:$0xff] %v21234_v17  ;;  %21748 = vst [vmem:[%s27686_s6 + $0x798] sm:$0xff] %v21236_v58  ;;  %v23208_v24 = vadd.f32 %v11995_v32, %v34439_v54  ;;  %v23240_v39 = vadd.f32 %v13273_v45, %v34439_v54  ;;  %13983 = vmatprep.mubr.f32.mxu0 %v33848_v3  ;;  %15261 = vmatprep.mubr.f32.mxu1 %v33848_v3  ;;  %v34441_v17 = vld [vmem:[#allocation60_spill] sm:$0xff]  ;;  %v34442_v54 = vld [vmem:[#allocation50_spill] sm:$0xff] }
 0x890   : > { %v21265_v10 = vmax.f32 %v23207_v44, 0.0  ;;  %v21267_v12 = vmax.f32 %v23239_v37, 0.0 }
 0x891   : > { %v21266_v21 = vmax.f32 %v23208_v24, 0.0  ;;  %v21268_v27 = vmax.f32 %v23240_v39, 0.0  ;;  %v12000_v20 = vpop.f32.mrb[146].mxu0  ;;  %v13278_v53 = vpop.f32.mrb[146].mxu1 }
 0x892   : > { %21777 = vst [vmem:[%s27686_s6 + $0x880] sm:$0xff] %v21265_v10  ;;  %21779 = vst [vmem:[%s27686_s6 + $0x890] sm:$0xff] %v21267_v12  ;;  %v23209_v58 = vadd.f32 %v12000_v20, %v34441_v17  ;;  %v23241_v32 = vadd.f32 %v13278_v53, %v34441_v17  ;;  %v12002_v0 = vpop.f32.mrb[147].mxu0  ;;  %v13280_v45 = vpop.f32.mrb[147].mxu1  ;;  %13986 = vmatmul.mubr.f32.gmra.mrb[188].mxu0 %v34442_v54  ;;  %15264 = vmatmul.mubr.f32.gmra.mrb[188].mxu1 %v34442_v54 }
 0x893   : > { %21778 = vst [vmem:[%s27686_s6 + $0x888] sm:$0xff] %v21266_v21  ;;  %21780 = vst [vmem:[%s27686_s6 + $0x898] sm:$0xff] %v21268_v27  ;;  %v23210_v44 = vadd.f32 %v12002_v0, %v34441_v17  ;;  %v23242_v37 = vadd.f32 %v13280_v45, %v34441_v17  ;;  %13991 = vmatprep.mubr.f32.mxu0 %v33848_v3  ;;  %15269 = vmatprep.mubr.f32.mxu1 %v33848_v3  ;;  %v34443_v21 = vld [vmem:[#allocation61_spill] sm:$0xff]  ;;  %v34444_v17 = vld [vmem:[#allocation55_spill] sm:$0xff] }
 0x894   : > { %v21297_v24 = vmax.f32 %v23209_v58, 0.0  ;;  %v21299_v39 = vmax.f32 %v23241_v32, 0.0  ;;  %v34445_v58 = vand.u32 4294901760, %v30584_v18  ;;  %v34446_v32 = vand.u32 4294901760, %v30586_v57 }
 0x895   : > { %v21298_v10 = vmax.f32 %v23210_v44, 0.0  ;;  %v21300_v12 = vmax.f32 %v23242_v37, 0.0  ;;  %v12007_v20 = vpop.f32.mrb[148].mxu0  ;;  %v13285_v53 = vpop.f32.mrb[148].mxu1 }
 0x896   : > { %21809 = vst [vmem:[%s27686_s6 + $0x980] sm:$0xff] %v21297_v24  ;;  %21811 = vst [vmem:[%s27686_s6 + $0x990] sm:$0xff] %v21299_v39  ;;  %v23211_v27 = vadd.f32 %v12007_v20, %v34443_v21  ;;  %v23243_v0 = vadd.f32 %v13285_v53, %v34443_v21  ;;  %v12009_v54 = vpop.f32.mrb[149].mxu0  ;;  %v13287_v45 = vpop.f32.mrb[149].mxu1  ;;  %13994 = vmatmul.mubr.f32.gmra.mrb[190].mxu0 %v34444_v17  ;;  %15272 = vmatmul.mubr.f32.gmra.mrb[190].mxu1 %v34444_v17  ;;  %v34447_v39 = vand.u32 4294901760, %v30588_v42 }
 0x897   : > { %v22681_v44 = vpack.c.bf16 %v34446_v32, %v34445_v58  ;;  %21810 = vst [vmem:[%s27686_s6 + $0x988] sm:$0xff] %v21298_v10  ;;  %21812 = vst [vmem:[%s27686_s6 + $0x998] sm:$0xff] %v21300_v12  ;;  %v23212_v37 = vadd.f32 %v12009_v54, %v34443_v21  ;;  %v23244_v24 = vadd.f32 %v13287_v45, %v34443_v21  ;;  %14072 = vmatprep.mubr.f32.mxu0 %v33848_v3 }
 0x898   : > { %15350 = vmatprep.mubr.f32.mxu1 %v33848_v3  ;;  %v34448_v20 = vand.u32 4294901760, %v30594_v63  ;;  %v21329_v53 = vmax.f32 %v23211_v27, 0.0  ;;  %v21331_v57 = vmax.f32 %v23243_v0, 0.0  ;;  %v34449_v54 = vand.u32 4294901760, %v30665_v55  ;;  %v34453_v63 = vld [vmem:[#allocation62_spill] sm:$0xff] }
 0x899   : > { %v21330_v10 = vmax.f32 %v23212_v37, 0.0  ;;  %v21332_v58 = vmax.f32 %v23244_v24, 0.0  ;;  %v12014_v12 = vpop.f32.mrb[150].mxu0  ;;  %v13292_v32 = vpop.f32.mrb[150].mxu1  ;;  %v34450_v45 = vand.u32 4294901760, %v30670_v13  ;;  %v34451_v21 = vand.u32 4294901760, %v30675_v7 }
 0x89a   : > { %v22729_v18 = vpack.c.bf16 %v34448_v20, %v34447_v39  ;;  %v34452_v42 = vand.u32 4294901760, %v30680_v2  ;;  %21841 = vst [vmem:[%s27686_s6 + $0xa80] sm:$0xff] %v21329_v53  ;;  %21843 = vst [vmem:[%s27686_s6 + $0xa90] sm:$0xff] %v21331_v57  ;;  %v23213_v27 = vadd.f32 %v12014_v12, %v34453_v63  ;;  %v23245_v0 = vadd.f32 %v13292_v32, %v34453_v63  ;;  %v12016_v37 = vpop.f32.mrb[151].mxu0  ;;  %v13294_v24 = vpop.f32.mrb[151].mxu1  ;;  %v34454_v39 = vld [vmem:[#allocation9_spill] sm:$0xff] }
 0x89b   : > { %v22683_v17 = vpack.c.bf16 %v34450_v45, %v34449_v54  ;;  %14076 = vmatmul.mubr.f32.vlgmr.msra.gmra.mrb[160].mxu0 %v34454_v39  ;;  %15354 = vmatmul.mubr.f32.vlgmr.msra.gmra.mrb[160].mxu1 %v34454_v39  ;;  %21842 = vst [vmem:[%s27686_s6 + $0xa88] sm:$0xff] %v21330_v10  ;;  %21844 = vst [vmem:[%s27686_s6 + $0xa98] sm:$0xff] %v21332_v58  ;;  %v23214_v55 = vadd.f32 %v12016_v37, %v34453_v63  ;;  %v34456_v20 = vand.u32 4294901760, %v30686_v49  ;;  %v34459_v54 = vld [vmem:[#allocation63_spill] sm:$0xff] }
 0x89c   : > { %v22731_v50 = vpack.c.bf16 %v34452_v42, %v34451_v21  ;;  %v23246_v2 = vadd.f32 %v13294_v24, %v34453_v63  ;;  %22682 = vmatpush1.bf16.msra.mxu0 %v22681_v44  ;;  %22730 = vmatpush1.bf16.msra.mxu1 %v22729_v18  ;;  %v21361_v13 = vmax.f32 %v23213_v27, 0.0  ;;  %v21363_v7 = vmax.f32 %v23245_v0, 0.0 }
 0x89d   : > { %14081 = vmatprep.mubr.f32.mxu0 %v33848_v3  ;;  %15359 = vmatprep.mubr.f32.mxu1 %v33848_v3  ;;  %v34455_v21 = vand.u32 4294901760, %v30683_v35  ;;  %v34457_v57 = vand.u32 4294901760, %v30689_v29  ;;  %v34458_v10 = vand.u32 4294901760, %v30692_v19  ;;  %v21362_v44 = vmax.f32 %v23214_v55, 0.0  ;;  %v12021_v12 = vpop.f32.mrb[152].mxu0  ;;  %v13299_v32 = vpop.f32.mrb[152].mxu1 }
 0x89e   : > { %v21364_v18 = vmax.f32 %v23246_v2, 0.0  ;;  %22684 = vmatprep.subr.bf16.mxu0 %v22683_v17  ;;  %22732 = vmatprep.subr.bf16.mxu1 %v22731_v50  ;;  %21873 = vst [vmem:[%s27686_s6 + $0xb80] sm:$0xff] %v21361_v13  ;;  %21875 = vst [vmem:[%s27686_s6 + $0xb90] sm:$0xff] %v21363_v7  ;;  %v23215_v35 = vadd.f32 %v12021_v12, %v34459_v54  ;;  %v23247_v49 = vadd.f32 %v13299_v32, %v34459_v54  ;;  %v12023_v45 = vpop.f32.mrb[153].mxu0  ;;  %v13301_v42 = vpop.f32.mrb[153].mxu1  ;;  %v34460_v29 = vld [vmem:[#allocation13_spill] sm:$0xff] }
 0x89f   : > { %v22685_v53 = vpack.c.bf16 %v34456_v20, %v34455_v21  ;;  %v22733_v58 = vpack.c.bf16 %v34458_v10, %v34457_v57  ;;  %14085 = vmatmul.mubr.f32.gmra.mrb[162].mxu0 %v34460_v29  ;;  %15363 = vmatmul.mubr.f32.gmra.mrb[162].mxu1 %v34460_v29  ;;  %21874 = vst [vmem:[%s27686_s6 + $0xb88] sm:$0xff] %v21362_v44  ;;  %v34461_v2 = vld [vmem:[#allocation64_spill] sm:$0xff]  ;;  %v34463_v32 = vld [vmem:[#allocation65_spill] sm:$0xff] }
 0x8a0   : > { %21876 = vst [vmem:[%s27686_s6 + $0xb98] sm:$0xff] %v21364_v18  ;;  %v23216_v19 = vadd.f32 %v12023_v45, %v34459_v54  ;;  %v23248_v50 = vadd.f32 %v13301_v42, %v34459_v54  ;;  %14090 = vmatprep.mubr.f32.mxu0 %v33848_v3  ;;  %15368 = vmatprep.mubr.f32.mxu1 %v33848_v3  ;;  %v21393_v17 = vmax.f32 %v23215_v35, 0.0  ;;  %v21395_v27 = vmax.f32 %v23247_v49, 0.0 }
 0x8a1   : > { %22686 = vmatpush1.bf16.msra.mxu0 %v22685_v53  ;;  %22734 = vmatpush1.bf16.msra.mxu1 %v22733_v58  ;;  %v12028_v24 = vpop.f32.mrb[154].mxu0  ;;  %v13306_v55 = vpop.f32.mrb[154].mxu1  ;;  %v34462_v53 = vld [vmem:[#allocation15_spill] sm:$0xff] }
 0x8a2   : > { %v21394_v0 = vmax.f32 %v23216_v19, 0.0  ;;  %v21396_v37 = vmax.f32 %v23248_v50, 0.0  ;;  %22688 = vmatprep.subr.bf16.mxu0 %v30444_v14  ;;  %22736 = vmatprep.subr.bf16.mxu1 %v34403_v56  ;;  %21905 = vst [vmem:[%s27686_s6 + $0xc80] sm:$0xff] %v21393_v17  ;;  %21907 = vst [vmem:[%s27686_s6 + $0xc90] sm:$0xff] %v21395_v27  ;;  %v23217_v13 = vadd.f32 %v12028_v24, %v34461_v2  ;;  %v12030_v21 = vpop.f32.mrb[155].mxu0  ;;  %v13308_v20 = vpop.f32.mrb[155].mxu1 }
 0x8a3   : > { %v23249_v7 = vadd.f32 %v13306_v55, %v34461_v2  ;;  %14094 = vmatmul.mubr.f32.gmra.mrb[164].mxu0 %v34462_v53  ;;  %15372 = vmatmul.mubr.f32.gmra.mrb[164].mxu1 %v34462_v53  ;;  %v23218_v14 = vadd.f32 %v12030_v21, %v34461_v2  ;;  %v23250_v56 = vadd.f32 %v13308_v20, %v34461_v2  ;;  %v34464_v19 = vld [vmem:[#allocation16_spill] sm:$0xff] }
 0x8a4   : > { %21906 = vst [vmem:[%s27686_s6 + $0xc88] sm:$0xff] %v21394_v0  ;;  %21908 = vst [vmem:[%s27686_s6 + $0xc98] sm:$0xff] %v21396_v37  ;;  %14099 = vmatprep.mubr.f32.mxu0 %v33848_v3  ;;  %15377 = vmatprep.mubr.f32.mxu1 %v33848_v3  ;;  %v21425_v57 = vmax.f32 %v23217_v13, 0.0 }
 0x8a5   : > { %v21427_v10 = vmax.f32 %v23249_v7, 0.0  ;;  %v21426_v58 = vmax.f32 %v23218_v14, 0.0  ;;  %v21428_v44 = vmax.f32 %v23250_v56, 0.0  ;;  %v12035_v18 = vpop.f32.mrb[156].mxu0  ;;  %v13313_v12 = vpop.f32.mrb[156].mxu1  ;;  %v34465_v7 = vld [vmem:[#allocation66_spill] sm:$0xff] }
 0x8a6   : > { %21937 = vst [vmem:[%s27686_s6 + $0xd80] sm:$0xff] %v21425_v57  ;;  %v23219_v35 = vadd.f32 %v12035_v18, %v34463_v32  ;;  %v23251_v49 = vadd.f32 %v13313_v12, %v34463_v32  ;;  %v12037_v45 = vpop.f32.mrb[157].mxu0  ;;  %v13315_v42 = vpop.f32.mrb[157].mxu1  ;;  %v34466_v57 = vld [vmem:[#allocation21_spill] sm:$0xff] }
 0x8a7   : > { %21939 = vst [vmem:[%s27686_s6 + $0xd90] sm:$0xff] %v21427_v10  ;;  %14103 = vmatmul.mubr.f32.gmra.mrb[166].mxu0 %v34464_v19  ;;  %15381 = vmatmul.mubr.f32.gmra.mrb[166].mxu1 %v34464_v19  ;;  %21938 = vst [vmem:[%s27686_s6 + $0xd88] sm:$0xff] %v21426_v58  ;;  %v23220_v50 = vadd.f32 %v12037_v45, %v34463_v32  ;;  %v23252_v17 = vadd.f32 %v13315_v42, %v34463_v32  ;;  %v34468_v45 = vld [vmem:[#allocation27_spill] sm:$0xff]  ;;  %v34469_v42 = vld [vmem:[#allocation28_spill] sm:$0xff] }
 0x8a8   : > { %21940 = vst [vmem:[%s27686_s6 + $0xd98] sm:$0xff] %v21428_v44  ;;  %14108 = vmatprep.mubr.f32.mxu0 %v33848_v3  ;;  %15386 = vmatprep.mubr.f32.mxu1 %v33848_v3  ;;  %v21457_v27 = vmax.f32 %v23219_v35, 0.0  ;;  %v21459_v0 = vmax.f32 %v23251_v49, 0.0  ;;  %v34467_v49 = vld [vmem:[#allocation22_spill] sm:$0xff] }
 0x8a9   : > { %v21458_v37 = vmax.f32 %v23220_v50, 0.0  ;;  %v21460_v24 = vmax.f32 %v23252_v17, 0.0  ;;  %v12042_v55 = vpop.f32.mrb[158].mxu0  ;;  %v13320_v13 = vpop.f32.mrb[158].mxu1  ;;  %v34470_v50 = vld [vmem:[#allocation31_spill] sm:$0xff] }
 0x8aa   : > { %21969 = vst [vmem:[%s27686_s6 + $0xe80] sm:$0xff] %v21457_v27  ;;  %21971 = vst [vmem:[%s27686_s6 + $0xe90] sm:$0xff] %v21459_v0  ;;  %v23221_v21 = vadd.f32 %v12042_v55, %v34465_v7  ;;  %v23253_v20 = vadd.f32 %v13320_v13, %v34465_v7  ;;  %v12044_v14 = vpop.f32.mrb[159].mxu0  ;;  %v13322_v56 = vpop.f32.mrb[159].mxu1  ;;  %v34471_v17 = vld [vmem:[#allocation35_spill] sm:$0xff]  ;;  %v34472_v27 = vld [vmem:[#allocation40_spill] sm:$0xff] }
 0x8ab   : > { %14112 = vmatmul.mubr.f32.gmra.mrb[168].mxu0 %v34466_v57  ;;  %15390 = vmatmul.mubr.f32.gmra.mrb[168].mxu1 %v34466_v57  ;;  %21970 = vst [vmem:[%s27686_s6 + $0xe88] sm:$0xff] %v21458_v37  ;;  %21972 = vst [vmem:[%s27686_s6 + $0xe98] sm:$0xff] %v21460_v24  ;;  %v23222_v10 = vadd.f32 %v12044_v14, %v34465_v7  ;;  %v23254_v58 = vadd.f32 %v13322_v56, %v34465_v7  ;;  %v34473_v0 = vld [vmem:[#allocation44_spill] sm:$0xff]  ;;  %v34476_v55 = vld [vmem:[#allocation54_spill] sm:$0xff] }
 0x8ac   : > { %14117 = vmatprep.mubr.f32.mxu0 %v33848_v3  ;;  %15395 = vmatprep.mubr.f32.mxu1 %v33848_v3  ;;  %v21489_v44 = vmax.f32 %v23221_v21, 0.0  ;;  %v21491_v18 = vmax.f32 %v23253_v20, 0.0  ;;  %v34474_v37 = vld [vmem:[#allocation48_spill] sm:$0xff]  ;;  %v31229_v13 = vld [vmem:[%s26321_s26 + $0xc8] sm:$0xff]  ;;  %v31237_v14 = vld [vmem:[%s26321_s26 + $0xd8] sm:$0xff] }
 0x8ad   : > { %v21490_v12 = vmax.f32 %v23222_v10, 0.0  ;;  %v21492_v35 = vmax.f32 %v23254_v58, 0.0  ;;  %v34475_v24 = vld [vmem:[#allocation52_spill] sm:$0xff]  ;;  %v34477_v21 = vld [vmem:[#allocation57_spill] sm:$0xff]  ;;  %v31240_v56 = vld [vmem:[%s26321_s26 + $0x1d8] sm:$0xff]  ;;  %v15881_v10 = vand.u32 4294901760, %v31229_v13 }
 0x8ae   : > { %22001 = vst [vmem:[%s27686_s6 + $0xf80] sm:$0xff] %v21489_v44  ;;  %22003 = vst [vmem:[%s27686_s6 + $0xf90] sm:$0xff] %v21491_v18  ;;  %v31234_v20 = vld [vmem:[%s26321_s26 + $0x1c8] sm:$0xff]  ;;  %v17159_v44 = vand.u32 4294901760, %v31237_v14  ;;  %v17163_v18 = vand.u32 4294901760, %v31240_v56 }
 0x8af   : > { %14121 = vmatmul.mubr.f32.gmra.mrb[170].mxu0 %v34467_v49  ;;  %15399 = vmatmul.mubr.f32.gmra.mrb[170].mxu1 %v34467_v49  ;;  %22002 = vst [vmem:[%s27686_s6 + $0xf88] sm:$0xff] %v21490_v12  ;;  %22004 = vst [vmem:[%s27686_s6 + $0xf98] sm:$0xff] %v21492_v35  ;;  %v15885_v58 = vand.u32 4294901760, %v31234_v20  ;;  %v31384_v49 = vld [vmem:[%s26321_s26 + $0x3d0] sm:$0xff] }
 0x8b0   : > { %14126 = vmatprep.mubr.f32.mxu0 %v33848_v3  ;;  %15404 = vmatprep.mubr.f32.mxu1 %v33848_v3  ;;  %v31340_v35 = vsub.f32 %v31240_v56, %v17163_v18  ;;  %v31358_v56 = vld [vmem:[%s26321_s26 + $0x3d8] sm:$0xff] }
 0x8b1   : > { %v31260_v12 = vpack.c.bf16 %v15885_v58, %v15881_v10 }
 0x8b2   : > { %v34483_v19 = vand.u32 4294901760, %v31340_v35 }
 0x8b3   : > { %14130 = vmatmul.mubr.f32.gmra.mrb[172].mxu0 %v34468_v45  ;;  %15408 = vmatmul.mubr.f32.gmra.mrb[172].mxu1 %v34468_v45  ;;  %v31381_v45 = vld [vmem:[%s26321_s26 + $0x2d0] sm:$0xff] }
 0x8b4   : > { %14135 = vmatprep.mubr.f32.mxu0 %v33848_v3  ;;  %15413 = vmatprep.mubr.f32.mxu1 %v33848_v3  ;;  %v17423_v32 = vsub.f32 %v31340_v35, %v34483_v19 }
 0x8b7   : > { %14139 = vmatmul.mubr.f32.gmra.mrb[174].mxu0 %v34469_v42  ;;  %15417 = vmatmul.mubr.f32.gmra.mrb[174].mxu1 %v34469_v42  ;;  %v31378_v42 = vld [vmem:[%s26321_s26 + $0x3c0] sm:$0xff] }
 0x8b8   : > { %14144 = vmatprep.mubr.f32.mxu0 %v33848_v3  ;;  %15422 = vmatprep.mubr.f32.mxu1 %v33848_v3  ;;  %v15895_v29 = vand.u32 4294901760, %v31378_v42 }
 0x8bb   : > { %14148 = vmatmul.mubr.f32.gmra.mrb[176].mxu0 %v34470_v50  ;;  %15426 = vmatmul.mubr.f32.gmra.mrb[176].mxu1 %v34470_v50  ;;  %v31375_v50 = vld [vmem:[%s26321_s26 + $0x2c0] sm:$0xff] }
 0x8bc   : > { %14153 = vmatprep.mubr.f32.mxu0 %v33848_v3  ;;  %15431 = vmatprep.mubr.f32.mxu1 %v33848_v3  ;;  %v15891_v19 = vand.u32 4294901760, %v31375_v50 }
 0x8bf   : > { %14157 = vmatmul.mubr.f32.gmra.mrb[178].mxu0 %v34471_v17  ;;  %15435 = vmatmul.mubr.f32.gmra.mrb[178].mxu1 %v34471_v17 }
 0x8c0   : > { %14162 = vmatprep.mubr.f32.mxu0 %v33848_v3  ;;  %15440 = vmatprep.mubr.f32.mxu1 %v33848_v3 }
 0x8c3   : > { %14166 = vmatmul.mubr.f32.gmra.mrb[180].mxu0 %v34472_v27  ;;  %15444 = vmatmul.mubr.f32.gmra.mrb[180].mxu1 %v34472_v27 }
 0x8c4   : > { %14171 = vmatprep.mubr.f32.mxu0 %v33848_v3  ;;  %15449 = vmatprep.mubr.f32.mxu1 %v33848_v3 }
 0x8c7   : > { %14175 = vmatmul.mubr.f32.gmra.mrb[182].mxu0 %v34473_v0  ;;  %15453 = vmatmul.mubr.f32.gmra.mrb[182].mxu1 %v34473_v0 }
 0x8c8   : > { %14180 = vmatprep.mubr.f32.mxu0 %v33848_v3  ;;  %15458 = vmatprep.mubr.f32.mxu1 %v33848_v3 }
 0x8cb   : > { %14184 = vmatmul.mubr.f32.gmra.mrb[184].mxu0 %v34474_v37  ;;  %15462 = vmatmul.mubr.f32.gmra.mrb[184].mxu1 %v34474_v37 }
 0x8cc   : > { %14189 = vmatprep.mubr.f32.mxu0 %v33848_v3  ;;  %15467 = vmatprep.mubr.f32.mxu1 %v33848_v3 }
 0x8cf   : > { %14193 = vmatmul.mubr.f32.gmra.mrb[186].mxu0 %v34475_v24  ;;  %15471 = vmatmul.mubr.f32.gmra.mrb[186].mxu1 %v34475_v24 }
 0x8d0   : > { %14198 = vmatprep.mubr.f32.mxu0 %v33848_v3  ;;  %15476 = vmatprep.mubr.f32.mxu1 %v33848_v3 }
 0x8d3   : > { %14202 = vmatmul.mubr.f32.gmra.mrb[188].mxu0 %v34476_v55  ;;  %15480 = vmatmul.mubr.f32.gmra.mrb[188].mxu1 %v34476_v55 }
 0x8d4   : > { %14207 = vmatprep.mubr.f32.mxu0 %v33848_v3  ;;  %15485 = vmatprep.mubr.f32.mxu1 %v33848_v3 }
 0x8d7   : > { %14211 = vmatmul.mubr.f32.gmra.mrb[190].mxu0 %v34477_v21  ;;  %15489 = vmatmul.mubr.f32.gmra.mrb[190].mxu1 %v34477_v21  ;;  %v31349_v21 = vld [vmem:[%s26321_s26 + $0x2c8] sm:$0xff] }
 0x8d8   : > { %14305 = vmatprep.mubr.f32.mxu0 %v33848_v3  ;;  %15583 = vmatprep.mubr.f32.mxu1 %v33848_v3  ;;  %v34485_v54 = vand.u32 4294901760, %v31349_v21 }
 0x8db   : > { %14307 = vmatmul.mubr.f32.vlgmr.msra.gmra.mrb[160].mxu0 %v26412_v51  ;;  %15585 = vmatmul.mubr.f32.vlgmr.msra.gmra.mrb[160].mxu1 %v26412_v51 }
 0x8dc   : > { %22690 = vmatpush1.bf16.msra.mxu0 %v34409_v36  ;;  %22738 = vmatpush1.bf16.msra.mxu1 %v34410_v1  ;;  %v31266_v36 = vpack.c.bf16 %v17163_v18, %v17159_v44  ;;  %v328_v1 = vld [vmem:[%s26321_s26 + $0x1c0] sm:$0xff] }
 0x8dd   : > { %14312 = vmatprep.mubr.f32.mxu0 %v33848_v3  ;;  %15590 = vmatprep.mubr.f32.mxu1 %v33848_v3 }
 0x8de   : > { %22692 = vmatprep.subr.bf16.mxu0 %v34411_v41  ;;  %22740 = vmatprep.subr.bf16.mxu1 %v34412_v43  ;;  %34478 = vst [vmem:[#allocation43_spill] sm:$0xff] %v31266_v36  ;;  %v31325_v41 = vsub.f32 %v31229_v13, %v15881_v10  ;;  %v31330_v43 = vsub.f32 %v31234_v20, %v15885_v58  ;;  %v15887_v20 = vand.u32 4294901760, %v328_v1  ;;  %v298_v10 = vld [vmem:[%s26321_s26 + $0xd0] sm:$0xff] }
 0x8df   : > { %14314 = vmatmul.mubr.f32.gmra.mrb[162].mxu0 %v26465_v62  ;;  %15592 = vmatmul.mubr.f32.gmra.mrb[162].mxu1 %v26465_v62  ;;  %v330_v58 = vld [vmem:[%s26321_s26 + $0x1d0] sm:$0xff]  ;;  %v17161_v18 = vand.u32 4294901760, %v298_v10 }
 0x8e0   : > { %14319 = vmatprep.mubr.f32.mxu0 %v33848_v3  ;;  %15597 = vmatprep.mubr.f32.mxu1 %v33848_v3  ;;  %v17165_v27 = vand.u32 4294901760, %v330_v58  ;;  %v34480_v57 = vand.u32 4294901760, %v31325_v41  ;;  %v34481_v55 = vand.u32 4294901760, %v31330_v43  ;;  %v31402_v2 = vsub.f32 %v328_v1, %v15887_v20 }
 0x8e1   : > { %22694 = vmatpush1.bf16.msra.mxu0 %v34418_v16  ;;  %22742 = vmatpush1.bf16.msra.mxu1 %v34419_v26  ;;  %v296_v26 = vld [vmem:[%s26321_s26 + $0xc0] sm:$0xff]  ;;  %v31335_v16 = vsub.f32 %v31237_v14, %v17159_v44  ;;  %v31352_v14 = vld [vmem:[%s26321_s26 + $0x3c8] sm:$0xff]  ;;  %v31355_v44 = vld [vmem:[%s26321_s26 + $0x2d8] sm:$0xff] }
 0x8e2   : > { %22744 = vmatprep.subr.bf16.mxu0 %v31260_v12  ;;  %22792 = vmatprep.subr.bf16.mxu1 %v31266_v36  ;;  %v15883_v13 = vand.u32 4294901760, %v296_v26  ;;  %v16133_v7 = vsub.f32 %v31325_v41, %v34480_v57  ;;  %v16145_v17 = vsub.f32 %v31330_v43, %v34481_v55  ;;  %v31404_v57 = vsub.f32 %v298_v10, %v17161_v18 }
 0x8e3   : > { %14321 = vmatmul.mubr.f32.gmra.mrb[164].mxu0 %v26468_v6  ;;  %15599 = vmatmul.mubr.f32.gmra.mrb[164].mxu1 %v26468_v6  ;;  %v34482_v24 = vand.u32 4294901760, %v31335_v16  ;;  %v31408_v55 = vpack.c.bf16 %v17165_v27, %v17161_v18  ;;  %v17169_v18 = vand.u32 4294901760, %v31381_v45  ;;  %v17424_v36 = vand.u32 4294901760, %v17423_v32 }
 0x8e4   : > { %14326 = vmatprep.mubr.f32.mxu0 %v33848_v3  ;;  %15604 = vmatprep.mubr.f32.mxu1 %v33848_v3  ;;  %v31368_v0 = vpack.c.bf16 %v15887_v20, %v15883_v13  ;;  %v31400_v53 = vsub.f32 %v296_v26, %v15883_v13  ;;  %v34486_v26 = vand.u32 4294901760, %v31352_v14  ;;  %v34488_v13 = vand.u32 4294901760, %v31355_v44 }
 0x8e5   : > { %v17411_v37 = vsub.f32 %v31335_v16, %v34482_v24  ;;  %34484 = vst [vmem:[#allocation68_spill] sm:$0xff] %v31408_v55  ;;  %v31410_v24 = vsub.f32 %v330_v58, %v17165_v27  ;;  %v34489_v20 = vand.u32 4294901760, %v31358_v56  ;;  %v17173_v27 = vand.u32 4294901760, %v31384_v49 }
 0x8e6   : > { %34479 = vst [vmem:[#allocation67_spill] sm:$0xff] %v31368_v0  ;;  %v31418_v1 = vpack.c.bf16 %v34486_v26, %v34485_v54  ;;  %v16134_v58 = vand.u32 4294901760, %v16133_v7  ;;  %v16146_v39 = vand.u32 4294901760, %v16145_v17  ;;  %v31442_v7 = vpack.c.bf16 %v15895_v29, %v15891_v19 }
 0x8e7   : > { %14328 = vmatmul.mubr.f32.gmra.mrb[166].mxu0 %v26476_v8  ;;  %15606 = vmatmul.mubr.f32.gmra.mrb[166].mxu1 %v26476_v8  ;;  %v31424_v10 = vpack.c.bf16 %v34489_v20, %v34488_v13  ;;  %v17412_v63 = vand.u32 4294901760, %v17411_v37  ;;  %v31444_v17 = vpack.c.bf16 %v17173_v27, %v17169_v18  ;;  %v34496_v32 = vand.u32 4294901760, %v31358_v56 }
 0x8e8   : > { %14333 = vmatprep.mubr.f32.mxu0 %v33848_v3  ;;  %15611 = vmatprep.mubr.f32.mxu1 %v33848_v3  ;;  %34487 = vst [vmem:[#allocation69_spill] sm:$0xff] %v31418_v1  ;;  %34491 = vst [vmem:[#allocation71_spill] sm:$0xff] %v31442_v7  ;;  %v22751_v37 = vpack.c.bf16 %v16146_v39, %v16134_v58 }
 0x8e9   : > { %34490 = vst [vmem:[#allocation70_spill] sm:$0xff] %v31424_v10  ;;  %34492 = vst [vmem:[#allocation72_spill] sm:$0xff] %v31444_v17  ;;  %v22799_v20 = vpack.c.bf16 %v17424_v36, %v17412_v63  ;;  %v34493_v63 = vmov %v34485_v54  ;;  %v34494_v36 = vmov %v34486_v26  ;;  %v31499_v26 = vsub.f32 %v31375_v50, %v15891_v19 }
 0x8ea   : > { %v31481_v39 = vsub.f32 %v31349_v21, %v34493_v63  ;;  %v31486_v58 = vsub.f32 %v31352_v14, %v34494_v36  ;;  %v31502_v21 = vsub.f32 %v31378_v42, %v15895_v29  ;;  %v31505_v63 = vsub.f32 %v31381_v45, %v17169_v18 }
 0x8eb   : > { %14335 = vmatmul.mubr.f32.gmra.mrb[168].mxu0 %v26483_v25  ;;  %15613 = vmatmul.mubr.f32.gmra.mrb[168].mxu1 %v26483_v25  ;;  %v31508_v14 = vsub.f32 %v31384_v49, %v17173_v27  ;;  %v33717_v45 = vand.u32 4294901760, %v31400_v53  ;;  %v33718_v42 = vand.u32 4294901760, %v31402_v2  ;;  %v33720_v19 = vand.u32 4294901760, %v31410_v24 }
 0x8ec   : > { %14340 = vmatprep.mubr.f32.mxu0 %v33848_v3  ;;  %15618 = vmatprep.mubr.f32.mxu1 %v33848_v3  ;;  %v33721_v18 = vand.u32 4294901760, %v31481_v39  ;;  %v33722_v27 = vand.u32 4294901760, %v31486_v58 }
 0x8ed   : > { %v16151_v49 = vsub.f32 %v31402_v2, %v33718_v42  ;;  %v17429_v50 = vsub.f32 %v31410_v24, %v33720_v19 }
 0x8ee   : > { %v16157_v42 = vsub.f32 %v31481_v39, %v33721_v18 }
 0x8ef   : > { %14342 = vmatmul.mubr.f32.gmra.mrb[170].mxu0 %v26485_v47  ;;  %15620 = vmatmul.mubr.f32.gmra.mrb[170].mxu1 %v26485_v47  ;;  %v16152_v36 = vand.u32 4294901760, %v16151_v49 }
 0x8f0   : > { %14347 = vmatprep.mubr.f32.mxu0 %v33848_v3  ;;  %15625 = vmatprep.mubr.f32.mxu1 %v33848_v3 }
 0x8f3   : > { %14349 = vmatmul.mubr.f32.gmra.mrb[172].mxu0 %v26530_v11  ;;  %15627 = vmatmul.mubr.f32.gmra.mrb[172].mxu1 %v26530_v11 }
 0x8f4   : > { %14354 = vmatprep.mubr.f32.mxu0 %v33848_v3  ;;  %15632 = vmatprep.mubr.f32.mxu1 %v33848_v3 }
 0x8f7   : > { %14356 = vmatmul.mubr.f32.gmra.mrb[174].mxu0 %v26532_v59  ;;  %15634 = vmatmul.mubr.f32.gmra.mrb[174].mxu1 %v26532_v59 }
 0x8f8   : > { %14361 = vmatprep.mubr.f32.mxu0 %v33848_v3  ;;  %15639 = vmatprep.mubr.f32.mxu1 %v33848_v3 }
 0x8fb   : > { %14363 = vmatmul.mubr.f32.gmra.mrb[176].mxu0 %v26586_v46  ;;  %15641 = vmatmul.mubr.f32.gmra.mrb[176].mxu1 %v26586_v46 }
 0x8fc   : > { %14368 = vmatprep.mubr.f32.mxu0 %v33848_v3  ;;  %15646 = vmatprep.mubr.f32.mxu1 %v33848_v3 }
 0x8ff   : > { %14370 = vmatmul.mubr.f32.gmra.mrb[178].mxu0 %v26646_v61  ;;  %15648 = vmatmul.mubr.f32.gmra.mrb[178].mxu1 %v26646_v61 }
 0x900   : > { %14375 = vmatprep.mubr.f32.mxu0 %v33848_v3  ;;  %15653 = vmatprep.mubr.f32.mxu1 %v33848_v3 }
 0x903   : > { %14377 = vmatmul.mubr.f32.gmra.mrb[180].mxu0 %v26665_v60  ;;  %15655 = vmatmul.mubr.f32.gmra.mrb[180].mxu1 %v26665_v60 }
 0x904   : > { %14382 = vmatprep.mubr.f32.mxu0 %v33848_v3  ;;  %15660 = vmatprep.mubr.f32.mxu1 %v33848_v3 }
 0x907   : > { %14384 = vmatmul.mubr.f32.gmra.mrb[182].mxu0 %v34404_v52  ;;  %15662 = vmatmul.mubr.f32.gmra.mrb[182].mxu1 %v34404_v52 }
 0x908   : > { %14389 = vmatprep.mubr.f32.mxu0 %v33848_v3  ;;  %15667 = vmatprep.mubr.f32.mxu1 %v33848_v3 }
 0x90b   : > { %14391 = vmatmul.mubr.f32.gmra.mrb[184].mxu0 %v34405_v22  ;;  %15669 = vmatmul.mubr.f32.gmra.mrb[184].mxu1 %v34405_v22 }
 0x90c   : > { %14396 = vmatprep.mubr.f32.mxu0 %v33848_v3  ;;  %15674 = vmatprep.mubr.f32.mxu1 %v33848_v3 }
 0x90f   : > { %14398 = vmatmul.mubr.f32.gmra.mrb[186].mxu0 %v34406_v33  ;;  %15676 = vmatmul.mubr.f32.gmra.mrb[186].mxu1 %v34406_v33 }
 0x910   : > { %14403 = vmatprep.mubr.f32.mxu0 %v33848_v3  ;;  %15681 = vmatprep.mubr.f32.mxu1 %v33848_v3 }
 0x913   : > { %14405 = vmatmul.mubr.f32.gmra.mrb[188].mxu0 %v34407_v28  ;;  %15683 = vmatmul.mubr.f32.gmra.mrb[188].mxu1 %v34407_v28 }
 0x914   : > { %14410 = vmatprep.mubr.f32.mxu0 %v33848_v3  ;;  %15688 = vmatprep.mubr.f32.mxu1 %v33848_v3 }
 0x917   : > { %14412 = vmatmul.mubr.f32.gmra.mrb[190].mxu0 %v26756_v48  ;;  %15690 = vmatmul.mubr.f32.gmra.mrb[190].mxu1 %v26756_v48 }
 0x918   : > { %14490 = vmatprep.mubr.f32.mxu0 %v33848_v3  ;;  %15768 = vmatprep.mubr.f32.mxu1 %v33848_v3 }
 0x91b   : > { %14492 = vmatmul.mubr.f32.vlgmr.msra.gmra.mrb[160].mxu0 %v26412_v51  ;;  %15770 = vmatmul.mubr.f32.vlgmr.msra.gmra.mrb[160].mxu1 %v26412_v51 }
 0x91c   : > { %22746 = vmatpush1.bf16.msra.mxu0 %v31368_v0  ;;  %22794 = vmatpush1.bf16.msra.mxu1 %v31408_v55  ;;  %v34501_v55 = vand.u32 4294901760, %v31508_v14 }
 0x91d   : > { %14497 = vmatprep.mubr.f32.mxu0 %v33848_v3  ;;  %15775 = vmatprep.mubr.f32.mxu1 %v33848_v3 }
 0x91e   : > { %22748 = vmatprep.subr.bf16.mxu0 %v31418_v1  ;;  %22796 = vmatprep.subr.bf16.mxu1 %v31424_v10  ;;  %v34500_v10 = vand.u32 4294901760, %v31505_v63  ;;  %v17453_v0 = vsub.f32 %v31508_v14, %v34501_v55 }
 0x91f   : > { %14499 = vmatmul.mubr.f32.gmra.mrb[162].mxu0 %v26465_v62  ;;  %15777 = vmatmul.mubr.f32.gmra.mrb[162].mxu1 %v26465_v62 }
 0x920   : > { %14504 = vmatprep.mubr.f32.mxu0 %v33848_v3  ;;  %15782 = vmatprep.mubr.f32.mxu1 %v33848_v3  ;;  %v17441_v1 = vsub.f32 %v31505_v63, %v34500_v10 }
 0x921   : > { %22750 = vmatpush1.bf16.msra.mxu0 %v31442_v7  ;;  %22798 = vmatpush1.bf16.msra.mxu1 %v31444_v17  ;;  %v34498_v17 = vand.u32 4294901760, %v31499_v26  ;;  %v34499_v7 = vand.u32 4294901760, %v31502_v21 }
 0x922   : > { %22752 = vmatprep.subr.bf16.mxu0 %v22751_v37  ;;  %22800 = vmatprep.subr.bf16.mxu1 %v22799_v20  ;;  %v34495_v37 = vmov %v34488_v13  ;;  %v31496_v13 = vsub.f32 %v31358_v56, %v34496_v32  ;;  %v33719_v56 = vand.u32 4294901760, %v31404_v57 }
 0x923   : > { %14506 = vmatmul.mubr.f32.gmra.mrb[164].mxu0 %v26468_v6  ;;  %15784 = vmatmul.mubr.f32.gmra.mrb[164].mxu1 %v26468_v6  ;;  %v31491_v20 = vsub.f32 %v31355_v44, %v34495_v37  ;;  %v16139_v37 = vsub.f32 %v31400_v53, %v33717_v45 }
 0x924   : > { %14511 = vmatprep.mubr.f32.mxu0 %v33848_v3  ;;  %15789 = vmatprep.mubr.f32.mxu1 %v33848_v3  ;;  %v17417_v29 = vsub.f32 %v31404_v57, %v33719_v56  ;;  %v16169_v56 = vsub.f32 %v31486_v58, %v33722_v27  ;;  %v34497_v44 = vand.u32 4294901760, %v31496_v13  ;;  %v17430_v27 = vand.u32 4294901760, %v17429_v50 }
 0x925   : > { %v33725_v32 = vand.u32 4294901760, %v31491_v20  ;;  %v16140_v18 = vand.u32 4294901760, %v16139_v37  ;;  %v16158_v37 = vand.u32 4294901760, %v16157_v42 }
 0x926   : > { %v17447_v45 = vsub.f32 %v31496_v13, %v34497_v44  ;;  %v17418_v54 = vand.u32 4294901760, %v17417_v29  ;;  %v16175_v44 = vsub.f32 %v31502_v21, %v34499_v7  ;;  %v16170_v49 = vand.u32 4294901760, %v16169_v56  ;;  %v34509_v56 = vld [vmem:[#allocation59_spill] sm:$0xff] }
 0x927   : > { %14513 = vmatmul.mubr.f32.gmra.mrb[166].mxu0 %v26476_v8  ;;  %15791 = vmatmul.mubr.f32.gmra.mrb[166].mxu1 %v26476_v8  ;;  %v17435_v19 = vsub.f32 %v31491_v20, %v33725_v32  ;;  %v16163_v32 = vsub.f32 %v31499_v26, %v34498_v17  ;;  %v22753_v7 = vpack.c.bf16 %v16152_v36, %v16140_v18 }
 0x928   : > { %14518 = vmatprep.mubr.f32.mxu0 %v33848_v3  ;;  %15796 = vmatprep.mubr.f32.mxu1 %v33848_v3  ;;  %v17448_v50 = vand.u32 4294901760, %v17447_v45  ;;  %v22801_v17 = vpack.c.bf16 %v17430_v27, %v17418_v54  ;;  %v16176_v10 = vand.u32 4294901760, %v16175_v44  ;;  %v34508_v54 = vld [vmem:[#allocation58_spill] sm:$0xff]  ;;  %v34511_v18 = vpack.c.bf16 %v31410_v24, %v31404_v57 }
 0x929   : > { %v17436_v29 = vand.u32 4294901760, %v17435_v19  ;;  %v34510_v19 = vpack.c.bf16 %v31402_v2, %v31400_v53  ;;  %v34512_v27 = vpack.c.bf16 %v31486_v58, %v31481_v39  ;;  %v34514_v36 = vpack.c.bf16 %v31502_v21, %v31499_v26 }
 0x92a   : > { %v34515_v44 = vpack.c.bf16 %v31508_v14, %v31505_v63 }
 0x92b   : > { %14520 = vmatmul.mubr.f32.gmra.mrb[168].mxu0 %v26483_v25  ;;  %15798 = vmatmul.mubr.f32.gmra.mrb[168].mxu1 %v26483_v25  ;;  %v22803_v55 = vpack.c.bf16 %v17448_v50, %v17436_v29  ;;  %v34518_v29 = vld [vmem:[#allocation39_spill] sm:$0xff]  ;;  %v34519_v50 = vld [vmem:[#allocation42_spill] sm:$0xff] }
 0x92c   : > { %14525 = vmatprep.mubr.f32.mxu0 %v33848_v3  ;;  %15803 = vmatprep.mubr.f32.mxu1 %v33848_v3 }
 0x92f   : > { %14527 = vmatmul.mubr.f32.gmra.mrb[170].mxu0 %v26485_v47  ;;  %15805 = vmatmul.mubr.f32.gmra.mrb[170].mxu1 %v26485_v47 }
 0x930   : > { %14532 = vmatprep.mubr.f32.mxu0 %v33848_v3  ;;  %15810 = vmatprep.mubr.f32.mxu1 %v33848_v3 }
 0x933   : > { %14534 = vmatmul.mubr.f32.gmra.mrb[172].mxu0 %v26530_v11  ;;  %15812 = vmatmul.mubr.f32.gmra.mrb[172].mxu1 %v26530_v11 }
 0x934   : > { %14539 = vmatprep.mubr.f32.mxu0 %v33848_v3  ;;  %15817 = vmatprep.mubr.f32.mxu1 %v33848_v3 }
 0x937   : > { %14541 = vmatmul.mubr.f32.gmra.mrb[174].mxu0 %v26532_v59  ;;  %15819 = vmatmul.mubr.f32.gmra.mrb[174].mxu1 %v26532_v59 }
 0x938   : > { %14546 = vmatprep.mubr.f32.mxu0 %v33848_v3  ;;  %15824 = vmatprep.mubr.f32.mxu1 %v33848_v3 }
 0x93b   : > { %14548 = vmatmul.mubr.f32.gmra.mrb[176].mxu0 %v26586_v46  ;;  %15826 = vmatmul.mubr.f32.gmra.mrb[176].mxu1 %v26586_v46 }
 0x93c   : > { %14553 = vmatprep.mubr.f32.mxu0 %v33848_v3  ;;  %15831 = vmatprep.mubr.f32.mxu1 %v33848_v3 }
 0x93f   : > { %14555 = vmatmul.mubr.f32.gmra.mrb[178].mxu0 %v26646_v61  ;;  %15833 = vmatmul.mubr.f32.gmra.mrb[178].mxu1 %v26646_v61 }
 0x940   : > { %14560 = vmatprep.mubr.f32.mxu0 %v33848_v3  ;;  %15838 = vmatprep.mubr.f32.mxu1 %v33848_v3 }
 0x943   : > { %14562 = vmatmul.mubr.f32.gmra.mrb[180].mxu0 %v26665_v60  ;;  %15840 = vmatmul.mubr.f32.gmra.mrb[180].mxu1 %v26665_v60 }
 0x944   : > { %14567 = vmatprep.mubr.f32.mxu0 %v33848_v3  ;;  %15845 = vmatprep.mubr.f32.mxu1 %v33848_v3 }
 0x947   : > { %14569 = vmatmul.mubr.f32.gmra.mrb[182].mxu0 %v34404_v52  ;;  %15847 = vmatmul.mubr.f32.gmra.mrb[182].mxu1 %v34404_v52  ;;  %v22755_v52 = vpack.c.bf16 %v16170_v49, %v16158_v37  ;;  %v34516_v37 = vld [vmem:[#allocation43_spill] sm:$0xff]  ;;  %v34517_v49 = vld [vmem:[#allocation37_spill] sm:$0xff] }
 0x948   : > { %14574 = vmatprep.mubr.f32.mxu0 %v33848_v3  ;;  %15852 = vmatprep.mubr.f32.mxu1 %v33848_v3 }
 0x94b   : > { %14576 = vmatmul.mubr.f32.gmra.mrb[184].mxu0 %v34405_v22  ;;  %15854 = vmatmul.mubr.f32.gmra.mrb[184].mxu1 %v34405_v22  ;;  %v17454_v22 = vand.u32 4294901760, %v17453_v0  ;;  %v34502_v0 = vpack.c.bf16 %v31330_v43, %v31325_v41 }
 0x94c   : > { %14581 = vmatprep.mubr.f32.mxu0 %v33848_v3  ;;  %15859 = vmatprep.mubr.f32.mxu1 %v33848_v3 }
 0x94f   : > { %14583 = vmatmul.mubr.f32.gmra.mrb[186].mxu0 %v34406_v33  ;;  %15861 = vmatmul.mubr.f32.gmra.mrb[186].mxu1 %v34406_v33  ;;  %v17442_v33 = vand.u32 4294901760, %v17441_v1  ;;  %v34507_v1 = vld [vmem:[#allocation56_spill] sm:$0xff] }
 0x950   : > { %14588 = vmatprep.mubr.f32.mxu0 %v33848_v3  ;;  %15866 = vmatprep.mubr.f32.mxu1 %v33848_v3 }
 0x951   : > { %v22805_v42 = vpack.c.bf16 %v17454_v22, %v17442_v33  ;;  %v34505_v22 = vld [vmem:[#allocation51_spill] sm:$0xff]  ;;  %v34506_v33 = vld [vmem:[#allocation53_spill] sm:$0xff] }
 0x953   : > { %14590 = vmatmul.mubr.f32.gmra.mrb[188].mxu0 %v34407_v28  ;;  %15868 = vmatmul.mubr.f32.gmra.mrb[188].mxu1 %v34407_v28  ;;  %v16164_v28 = vand.u32 4294901760, %v16163_v32  ;;  %v34513_v32 = vpack.c.bf16 %v31496_v13, %v31491_v20 }
 0x954   : > { %14595 = vmatprep.mubr.f32.mxu0 %v33848_v3  ;;  %15873 = vmatprep.mubr.f32.mxu1 %v33848_v3 }
 0x955   : > { %v22757_v45 = vpack.c.bf16 %v16176_v10, %v16164_v28  ;;  %v34503_v28 = vpack.c.bf16 %v31340_v35, %v31335_v16  ;;  %v34522_v10 = vld [vmem:[#allocation67_spill] sm:$0xff] }
 0x957   : > { %14597 = vmatmul.mubr.f32.gmra.mrb[190].mxu0 %v26756_v48  ;;  %15875 = vmatmul.mubr.f32.gmra.mrb[190].mxu1 %v26756_v48 }
 0x958   : > { %15953 = vmatprep.mubr.f32.mxu0 %v33848_v3  ;;  %17231 = vmatprep.mubr.f32.mxu1 %v33848_v3 }
 0x95b   : > { %15959 = vmatmul.mubr.f32.vlgmr.msra.gmra.mrb[192].mxu0 %v33938_v4  ;;  %17237 = vmatmul.mubr.f32.vlgmr.msra.gmra.mrb[192].mxu1 %v33938_v4 }
 0x95c   : > { %22754 = vmatpush1.bf16.msra.mxu0 %v22753_v7  ;;  %22802 = vmatpush1.bf16.msra.mxu1 %v22801_v17  ;;  %v34520_v7 = vld [vmem:[#allocation46_spill] sm:$0xff]  ;;  %v34521_v17 = vld [vmem:[#allocation8_spill] sm:$0xff] }
 0x95d   : > { %15964 = vmatprep.mubr.f32.mxu0 %v33848_v3  ;;  %17242 = vmatprep.mubr.f32.mxu1 %v33848_v3 }
 0x95e   : > { %22756 = vmatprep.subr.bf16.mxu0 %v22755_v52  ;;  %22804 = vmatprep.subr.bf16.mxu1 %v22803_v55  ;;  %v34504_v52 = vld [vmem:[#allocation47_spill] sm:$0xff]  ;;  %v34523_v55 = vld [vmem:[#allocation68_spill] sm:$0xff] }
 0x95f   : > { %15970 = vmatmul.mubr.f32.gmra.mrb[194].mxu0 %v33939_v31  ;;  %17248 = vmatmul.mubr.f32.gmra.mrb[194].mxu1 %v33939_v31 }
 0x960   : > { %15975 = vmatprep.mubr.f32.mxu0 %v33848_v3  ;;  %17253 = vmatprep.mubr.f32.mxu1 %v33848_v3 }
 0x961   : > { %22758 = vmatpush1.bf16.msra.mxu0 %v22757_v45  ;;  %22806 = vmatpush1.bf16.msra.mxu1 %v22805_v42  ;;  %v34524_v45 = vld [vmem:[#allocation69_spill] sm:$0xff]  ;;  %v34525_v42 = vld [vmem:[#allocation70_spill] sm:$0xff] }
 0x962   : > { %22760 = vmatprep.subr.bf16.mxu0 %v34502_v0  ;;  %22808 = vmatprep.subr.bf16.mxu1 %v34503_v28  ;;  %v34526_v0 = vand.u32 4294901760, %v31325_v41  ;;  %v34527_v28 = vand.u32 4294901760, %v31330_v43  ;;  %v34533_v41 = vld [vmem:[#allocation12_spill] sm:$0xff]  ;;  %v34534_v43 = vld [vmem:[#allocation14_spill] sm:$0xff] }
 0x963   : > { %15981 = vmatmul.mubr.f32.gmra.mrb[196].mxu0 %v33942_v5  ;;  %17259 = vmatmul.mubr.f32.gmra.mrb[196].mxu1 %v33942_v5 }
 0x964   : > { %15986 = vmatprep.mubr.f32.mxu0 %v33848_v3  ;;  %17264 = vmatprep.mubr.f32.mxu1 %v33848_v3 }
 0x967   : > { %15992 = vmatmul.mubr.f32.gmra.mrb[198].mxu0 %v33943_v15  ;;  %17270 = vmatmul.mubr.f32.gmra.mrb[198].mxu1 %v33943_v15 }
 0x968   : > { %15997 = vmatprep.mubr.f32.mxu0 %v33848_v3  ;;  %17275 = vmatprep.mubr.f32.mxu1 %v33848_v3 }
 0x96b   : > { %16003 = vmatmul.mubr.f32.gmra.mrb[200].mxu0 %v33944_v38  ;;  %17281 = vmatmul.mubr.f32.gmra.mrb[200].mxu1 %v33944_v38 }
 0x96c   : > { %16008 = vmatprep.mubr.f32.mxu0 %v33848_v3  ;;  %17286 = vmatprep.mubr.f32.mxu1 %v33848_v3 }
 0x96f   : > { %16014 = vmatmul.mubr.f32.gmra.mrb[202].mxu0 %v33945_v40  ;;  %17292 = vmatmul.mubr.f32.gmra.mrb[202].mxu1 %v33945_v40 }
 0x970   : > { %16019 = vmatprep.mubr.f32.mxu0 %v33848_v3  ;;  %17297 = vmatprep.mubr.f32.mxu1 %v33848_v3 }
 0x973   : > { %16025 = vmatmul.mubr.f32.gmra.mrb[204].mxu0 %v33946_v34  ;;  %17303 = vmatmul.mubr.f32.gmra.mrb[204].mxu1 %v33946_v34 }
 0x974   : > { %16030 = vmatprep.mubr.f32.mxu0 %v33848_v3  ;;  %17308 = vmatprep.mubr.f32.mxu1 %v33848_v3 }
 0x977   : > { %16036 = vmatmul.mubr.f32.gmra.mrb[206].mxu0 %v33947_v30  ;;  %17314 = vmatmul.mubr.f32.gmra.mrb[206].mxu1 %v33947_v30 }
 0x978   : > { %16041 = vmatprep.mubr.f32.mxu0 %v33848_v3  ;;  %17319 = vmatprep.mubr.f32.mxu1 %v33848_v3 }
 0x97b   : > { %16047 = vmatmul.mubr.f32.gmra.mrb[208].mxu0 %v33948_v23  ;;  %17325 = vmatmul.mubr.f32.gmra.mrb[208].mxu1 %v33948_v23 }
 0x97c   : > { %16052 = vmatprep.mubr.f32.mxu0 %v33848_v3  ;;  %17330 = vmatprep.mubr.f32.mxu1 %v33848_v3 }
 0x97f   : > { %16058 = vmatmul.mubr.f32.gmra.mrb[210].mxu0 %v34052_v9  ;;  %17336 = vmatmul.mubr.f32.gmra.mrb[210].mxu1 %v34052_v9 }
 0x980   : > { %16063 = vmatprep.mubr.f32.mxu0 %v33848_v3  ;;  %17341 = vmatprep.mubr.f32.mxu1 %v33848_v3 }
 0x983   : > { %16069 = vmatmul.mubr.f32.gmra.mrb[212].mxu0 %v34504_v52  ;;  %17347 = vmatmul.mubr.f32.gmra.mrb[212].mxu1 %v34504_v52 }
 0x984   : > { %16074 = vmatprep.mubr.f32.mxu0 %v33848_v3  ;;  %17352 = vmatprep.mubr.f32.mxu1 %v33848_v3 }
 0x987   : > { %16080 = vmatmul.mubr.f32.gmra.mrb[214].mxu0 %v34505_v22  ;;  %17358 = vmatmul.mubr.f32.gmra.mrb[214].mxu1 %v34505_v22 }
 0x988   : > { %16085 = vmatprep.mubr.f32.mxu0 %v33848_v3  ;;  %17363 = vmatprep.mubr.f32.mxu1 %v33848_v3 }
 0x98b   : > { %16091 = vmatmul.mubr.f32.gmra.mrb[216].mxu0 %v34506_v33  ;;  %17369 = vmatmul.mubr.f32.gmra.mrb[216].mxu1 %v34506_v33  ;;  %v34538_v33 = vld [vmem:[#allocation19_spill] sm:$0xff] }
 0x98c   : > { %16096 = vmatprep.mubr.f32.mxu0 %v33848_v3  ;;  %17374 = vmatprep.mubr.f32.mxu1 %v33848_v3 }
 0x98f   : > { %16102 = vmatmul.mubr.f32.gmra.mrb[218].mxu0 %v34507_v1  ;;  %17380 = vmatmul.mubr.f32.gmra.mrb[218].mxu1 %v34507_v1 }
 0x990   : > { %16107 = vmatprep.mubr.f32.mxu0 %v33848_v3  ;;  %17385 = vmatprep.mubr.f32.mxu1 %v33848_v3 }
 0x993   : > { %16113 = vmatmul.mubr.f32.gmra.mrb[220].mxu0 %v34508_v54  ;;  %17391 = vmatmul.mubr.f32.gmra.mrb[220].mxu1 %v34508_v54 }
 0x994   : > { %16118 = vmatprep.mubr.f32.mxu0 %v33848_v3  ;;  %17396 = vmatprep.mubr.f32.mxu1 %v33848_v3 }
 0x997   : > { %16124 = vmatmul.mubr.f32.gmra.mrb[222].mxu0 %v34509_v56  ;;  %17402 = vmatmul.mubr.f32.gmra.mrb[222].mxu1 %v34509_v56 }
 0x998   : > { %16234 = vmatprep.mubr.f32.mxu0 %v33848_v3  ;;  %17512 = vmatprep.mubr.f32.mxu1 %v33848_v3 }
 0x99b   : > { %16236 = vmatmul.mubr.f32.vlgmr.msra.gmra.mrb[192].mxu0 %v26412_v51  ;;  %17514 = vmatmul.mubr.f32.vlgmr.msra.gmra.mrb[192].mxu1 %v26412_v51 }
 0x99c   : > { %22762 = vmatpush1.bf16.msra.mxu0 %v34510_v19  ;;  %22810 = vmatpush1.bf16.msra.mxu1 %v34511_v18  ;;  %v22775_v19 = vpack.c.bf16 %v34527_v28, %v34526_v0  ;;  %v34528_v18 = vand.u32 4294901760, %v31335_v16  ;;  %v34535_v16 = vld [vmem:[#allocation17_spill] sm:$0xff]  ;;  %v34536_v28 = vld [vmem:[#allocation10_spill] sm:$0xff] }
 0x99d   : > { %16241 = vmatprep.mubr.f32.mxu0 %v33848_v3  ;;  %17519 = vmatprep.mubr.f32.mxu1 %v33848_v3 }
 0x99e   : > { %22764 = vmatprep.subr.bf16.mxu0 %v34512_v27  ;;  %22812 = vmatprep.subr.bf16.mxu1 %v34513_v32  ;;  %v34529_v27 = vand.u32 4294901760, %v31340_v35 }
 0x99f   : > { %16243 = vmatmul.mubr.f32.gmra.mrb[194].mxu0 %v26465_v62  ;;  %17521 = vmatmul.mubr.f32.gmra.mrb[194].mxu1 %v26465_v62 }
 0x9a0   : > { %16248 = vmatprep.mubr.f32.mxu0 %v33848_v3  ;;  %17526 = vmatprep.mubr.f32.mxu1 %v33848_v3  ;;  %v22823_v32 = vpack.c.bf16 %v34529_v27, %v34528_v18 }
 0x9a1   : > { %22766 = vmatpush1.bf16.msra.mxu0 %v34514_v36  ;;  %22814 = vmatpush1.bf16.msra.mxu1 %v34515_v44  ;;  %v34530_v36 = vld [vmem:[#allocation11_spill] sm:$0xff] }
 0x9a2   : > { %22768 = vmatprep.subr.bf16.mxu0 %v31260_v12  ;;  %22816 = vmatprep.subr.bf16.mxu1 %v34516_v37  ;;  %v34531_v44 = vld [vmem:[#allocation71_spill] sm:$0xff] }
 0x9a3   : > { %16250 = vmatmul.mubr.f32.gmra.mrb[196].mxu0 %v26468_v6  ;;  %17528 = vmatmul.mubr.f32.gmra.mrb[196].mxu1 %v26468_v6 }
 0x9a4   : > { %16255 = vmatprep.mubr.f32.mxu0 %v33848_v3  ;;  %17533 = vmatprep.mubr.f32.mxu1 %v33848_v3 }
 0x9a7   : > { %16257 = vmatmul.mubr.f32.gmra.mrb[198].mxu0 %v26476_v8  ;;  %17535 = vmatmul.mubr.f32.gmra.mrb[198].mxu1 %v26476_v8 }
 0x9a8   : > { %16262 = vmatprep.mubr.f32.mxu0 %v33848_v3  ;;  %17540 = vmatprep.mubr.f32.mxu1 %v33848_v3 }
 0x9ab   : > { %16264 = vmatmul.mubr.f32.gmra.mrb[200].mxu0 %v26483_v25  ;;  %17542 = vmatmul.mubr.f32.gmra.mrb[200].mxu1 %v26483_v25 }
 0x9ac   : > { %16269 = vmatprep.mubr.f32.mxu0 %v33848_v3  ;;  %17547 = vmatprep.mubr.f32.mxu1 %v33848_v3 }
 0x9af   : > { %16271 = vmatmul.mubr.f32.gmra.mrb[202].mxu0 %v26485_v47  ;;  %17549 = vmatmul.mubr.f32.gmra.mrb[202].mxu1 %v26485_v47 }
 0x9b0   : > { %16276 = vmatprep.mubr.f32.mxu0 %v33848_v3  ;;  %17554 = vmatprep.mubr.f32.mxu1 %v33848_v3 }
 0x9b3   : > { %16278 = vmatmul.mubr.f32.gmra.mrb[204].mxu0 %v26530_v11  ;;  %17556 = vmatmul.mubr.f32.gmra.mrb[204].mxu1 %v26530_v11 }
 0x9b4   : > { %16283 = vmatprep.mubr.f32.mxu0 %v33848_v3  ;;  %17561 = vmatprep.mubr.f32.mxu1 %v33848_v3 }
 0x9b7   : > { %16285 = vmatmul.mubr.f32.gmra.mrb[206].mxu0 %v26532_v59  ;;  %17563 = vmatmul.mubr.f32.gmra.mrb[206].mxu1 %v26532_v59 }
 0x9b8   : > { %16290 = vmatprep.mubr.f32.mxu0 %v33848_v3  ;;  %17568 = vmatprep.mubr.f32.mxu1 %v33848_v3 }
 0x9bb   : > { %16292 = vmatmul.mubr.f32.gmra.mrb[208].mxu0 %v26586_v46  ;;  %17570 = vmatmul.mubr.f32.gmra.mrb[208].mxu1 %v26586_v46 }
 0x9bc   : > { %16297 = vmatprep.mubr.f32.mxu0 %v33848_v3  ;;  %17575 = vmatprep.mubr.f32.mxu1 %v33848_v3 }
 0x9bf   : > { %16299 = vmatmul.mubr.f32.gmra.mrb[210].mxu0 %v26646_v61  ;;  %17577 = vmatmul.mubr.f32.gmra.mrb[210].mxu1 %v26646_v61 }
 0x9c0   : > { %16304 = vmatprep.mubr.f32.mxu0 %v33848_v3  ;;  %17582 = vmatprep.mubr.f32.mxu1 %v33848_v3 }
 0x9c3   : > { %16306 = vmatmul.mubr.f32.gmra.mrb[212].mxu0 %v26665_v60  ;;  %17584 = vmatmul.mubr.f32.gmra.mrb[212].mxu1 %v26665_v60 }
 0x9c4   : > { %16311 = vmatprep.mubr.f32.mxu0 %v33848_v3  ;;  %17589 = vmatprep.mubr.f32.mxu1 %v33848_v3 }
 0x9c7   : > { %16313 = vmatmul.mubr.f32.gmra.mrb[214].mxu0 %v34517_v49  ;;  %17591 = vmatmul.mubr.f32.gmra.mrb[214].mxu1 %v34517_v49 }
 0x9c8   : > { %16318 = vmatprep.mubr.f32.mxu0 %v33848_v3  ;;  %17596 = vmatprep.mubr.f32.mxu1 %v33848_v3 }
 0x9cb   : > { %16320 = vmatmul.mubr.f32.gmra.mrb[216].mxu0 %v34518_v29  ;;  %17598 = vmatmul.mubr.f32.gmra.mrb[216].mxu1 %v34518_v29 }
 0x9cc   : > { %16325 = vmatprep.mubr.f32.mxu0 %v33848_v3  ;;  %17603 = vmatprep.mubr.f32.mxu1 %v33848_v3 }
 0x9cf   : > { %16327 = vmatmul.mubr.f32.gmra.mrb[218].mxu0 %v34519_v50  ;;  %17605 = vmatmul.mubr.f32.gmra.mrb[218].mxu1 %v34519_v50 }
 0x9d0   : > { %16332 = vmatprep.mubr.f32.mxu0 %v33848_v3  ;;  %17610 = vmatprep.mubr.f32.mxu1 %v33848_v3 }
 0x9d3   : > { %16334 = vmatmul.mubr.f32.gmra.mrb[220].mxu0 %v34520_v7  ;;  %17612 = vmatmul.mubr.f32.gmra.mrb[220].mxu1 %v34520_v7 }
 0x9d4   : > { %16339 = vmatprep.mubr.f32.mxu0 %v33848_v3  ;;  %17617 = vmatprep.mubr.f32.mxu1 %v33848_v3 }
 0x9d7   : > { %16341 = vmatmul.mubr.f32.gmra.mrb[222].mxu0 %v26756_v48  ;;  %17619 = vmatmul.mubr.f32.gmra.mrb[222].mxu1 %v26756_v48 }
 0x9d8   : > { %16427 = vmatprep.mubr.f32.mxu0 %v33848_v3  ;;  %17705 = vmatprep.mubr.f32.mxu1 %v33848_v3 }
 0x9db   : > { %16430 = vmatmul.mubr.f32.vlgmr.msra.gmra.mrb[192].mxu0 %v34521_v17  ;;  %17708 = vmatmul.mubr.f32.vlgmr.msra.gmra.mrb[192].mxu1 %v34521_v17  ;;  %v34532_v17 = vld [vmem:[#allocation72_spill] sm:$0xff] }
 0x9dc   : > { %22770 = vmatpush1.bf16.msra.mxu0 %v34522_v10  ;;  %22818 = vmatpush1.bf16.msra.mxu1 %v34523_v55 }
 0x9dd   : > { %16435 = vmatprep.mubr.f32.mxu0 %v33848_v3  ;;  %17713 = vmatprep.mubr.f32.mxu1 %v33848_v3 }
 0x9de   : > { %22772 = vmatprep.subr.bf16.mxu0 %v34524_v45  ;;  %22820 = vmatprep.subr.bf16.mxu1 %v34525_v42 }
 0x9df   : > { %16438 = vmatmul.mubr.f32.gmra.mrb[194].mxu0 %v34530_v36  ;;  %17716 = vmatmul.mubr.f32.gmra.mrb[194].mxu1 %v34530_v36 }
 0x9e0   : > { %16443 = vmatprep.mubr.f32.mxu0 %v33848_v3  ;;  %17721 = vmatprep.mubr.f32.mxu1 %v33848_v3 }
 0x9e1   : > { %22774 = vmatpush1.bf16.msra.mxu0 %v34531_v44  ;;  %22822 = vmatpush1.bf16.msra.mxu1 %v34532_v17 }
 0x9e2   : > { %22776 = vmatprep.subr.bf16.mxu0 %v22775_v19  ;;  %22824 = vmatprep.subr.bf16.mxu1 %v22823_v32 }
 0x9e3   : > { %16446 = vmatmul.mubr.f32.gmra.mrb[196].mxu0 %v34533_v41  ;;  %17724 = vmatmul.mubr.f32.gmra.mrb[196].mxu1 %v34533_v41 }
 0x9e4   : > { %16451 = vmatprep.mubr.f32.mxu0 %v33848_v3  ;;  %17729 = vmatprep.mubr.f32.mxu1 %v33848_v3 }
 0x9e7   : > { %16454 = vmatmul.mubr.f32.gmra.mrb[198].mxu0 %v34534_v43  ;;  %17732 = vmatmul.mubr.f32.gmra.mrb[198].mxu1 %v34534_v43  ;;  %v34537_v43 = vld [vmem:[#allocation18_spill] sm:$0xff] }
 0x9e8   : > { %16459 = vmatprep.mubr.f32.mxu0 %v33848_v3  ;;  %17737 = vmatprep.mubr.f32.mxu1 %v33848_v3 }
 0x9eb   : > { %16462 = vmatmul.mubr.f32.gmra.mrb[200].mxu0 %v34535_v16  ;;  %17740 = vmatmul.mubr.f32.gmra.mrb[200].mxu1 %v34535_v16 }
 0x9ec   : > { %16467 = vmatprep.mubr.f32.mxu0 %v33848_v3  ;;  %17745 = vmatprep.mubr.f32.mxu1 %v33848_v3 }
 0x9ee   : > { %v14493_v35 = vpop.f32.mrb[160].mxu0  ;;  %v15771_v0 = vpop.f32.mrb[160].mxu1 }
 0x9ef   : > { %v23255_v19 = vadd.f32 %v14493_v35, %v34536_v28  ;;  %v23287_v18 = vadd.f32 %v15771_v0, %v34536_v28  ;;  %v14495_v27 = vpop.f32.mrb[161].mxu0  ;;  %v15773_v32 = vpop.f32.mrb[161].mxu1  ;;  %16470 = vmatmul.mubr.f32.gmra.mrb[202].mxu0 %v34537_v43  ;;  %17748 = vmatmul.mubr.f32.gmra.mrb[202].mxu1 %v34537_v43 }
 0x9f0   : > { %v23256_v16 = vadd.f32 %v14495_v27, %v34536_v28  ;;  %v23288_v41 = vadd.f32 %v15773_v32, %v34536_v28  ;;  %16475 = vmatprep.mubr.f32.mxu0 %v33848_v3  ;;  %17753 = vmatprep.mubr.f32.mxu1 %v33848_v3  ;;  %v34539_v28 = vld [vmem:[#allocation23_spill] sm:$0xff] }
 0x9f1   : > { %v21013_v35 = vmax.f32 %v23255_v19, 0.0  ;;  %v21015_v36 = vmax.f32 %v23287_v18, 0.0 }
 0x9f2   : > { %v21014_v0 = vmax.f32 %v23256_v16, 0.0  ;;  %v21016_v56 = vmax.f32 %v23288_v41, 0.0  ;;  %v14500_v54 = vpop.f32.mrb[162].mxu0  ;;  %v15778_v1 = vpop.f32.mrb[162].mxu1 }
 0x9f3   : > { %21525 = vst [vmem:[%s27686_s6 + $0xa0] sm:$0xff] %v21013_v35  ;;  %21527 = vst [vmem:[%s27686_s6 + $0xb0] sm:$0xff] %v21015_v36  ;;  %v23257_v43 = vadd.f32 %v14500_v54, %v34538_v33  ;;  %v23289_v27 = vadd.f32 %v15778_v1, %v34538_v33  ;;  %v14502_v22 = vpop.f32.mrb[163].mxu0  ;;  %v15780_v32 = vpop.f32.mrb[163].mxu1  ;;  %16478 = vmatmul.mubr.f32.gmra.mrb[204].mxu0 %v34539_v28  ;;  %17756 = vmatmul.mubr.f32.gmra.mrb[204].mxu1 %v34539_v28 }
 0x9f4   : > { %21526 = vst [vmem:[%s27686_s6 + $0xa8] sm:$0xff] %v21014_v0  ;;  %21528 = vst [vmem:[%s27686_s6 + $0xb8] sm:$0xff] %v21016_v56  ;;  %v23258_v41 = vadd.f32 %v14502_v22, %v34538_v33  ;;  %v23290_v16 = vadd.f32 %v15780_v32, %v34538_v33  ;;  %16483 = vmatprep.mubr.f32.mxu0 %v33848_v3  ;;  %17761 = vmatprep.mubr.f32.mxu1 %v33848_v3  ;;  %v34540_v0 = vld [vmem:[#allocation20_spill] sm:$0xff] }
 0x9f5   : > { %v21045_v1 = vmax.f32 %v23257_v43, 0.0  ;;  %v21047_v54 = vmax.f32 %v23289_v27, 0.0  ;;  %v34541_v33 = vld [vmem:[#allocation24_spill] sm:$0xff] }
 0x9f6   : > { %v21046_v36 = vmax.f32 %v23258_v41, 0.0  ;;  %v21048_v19 = vmax.f32 %v23290_v16, 0.0  ;;  %v14507_v18 = vpop.f32.mrb[164].mxu0  ;;  %v15785_v35 = vpop.f32.mrb[164].mxu1 }
 0x9f7   : > { %21557 = vst [vmem:[%s27686_s6 + $0x1a0] sm:$0xff] %v21045_v1  ;;  %21559 = vst [vmem:[%s27686_s6 + $0x1b0] sm:$0xff] %v21047_v54  ;;  %v23259_v56 = vadd.f32 %v14507_v18, %v34540_v0  ;;  %v23291_v22 = vadd.f32 %v15785_v35, %v34540_v0  ;;  %v14509_v28 = vpop.f32.mrb[165].mxu0  ;;  %v15787_v32 = vpop.f32.mrb[165].mxu1  ;;  %16486 = vmatmul.mubr.f32.gmra.mrb[206].mxu0 %v34541_v33  ;;  %17764 = vmatmul.mubr.f32.gmra.mrb[206].mxu1 %v34541_v33 }
 0x9f8   : > { %21558 = vst [vmem:[%s27686_s6 + $0x1a8] sm:$0xff] %v21046_v36  ;;  %21560 = vst [vmem:[%s27686_s6 + $0x1b8] sm:$0xff] %v21048_v19  ;;  %v23260_v43 = vadd.f32 %v14509_v28, %v34540_v0  ;;  %v23292_v27 = vadd.f32 %v15787_v32, %v34540_v0  ;;  %16491 = vmatprep.mubr.f32.mxu0 %v33848_v3  ;;  %17769 = vmatprep.mubr.f32.mxu1 %v33848_v3  ;;  %v34542_v36 = vld [vmem:[#allocation25_spill] sm:$0xff] }
 0x9f9   : > { %v21077_v41 = vmax.f32 %v23259_v56, 0.0  ;;  %v21079_v16 = vmax.f32 %v23291_v22, 0.0  ;;  %v34543_v0 = vld [vmem:[#allocation29_spill] sm:$0xff] }
 0x9fa   : > { %v21078_v1 = vmax.f32 %v23260_v43, 0.0  ;;  %v21080_v54 = vmax.f32 %v23292_v27, 0.0  ;;  %v14514_v18 = vpop.f32.mrb[166].mxu0  ;;  %v15792_v35 = vpop.f32.mrb[166].mxu1 }
 0x9fb   : > { %21589 = vst [vmem:[%s27686_s6 + $0x2a0] sm:$0xff] %v21077_v41  ;;  %21591 = vst [vmem:[%s27686_s6 + $0x2b0] sm:$0xff] %v21079_v16  ;;  %v23261_v19 = vadd.f32 %v14514_v18, %v34542_v36  ;;  %v23293_v28 = vadd.f32 %v15792_v35, %v34542_v36  ;;  %v14516_v33 = vpop.f32.mrb[167].mxu0  ;;  %v15794_v32 = vpop.f32.mrb[167].mxu1  ;;  %16494 = vmatmul.mubr.f32.gmra.mrb[208].mxu0 %v34543_v0  ;;  %17772 = vmatmul.mubr.f32.gmra.mrb[208].mxu1 %v34543_v0 }
 0x9fc   : > { %21590 = vst [vmem:[%s27686_s6 + $0x2a8] sm:$0xff] %v21078_v1  ;;  %21592 = vst [vmem:[%s27686_s6 + $0x2b8] sm:$0xff] %v21080_v54  ;;  %v23262_v56 = vadd.f32 %v14516_v33, %v34542_v36  ;;  %v23294_v22 = vadd.f32 %v15794_v32, %v34542_v36  ;;  %16499 = vmatprep.mubr.f32.mxu0 %v33848_v3  ;;  %17777 = vmatprep.mubr.f32.mxu1 %v33848_v3  ;;  %v34544_v1 = vld [vmem:[#allocation26_spill] sm:$0xff]  ;;  %v34545_v36 = vld [vmem:[#allocation33_spill] sm:$0xff] }
 0x9fd   : > { %v21109_v43 = vmax.f32 %v23261_v19, 0.0  ;;  %v21111_v27 = vmax.f32 %v23293_v28, 0.0 }
 0x9fe   : > { %v21110_v41 = vmax.f32 %v23262_v56, 0.0  ;;  %v21112_v16 = vmax.f32 %v23294_v22, 0.0  ;;  %v14521_v18 = vpop.f32.mrb[168].mxu0  ;;  %v15799_v35 = vpop.f32.mrb[168].mxu1 }
 0x9ff   : > { %21621 = vst [vmem:[%s27686_s6 + $0x3a0] sm:$0xff] %v21109_v43  ;;  %21623 = vst [vmem:[%s27686_s6 + $0x3b0] sm:$0xff] %v21111_v27  ;;  %v23263_v54 = vadd.f32 %v14521_v18, %v34544_v1  ;;  %v23295_v33 = vadd.f32 %v15799_v35, %v34544_v1  ;;  %v14523_v0 = vpop.f32.mrb[169].mxu0  ;;  %v15801_v32 = vpop.f32.mrb[169].mxu1  ;;  %16502 = vmatmul.mubr.f32.gmra.mrb[210].mxu0 %v34545_v36  ;;  %17780 = vmatmul.mubr.f32.gmra.mrb[210].mxu1 %v34545_v36 }
 0xa00   : > { %21622 = vst [vmem:[%s27686_s6 + $0x3a8] sm:$0xff] %v21110_v41  ;;  %21624 = vst [vmem:[%s27686_s6 + $0x3b8] sm:$0xff] %v21112_v16  ;;  %v23264_v19 = vadd.f32 %v14523_v0, %v34544_v1  ;;  %v23296_v28 = vadd.f32 %v15801_v32, %v34544_v1  ;;  %16507 = vmatprep.mubr.f32.mxu0 %v33848_v3  ;;  %17785 = vmatprep.mubr.f32.mxu1 %v33848_v3  ;;  %v34546_v41 = vld [vmem:[#allocation30_spill] sm:$0xff]  ;;  %v34547_v1 = vld [vmem:[#allocation36_spill] sm:$0xff] }
 0xa01   : > { %v21141_v56 = vmax.f32 %v23263_v54, 0.0  ;;  %v21143_v22 = vmax.f32 %v23295_v33, 0.0 }
 0xa02   : > { %v21142_v43 = vmax.f32 %v23264_v19, 0.0  ;;  %v21144_v27 = vmax.f32 %v23296_v28, 0.0  ;;  %v14528_v18 = vpop.f32.mrb[170].mxu0  ;;  %v15806_v35 = vpop.f32.mrb[170].mxu1 }
 0xa03   : > { %21653 = vst [vmem:[%s27686_s6 + $0x4a0] sm:$0xff] %v21141_v56  ;;  %21655 = vst [vmem:[%s27686_s6 + $0x4b0] sm:$0xff] %v21143_v22  ;;  %v23265_v16 = vadd.f32 %v14528_v18, %v34546_v41  ;;  %v23297_v0 = vadd.f32 %v15806_v35, %v34546_v41  ;;  %v14530_v36 = vpop.f32.mrb[171].mxu0  ;;  %v15808_v32 = vpop.f32.mrb[171].mxu1  ;;  %16510 = vmatmul.mubr.f32.gmra.mrb[212].mxu0 %v34547_v1  ;;  %17788 = vmatmul.mubr.f32.gmra.mrb[212].mxu1 %v34547_v1 }
 0xa04   : > { %21654 = vst [vmem:[%s27686_s6 + $0x4a8] sm:$0xff] %v21142_v43  ;;  %21656 = vst [vmem:[%s27686_s6 + $0x4b8] sm:$0xff] %v21144_v27  ;;  %v23266_v54 = vadd.f32 %v14530_v36, %v34546_v41  ;;  %v23298_v33 = vadd.f32 %v15808_v32, %v34546_v41  ;;  %16515 = vmatprep.mubr.f32.mxu0 %v33848_v3  ;;  %17793 = vmatprep.mubr.f32.mxu1 %v33848_v3  ;;  %v34548_v43 = vld [vmem:[#allocation32_spill] sm:$0xff]  ;;  %v34549_v41 = vld [vmem:[#allocation41_spill] sm:$0xff] }
 0xa05   : > { %v21173_v19 = vmax.f32 %v23265_v16, 0.0  ;;  %v21175_v28 = vmax.f32 %v23297_v0, 0.0 }
 0xa06   : > { %v21174_v56 = vmax.f32 %v23266_v54, 0.0  ;;  %v21176_v22 = vmax.f32 %v23298_v33, 0.0  ;;  %v14535_v18 = vpop.f32.mrb[172].mxu0  ;;  %v15813_v35 = vpop.f32.mrb[172].mxu1 }
 0xa07   : > { %21685 = vst [vmem:[%s27686_s6 + $0x5a0] sm:$0xff] %v21173_v19  ;;  %21687 = vst [vmem:[%s27686_s6 + $0x5b0] sm:$0xff] %v21175_v28  ;;  %v23267_v27 = vadd.f32 %v14535_v18, %v34548_v43  ;;  %v23299_v36 = vadd.f32 %v15813_v35, %v34548_v43  ;;  %v14537_v1 = vpop.f32.mrb[173].mxu0  ;;  %v15815_v32 = vpop.f32.mrb[173].mxu1  ;;  %16518 = vmatmul.mubr.f32.gmra.mrb[214].mxu0 %v34549_v41  ;;  %17796 = vmatmul.mubr.f32.gmra.mrb[214].mxu1 %v34549_v41 }
 0xa08   : > { %21686 = vst [vmem:[%s27686_s6 + $0x5a8] sm:$0xff] %v21174_v56  ;;  %21688 = vst [vmem:[%s27686_s6 + $0x5b8] sm:$0xff] %v21176_v22  ;;  %v23268_v16 = vadd.f32 %v14537_v1, %v34548_v43  ;;  %v23300_v0 = vadd.f32 %v15815_v32, %v34548_v43  ;;  %16523 = vmatprep.mubr.f32.mxu0 %v33848_v3  ;;  %17801 = vmatprep.mubr.f32.mxu1 %v33848_v3  ;;  %v34550_v56 = vld [vmem:[#allocation34_spill] sm:$0xff]  ;;  %v34551_v43 = vld [vmem:[#allocation45_spill] sm:$0xff] }
 0xa09   : > { %v21205_v54 = vmax.f32 %v23267_v27, 0.0  ;;  %v21207_v33 = vmax.f32 %v23299_v36, 0.0 }
 0xa0a   : > { %v21206_v19 = vmax.f32 %v23268_v16, 0.0  ;;  %v21208_v28 = vmax.f32 %v23300_v0, 0.0  ;;  %v14542_v18 = vpop.f32.mrb[174].mxu0  ;;  %v15820_v35 = vpop.f32.mrb[174].mxu1 }
 0xa0b   : > { %21717 = vst [vmem:[%s27686_s6 + $0x6a0] sm:$0xff] %v21205_v54  ;;  %21719 = vst [vmem:[%s27686_s6 + $0x6b0] sm:$0xff] %v21207_v33  ;;  %v23269_v22 = vadd.f32 %v14542_v18, %v34550_v56  ;;  %v23301_v1 = vadd.f32 %v15820_v35, %v34550_v56  ;;  %v14544_v41 = vpop.f32.mrb[175].mxu0  ;;  %v15822_v32 = vpop.f32.mrb[175].mxu1  ;;  %16526 = vmatmul.mubr.f32.gmra.mrb[216].mxu0 %v34551_v43  ;;  %17804 = vmatmul.mubr.f32.gmra.mrb[216].mxu1 %v34551_v43 }
 0xa0c   : > { %21718 = vst [vmem:[%s27686_s6 + $0x6a8] sm:$0xff] %v21206_v19  ;;  %21720 = vst [vmem:[%s27686_s6 + $0x6b8] sm:$0xff] %v21208_v28  ;;  %v23270_v27 = vadd.f32 %v14544_v41, %v34550_v56  ;;  %v23302_v36 = vadd.f32 %v15822_v32, %v34550_v56  ;;  %16531 = vmatprep.mubr.f32.mxu0 %v33848_v3  ;;  %17809 = vmatprep.mubr.f32.mxu1 %v33848_v3  ;;  %v34552_v19 = vld [vmem:[#allocation38_spill] sm:$0xff]  ;;  %v34553_v56 = vld [vmem:[#allocation49_spill] sm:$0xff] }
 0xa0d   : > { %v21237_v16 = vmax.f32 %v23269_v22, 0.0  ;;  %v21239_v0 = vmax.f32 %v23301_v1, 0.0 }
 0xa0e   : > { %v21238_v54 = vmax.f32 %v23270_v27, 0.0  ;;  %v21240_v33 = vmax.f32 %v23302_v36, 0.0  ;;  %v14549_v18 = vpop.f32.mrb[176].mxu0  ;;  %v15827_v35 = vpop.f32.mrb[176].mxu1 }
 0xa0f   : > { %21749 = vst [vmem:[%s27686_s6 + $0x7a0] sm:$0xff] %v21237_v16  ;;  %21751 = vst [vmem:[%s27686_s6 + $0x7b0] sm:$0xff] %v21239_v0  ;;  %v23271_v28 = vadd.f32 %v14549_v18, %v34552_v19  ;;  %v23303_v41 = vadd.f32 %v15827_v35, %v34552_v19  ;;  %v14551_v43 = vpop.f32.mrb[177].mxu0  ;;  %v15829_v32 = vpop.f32.mrb[177].mxu1  ;;  %16534 = vmatmul.mubr.f32.gmra.mrb[218].mxu0 %v34553_v56  ;;  %17812 = vmatmul.mubr.f32.gmra.mrb[218].mxu1 %v34553_v56 }
 0xa10   : > { %21750 = vst [vmem:[%s27686_s6 + $0x7a8] sm:$0xff] %v21238_v54  ;;  %21752 = vst [vmem:[%s27686_s6 + $0x7b8] sm:$0xff] %v21240_v33  ;;  %v23272_v22 = vadd.f32 %v14551_v43, %v34552_v19  ;;  %v23304_v1 = vadd.f32 %v15829_v32, %v34552_v19  ;;  %16539 = vmatprep.mubr.f32.mxu0 %v33848_v3  ;;  %17817 = vmatprep.mubr.f32.mxu1 %v33848_v3  ;;  %v34554_v54 = vld [vmem:[#allocation60_spill] sm:$0xff]  ;;  %v34555_v19 = vld [vmem:[#allocation50_spill] sm:$0xff] }
 0xa11   : > { %v21269_v27 = vmax.f32 %v23271_v28, 0.0  ;;  %v21271_v36 = vmax.f32 %v23303_v41, 0.0 }
 0xa12   : > { %v21270_v16 = vmax.f32 %v23272_v22, 0.0  ;;  %v21272_v0 = vmax.f32 %v23304_v1, 0.0  ;;  %v14556_v18 = vpop.f32.mrb[178].mxu0  ;;  %v15834_v35 = vpop.f32.mrb[178].mxu1 }
 0xa13   : > { %21781 = vst [vmem:[%s27686_s6 + $0x8a0] sm:$0xff] %v21269_v27  ;;  %21783 = vst [vmem:[%s27686_s6 + $0x8b0] sm:$0xff] %v21271_v36  ;;  %v23273_v33 = vadd.f32 %v14556_v18, %v34554_v54  ;;  %v23305_v43 = vadd.f32 %v15834_v35, %v34554_v54  ;;  %v14558_v56 = vpop.f32.mrb[179].mxu0  ;;  %v15836_v32 = vpop.f32.mrb[179].mxu1  ;;  %16542 = vmatmul.mubr.f32.gmra.mrb[220].mxu0 %v34555_v19  ;;  %17820 = vmatmul.mubr.f32.gmra.mrb[220].mxu1 %v34555_v19 }
 0xa14   : > { %21782 = vst [vmem:[%s27686_s6 + $0x8a8] sm:$0xff] %v21270_v16  ;;  %21784 = vst [vmem:[%s27686_s6 + $0x8b8] sm:$0xff] %v21272_v0  ;;  %v23274_v28 = vadd.f32 %v14558_v56, %v34554_v54  ;;  %v23306_v41 = vadd.f32 %v15836_v32, %v34554_v54  ;;  %16547 = vmatprep.mubr.f32.mxu0 %v33848_v3  ;;  %17825 = vmatprep.mubr.f32.mxu1 %v33848_v3  ;;  %v34556_v16 = vld [vmem:[#allocation61_spill] sm:$0xff]  ;;  %v34557_v54 = vld [vmem:[#allocation55_spill] sm:$0xff] }
 0xa15   : > { %v21301_v22 = vmax.f32 %v23273_v33, 0.0  ;;  %v21303_v1 = vmax.f32 %v23305_v43, 0.0  ;;  %v34558_v33 = vand.u32 4294901760, %v31400_v53  ;;  %v34559_v43 = vand.u32 4294901760, %v31402_v2 }
 0xa16   : > { %v21302_v27 = vmax.f32 %v23274_v28, 0.0  ;;  %v21304_v36 = vmax.f32 %v23306_v41, 0.0  ;;  %v14563_v18 = vpop.f32.mrb[180].mxu0  ;;  %v15841_v35 = vpop.f32.mrb[180].mxu1 }
 0xa17   : > { %21813 = vst [vmem:[%s27686_s6 + $0x9a0] sm:$0xff] %v21301_v22  ;;  %21815 = vst [vmem:[%s27686_s6 + $0x9b0] sm:$0xff] %v21303_v1  ;;  %v23275_v0 = vadd.f32 %v14563_v18, %v34556_v16  ;;  %v23307_v56 = vadd.f32 %v15841_v35, %v34556_v16  ;;  %v14565_v19 = vpop.f32.mrb[181].mxu0  ;;  %v15843_v32 = vpop.f32.mrb[181].mxu1  ;;  %16550 = vmatmul.mubr.f32.gmra.mrb[222].mxu0 %v34557_v54  ;;  %17828 = vmatmul.mubr.f32.gmra.mrb[222].mxu1 %v34557_v54  ;;  %v34560_v1 = vand.u32 4294901760, %v31404_v57 }
 0xa18   : > { %v22777_v28 = vpack.c.bf16 %v34559_v43, %v34558_v33  ;;  %21814 = vst [vmem:[%s27686_s6 + $0x9a8] sm:$0xff] %v21302_v27  ;;  %21816 = vst [vmem:[%s27686_s6 + $0x9b8] sm:$0xff] %v21304_v36  ;;  %v23276_v41 = vadd.f32 %v14565_v19, %v34556_v16  ;;  %v23308_v22 = vadd.f32 %v15843_v32, %v34556_v16  ;;  %16628 = vmatprep.mubr.f32.mxu0 %v33848_v3 }
 0xa19   : > { %17906 = vmatprep.mubr.f32.mxu1 %v33848_v3  ;;  %v34561_v18 = vand.u32 4294901760, %v31410_v24  ;;  %v21333_v35 = vmax.f32 %v23275_v0, 0.0  ;;  %v21335_v2 = vmax.f32 %v23307_v56, 0.0  ;;  %v34562_v19 = vand.u32 4294901760, %v31481_v39  ;;  %v34566_v24 = vld [vmem:[#allocation62_spill] sm:$0xff] }
 0xa1a   : > { %v21334_v27 = vmax.f32 %v23276_v41, 0.0  ;;  %v21336_v33 = vmax.f32 %v23308_v22, 0.0  ;;  %v14570_v36 = vpop.f32.mrb[182].mxu0  ;;  %v15848_v43 = vpop.f32.mrb[182].mxu1  ;;  %v34563_v32 = vand.u32 4294901760, %v31486_v58  ;;  %v34564_v16 = vand.u32 4294901760, %v31491_v20 }
 0xa1b   : > { %v22825_v53 = vpack.c.bf16 %v34561_v18, %v34560_v1  ;;  %v34565_v57 = vand.u32 4294901760, %v31496_v13  ;;  %21845 = vst [vmem:[%s27686_s6 + $0xaa0] sm:$0xff] %v21333_v35  ;;  %21847 = vst [vmem:[%s27686_s6 + $0xab0] sm:$0xff] %v21335_v2  ;;  %v23277_v0 = vadd.f32 %v14570_v36, %v34566_v24  ;;  %v23309_v56 = vadd.f32 %v15848_v43, %v34566_v24  ;;  %v14572_v41 = vpop.f32.mrb[183].mxu0  ;;  %v15850_v22 = vpop.f32.mrb[183].mxu1  ;;  %v34567_v1 = vld [vmem:[#allocation9_spill] sm:$0xff] }
 0xa1c   : > { %v22779_v54 = vpack.c.bf16 %v34563_v32, %v34562_v19  ;;  %16632 = vmatmul.mubr.f32.vlgmr.msra.gmra.mrb[192].mxu0 %v34567_v1  ;;  %17910 = vmatmul.mubr.f32.vlgmr.msra.gmra.mrb[192].mxu1 %v34567_v1  ;;  %21846 = vst [vmem:[%s27686_s6 + $0xaa8] sm:$0xff] %v21334_v27  ;;  %21848 = vst [vmem:[%s27686_s6 + $0xab8] sm:$0xff] %v21336_v33  ;;  %v23278_v39 = vadd.f32 %v14572_v41, %v34566_v24  ;;  %v34569_v18 = vand.u32 4294901760, %v31502_v21  ;;  %v34572_v19 = vld [vmem:[#allocation63_spill] sm:$0xff] }
 0xa1d   : > { %v22827_v52 = vpack.c.bf16 %v34565_v57, %v34564_v16  ;;  %v23310_v13 = vadd.f32 %v15850_v22, %v34566_v24  ;;  %22778 = vmatpush1.bf16.msra.mxu0 %v22777_v28  ;;  %22826 = vmatpush1.bf16.msra.mxu1 %v22825_v53  ;;  %v21365_v58 = vmax.f32 %v23277_v0, 0.0  ;;  %v21367_v20 = vmax.f32 %v23309_v56, 0.0 }
 0xa1e   : > { %16637 = vmatprep.mubr.f32.mxu0 %v33848_v3  ;;  %17915 = vmatprep.mubr.f32.mxu1 %v33848_v3  ;;  %v34568_v16 = vand.u32 4294901760, %v31499_v26  ;;  %v34570_v2 = vand.u32 4294901760, %v31505_v63  ;;  %v34571_v27 = vand.u32 4294901760, %v31508_v14  ;;  %v21366_v28 = vmax.f32 %v23278_v39, 0.0  ;;  %v14577_v36 = vpop.f32.mrb[184].mxu0  ;;  %v15855_v43 = vpop.f32.mrb[184].mxu1 }
 0xa1f   : > { %v21368_v53 = vmax.f32 %v23310_v13, 0.0  ;;  %22780 = vmatprep.subr.bf16.mxu0 %v22779_v54  ;;  %22828 = vmatprep.subr.bf16.mxu1 %v22827_v52  ;;  %21877 = vst [vmem:[%s27686_s6 + $0xba0] sm:$0xff] %v21365_v58  ;;  %21879 = vst [vmem:[%s27686_s6 + $0xbb0] sm:$0xff] %v21367_v20  ;;  %v23279_v26 = vadd.f32 %v14577_v36, %v34572_v19  ;;  %v23311_v21 = vadd.f32 %v15855_v43, %v34572_v19  ;;  %v14579_v32 = vpop.f32.mrb[185].mxu0  ;;  %v15857_v57 = vpop.f32.mrb[185].mxu1  ;;  %v34573_v63 = vld [vmem:[#allocation13_spill] sm:$0xff] }
 0xa20   : > { %v22781_v35 = vpack.c.bf16 %v34569_v18, %v34568_v16  ;;  %v22829_v33 = vpack.c.bf16 %v34571_v27, %v34570_v2  ;;  %16641 = vmatmul.mubr.f32.gmra.mrb[194].mxu0 %v34573_v63  ;;  %17919 = vmatmul.mubr.f32.gmra.mrb[194].mxu1 %v34573_v63  ;;  %21878 = vst [vmem:[%s27686_s6 + $0xba8] sm:$0xff] %v21366_v28  ;;  %v34574_v13 = vld [vmem:[#allocation64_spill] sm:$0xff]  ;;  %v34576_v43 = vld [vmem:[#allocation65_spill] sm:$0xff] }
 0xa21   : > { %21880 = vst [vmem:[%s27686_s6 + $0xbb8] sm:$0xff] %v21368_v53  ;;  %v23280_v14 = vadd.f32 %v14579_v32, %v34572_v19  ;;  %v23312_v52 = vadd.f32 %v15857_v57, %v34572_v19  ;;  %16646 = vmatprep.mubr.f32.mxu0 %v33848_v3  ;;  %17924 = vmatprep.mubr.f32.mxu1 %v33848_v3  ;;  %v21397_v54 = vmax.f32 %v23279_v26, 0.0  ;;  %v21399_v0 = vmax.f32 %v23311_v21, 0.0 }
 0xa22   : > { %22782 = vmatpush1.bf16.msra.mxu0 %v22781_v35  ;;  %22830 = vmatpush1.bf16.msra.mxu1 %v22829_v33  ;;  %v14584_v22 = vpop.f32.mrb[186].mxu0  ;;  %v15862_v39 = vpop.f32.mrb[186].mxu1  ;;  %v34575_v35 = vld [vmem:[#allocation15_spill] sm:$0xff] }
 0xa23   : > { %v21398_v56 = vmax.f32 %v23280_v14, 0.0  ;;  %v21400_v41 = vmax.f32 %v23312_v52, 0.0  ;;  %22784 = vmatprep.subr.bf16.mxu0 %v31260_v12  ;;  %22832 = vmatprep.subr.bf16.mxu1 %v34516_v37  ;;  %21909 = vst [vmem:[%s27686_s6 + $0xca0] sm:$0xff] %v21397_v54  ;;  %21911 = vst [vmem:[%s27686_s6 + $0xcb0] sm:$0xff] %v21399_v0  ;;  %v23281_v58 = vadd.f32 %v14584_v22, %v34574_v13  ;;  %v14586_v16 = vpop.f32.mrb[187].mxu0  ;;  %v15864_v18 = vpop.f32.mrb[187].mxu1 }
 0xa24   : > { %v23313_v20 = vadd.f32 %v15862_v39, %v34574_v13  ;;  %16650 = vmatmul.mubr.f32.gmra.mrb[196].mxu0 %v34575_v35  ;;  %17928 = vmatmul.mubr.f32.gmra.mrb[196].mxu1 %v34575_v35  ;;  %v23282_v12 = vadd.f32 %v14586_v16, %v34574_v13  ;;  %v23314_v37 = vadd.f32 %v15864_v18, %v34574_v13  ;;  %v34577_v14 = vld [vmem:[#allocation16_spill] sm:$0xff] }
 0xa25   : > { %21910 = vst [vmem:[%s27686_s6 + $0xca8] sm:$0xff] %v21398_v56  ;;  %21912 = vst [vmem:[%s27686_s6 + $0xcb8] sm:$0xff] %v21400_v41  ;;  %16655 = vmatprep.mubr.f32.mxu0 %v33848_v3  ;;  %17933 = vmatprep.mubr.f32.mxu1 %v33848_v3  ;;  %v21429_v2 = vmax.f32 %v23281_v58, 0.0 }
 0xa26   : > { %v21431_v27 = vmax.f32 %v23313_v20, 0.0  ;;  %v21430_v33 = vmax.f32 %v23282_v12, 0.0  ;;  %v21432_v28 = vmax.f32 %v23314_v37, 0.0  ;;  %v14591_v53 = vpop.f32.mrb[188].mxu0  ;;  %v15869_v36 = vpop.f32.mrb[188].mxu1  ;;  %v34578_v20 = vld [vmem:[#allocation66_spill] sm:$0xff] }
 0xa27   : > { %21941 = vst [vmem:[%s27686_s6 + $0xda0] sm:$0xff] %v21429_v2  ;;  %v23283_v26 = vadd.f32 %v14591_v53, %v34576_v43  ;;  %v23315_v21 = vadd.f32 %v15869_v36, %v34576_v43  ;;  %v14593_v32 = vpop.f32.mrb[189].mxu0  ;;  %v15871_v57 = vpop.f32.mrb[189].mxu1  ;;  %v34579_v2 = vld [vmem:[#allocation21_spill] sm:$0xff] }
 0xa28   : > { %21943 = vst [vmem:[%s27686_s6 + $0xdb0] sm:$0xff] %v21431_v27  ;;  %16659 = vmatmul.mubr.f32.gmra.mrb[198].mxu0 %v34577_v14  ;;  %17937 = vmatmul.mubr.f32.gmra.mrb[198].mxu1 %v34577_v14  ;;  %21942 = vst [vmem:[%s27686_s6 + $0xda8] sm:$0xff] %v21430_v33  ;;  %v23284_v52 = vadd.f32 %v14593_v32, %v34576_v43  ;;  %v23316_v54 = vadd.f32 %v15871_v57, %v34576_v43  ;;  %v34581_v32 = vld [vmem:[#allocation27_spill] sm:$0xff]  ;;  %v34582_v57 = vld [vmem:[#allocation28_spill] sm:$0xff] }
 0xa29   : > { %21944 = vst [vmem:[%s27686_s6 + $0xdb8] sm:$0xff] %v21432_v28  ;;  %16664 = vmatprep.mubr.f32.mxu0 %v33848_v3  ;;  %17942 = vmatprep.mubr.f32.mxu1 %v33848_v3  ;;  %v21461_v0 = vmax.f32 %v23283_v26, 0.0  ;;  %v21463_v56 = vmax.f32 %v23315_v21, 0.0  ;;  %v34580_v21 = vld [vmem:[#allocation22_spill] sm:$0xff] }
 0xa2a   : > { %v21462_v41 = vmax.f32 %v23284_v52, 0.0  ;;  %v21464_v22 = vmax.f32 %v23316_v54, 0.0  ;;  %v14598_v39 = vpop.f32.mrb[190].mxu0  ;;  %v15876_v58 = vpop.f32.mrb[190].mxu1  ;;  %v34583_v52 = vld [vmem:[#allocation31_spill] sm:$0xff] }
 0xa2b   : > { %21973 = vst [vmem:[%s27686_s6 + $0xea0] sm:$0xff] %v21461_v0  ;;  %21975 = vst [vmem:[%s27686_s6 + $0xeb0] sm:$0xff] %v21463_v56  ;;  %v23285_v16 = vadd.f32 %v14598_v39, %v34578_v20  ;;  %v23317_v18 = vadd.f32 %v15876_v58, %v34578_v20  ;;  %v14600_v12 = vpop.f32.mrb[191].mxu0  ;;  %v15878_v37 = vpop.f32.mrb[191].mxu1  ;;  %v34584_v54 = vld [vmem:[#allocation35_spill] sm:$0xff]  ;;  %v34585_v0 = vld [vmem:[#allocation40_spill] sm:$0xff] }
 0xa2c   : > { %16668 = vmatmul.mubr.f32.gmra.mrb[200].mxu0 %v34579_v2  ;;  %17946 = vmatmul.mubr.f32.gmra.mrb[200].mxu1 %v34579_v2  ;;  %21974 = vst [vmem:[%s27686_s6 + $0xea8] sm:$0xff] %v21462_v41  ;;  %21976 = vst [vmem:[%s27686_s6 + $0xeb8] sm:$0xff] %v21464_v22  ;;  %v23286_v27 = vadd.f32 %v14600_v12, %v34578_v20  ;;  %v23318_v33 = vadd.f32 %v15878_v37, %v34578_v20  ;;  %v34586_v56 = vld [vmem:[#allocation44_spill] sm:$0xff]  ;;  %v34589_v39 = vld [vmem:[#allocation54_spill] sm:$0xff] }
 0xa2d   : > { %16673 = vmatprep.mubr.f32.mxu0 %v33848_v3  ;;  %17951 = vmatprep.mubr.f32.mxu1 %v33848_v3  ;;  %v21493_v28 = vmax.f32 %v23285_v16, 0.0  ;;  %v21495_v53 = vmax.f32 %v23317_v18, 0.0  ;;  %v34587_v41 = vld [vmem:[#allocation48_spill] sm:$0xff]  ;;  %v32045_v58 = vld [vmem:[%s26321_s26 + $0xe8] sm:$0xff]  ;;  %v32053_v12 = vld [vmem:[%s26321_s26 + $0xf8] sm:$0xff] }
 0xa2e   : > { %v21494_v36 = vmax.f32 %v23286_v27, 0.0  ;;  %v21496_v26 = vmax.f32 %v23318_v33, 0.0  ;;  %v34588_v22 = vld [vmem:[#allocation52_spill] sm:$0xff]  ;;  %v34590_v16 = vld [vmem:[#allocation57_spill] sm:$0xff]  ;;  %v32056_v37 = vld [vmem:[%s26321_s26 + $0x1f8] sm:$0xff]  ;;  %v18437_v27 = vand.u32 4294901760, %v32045_v58 }
 0xa2f   : > { %22005 = vst [vmem:[%s27686_s6 + $0xfa0] sm:$0xff] %v21493_v28  ;;  %22007 = vst [vmem:[%s27686_s6 + $0xfb0] sm:$0xff] %v21495_v53  ;;  %v32050_v18 = vld [vmem:[%s26321_s26 + $0x1e8] sm:$0xff]  ;;  %v19715_v28 = vand.u32 4294901760, %v32053_v12  ;;  %v19719_v53 = vand.u32 4294901760, %v32056_v37 }
 0xa30   : > { %16677 = vmatmul.mubr.f32.gmra.mrb[202].mxu0 %v34580_v21  ;;  %17955 = vmatmul.mubr.f32.gmra.mrb[202].mxu1 %v34580_v21  ;;  %22006 = vst [vmem:[%s27686_s6 + $0xfa8] sm:$0xff] %v21494_v36  ;;  %22008 = vst [vmem:[%s27686_s6 + $0xfb8] sm:$0xff] %v21496_v26  ;;  %v18441_v33 = vand.u32 4294901760, %v32050_v18  ;;  %v32200_v21 = vld [vmem:[%s26321_s26 + $0x3f0] sm:$0xff] }
 0xa31   : > { %16682 = vmatprep.mubr.f32.mxu0 %v33848_v3  ;;  %17960 = vmatprep.mubr.f32.mxu1 %v33848_v3  ;;  %v32156_v26 = vsub.f32 %v32056_v37, %v19719_v53  ;;  %v32174_v37 = vld [vmem:[%s26321_s26 + $0x3f8] sm:$0xff] }
 0xa32   : > { %v32076_v36 = vpack.c.bf16 %v18441_v33, %v18437_v27 }
 0xa33   : > { %v34596_v14 = vand.u32 4294901760, %v32156_v26 }
 0xa34   : > { %16686 = vmatmul.mubr.f32.gmra.mrb[204].mxu0 %v34581_v32  ;;  %17964 = vmatmul.mubr.f32.gmra.mrb[204].mxu1 %v34581_v32  ;;  %v32197_v32 = vld [vmem:[%s26321_s26 + $0x2f0] sm:$0xff] }
 0xa35   : > { %16691 = vmatprep.mubr.f32.mxu0 %v33848_v3  ;;  %17969 = vmatprep.mubr.f32.mxu1 %v33848_v3  ;;  %v19979_v43 = vsub.f32 %v32156_v26, %v34596_v14 }
 0xa38   : > { %16695 = vmatmul.mubr.f32.gmra.mrb[206].mxu0 %v34582_v57  ;;  %17973 = vmatmul.mubr.f32.gmra.mrb[206].mxu1 %v34582_v57  ;;  %v32194_v57 = vld [vmem:[%s26321_s26 + $0x3e0] sm:$0xff] }
 0xa39   : > { %16700 = vmatprep.mubr.f32.mxu0 %v33848_v3  ;;  %17978 = vmatprep.mubr.f32.mxu1 %v33848_v3  ;;  %v18451_v63 = vand.u32 4294901760, %v32194_v57 }
 0xa3c   : > { %16704 = vmatmul.mubr.f32.gmra.mrb[208].mxu0 %v34583_v52  ;;  %17982 = vmatmul.mubr.f32.gmra.mrb[208].mxu1 %v34583_v52  ;;  %v32191_v52 = vld [vmem:[%s26321_s26 + $0x2e0] sm:$0xff] }
 0xa3d   : > { %16709 = vmatprep.mubr.f32.mxu0 %v33848_v3  ;;  %17987 = vmatprep.mubr.f32.mxu1 %v33848_v3  ;;  %v18447_v14 = vand.u32 4294901760, %v32191_v52 }
 0xa40   : > { %16713 = vmatmul.mubr.f32.gmra.mrb[210].mxu0 %v34584_v54  ;;  %17991 = vmatmul.mubr.f32.gmra.mrb[210].mxu1 %v34584_v54 }
 0xa41   : > { %16718 = vmatprep.mubr.f32.mxu0 %v33848_v3  ;;  %17996 = vmatprep.mubr.f32.mxu1 %v33848_v3 }
 0xa44   : > { %16722 = vmatmul.mubr.f32.gmra.mrb[212].mxu0 %v34585_v0  ;;  %18000 = vmatmul.mubr.f32.gmra.mrb[212].mxu1 %v34585_v0 }
 0xa45   : > { %16727 = vmatprep.mubr.f32.mxu0 %v33848_v3  ;;  %18005 = vmatprep.mubr.f32.mxu1 %v33848_v3 }
 0xa48   : > { %16731 = vmatmul.mubr.f32.gmra.mrb[214].mxu0 %v34586_v56  ;;  %18009 = vmatmul.mubr.f32.gmra.mrb[214].mxu1 %v34586_v56 }
 0xa49   : > { %16736 = vmatprep.mubr.f32.mxu0 %v33848_v3  ;;  %18014 = vmatprep.mubr.f32.mxu1 %v33848_v3 }
 0xa4c   : > { %16740 = vmatmul.mubr.f32.gmra.mrb[216].mxu0 %v34587_v41  ;;  %18018 = vmatmul.mubr.f32.gmra.mrb[216].mxu1 %v34587_v41 }
 0xa4d   : > { %16745 = vmatprep.mubr.f32.mxu0 %v33848_v3  ;;  %18023 = vmatprep.mubr.f32.mxu1 %v33848_v3 }
 0xa50   : > { %16749 = vmatmul.mubr.f32.gmra.mrb[218].mxu0 %v34588_v22  ;;  %18027 = vmatmul.mubr.f32.gmra.mrb[218].mxu1 %v34588_v22 }
 0xa51   : > { %16754 = vmatprep.mubr.f32.mxu0 %v33848_v3  ;;  %18032 = vmatprep.mubr.f32.mxu1 %v33848_v3 }
 0xa54   : > { %16758 = vmatmul.mubr.f32.gmra.mrb[220].mxu0 %v34589_v39  ;;  %18036 = vmatmul.mubr.f32.gmra.mrb[220].mxu1 %v34589_v39 }
 0xa55   : > { %16763 = vmatprep.mubr.f32.mxu0 %v33848_v3  ;;  %18041 = vmatprep.mubr.f32.mxu1 %v33848_v3 }
 0xa58   : > { %16767 = vmatmul.mubr.f32.gmra.mrb[222].mxu0 %v34590_v16  ;;  %18045 = vmatmul.mubr.f32.gmra.mrb[222].mxu1 %v34590_v16  ;;  %v32165_v16 = vld [vmem:[%s26321_s26 + $0x2e8] sm:$0xff] }
 0xa59   : > { %16861 = vmatprep.mubr.f32.mxu0 %v33848_v3  ;;  %18139 = vmatprep.mubr.f32.mxu1 %v33848_v3  ;;  %v34598_v19 = vand.u32 4294901760, %v32165_v16 }
 0xa5c   : > { %16863 = vmatmul.mubr.f32.vlgmr.msra.gmra.mrb[192].mxu0 %v26412_v51  ;;  %18141 = vmatmul.mubr.f32.vlgmr.msra.gmra.mrb[192].mxu1 %v26412_v51 }
 0xa5d   : > { %22786 = vmatpush1.bf16.msra.mxu0 %v34522_v10  ;;  %22834 = vmatpush1.bf16.msra.mxu1 %v34523_v55  ;;  %v32082_v10 = vpack.c.bf16 %v19719_v53, %v19715_v28  ;;  %v332_v55 = vld [vmem:[%s26321_s26 + $0x1e0] sm:$0xff] }
 0xa5e   : > { %16868 = vmatprep.mubr.f32.mxu0 %v33848_v3  ;;  %18146 = vmatprep.mubr.f32.mxu1 %v33848_v3 }
 0xa5f   : > { %22788 = vmatprep.subr.bf16.mxu0 %v34524_v45  ;;  %22836 = vmatprep.subr.bf16.mxu1 %v34525_v42  ;;  %34591 = vst [vmem:[#allocation43_spill] sm:$0xff] %v32082_v10  ;;  %v32141_v45 = vsub.f32 %v32045_v58, %v18437_v27  ;;  %v32146_v42 = vsub.f32 %v32050_v18, %v18441_v33  ;;  %v18443_v18 = vand.u32 4294901760, %v332_v55  ;;  %v302_v27 = vld [vmem:[%s26321_s26 + $0xf0] sm:$0xff] }
 0xa60   : > { %16870 = vmatmul.mubr.f32.gmra.mrb[194].mxu0 %v26465_v62  ;;  %18148 = vmatmul.mubr.f32.gmra.mrb[194].mxu1 %v26465_v62  ;;  %v334_v33 = vld [vmem:[%s26321_s26 + $0x1f0] sm:$0xff]  ;;  %v19717_v53 = vand.u32 4294901760, %v302_v27 }
 0xa61   : > { %16875 = vmatprep.mubr.f32.mxu0 %v33848_v3  ;;  %18153 = vmatprep.mubr.f32.mxu1 %v33848_v3  ;;  %v19721_v0 = vand.u32 4294901760, %v334_v33  ;;  %v34593_v2 = vand.u32 4294901760, %v32141_v45  ;;  %v34594_v39 = vand.u32 4294901760, %v32146_v42  ;;  %v32218_v13 = vsub.f32 %v332_v55, %v18443_v18 }
 0xa62   : > { %22790 = vmatpush1.bf16.msra.mxu0 %v34531_v44  ;;  %22838 = vmatpush1.bf16.msra.mxu1 %v34532_v17  ;;  %v300_v17 = vld [vmem:[%s26321_s26 + $0xe0] sm:$0xff]  ;;  %v32151_v44 = vsub.f32 %v32053_v12, %v19715_v28  ;;  %v32168_v12 = vld [vmem:[%s26321_s26 + $0x3e8] sm:$0xff]  ;;  %v32171_v28 = vld [vmem:[%s26321_s26 + $0x2f8] sm:$0xff]  ;;  %s22166_s26 = sshll.u32 %s26183_s15, 16 }
 0xa63   : > { %22840 = vmatprep.subr.bf16.mxu0 %v32076_v36  ;;  %22888 = vmatprep.subr.bf16.mxu1 %v32082_v10  ;;  %v18439_v58 = vand.u32 4294901760, %v300_v17  ;;  %v18689_v20 = vsub.f32 %v32141_v45, %v34593_v2  ;;  %v18701_v54 = vsub.f32 %v32146_v42, %v34594_v39  ;;  %v32220_v2 = vsub.f32 %v302_v27, %v19717_v53  ;;  %s33125_s9 = scalar_lea.hbm %s33184_s3, %s22166_s26 }
 0xa64   : > { %16877 = vmatmul.mubr.f32.gmra.mrb[196].mxu0 %v26468_v6  ;;  %18155 = vmatmul.mubr.f32.gmra.mrb[196].mxu1 %v26468_v6  ;;  %v34595_v22 = vand.u32 4294901760, %v32151_v44  ;;  %v32224_v39 = vpack.c.bf16 %v19721_v0, %v19717_v53  ;;  %v19725_v53 = vand.u32 4294901760, %v32197_v32  ;;  %v19980_v10 = vand.u32 4294901760, %v19979_v43 }
 0xa65   : > { %16882 = vmatprep.mubr.f32.mxu0 %v33848_v3  ;;  %18160 = vmatprep.mubr.f32.mxu1 %v33848_v3  ;;  %v32184_v56 = vpack.c.bf16 %v18443_v18, %v18439_v58  ;;  %v32216_v35 = vsub.f32 %v300_v17, %v18439_v58  ;;  %v34599_v17 = vand.u32 4294901760, %v32168_v12  ;;  %v34601_v58 = vand.u32 4294901760, %v32171_v28 }
 0xa66   : > { %v19967_v41 = vsub.f32 %v32151_v44, %v34595_v22  ;;  %34597 = vst [vmem:[#allocation68_spill] sm:$0xff] %v32224_v39  ;;  %v32226_v22 = vsub.f32 %v334_v33, %v19721_v0  ;;  %v34602_v18 = vand.u32 4294901760, %v32174_v37  ;;  %v19729_v0 = vand.u32 4294901760, %v32200_v21 }
 0xa67   : > { %34592 = vst [vmem:[#allocation67_spill] sm:$0xff] %v32184_v56  ;;  %v32234_v55 = vpack.c.bf16 %v34599_v17, %v34598_v19  ;;  %v18690_v33 = vand.u32 4294901760, %v18689_v20  ;;  %v18702_v1 = vand.u32 4294901760, %v18701_v54  ;;  %v32258_v20 = vpack.c.bf16 %v18451_v63, %v18447_v14 }
 0xa68   : > { %16884 = vmatmul.mubr.f32.gmra.mrb[198].mxu0 %v26476_v8  ;;  %18162 = vmatmul.mubr.f32.gmra.mrb[198].mxu1 %v26476_v8  ;;  %v32240_v27 = vpack.c.bf16 %v34602_v18, %v34601_v58  ;;  %v19968_v24 = vand.u32 4294901760, %v19967_v41  ;;  %v32260_v54 = vpack.c.bf16 %v19729_v0, %v19725_v53  ;;  %v34609_v43 = vand.u32 4294901760, %v32174_v37 }
 0xa69   : > { %16889 = vmatprep.mubr.f32.mxu0 %v33848_v3  ;;  %18167 = vmatprep.mubr.f32.mxu1 %v33848_v3  ;;  %34600 = vst [vmem:[#allocation69_spill] sm:$0xff] %v32234_v55  ;;  %34604 = vst [vmem:[#allocation71_spill] sm:$0xff] %v32258_v20  ;;  %v22847_v41 = vpack.c.bf16 %v18702_v1, %v18690_v33 }
 0xa6a   : > { %34603 = vst [vmem:[#allocation70_spill] sm:$0xff] %v32240_v27  ;;  %34605 = vst [vmem:[#allocation72_spill] sm:$0xff] %v32260_v54  ;;  %v22895_v18 = vpack.c.bf16 %v19980_v10, %v19968_v24  ;;  %v34606_v24 = vmov %v34598_v19  ;;  %v34607_v10 = vmov %v34599_v17  ;;  %v32315_v17 = vsub.f32 %v32191_v52, %v18447_v14 }
 0xa6b   : > { %v32297_v1 = vsub.f32 %v32165_v16, %v34606_v24  ;;  %v32302_v33 = vsub.f32 %v32168_v12, %v34607_v10  ;;  %v32318_v16 = vsub.f32 %v32194_v57, %v18451_v63  ;;  %v32321_v24 = vsub.f32 %v32197_v32, %v19725_v53 }
 0xa6c   : > { %16891 = vmatmul.mubr.f32.gmra.mrb[200].mxu0 %v26483_v25  ;;  %18169 = vmatmul.mubr.f32.gmra.mrb[200].mxu1 %v26483_v25  ;;  %v32324_v12 = vsub.f32 %v32200_v21, %v19729_v0  ;;  %v33796_v32 = vand.u32 4294901760, %v32216_v35  ;;  %v33797_v57 = vand.u32 4294901760, %v32218_v13  ;;  %v33799_v14 = vand.u32 4294901760, %v32226_v22 }
 0xa6d   : > { %16896 = vmatprep.mubr.f32.mxu0 %v33848_v3  ;;  %18174 = vmatprep.mubr.f32.mxu1 %v33848_v3  ;;  %v33800_v53 = vand.u32 4294901760, %v32297_v1  ;;  %v33801_v0 = vand.u32 4294901760, %v32302_v33 }
 0xa6e   : > { %v18707_v21 = vsub.f32 %v32218_v13, %v33797_v57  ;;  %v19985_v52 = vsub.f32 %v32226_v22, %v33799_v14 }
 0xa6f   : > { %v18713_v57 = vsub.f32 %v32297_v1, %v33800_v53 }
 0xa70   : > { %16898 = vmatmul.mubr.f32.gmra.mrb[202].mxu0 %v26485_v47  ;;  %18176 = vmatmul.mubr.f32.gmra.mrb[202].mxu1 %v26485_v47  ;;  %v18708_v10 = vand.u32 4294901760, %v18707_v21 }
 0xa71   : > { %16903 = vmatprep.mubr.f32.mxu0 %v33848_v3  ;;  %18181 = vmatprep.mubr.f32.mxu1 %v33848_v3 }
 0xa74   : > { %16905 = vmatmul.mubr.f32.gmra.mrb[204].mxu0 %v26530_v11  ;;  %18183 = vmatmul.mubr.f32.gmra.mrb[204].mxu1 %v26530_v11 }
 0xa75   : > { %16910 = vmatprep.mubr.f32.mxu0 %v33848_v3  ;;  %18188 = vmatprep.mubr.f32.mxu1 %v33848_v3 }
 0xa78   : > { %16912 = vmatmul.mubr.f32.gmra.mrb[206].mxu0 %v26532_v59  ;;  %18190 = vmatmul.mubr.f32.gmra.mrb[206].mxu1 %v26532_v59 }
 0xa79   : > { %16917 = vmatprep.mubr.f32.mxu0 %v33848_v3  ;;  %18195 = vmatprep.mubr.f32.mxu1 %v33848_v3 }
 0xa7c   : > { %16919 = vmatmul.mubr.f32.gmra.mrb[208].mxu0 %v26586_v46  ;;  %18197 = vmatmul.mubr.f32.gmra.mrb[208].mxu1 %v26586_v46 }
 0xa7d   : > { %16924 = vmatprep.mubr.f32.mxu0 %v33848_v3  ;;  %18202 = vmatprep.mubr.f32.mxu1 %v33848_v3 }
 0xa80   : > { %16926 = vmatmul.mubr.f32.gmra.mrb[210].mxu0 %v26646_v61  ;;  %18204 = vmatmul.mubr.f32.gmra.mrb[210].mxu1 %v26646_v61 }
 0xa81   : > { %16931 = vmatprep.mubr.f32.mxu0 %v33848_v3  ;;  %18209 = vmatprep.mubr.f32.mxu1 %v33848_v3 }
 0xa84   : > { %16933 = vmatmul.mubr.f32.gmra.mrb[212].mxu0 %v26665_v60  ;;  %18211 = vmatmul.mubr.f32.gmra.mrb[212].mxu1 %v26665_v60 }
 0xa85   : > { %16938 = vmatprep.mubr.f32.mxu0 %v33848_v3  ;;  %18216 = vmatprep.mubr.f32.mxu1 %v33848_v3 }
 0xa88   : > { %16940 = vmatmul.mubr.f32.gmra.mrb[214].mxu0 %v34517_v49  ;;  %18218 = vmatmul.mubr.f32.gmra.mrb[214].mxu1 %v34517_v49 }
 0xa89   : > { %16945 = vmatprep.mubr.f32.mxu0 %v33848_v3  ;;  %18223 = vmatprep.mubr.f32.mxu1 %v33848_v3 }
 0xa8c   : > { %16947 = vmatmul.mubr.f32.gmra.mrb[216].mxu0 %v34518_v29  ;;  %18225 = vmatmul.mubr.f32.gmra.mrb[216].mxu1 %v34518_v29 }
 0xa8d   : > { %16952 = vmatprep.mubr.f32.mxu0 %v33848_v3  ;;  %18230 = vmatprep.mubr.f32.mxu1 %v33848_v3 }
 0xa90   : > { %16954 = vmatmul.mubr.f32.gmra.mrb[218].mxu0 %v34519_v50  ;;  %18232 = vmatmul.mubr.f32.gmra.mrb[218].mxu1 %v34519_v50 }
 0xa91   : > { %16959 = vmatprep.mubr.f32.mxu0 %v33848_v3  ;;  %18237 = vmatprep.mubr.f32.mxu1 %v33848_v3 }
 0xa94   : > { %16961 = vmatmul.mubr.f32.gmra.mrb[220].mxu0 %v34520_v7  ;;  %18239 = vmatmul.mubr.f32.gmra.mrb[220].mxu1 %v34520_v7 }
 0xa95   : > { %16966 = vmatprep.mubr.f32.mxu0 %v33848_v3  ;;  %18244 = vmatprep.mubr.f32.mxu1 %v33848_v3 }
 0xa98   : > { %16968 = vmatmul.mubr.f32.gmra.mrb[222].mxu0 %v26756_v48  ;;  %18246 = vmatmul.mubr.f32.gmra.mrb[222].mxu1 %v26756_v48 }
 0xa99   : > { %17046 = vmatprep.mubr.f32.mxu0 %v33848_v3  ;;  %18324 = vmatprep.mubr.f32.mxu1 %v33848_v3 }
 0xa9c   : > { %17048 = vmatmul.mubr.f32.vlgmr.msra.gmra.mrb[192].mxu0 %v26412_v51  ;;  %18326 = vmatmul.mubr.f32.vlgmr.msra.gmra.mrb[192].mxu1 %v26412_v51 }
 0xa9d   : > { %22842 = vmatpush1.bf16.msra.mxu0 %v32184_v56  ;;  %22890 = vmatpush1.bf16.msra.mxu1 %v32224_v39  ;;  %v34614_v39 = vand.u32 4294901760, %v32324_v12 }
 0xa9e   : > { %17053 = vmatprep.mubr.f32.mxu0 %v33848_v3  ;;  %18331 = vmatprep.mubr.f32.mxu1 %v33848_v3 }
 0xa9f   : > { %22844 = vmatprep.subr.bf16.mxu0 %v32234_v55  ;;  %22892 = vmatprep.subr.bf16.mxu1 %v32240_v27  ;;  %v34613_v27 = vand.u32 4294901760, %v32321_v24  ;;  %v20009_v56 = vsub.f32 %v32324_v12, %v34614_v39 }
 0xaa0   : > { %17055 = vmatmul.mubr.f32.gmra.mrb[194].mxu0 %v26465_v62  ;;  %18333 = vmatmul.mubr.f32.gmra.mrb[194].mxu1 %v26465_v62 }
 0xaa1   : > { %17060 = vmatprep.mubr.f32.mxu0 %v33848_v3  ;;  %18338 = vmatprep.mubr.f32.mxu1 %v33848_v3  ;;  %v19997_v55 = vsub.f32 %v32321_v24, %v34613_v27 }
 0xaa2   : > { %22846 = vmatpush1.bf16.msra.mxu0 %v32258_v20  ;;  %22894 = vmatpush1.bf16.msra.mxu1 %v32260_v54  ;;  %v34611_v54 = vand.u32 4294901760, %v32315_v17  ;;  %v34612_v20 = vand.u32 4294901760, %v32318_v16 }
 0xaa3   : > { %22848 = vmatprep.subr.bf16.mxu0 %v22847_v41  ;;  %22896 = vmatprep.subr.bf16.mxu1 %v22895_v18  ;;  %v34608_v41 = vmov %v34601_v58  ;;  %v32312_v58 = vsub.f32 %v32174_v37, %v34609_v43  ;;  %v33798_v37 = vand.u32 4294901760, %v32220_v2 }
 0xaa4   : > { %17062 = vmatmul.mubr.f32.gmra.mrb[196].mxu0 %v26468_v6  ;;  %18340 = vmatmul.mubr.f32.gmra.mrb[196].mxu1 %v26468_v6  ;;  %v32307_v18 = vsub.f32 %v32171_v28, %v34608_v41  ;;  %v18695_v41 = vsub.f32 %v32216_v35, %v33796_v32 }
 0xaa5   : > { %17067 = vmatprep.mubr.f32.mxu0 %v33848_v3  ;;  %18345 = vmatprep.mubr.f32.mxu1 %v33848_v3  ;;  %v19973_v63 = vsub.f32 %v32220_v2, %v33798_v37  ;;  %v18725_v37 = vsub.f32 %v32302_v33, %v33801_v0  ;;  %v34610_v28 = vand.u32 4294901760, %v32312_v58  ;;  %v19986_v0 = vand.u32 4294901760, %v19985_v52 }
 0xaa6   : > { %v33804_v43 = vand.u32 4294901760, %v32307_v18  ;;  %v18696_v53 = vand.u32 4294901760, %v18695_v41  ;;  %v18714_v41 = vand.u32 4294901760, %v18713_v57 }
 0xaa7   : > { %v20003_v32 = vsub.f32 %v32312_v58, %v34610_v28  ;;  %v19974_v19 = vand.u32 4294901760, %v19973_v63  ;;  %v18731_v28 = vsub.f32 %v32318_v16, %v34612_v20  ;;  %v18726_v21 = vand.u32 4294901760, %v18725_v37  ;;  %v34632_v37 = vld [vmem:[#allocation42_spill] sm:$0xff] }
 0xaa8   : > { %17069 = vmatmul.mubr.f32.gmra.mrb[198].mxu0 %v26476_v8  ;;  %18347 = vmatmul.mubr.f32.gmra.mrb[198].mxu1 %v26476_v8  ;;  %v19991_v14 = vsub.f32 %v32307_v18, %v33804_v43  ;;  %v18719_v43 = vsub.f32 %v32315_v17, %v34611_v54  ;;  %v22849_v20 = vpack.c.bf16 %v18708_v10, %v18696_v53  ;;  %v34634_v53 = vld [vmem:[#allocation8_spill] sm:$0xff]  ;;  %v34637_v10 = vld [vmem:[#allocation69_spill] sm:$0xff] }
 0xaa9   : > { %17074 = vmatprep.mubr.f32.mxu0 %v33848_v3  ;;  %18352 = vmatprep.mubr.f32.mxu1 %v33848_v3  ;;  %v20004_v52 = vand.u32 4294901760, %v20003_v32  ;;  %v22897_v54 = vpack.c.bf16 %v19986_v0, %v19974_v19  ;;  %v18732_v27 = vand.u32 4294901760, %v18731_v28  ;;  %v34631_v19 = vld [vmem:[#allocation39_spill] sm:$0xff]  ;;  %v34638_v28 = vld [vmem:[#allocation70_spill] sm:$0xff] }
 0xaaa   : > { %v19992_v63 = vand.u32 4294901760, %v19991_v14  ;;  %v34633_v14 = vld [vmem:[#allocation46_spill] sm:$0xff]  ;;  %v34635_v0 = vld [vmem:[#allocation67_spill] sm:$0xff] }
 0xaac   : > { %17076 = vmatmul.mubr.f32.gmra.mrb[200].mxu0 %v26483_v25  ;;  %18354 = vmatmul.mubr.f32.gmra.mrb[200].mxu1 %v26483_v25  ;;  %v22899_v39 = vpack.c.bf16 %v20004_v52, %v19992_v63  ;;  %v34641_v52 = vand.u32 4294901760, %v32151_v44 }
 0xaad   : > { %17081 = vmatprep.mubr.f32.mxu0 %v33848_v3  ;;  %18359 = vmatprep.mubr.f32.mxu1 %v33848_v3 }
 0xab0   : > { %17083 = vmatmul.mubr.f32.gmra.mrb[202].mxu0 %v26485_v47  ;;  %18361 = vmatmul.mubr.f32.gmra.mrb[202].mxu1 %v26485_v47 }
 0xab1   : > { %17088 = vmatprep.mubr.f32.mxu0 %v33848_v3  ;;  %18366 = vmatprep.mubr.f32.mxu1 %v33848_v3 }
 0xab4   : > { %17090 = vmatmul.mubr.f32.gmra.mrb[204].mxu0 %v26530_v11  ;;  %18368 = vmatmul.mubr.f32.gmra.mrb[204].mxu1 %v26530_v11 }
 0xab5   : > { %17095 = vmatprep.mubr.f32.mxu0 %v33848_v3  ;;  %18373 = vmatprep.mubr.f32.mxu1 %v33848_v3 }
 0xab8   : > { %17097 = vmatmul.mubr.f32.gmra.mrb[206].mxu0 %v26532_v59  ;;  %18375 = vmatmul.mubr.f32.gmra.mrb[206].mxu1 %v26532_v59 }
 0xab9   : > { %17102 = vmatprep.mubr.f32.mxu0 %v33848_v3  ;;  %18380 = vmatprep.mubr.f32.mxu1 %v33848_v3 }
 0xabc   : > { %17104 = vmatmul.mubr.f32.gmra.mrb[208].mxu0 %v26586_v46  ;;  %18382 = vmatmul.mubr.f32.gmra.mrb[208].mxu1 %v26586_v46 }
 0xabd   : > { %17109 = vmatprep.mubr.f32.mxu0 %v33848_v3  ;;  %18387 = vmatprep.mubr.f32.mxu1 %v33848_v3 }
 0xac0   : > { %17111 = vmatmul.mubr.f32.gmra.mrb[210].mxu0 %v26646_v61  ;;  %18389 = vmatmul.mubr.f32.gmra.mrb[210].mxu1 %v26646_v61 }
 0xac1   : > { %17116 = vmatprep.mubr.f32.mxu0 %v33848_v3  ;;  %18394 = vmatprep.mubr.f32.mxu1 %v33848_v3 }
 0xac4   : > { %17118 = vmatmul.mubr.f32.gmra.mrb[212].mxu0 %v26665_v60  ;;  %18396 = vmatmul.mubr.f32.gmra.mrb[212].mxu1 %v26665_v60 }
 0xac5   : > { %17123 = vmatprep.mubr.f32.mxu0 %v33848_v3  ;;  %18401 = vmatprep.mubr.f32.mxu1 %v33848_v3 }
 0xac8   : > { %17125 = vmatmul.mubr.f32.gmra.mrb[214].mxu0 %v34517_v49  ;;  %18403 = vmatmul.mubr.f32.gmra.mrb[214].mxu1 %v34517_v49  ;;  %v22851_v49 = vpack.c.bf16 %v18726_v21, %v18714_v41  ;;  %v34639_v41 = vand.u32 4294901760, %v32141_v45  ;;  %v34640_v21 = vand.u32 4294901760, %v32146_v42 }
 0xac9   : > { %17130 = vmatprep.mubr.f32.mxu0 %v33848_v3  ;;  %18408 = vmatprep.mubr.f32.mxu1 %v33848_v3 }
 0xaca   : > { %v22871_v63 = vpack.c.bf16 %v34640_v21, %v34639_v41 }
 0xacc   : > { %17132 = vmatmul.mubr.f32.gmra.mrb[216].mxu0 %v34518_v29  ;;  %18410 = vmatmul.mubr.f32.gmra.mrb[216].mxu1 %v34518_v29  ;;  %v20010_v29 = vand.u32 4294901760, %v20009_v56  ;;  %v34629_v56 = vld [vmem:[#allocation43_spill] sm:$0xff] }
 0xacd   : > { %17137 = vmatprep.mubr.f32.mxu0 %v33848_v3  ;;  %18415 = vmatprep.mubr.f32.mxu1 %v33848_v3 }
 0xad0   : > { %17139 = vmatmul.mubr.f32.gmra.mrb[218].mxu0 %v34519_v50  ;;  %18417 = vmatmul.mubr.f32.gmra.mrb[218].mxu1 %v34519_v50  ;;  %v19998_v50 = vand.u32 4294901760, %v19997_v55  ;;  %v34630_v55 = vld [vmem:[#allocation37_spill] sm:$0xff] }
 0xad1   : > { %17144 = vmatprep.mubr.f32.mxu0 %v33848_v3  ;;  %18422 = vmatprep.mubr.f32.mxu1 %v33848_v3 }
 0xad2   : > { %v22901_v57 = vpack.c.bf16 %v20010_v29, %v19998_v50  ;;  %v34627_v29 = vpack.c.bf16 %v32318_v16, %v32315_v17  ;;  %v34628_v50 = vpack.c.bf16 %v32324_v12, %v32321_v24 }
 0xad4   : > { %17146 = vmatmul.mubr.f32.gmra.mrb[220].mxu0 %v34520_v7  ;;  %18424 = vmatmul.mubr.f32.gmra.mrb[220].mxu1 %v34520_v7  ;;  %v18720_v7 = vand.u32 4294901760, %v18719_v43  ;;  %v34636_v43 = vld [vmem:[#allocation68_spill] sm:$0xff] }
 0xad5   : > { %17151 = vmatprep.mubr.f32.mxu0 %v33848_v3  ;;  %18429 = vmatprep.mubr.f32.mxu1 %v33848_v3 }
 0xad6   : > { %v22853_v32 = vpack.c.bf16 %v18732_v27, %v18720_v7  ;;  %v34616_v7 = vpack.c.bf16 %v32156_v26, %v32151_v44  ;;  %v34643_v27 = vld [vmem:[#allocation11_spill] sm:$0xff]  ;;  %v34648_v44 = vld [vmem:[#allocation17_spill] sm:$0xff] }
 0xad8   : > { %17153 = vmatmul.mubr.f32.gmra.mrb[222].mxu0 %v26756_v48  ;;  %18431 = vmatmul.mubr.f32.gmra.mrb[222].mxu1 %v26756_v48 }
 0xad9   : > { %18509 = vmatprep.mubr.f32.mxu0 %v33848_v3  ;;  %19787 = vmatprep.mubr.f32.mxu1 %v33848_v3 }
 0xadc   : > { %18515 = vmatmul.mubr.f32.vlgmr.msra.gmra.mrb[224].mxu0 %v33938_v4  ;;  %19793 = vmatmul.mubr.f32.vlgmr.msra.gmra.mrb[224].mxu1 %v33938_v4  ;;  %v34615_v4 = vpack.c.bf16 %v32146_v42, %v32141_v45  ;;  %v34646_v45 = vld [vmem:[#allocation12_spill] sm:$0xff]  ;;  %v34647_v42 = vld [vmem:[#allocation14_spill] sm:$0xff] }
 0xadd   : > { %22850 = vmatpush1.bf16.msra.mxu0 %v22849_v20  ;;  %22898 = vmatpush1.bf16.msra.mxu1 %v22897_v54  ;;  %v34642_v20 = vand.u32 4294901760, %v32156_v26 }
 0xade   : > { %18520 = vmatprep.mubr.f32.mxu0 %v33848_v3  ;;  %19798 = vmatprep.mubr.f32.mxu1 %v33848_v3 }
 0xadf   : > { %22852 = vmatprep.subr.bf16.mxu0 %v22851_v49  ;;  %22900 = vmatprep.subr.bf16.mxu1 %v22899_v39  ;;  %v34626_v49 = vpack.c.bf16 %v32312_v58, %v32307_v18  ;;  %v22919_v54 = vpack.c.bf16 %v34642_v20, %v34641_v52  ;;  %v34644_v39 = vld [vmem:[#allocation71_spill] sm:$0xff] }
 0xae0   : > { %18526 = vmatmul.mubr.f32.gmra.mrb[226].mxu0 %v33939_v31  ;;  %19804 = vmatmul.mubr.f32.gmra.mrb[226].mxu1 %v33939_v31  ;;  %v34617_v31 = vld [vmem:[#allocation47_spill] sm:$0xff] }
 0xae1   : > { %18531 = vmatprep.mubr.f32.mxu0 %v33848_v3  ;;  %19809 = vmatprep.mubr.f32.mxu1 %v33848_v3  ;;  %v34652_v20 = vld [vmem:[#allocation23_spill] sm:$0xff] }
 0xae2   : > { %22854 = vmatpush1.bf16.msra.mxu0 %v22853_v32  ;;  %22902 = vmatpush1.bf16.msra.mxu1 %v22901_v57  ;;  %v34645_v32 = vld [vmem:[#allocation72_spill] sm:$0xff] }
 0xae3   : > { %22856 = vmatprep.subr.bf16.mxu0 %v34615_v4  ;;  %22904 = vmatprep.subr.bf16.mxu1 %v34616_v7  ;;  %v34649_v4 = vld [vmem:[#allocation10_spill] sm:$0xff] }
 0xae4   : > { %18537 = vmatmul.mubr.f32.gmra.mrb[228].mxu0 %v33942_v5  ;;  %19815 = vmatmul.mubr.f32.gmra.mrb[228].mxu1 %v33942_v5  ;;  %v34618_v5 = vld [vmem:[#allocation51_spill] sm:$0xff] }
 0xae5   : > { %18542 = vmatprep.mubr.f32.mxu0 %v33848_v3  ;;  %19820 = vmatprep.mubr.f32.mxu1 %v33848_v3 }
 0xae8   : > { %18548 = vmatmul.mubr.f32.gmra.mrb[230].mxu0 %v33943_v15  ;;  %19826 = vmatmul.mubr.f32.gmra.mrb[230].mxu1 %v33943_v15  ;;  %v34619_v15 = vld [vmem:[#allocation53_spill] sm:$0xff] }
 0xae9   : > { %18553 = vmatprep.mubr.f32.mxu0 %v33848_v3  ;;  %19831 = vmatprep.mubr.f32.mxu1 %v33848_v3 }
 0xaec   : > { %18559 = vmatmul.mubr.f32.gmra.mrb[232].mxu0 %v33944_v38  ;;  %19837 = vmatmul.mubr.f32.gmra.mrb[232].mxu1 %v33944_v38  ;;  %v34620_v38 = vld [vmem:[#allocation56_spill] sm:$0xff] }
 0xaed   : > { %18564 = vmatprep.mubr.f32.mxu0 %v33848_v3  ;;  %19842 = vmatprep.mubr.f32.mxu1 %v33848_v3 }
 0xaf0   : > { %18570 = vmatmul.mubr.f32.gmra.mrb[234].mxu0 %v33945_v40  ;;  %19848 = vmatmul.mubr.f32.gmra.mrb[234].mxu1 %v33945_v40  ;;  %v34621_v40 = vld [vmem:[#allocation58_spill] sm:$0xff] }
 0xaf1   : > { %18575 = vmatprep.mubr.f32.mxu0 %v33848_v3  ;;  %19853 = vmatprep.mubr.f32.mxu1 %v33848_v3 }
 0xaf4   : > { %18581 = vmatmul.mubr.f32.gmra.mrb[236].mxu0 %v33946_v34  ;;  %19859 = vmatmul.mubr.f32.gmra.mrb[236].mxu1 %v33946_v34  ;;  %v34622_v34 = vld [vmem:[#allocation59_spill] sm:$0xff] }
 0xaf5   : > { %18586 = vmatprep.mubr.f32.mxu0 %v33848_v3  ;;  %19864 = vmatprep.mubr.f32.mxu1 %v33848_v3 }
 0xaf8   : > { %18592 = vmatmul.mubr.f32.gmra.mrb[238].mxu0 %v33947_v30  ;;  %19870 = vmatmul.mubr.f32.gmra.mrb[238].mxu1 %v33947_v30  ;;  %v34623_v30 = vpack.c.bf16 %v32218_v13, %v32216_v35 }
 0xaf9   : > { %18597 = vmatprep.mubr.f32.mxu0 %v33848_v3  ;;  %19875 = vmatprep.mubr.f32.mxu1 %v33848_v3 }
 0xafc   : > { %18603 = vmatmul.mubr.f32.gmra.mrb[240].mxu0 %v33948_v23  ;;  %19881 = vmatmul.mubr.f32.gmra.mrb[240].mxu1 %v33948_v23  ;;  %v34624_v23 = vpack.c.bf16 %v32226_v22, %v32220_v2 }
 0xafd   : > { %18608 = vmatprep.mubr.f32.mxu0 %v33848_v3  ;;  %19886 = vmatprep.mubr.f32.mxu1 %v33848_v3 }
 0xb00   : > { %18614 = vmatmul.mubr.f32.gmra.mrb[242].mxu0 %v34052_v9  ;;  %19892 = vmatmul.mubr.f32.gmra.mrb[242].mxu1 %v34052_v9  ;;  %v34625_v9 = vpack.c.bf16 %v32302_v33, %v32297_v1 }
 0xb01   : > { %18619 = vmatprep.mubr.f32.mxu0 %v33848_v3  ;;  %19897 = vmatprep.mubr.f32.mxu1 %v33848_v3 }
 0xb04   : > { %18625 = vmatmul.mubr.f32.gmra.mrb[244].mxu0 %v34617_v31  ;;  %19903 = vmatmul.mubr.f32.gmra.mrb[244].mxu1 %v34617_v31 }
 0xb05   : > { %18630 = vmatprep.mubr.f32.mxu0 %v33848_v3  ;;  %19908 = vmatprep.mubr.f32.mxu1 %v33848_v3 }
 0xb08   : > { %18636 = vmatmul.mubr.f32.gmra.mrb[246].mxu0 %v34618_v5  ;;  %19914 = vmatmul.mubr.f32.gmra.mrb[246].mxu1 %v34618_v5 }
 0xb09   : > { %18641 = vmatprep.mubr.f32.mxu0 %v33848_v3  ;;  %19919 = vmatprep.mubr.f32.mxu1 %v33848_v3 }
 0xb0c   : > { %18647 = vmatmul.mubr.f32.gmra.mrb[248].mxu0 %v34619_v15  ;;  %19925 = vmatmul.mubr.f32.gmra.mrb[248].mxu1 %v34619_v15 }
 0xb0d   : > { %18652 = vmatprep.mubr.f32.mxu0 %v33848_v3  ;;  %19930 = vmatprep.mubr.f32.mxu1 %v33848_v3 }
 0xb10   : > { %18658 = vmatmul.mubr.f32.gmra.mrb[250].mxu0 %v34620_v38  ;;  %19936 = vmatmul.mubr.f32.gmra.mrb[250].mxu1 %v34620_v38  ;;  %v34650_v38 = vld [vmem:[#allocation18_spill] sm:$0xff] }
 0xb11   : > { %18663 = vmatprep.mubr.f32.mxu0 %v33848_v3  ;;  %19941 = vmatprep.mubr.f32.mxu1 %v33848_v3 }
 0xb14   : > { %18669 = vmatmul.mubr.f32.gmra.mrb[252].mxu0 %v34621_v40  ;;  %19947 = vmatmul.mubr.f32.gmra.mrb[252].mxu1 %v34621_v40 }
 0xb15   : > { %18674 = vmatprep.mubr.f32.mxu0 %v33848_v3  ;;  %19952 = vmatprep.mubr.f32.mxu1 %v33848_v3 }
 0xb18   : > { %18680 = vmatmul.mubr.f32.gmra.mrb[254].mxu0 %v34622_v34  ;;  %19958 = vmatmul.mubr.f32.gmra.mrb[254].mxu1 %v34622_v34 }
 0xb19   : > { %18790 = vmatprep.mubr.f32.mxu0 %v33848_v3  ;;  %20068 = vmatprep.mubr.f32.mxu1 %v33848_v3 }
 0xb1c   : > { %18792 = vmatmul.mubr.f32.vlgmr.msra.gmra.mrb[224].mxu0 %v26412_v51  ;;  %20070 = vmatmul.mubr.f32.vlgmr.msra.gmra.mrb[224].mxu1 %v26412_v51 }
 0xb1d   : > { %22858 = vmatpush1.bf16.msra.mxu0 %v34623_v30  ;;  %22906 = vmatpush1.bf16.msra.mxu1 %v34624_v23 }
 0xb1e   : > { %18797 = vmatprep.mubr.f32.mxu0 %v33848_v3  ;;  %20075 = vmatprep.mubr.f32.mxu1 %v33848_v3 }
 0xb1f   : > { %22860 = vmatprep.subr.bf16.mxu0 %v34625_v9  ;;  %22908 = vmatprep.subr.bf16.mxu1 %v34626_v49 }
 0xb20   : > { %18799 = vmatmul.mubr.f32.gmra.mrb[226].mxu0 %v26465_v62  ;;  %20077 = vmatmul.mubr.f32.gmra.mrb[226].mxu1 %v26465_v62 }
 0xb21   : > { %18804 = vmatprep.mubr.f32.mxu0 %v33848_v3  ;;  %20082 = vmatprep.mubr.f32.mxu1 %v33848_v3 }
 0xb22   : > { %22862 = vmatpush1.bf16.msra.mxu0 %v34627_v29  ;;  %22910 = vmatpush1.bf16.msra.mxu1 %v34628_v50 }
 0xb23   : > { %22864 = vmatprep.subr.bf16.mxu0 %v32076_v36  ;;  %22912 = vmatprep.subr.bf16.mxu1 %v34629_v56 }
 0xb24   : > { %18806 = vmatmul.mubr.f32.gmra.mrb[228].mxu0 %v26468_v6  ;;  %20084 = vmatmul.mubr.f32.gmra.mrb[228].mxu1 %v26468_v6 }
 0xb25   : > { %18811 = vmatprep.mubr.f32.mxu0 %v33848_v3  ;;  %20089 = vmatprep.mubr.f32.mxu1 %v33848_v3 }
 0xb28   : > { %18813 = vmatmul.mubr.f32.gmra.mrb[230].mxu0 %v26476_v8  ;;  %20091 = vmatmul.mubr.f32.gmra.mrb[230].mxu1 %v26476_v8 }
 0xb29   : > { %18818 = vmatprep.mubr.f32.mxu0 %v33848_v3  ;;  %20096 = vmatprep.mubr.f32.mxu1 %v33848_v3 }
 0xb2c   : > { %18820 = vmatmul.mubr.f32.gmra.mrb[232].mxu0 %v26483_v25  ;;  %20098 = vmatmul.mubr.f32.gmra.mrb[232].mxu1 %v26483_v25 }
 0xb2d   : > { %18825 = vmatprep.mubr.f32.mxu0 %v33848_v3  ;;  %20103 = vmatprep.mubr.f32.mxu1 %v33848_v3 }
 0xb30   : > { %18827 = vmatmul.mubr.f32.gmra.mrb[234].mxu0 %v26485_v47  ;;  %20105 = vmatmul.mubr.f32.gmra.mrb[234].mxu1 %v26485_v47 }
 0xb31   : > { %18832 = vmatprep.mubr.f32.mxu0 %v33848_v3  ;;  %20110 = vmatprep.mubr.f32.mxu1 %v33848_v3 }
 0xb34   : > { %18834 = vmatmul.mubr.f32.gmra.mrb[236].mxu0 %v26530_v11  ;;  %20112 = vmatmul.mubr.f32.gmra.mrb[236].mxu1 %v26530_v11 }
 0xb35   : > { %18839 = vmatprep.mubr.f32.mxu0 %v33848_v3  ;;  %20117 = vmatprep.mubr.f32.mxu1 %v33848_v3 }
 0xb38   : > { %18841 = vmatmul.mubr.f32.gmra.mrb[238].mxu0 %v26532_v59  ;;  %20119 = vmatmul.mubr.f32.gmra.mrb[238].mxu1 %v26532_v59 }
 0xb39   : > { %18846 = vmatprep.mubr.f32.mxu0 %v33848_v3  ;;  %20124 = vmatprep.mubr.f32.mxu1 %v33848_v3 }
 0xb3c   : > { %18848 = vmatmul.mubr.f32.gmra.mrb[240].mxu0 %v26586_v46  ;;  %20126 = vmatmul.mubr.f32.gmra.mrb[240].mxu1 %v26586_v46 }
 0xb3d   : > { %18853 = vmatprep.mubr.f32.mxu0 %v33848_v3  ;;  %20131 = vmatprep.mubr.f32.mxu1 %v33848_v3 }
 0xb40   : > { %18855 = vmatmul.mubr.f32.gmra.mrb[242].mxu0 %v26646_v61  ;;  %20133 = vmatmul.mubr.f32.gmra.mrb[242].mxu1 %v26646_v61 }
 0xb41   : > { %18860 = vmatprep.mubr.f32.mxu0 %v33848_v3  ;;  %20138 = vmatprep.mubr.f32.mxu1 %v33848_v3 }
 0xb44   : > { %18862 = vmatmul.mubr.f32.gmra.mrb[244].mxu0 %v26665_v60  ;;  %20140 = vmatmul.mubr.f32.gmra.mrb[244].mxu1 %v26665_v60 }
 0xb45   : > { %18867 = vmatprep.mubr.f32.mxu0 %v33848_v3  ;;  %20145 = vmatprep.mubr.f32.mxu1 %v33848_v3 }
 0xb48   : > { %18869 = vmatmul.mubr.f32.gmra.mrb[246].mxu0 %v34630_v55  ;;  %20147 = vmatmul.mubr.f32.gmra.mrb[246].mxu1 %v34630_v55 }
 0xb49   : > { %18874 = vmatprep.mubr.f32.mxu0 %v33848_v3  ;;  %20152 = vmatprep.mubr.f32.mxu1 %v33848_v3 }
 0xb4c   : > { %18876 = vmatmul.mubr.f32.gmra.mrb[248].mxu0 %v34631_v19  ;;  %20154 = vmatmul.mubr.f32.gmra.mrb[248].mxu1 %v34631_v19 }
 0xb4d   : > { %18881 = vmatprep.mubr.f32.mxu0 %v33848_v3  ;;  %20159 = vmatprep.mubr.f32.mxu1 %v33848_v3 }
 0xb50   : > { %18883 = vmatmul.mubr.f32.gmra.mrb[250].mxu0 %v34632_v37  ;;  %20161 = vmatmul.mubr.f32.gmra.mrb[250].mxu1 %v34632_v37 }
 0xb51   : > { %18888 = vmatprep.mubr.f32.mxu0 %v33848_v3  ;;  %20166 = vmatprep.mubr.f32.mxu1 %v33848_v3 }
 0xb54   : > { %18890 = vmatmul.mubr.f32.gmra.mrb[252].mxu0 %v34633_v14  ;;  %20168 = vmatmul.mubr.f32.gmra.mrb[252].mxu1 %v34633_v14 }
 0xb55   : > { %18895 = vmatprep.mubr.f32.mxu0 %v33848_v3  ;;  %20173 = vmatprep.mubr.f32.mxu1 %v33848_v3 }
 0xb58   : > { %18897 = vmatmul.mubr.f32.gmra.mrb[254].mxu0 %v26756_v48  ;;  %20175 = vmatmul.mubr.f32.gmra.mrb[254].mxu1 %v26756_v48 }
 0xb59   : > { %18983 = vmatprep.mubr.f32.mxu0 %v33848_v3  ;;  %20261 = vmatprep.mubr.f32.mxu1 %v33848_v3 }
 0xb5c   : > { %18986 = vmatmul.mubr.f32.vlgmr.msra.gmra.mrb[224].mxu0 %v34634_v53  ;;  %20264 = vmatmul.mubr.f32.vlgmr.msra.gmra.mrb[224].mxu1 %v34634_v53  ;;  %v34651_v53 = vld [vmem:[#allocation19_spill] sm:$0xff] }
 0xb5d   : > { %22866 = vmatpush1.bf16.msra.mxu0 %v34635_v0  ;;  %22914 = vmatpush1.bf16.msra.mxu1 %v34636_v43 }
 0xb5e   : > { %18991 = vmatprep.mubr.f32.mxu0 %v33848_v3  ;;  %20269 = vmatprep.mubr.f32.mxu1 %v33848_v3 }
 0xb5f   : > { %22868 = vmatprep.subr.bf16.mxu0 %v34637_v10  ;;  %22916 = vmatprep.subr.bf16.mxu1 %v34638_v28 }
 0xb60   : > { %18994 = vmatmul.mubr.f32.gmra.mrb[226].mxu0 %v34643_v27  ;;  %20272 = vmatmul.mubr.f32.gmra.mrb[226].mxu1 %v34643_v27 }
 0xb61   : > { %18999 = vmatprep.mubr.f32.mxu0 %v33848_v3  ;;  %20277 = vmatprep.mubr.f32.mxu1 %v33848_v3 }
 0xb62   : > { %22870 = vmatpush1.bf16.msra.mxu0 %v34644_v39  ;;  %22918 = vmatpush1.bf16.msra.mxu1 %v34645_v32 }
 0xb63   : > { %22872 = vmatprep.subr.bf16.mxu0 %v22871_v63  ;;  %22920 = vmatprep.subr.bf16.mxu1 %v22919_v54 }
 0xb64   : > { %19002 = vmatmul.mubr.f32.gmra.mrb[228].mxu0 %v34646_v45  ;;  %20280 = vmatmul.mubr.f32.gmra.mrb[228].mxu1 %v34646_v45 }
 0xb65   : > { %19007 = vmatprep.mubr.f32.mxu0 %v33848_v3  ;;  %20285 = vmatprep.mubr.f32.mxu1 %v33848_v3 }
 0xb68   : > { %19010 = vmatmul.mubr.f32.gmra.mrb[230].mxu0 %v34647_v42  ;;  %20288 = vmatmul.mubr.f32.gmra.mrb[230].mxu1 %v34647_v42 }
 0xb69   : > { %19015 = vmatprep.mubr.f32.mxu0 %v33848_v3  ;;  %20293 = vmatprep.mubr.f32.mxu1 %v33848_v3 }
 0xb6c   : > { %19018 = vmatmul.mubr.f32.gmra.mrb[232].mxu0 %v34648_v44  ;;  %20296 = vmatmul.mubr.f32.gmra.mrb[232].mxu1 %v34648_v44 }
 0xb6d   : > { %19023 = vmatprep.mubr.f32.mxu0 %v33848_v3  ;;  %20301 = vmatprep.mubr.f32.mxu1 %v33848_v3 }
 0xb6f   : > { %v17049_v26 = vpop.f32.mrb[192].mxu0  ;;  %v18327_v57 = vpop.f32.mrb[192].mxu1 }
 0xb70   : > { %v23319_v7 = vadd.f32 %v17049_v26, %v34649_v4  ;;  %v23351_v31 = vadd.f32 %v18327_v57, %v34649_v4  ;;  %v17051_v5 = vpop.f32.mrb[193].mxu0  ;;  %v18329_v15 = vpop.f32.mrb[193].mxu1  ;;  %19026 = vmatmul.mubr.f32.gmra.mrb[234].mxu0 %v34650_v38  ;;  %20304 = vmatmul.mubr.f32.gmra.mrb[234].mxu1 %v34650_v38 }
 0xb71   : > { %v23320_v40 = vadd.f32 %v17051_v5, %v34649_v4  ;;  %v23352_v34 = vadd.f32 %v18329_v15, %v34649_v4  ;;  %19031 = vmatprep.mubr.f32.mxu0 %v33848_v3  ;;  %20309 = vmatprep.mubr.f32.mxu1 %v33848_v3 }
 0xb72   : > { %v21017_v30 = vmax.f32 %v23319_v7, 0.0  ;;  %v21019_v23 = vmax.f32 %v23351_v31, 0.0  ;;  %v34653_v31 = vld [vmem:[#allocation20_spill] sm:$0xff] }
 0xb73   : > { %v21018_v9 = vmax.f32 %v23320_v40, 0.0  ;;  %v21020_v49 = vmax.f32 %v23352_v34, 0.0  ;;  %v17056_v29 = vpop.f32.mrb[194].mxu0  ;;  %v18334_v50 = vpop.f32.mrb[194].mxu1  ;;  %v34654_v34 = vld [vmem:[#allocation24_spill] sm:$0xff] }
 0xb74   : > { %21529 = vst [vmem:[%s27686_s6 + $0xc0] sm:$0xff] %v21017_v30  ;;  %21531 = vst [vmem:[%s27686_s6 + $0xd0] sm:$0xff] %v21019_v23  ;;  %v23321_v41 = vadd.f32 %v17056_v29, %v34651_v53  ;;  %v23353_v21 = vadd.f32 %v18334_v50, %v34651_v53  ;;  %v17058_v63 = vpop.f32.mrb[195].mxu0  ;;  %v18336_v52 = vpop.f32.mrb[195].mxu1  ;;  %19034 = vmatmul.mubr.f32.gmra.mrb[236].mxu0 %v34652_v20  ;;  %20312 = vmatmul.mubr.f32.gmra.mrb[236].mxu1 %v34652_v20 }
 0xb75   : > { %21530 = vst [vmem:[%s27686_s6 + $0xc8] sm:$0xff] %v21018_v9  ;;  %21532 = vst [vmem:[%s27686_s6 + $0xd8] sm:$0xff] %v21020_v49  ;;  %v23322_v54 = vadd.f32 %v17058_v63, %v34651_v53  ;;  %v23354_v27 = vadd.f32 %v18336_v52, %v34651_v53  ;;  %19039 = vmatprep.mubr.f32.mxu0 %v33848_v3  ;;  %20317 = vmatprep.mubr.f32.mxu1 %v33848_v3  ;;  %v34655_v63 = vld [vmem:[#allocation25_spill] sm:$0xff] }
 0xb76   : > { %v21049_v45 = vmax.f32 %v23321_v41, 0.0  ;;  %v21051_v42 = vmax.f32 %v23353_v21, 0.0 }
 0xb77   : > { %v21050_v44 = vmax.f32 %v23322_v54, 0.0  ;;  %v21052_v26 = vmax.f32 %v23354_v27, 0.0  ;;  %v17063_v57 = vpop.f32.mrb[196].mxu0  ;;  %v18341_v7 = vpop.f32.mrb[196].mxu1 }
 0xb78   : > { %21561 = vst [vmem:[%s27686_s6 + $0x1c0] sm:$0xff] %v21049_v45  ;;  %21563 = vst [vmem:[%s27686_s6 + $0x1d0] sm:$0xff] %v21051_v42  ;;  %v23323_v5 = vadd.f32 %v17063_v57, %v34653_v31  ;;  %v23355_v15 = vadd.f32 %v18341_v7, %v34653_v31  ;;  %v17065_v38 = vpop.f32.mrb[197].mxu0  ;;  %v18343_v40 = vpop.f32.mrb[197].mxu1  ;;  %19042 = vmatmul.mubr.f32.gmra.mrb[238].mxu0 %v34654_v34  ;;  %20320 = vmatmul.mubr.f32.gmra.mrb[238].mxu1 %v34654_v34  ;;  %v34656_v45 = vld [vmem:[#allocation29_spill] sm:$0xff] }
 0xb79   : > { %21562 = vst [vmem:[%s27686_s6 + $0x1c8] sm:$0xff] %v21050_v44  ;;  %21564 = vst [vmem:[%s27686_s6 + $0x1d8] sm:$0xff] %v21052_v26  ;;  %v23324_v30 = vadd.f32 %v17065_v38, %v34653_v31  ;;  %v23356_v23 = vadd.f32 %v18343_v40, %v34653_v31  ;;  %19047 = vmatprep.mubr.f32.mxu0 %v33848_v3  ;;  %20325 = vmatprep.mubr.f32.mxu1 %v33848_v3  ;;  %v34657_v40 = vld [vmem:[#allocation26_spill] sm:$0xff] }
 0xb7a   : > { %v21081_v9 = vmax.f32 %v23323_v5, 0.0  ;;  %v21083_v49 = vmax.f32 %v23355_v15, 0.0 }
 0xb7b   : > { %v21082_v29 = vmax.f32 %v23324_v30, 0.0  ;;  %v21084_v50 = vmax.f32 %v23356_v23, 0.0  ;;  %v17070_v41 = vpop.f32.mrb[198].mxu0  ;;  %v18348_v21 = vpop.f32.mrb[198].mxu1 }
 0xb7c   : > { %21593 = vst [vmem:[%s27686_s6 + $0x2c0] sm:$0xff] %v21081_v9  ;;  %21595 = vst [vmem:[%s27686_s6 + $0x2d0] sm:$0xff] %v21083_v49  ;;  %v23325_v52 = vadd.f32 %v17070_v41, %v34655_v63  ;;  %v23357_v20 = vadd.f32 %v18348_v21, %v34655_v63  ;;  %v17072_v54 = vpop.f32.mrb[199].mxu0  ;;  %v18350_v27 = vpop.f32.mrb[199].mxu1  ;;  %19050 = vmatmul.mubr.f32.gmra.mrb[240].mxu0 %v34656_v45  ;;  %20328 = vmatmul.mubr.f32.gmra.mrb[240].mxu1 %v34656_v45  ;;  %v34658_v49 = vld [vmem:[#allocation33_spill] sm:$0xff]  ;;  %v34659_v45 = vld [vmem:[#allocation30_spill] sm:$0xff] }
 0xb7d   : > { %21594 = vst [vmem:[%s27686_s6 + $0x2c8] sm:$0xff] %v21082_v29  ;;  %21596 = vst [vmem:[%s27686_s6 + $0x2d8] sm:$0xff] %v21084_v50  ;;  %v23326_v42 = vadd.f32 %v17072_v54, %v34655_v63  ;;  %v23358_v44 = vadd.f32 %v18350_v27, %v34655_v63  ;;  %19055 = vmatprep.mubr.f32.mxu0 %v33848_v3  ;;  %20333 = vmatprep.mubr.f32.mxu1 %v33848_v3 }
 0xb7e   : > { %v21113_v26 = vmax.f32 %v23325_v52, 0.0  ;;  %v21115_v57 = vmax.f32 %v23357_v20, 0.0 }
 0xb7f   : > { %v21114_v7 = vmax.f32 %v23326_v42, 0.0  ;;  %v21116_v5 = vmax.f32 %v23358_v44, 0.0  ;;  %v17077_v15 = vpop.f32.mrb[200].mxu0  ;;  %v18355_v38 = vpop.f32.mrb[200].mxu1 }
 0xb80   : > { %21625 = vst [vmem:[%s27686_s6 + $0x3c0] sm:$0xff] %v21113_v26  ;;  %21627 = vst [vmem:[%s27686_s6 + $0x3d0] sm:$0xff] %v21115_v57  ;;  %v23327_v34 = vadd.f32 %v17077_v15, %v34657_v40  ;;  %v23359_v30 = vadd.f32 %v18355_v38, %v34657_v40  ;;  %v17079_v23 = vpop.f32.mrb[201].mxu0  ;;  %v18357_v9 = vpop.f32.mrb[201].mxu1  ;;  %19058 = vmatmul.mubr.f32.gmra.mrb[242].mxu0 %v34658_v49  ;;  %20336 = vmatmul.mubr.f32.gmra.mrb[242].mxu1 %v34658_v49 }
 0xb81   : > { %21626 = vst [vmem:[%s27686_s6 + $0x3c8] sm:$0xff] %v21114_v7  ;;  %21628 = vst [vmem:[%s27686_s6 + $0x3d8] sm:$0xff] %v21116_v5  ;;  %v23328_v29 = vadd.f32 %v17079_v23, %v34657_v40  ;;  %v23360_v50 = vadd.f32 %v18357_v9, %v34657_v40  ;;  %19063 = vmatprep.mubr.f32.mxu0 %v33848_v3  ;;  %20341 = vmatprep.mubr.f32.mxu1 %v33848_v3  ;;  %v34660_v7 = vld [vmem:[#allocation36_spill] sm:$0xff] }
 0xb82   : > { %v21145_v41 = vmax.f32 %v23327_v34, 0.0  ;;  %v21147_v21 = vmax.f32 %v23359_v30, 0.0 }
 0xb83   : > { %v21146_v52 = vmax.f32 %v23328_v29, 0.0  ;;  %v21148_v20 = vmax.f32 %v23360_v50, 0.0  ;;  %v17084_v54 = vpop.f32.mrb[202].mxu0  ;;  %v18362_v27 = vpop.f32.mrb[202].mxu1  ;;  %v34661_v29 = vld [vmem:[#allocation32_spill] sm:$0xff] }
 0xb84   : > { %21657 = vst [vmem:[%s27686_s6 + $0x4c0] sm:$0xff] %v21145_v41  ;;  %21659 = vst [vmem:[%s27686_s6 + $0x4d0] sm:$0xff] %v21147_v21  ;;  %v23329_v42 = vadd.f32 %v17084_v54, %v34659_v45  ;;  %v23361_v44 = vadd.f32 %v18362_v27, %v34659_v45  ;;  %v17086_v26 = vpop.f32.mrb[203].mxu0  ;;  %v18364_v57 = vpop.f32.mrb[203].mxu1  ;;  %19066 = vmatmul.mubr.f32.gmra.mrb[244].mxu0 %v34660_v7  ;;  %20344 = vmatmul.mubr.f32.gmra.mrb[244].mxu1 %v34660_v7 }
 0xb85   : > { %21658 = vst [vmem:[%s27686_s6 + $0x4c8] sm:$0xff] %v21146_v52  ;;  %21660 = vst [vmem:[%s27686_s6 + $0x4d8] sm:$0xff] %v21148_v20  ;;  %v23330_v5 = vadd.f32 %v17086_v26, %v34659_v45  ;;  %v23362_v15 = vadd.f32 %v18364_v57, %v34659_v45  ;;  %19071 = vmatprep.mubr.f32.mxu0 %v33848_v3  ;;  %20349 = vmatprep.mubr.f32.mxu1 %v33848_v3  ;;  %v34662_v20 = vld [vmem:[#allocation41_spill] sm:$0xff] }
 0xb86   : > { %v21177_v38 = vmax.f32 %v23329_v42, 0.0  ;;  %v21179_v34 = vmax.f32 %v23361_v44, 0.0 }
 0xb87   : > { %v21178_v30 = vmax.f32 %v23330_v5, 0.0  ;;  %v21180_v23 = vmax.f32 %v23362_v15, 0.0  ;;  %v17091_v9 = vpop.f32.mrb[204].mxu0  ;;  %v18369_v49 = vpop.f32.mrb[204].mxu1  ;;  %v34663_v15 = vld [vmem:[#allocation34_spill] sm:$0xff] }
 0xb88   : > { %21689 = vst [vmem:[%s27686_s6 + $0x5c0] sm:$0xff] %v21177_v38  ;;  %21691 = vst [vmem:[%s27686_s6 + $0x5d0] sm:$0xff] %v21179_v34  ;;  %v23331_v50 = vadd.f32 %v17091_v9, %v34661_v29  ;;  %v23363_v41 = vadd.f32 %v18369_v49, %v34661_v29  ;;  %v17093_v21 = vpop.f32.mrb[205].mxu0  ;;  %v18371_v52 = vpop.f32.mrb[205].mxu1  ;;  %19074 = vmatmul.mubr.f32.gmra.mrb[246].mxu0 %v34662_v20  ;;  %20352 = vmatmul.mubr.f32.gmra.mrb[246].mxu1 %v34662_v20  ;;  %v34664_v9 = vld [vmem:[#allocation45_spill] sm:$0xff] }
 0xb89   : > { %21690 = vst [vmem:[%s27686_s6 + $0x5c8] sm:$0xff] %v21178_v30  ;;  %21692 = vst [vmem:[%s27686_s6 + $0x5d8] sm:$0xff] %v21180_v23  ;;  %v23332_v54 = vadd.f32 %v17093_v21, %v34661_v29  ;;  %v23364_v27 = vadd.f32 %v18371_v52, %v34661_v29  ;;  %19079 = vmatprep.mubr.f32.mxu0 %v33848_v3  ;;  %20357 = vmatprep.mubr.f32.mxu1 %v33848_v3 }
 0xb8a   : > { %v21209_v42 = vmax.f32 %v23331_v50, 0.0  ;;  %v21211_v44 = vmax.f32 %v23363_v41, 0.0 }
 0xb8b   : > { %v21210_v26 = vmax.f32 %v23332_v54, 0.0  ;;  %v21212_v57 = vmax.f32 %v23364_v27, 0.0  ;;  %v17098_v7 = vpop.f32.mrb[206].mxu0  ;;  %v18376_v5 = vpop.f32.mrb[206].mxu1 }
 0xb8c   : > { %21721 = vst [vmem:[%s27686_s6 + $0x6c0] sm:$0xff] %v21209_v42  ;;  %21723 = vst [vmem:[%s27686_s6 + $0x6d0] sm:$0xff] %v21211_v44  ;;  %v23333_v38 = vadd.f32 %v17098_v7, %v34663_v15  ;;  %v23365_v34 = vadd.f32 %v18376_v5, %v34663_v15  ;;  %v17100_v30 = vpop.f32.mrb[207].mxu0  ;;  %v18378_v23 = vpop.f32.mrb[207].mxu1  ;;  %19082 = vmatmul.mubr.f32.gmra.mrb[248].mxu0 %v34664_v9  ;;  %20360 = vmatmul.mubr.f32.gmra.mrb[248].mxu1 %v34664_v9  ;;  %v34665_v42 = vld [vmem:[#allocation38_spill] sm:$0xff]  ;;  %v34666_v5 = vld [vmem:[#allocation49_spill] sm:$0xff] }
 0xb8d   : > { %21722 = vst [vmem:[%s27686_s6 + $0x6c8] sm:$0xff] %v21210_v26  ;;  %21724 = vst [vmem:[%s27686_s6 + $0x6d8] sm:$0xff] %v21212_v57  ;;  %v23334_v49 = vadd.f32 %v17100_v30, %v34663_v15  ;;  %v23366_v50 = vadd.f32 %v18378_v23, %v34663_v15  ;;  %19087 = vmatprep.mubr.f32.mxu0 %v33848_v3  ;;  %20365 = vmatprep.mubr.f32.mxu1 %v33848_v3 }
 0xb8e   : > { %v21241_v41 = vmax.f32 %v23333_v38, 0.0  ;;  %v21243_v21 = vmax.f32 %v23365_v34, 0.0 }
 0xb8f   : > { %v21242_v52 = vmax.f32 %v23334_v49, 0.0  ;;  %v21244_v20 = vmax.f32 %v23366_v50, 0.0  ;;  %v17105_v54 = vpop.f32.mrb[208].mxu0  ;;  %v18383_v27 = vpop.f32.mrb[208].mxu1 }
 0xb90   : > { %21753 = vst [vmem:[%s27686_s6 + $0x7c0] sm:$0xff] %v21241_v41  ;;  %21755 = vst [vmem:[%s27686_s6 + $0x7d0] sm:$0xff] %v21243_v21  ;;  %v23335_v44 = vadd.f32 %v17105_v54, %v34665_v42  ;;  %v23367_v26 = vadd.f32 %v18383_v27, %v34665_v42  ;;  %v17107_v57 = vpop.f32.mrb[209].mxu0  ;;  %v18385_v7 = vpop.f32.mrb[209].mxu1  ;;  %19090 = vmatmul.mubr.f32.gmra.mrb[250].mxu0 %v34666_v5  ;;  %20368 = vmatmul.mubr.f32.gmra.mrb[250].mxu1 %v34666_v5  ;;  %v34667_v21 = vld [vmem:[#allocation60_spill] sm:$0xff] }
 0xb91   : > { %21754 = vst [vmem:[%s27686_s6 + $0x7c8] sm:$0xff] %v21242_v52  ;;  %21756 = vst [vmem:[%s27686_s6 + $0x7d8] sm:$0xff] %v21244_v20  ;;  %v23336_v38 = vadd.f32 %v17107_v57, %v34665_v42  ;;  %v23368_v34 = vadd.f32 %v18385_v7, %v34665_v42  ;;  %19095 = vmatprep.mubr.f32.mxu0 %v33848_v3  ;;  %20373 = vmatprep.mubr.f32.mxu1 %v33848_v3  ;;  %v34668_v57 = vld [vmem:[#allocation50_spill] sm:$0xff] }
 0xb92   : > { %v21273_v30 = vmax.f32 %v23335_v44, 0.0  ;;  %v21275_v23 = vmax.f32 %v23367_v26, 0.0 }
 0xb93   : > { %v21274_v9 = vmax.f32 %v23336_v38, 0.0  ;;  %v21276_v49 = vmax.f32 %v23368_v34, 0.0  ;;  %v17112_v50 = vpop.f32.mrb[210].mxu0  ;;  %v18390_v41 = vpop.f32.mrb[210].mxu1 }
 0xb94   : > { %21785 = vst [vmem:[%s27686_s6 + $0x8c0] sm:$0xff] %v21273_v30  ;;  %21787 = vst [vmem:[%s27686_s6 + $0x8d0] sm:$0xff] %v21275_v23  ;;  %v23337_v52 = vadd.f32 %v17112_v50, %v34667_v21  ;;  %v23369_v20 = vadd.f32 %v18390_v41, %v34667_v21  ;;  %v17114_v54 = vpop.f32.mrb[211].mxu0  ;;  %v18392_v27 = vpop.f32.mrb[211].mxu1  ;;  %19098 = vmatmul.mubr.f32.gmra.mrb[252].mxu0 %v34668_v57  ;;  %20376 = vmatmul.mubr.f32.gmra.mrb[252].mxu1 %v34668_v57 }
 0xb95   : > { %21786 = vst [vmem:[%s27686_s6 + $0x8c8] sm:$0xff] %v21274_v9  ;;  %21788 = vst [vmem:[%s27686_s6 + $0x8d8] sm:$0xff] %v21276_v49  ;;  %v23338_v44 = vadd.f32 %v17114_v54, %v34667_v21  ;;  %v23370_v26 = vadd.f32 %v18392_v27, %v34667_v21  ;;  %19103 = vmatprep.mubr.f32.mxu0 %v33848_v3  ;;  %20381 = vmatprep.mubr.f32.mxu1 %v33848_v3  ;;  %v34669_v9 = vld [vmem:[#allocation61_spill] sm:$0xff]  ;;  %v34670_v27 = vld [vmem:[#allocation55_spill] sm:$0xff] }
 0xb96   : > { %v21305_v7 = vmax.f32 %v23337_v52, 0.0  ;;  %v21307_v5 = vmax.f32 %v23369_v20, 0.0  ;;  %v34671_v52 = vand.u32 4294901760, %v32216_v35  ;;  %v34672_v20 = vand.u32 4294901760, %v32218_v13 }
 0xb97   : > { %v21306_v38 = vmax.f32 %v23338_v44, 0.0  ;;  %v21308_v34 = vmax.f32 %v23370_v26, 0.0  ;;  %v17119_v30 = vpop.f32.mrb[212].mxu0  ;;  %v18397_v23 = vpop.f32.mrb[212].mxu1 }
 0xb98   : > { %21817 = vst [vmem:[%s27686_s6 + $0x9c0] sm:$0xff] %v21305_v7  ;;  %21819 = vst [vmem:[%s27686_s6 + $0x9d0] sm:$0xff] %v21307_v5  ;;  %v23339_v49 = vadd.f32 %v17119_v30, %v34669_v9  ;;  %v23371_v50 = vadd.f32 %v18397_v23, %v34669_v9  ;;  %v17121_v41 = vpop.f32.mrb[213].mxu0  ;;  %v18399_v54 = vpop.f32.mrb[213].mxu1  ;;  %19106 = vmatmul.mubr.f32.gmra.mrb[254].mxu0 %v34670_v27  ;;  %20384 = vmatmul.mubr.f32.gmra.mrb[254].mxu1 %v34670_v27  ;;  %v34673_v7 = vand.u32 4294901760, %v32220_v2 }
 0xb99   : > { %v22873_v57 = vpack.c.bf16 %v34672_v20, %v34671_v52  ;;  %21818 = vst [vmem:[%s27686_s6 + $0x9c8] sm:$0xff] %v21306_v38  ;;  %21820 = vst [vmem:[%s27686_s6 + $0x9d8] sm:$0xff] %v21308_v34  ;;  %v23340_v44 = vadd.f32 %v17121_v41, %v34669_v9  ;;  %v23372_v26 = vadd.f32 %v18399_v54, %v34669_v9  ;;  %19184 = vmatprep.mubr.f32.mxu0 %v33848_v3 }
 0xb9a   : > { %20462 = vmatprep.mubr.f32.mxu1 %v33848_v3  ;;  %v34674_v5 = vand.u32 4294901760, %v32226_v22  ;;  %v21337_v30 = vmax.f32 %v23339_v49, 0.0  ;;  %v21339_v13 = vmax.f32 %v23371_v50, 0.0  ;;  %v34675_v41 = vand.u32 4294901760, %v32297_v1  ;;  %v34679_v22 = vld [vmem:[#allocation62_spill] sm:$0xff] }
 0xb9b   : > { %v21338_v38 = vmax.f32 %v23340_v44, 0.0  ;;  %v21340_v23 = vmax.f32 %v23372_v26, 0.0  ;;  %v17126_v34 = vpop.f32.mrb[214].mxu0  ;;  %v18404_v27 = vpop.f32.mrb[214].mxu1  ;;  %v34676_v54 = vand.u32 4294901760, %v32302_v33  ;;  %v34677_v20 = vand.u32 4294901760, %v32307_v18 }
 0xb9c   : > { %v22921_v35 = vpack.c.bf16 %v34674_v5, %v34673_v7  ;;  %v34678_v2 = vand.u32 4294901760, %v32312_v58  ;;  %21849 = vst [vmem:[%s27686_s6 + $0xac0] sm:$0xff] %v21337_v30  ;;  %21851 = vst [vmem:[%s27686_s6 + $0xad0] sm:$0xff] %v21339_v13  ;;  %v23341_v49 = vadd.f32 %v17126_v34, %v34679_v22  ;;  %v23373_v50 = vadd.f32 %v18404_v27, %v34679_v22  ;;  %v17128_v44 = vpop.f32.mrb[215].mxu0  ;;  %v18406_v26 = vpop.f32.mrb[215].mxu1  ;;  %v34680_v7 = vld [vmem:[#allocation9_spill] sm:$0xff] }
 0xb9d   : > { %v22875_v52 = vpack.c.bf16 %v34676_v54, %v34675_v41  ;;  %19188 = vmatmul.mubr.f32.vlgmr.msra.gmra.mrb[224].mxu0 %v34680_v7  ;;  %20466 = vmatmul.mubr.f32.vlgmr.msra.gmra.mrb[224].mxu1 %v34680_v7  ;;  %21850 = vst [vmem:[%s27686_s6 + $0xac8] sm:$0xff] %v21338_v38  ;;  %21852 = vst [vmem:[%s27686_s6 + $0xad8] sm:$0xff] %v21340_v23  ;;  %v23342_v1 = vadd.f32 %v17128_v44, %v34679_v22  ;;  %v34681_v5 = vand.u32 4294901760, %v32315_v17  ;;  %v34685_v54 = vld [vmem:[#allocation63_spill] sm:$0xff] }
 0xb9e   : > { %v22923_v9 = vpack.c.bf16 %v34678_v2, %v34677_v20  ;;  %v23374_v58 = vadd.f32 %v18406_v26, %v34679_v22  ;;  %22874 = vmatpush1.bf16.msra.mxu0 %v22873_v57  ;;  %22922 = vmatpush1.bf16.msra.mxu1 %v22921_v35  ;;  %v21369_v33 = vmax.f32 %v23341_v49, 0.0  ;;  %v21371_v18 = vmax.f32 %v23373_v50, 0.0 }
 0xb9f   : > { %19193 = vmatprep.mubr.f32.mxu0 %v33848_v3  ;;  %20471 = vmatprep.mubr.f32.mxu1 %v33848_v3  ;;  %v34682_v30 = vand.u32 4294901760, %v32318_v16  ;;  %v34683_v38 = vand.u32 4294901760, %v32321_v24  ;;  %v34684_v23 = vand.u32 4294901760, %v32324_v12  ;;  %v21370_v57 = vmax.f32 %v23342_v1, 0.0  ;;  %v17133_v27 = vpop.f32.mrb[216].mxu0  ;;  %v18411_v41 = vpop.f32.mrb[216].mxu1 }
 0xba0   : > { %v21372_v35 = vmax.f32 %v23374_v58, 0.0  ;;  %22876 = vmatprep.subr.bf16.mxu0 %v22875_v52  ;;  %22924 = vmatprep.subr.bf16.mxu1 %v22923_v9  ;;  %21881 = vst [vmem:[%s27686_s6 + $0xbc0] sm:$0xff] %v21369_v33  ;;  %21883 = vst [vmem:[%s27686_s6 + $0xbd0] sm:$0xff] %v21371_v18  ;;  %v23343_v17 = vadd.f32 %v17133_v27, %v34685_v54  ;;  %v23375_v16 = vadd.f32 %v18411_v41, %v34685_v54  ;;  %v17135_v20 = vpop.f32.mrb[217].mxu0  ;;  %v18413_v2 = vpop.f32.mrb[217].mxu1  ;;  %v34686_v24 = vld [vmem:[#allocation13_spill] sm:$0xff] }
 0xba1   : > { %v22877_v13 = vpack.c.bf16 %v34682_v30, %v34681_v5  ;;  %v22925_v34 = vpack.c.bf16 %v34684_v23, %v34683_v38  ;;  %19197 = vmatmul.mubr.f32.gmra.mrb[226].mxu0 %v34686_v24  ;;  %20475 = vmatmul.mubr.f32.gmra.mrb[226].mxu1 %v34686_v24  ;;  %21882 = vst [vmem:[%s27686_s6 + $0xbc8] sm:$0xff] %v21370_v57  ;;  %v34687_v1 = vld [vmem:[#allocation64_spill] sm:$0xff]  ;;  %v34688_v30 = vld [vmem:[#allocation15_spill] sm:$0xff]  ;;  %v34689_v27 = vld [vmem:[#allocation65_spill] sm:$0xff] }
 0xba2   : > { %21884 = vst [vmem:[%s27686_s6 + $0xbd8] sm:$0xff] %v21372_v35  ;;  %v23344_v12 = vadd.f32 %v17135_v20, %v34685_v54  ;;  %v23376_v9 = vadd.f32 %v18413_v2, %v34685_v54  ;;  %19202 = vmatprep.mubr.f32.mxu0 %v33848_v3  ;;  %20480 = vmatprep.mubr.f32.mxu1 %v33848_v3  ;;  %v21401_v52 = vmax.f32 %v23343_v17, 0.0  ;;  %v21403_v49 = vmax.f32 %v23375_v16, 0.0  ;;  %v34690_v2 = vld [vmem:[#allocation16_spill] sm:$0xff] }
 0xba3   : > { %22878 = vmatpush1.bf16.msra.mxu0 %v22877_v13  ;;  %22926 = vmatpush1.bf16.msra.mxu1 %v22925_v34  ;;  %v17140_v26 = vpop.f32.mrb[218].mxu0  ;;  %v18418_v7 = vpop.f32.mrb[218].mxu1 }
 0xba4   : > { %v21402_v50 = vmax.f32 %v23344_v12, 0.0  ;;  %v21404_v44 = vmax.f32 %v23376_v9, 0.0  ;;  %22880 = vmatprep.subr.bf16.mxu0 %v32076_v36  ;;  %22928 = vmatprep.subr.bf16.mxu1 %v34629_v56  ;;  %21913 = vst [vmem:[%s27686_s6 + $0xcc0] sm:$0xff] %v21401_v52  ;;  %21915 = vst [vmem:[%s27686_s6 + $0xcd0] sm:$0xff] %v21403_v49  ;;  %v23345_v58 = vadd.f32 %v17140_v26, %v34687_v1  ;;  %v17142_v18 = vpop.f32.mrb[219].mxu0  ;;  %v18420_v5 = vpop.f32.mrb[219].mxu1 }
 0xba5   : > { %v23377_v33 = vadd.f32 %v18418_v7, %v34687_v1  ;;  %19206 = vmatmul.mubr.f32.gmra.mrb[228].mxu0 %v34688_v30  ;;  %20484 = vmatmul.mubr.f32.gmra.mrb[228].mxu1 %v34688_v30  ;;  %v23346_v36 = vadd.f32 %v17142_v18, %v34687_v1  ;;  %v23378_v56 = vadd.f32 %v18420_v5, %v34687_v1  ;;  %v34691_v7 = vld [vmem:[#allocation66_spill] sm:$0xff]  ;;  %v34692_v30 = vld [vmem:[#allocation21_spill] sm:$0xff] }
 0xba6   : > { %21914 = vst [vmem:[%s27686_s6 + $0xcc8] sm:$0xff] %v21402_v50  ;;  %21916 = vst [vmem:[%s27686_s6 + $0xcd8] sm:$0xff] %v21404_v44  ;;  %19211 = vmatprep.mubr.f32.mxu0 %v33848_v3  ;;  %20489 = vmatprep.mubr.f32.mxu1 %v33848_v3  ;;  %v21433_v13 = vmax.f32 %v23345_v58, 0.0 }
 0xba7   : > { %v21435_v38 = vmax.f32 %v23377_v33, 0.0  ;;  %v21434_v23 = vmax.f32 %v23346_v36, 0.0  ;;  %v21436_v34 = vmax.f32 %v23378_v56, 0.0  ;;  %v17147_v57 = vpop.f32.mrb[220].mxu0  ;;  %v18425_v35 = vpop.f32.mrb[220].mxu1 }
 0xba8   : > { %21945 = vst [vmem:[%s27686_s6 + $0xdc0] sm:$0xff] %v21433_v13  ;;  %v23347_v41 = vadd.f32 %v17147_v57, %v34689_v27  ;;  %v23379_v17 = vadd.f32 %v18425_v35, %v34689_v27  ;;  %v17149_v16 = vpop.f32.mrb[221].mxu0  ;;  %v18427_v20 = vpop.f32.mrb[221].mxu1  ;;  %v34693_v57 = vld [vmem:[#allocation22_spill] sm:$0xff]  ;;  %v34694_v35 = vld [vmem:[#allocation27_spill] sm:$0xff] }
 0xba9   : > { %21947 = vst [vmem:[%s27686_s6 + $0xdd0] sm:$0xff] %v21435_v38  ;;  %19215 = vmatmul.mubr.f32.gmra.mrb[230].mxu0 %v34690_v2  ;;  %20493 = vmatmul.mubr.f32.gmra.mrb[230].mxu1 %v34690_v2  ;;  %21946 = vst [vmem:[%s27686_s6 + $0xdc8] sm:$0xff] %v21434_v23  ;;  %v23348_v24 = vadd.f32 %v17149_v16, %v34689_v27  ;;  %v23380_v12 = vadd.f32 %v18427_v20, %v34689_v27  ;;  %v34697_v16 = vld [vmem:[#allocation35_spill] sm:$0xff]  ;;  %v34698_v20 = vld [vmem:[#allocation40_spill] sm:$0xff] }
 0xbaa   : > { %21948 = vst [vmem:[%s27686_s6 + $0xdd8] sm:$0xff] %v21436_v34  ;;  %19220 = vmatprep.mubr.f32.mxu0 %v33848_v3  ;;  %20498 = vmatprep.mubr.f32.mxu1 %v33848_v3  ;;  %v21465_v9 = vmax.f32 %v23347_v41, 0.0  ;;  %v21467_v52 = vmax.f32 %v23379_v17, 0.0  ;;  %v34695_v41 = vld [vmem:[#allocation28_spill] sm:$0xff]  ;;  %v34696_v17 = vld [vmem:[#allocation31_spill] sm:$0xff] }
 0xbab   : > { %v21466_v49 = vmax.f32 %v23348_v24, 0.0  ;;  %v21468_v50 = vmax.f32 %v23380_v12, 0.0  ;;  %v17154_v44 = vpop.f32.mrb[222].mxu0  ;;  %v18432_v26 = vpop.f32.mrb[222].mxu1  ;;  %v34699_v2 = vld [vmem:[#allocation44_spill] sm:$0xff] }
 0xbac   : > { %21977 = vst [vmem:[%s27686_s6 + $0xec0] sm:$0xff] %v21465_v9  ;;  %21979 = vst [vmem:[%s27686_s6 + $0xed0] sm:$0xff] %v21467_v52  ;;  %v23349_v58 = vadd.f32 %v17154_v44, %v34691_v7  ;;  %v23381_v33 = vadd.f32 %v18432_v26, %v34691_v7  ;;  %v17156_v18 = vpop.f32.mrb[223].mxu0  ;;  %v18434_v5 = vpop.f32.mrb[223].mxu1  ;;  %v34700_v24 = vld [vmem:[#allocation48_spill] sm:$0xff]  ;;  %v34702_v9 = vld [vmem:[#allocation54_spill] sm:$0xff] }
 0xbad   : > { %19224 = vmatmul.mubr.f32.gmra.mrb[232].mxu0 %v34692_v30  ;;  %20502 = vmatmul.mubr.f32.gmra.mrb[232].mxu1 %v34692_v30  ;;  %21978 = vst [vmem:[%s27686_s6 + $0xec8] sm:$0xff] %v21466_v49  ;;  %21980 = vst [vmem:[%s27686_s6 + $0xed8] sm:$0xff] %v21468_v50  ;;  %v23350_v36 = vadd.f32 %v17156_v18, %v34691_v7  ;;  %v23382_v56 = vadd.f32 %v18434_v5, %v34691_v7  ;;  %v34701_v12 = vld [vmem:[#allocation52_spill] sm:$0xff]  ;;  %v34703_v52 = vld [vmem:[#allocation57_spill] sm:$0xff] }
 0xbae   : > { %19229 = vmatprep.mubr.f32.mxu0 %v33848_v3  ;;  %20507 = vmatprep.mubr.f32.mxu1 %v33848_v3  ;;  %v21497_v13 = vmax.f32 %v23349_v58, 0.0  ;;  %v21499_v38 = vmax.f32 %v23381_v33, 0.0 }
 0xbaf   : > { %v21498_v23 = vmax.f32 %v23350_v36, 0.0  ;;  %v21500_v34 = vmax.f32 %v23382_v56, 0.0 }
 0xbb0   : > { %22009 = vst [vmem:[%s27686_s6 + $0xfc0] sm:$0xff] %v21497_v13  ;;  %22011 = vst [vmem:[%s27686_s6 + $0xfd0] sm:$0xff] %v21499_v38 }
 0xbb1   : > { %19233 = vmatmul.mubr.f32.gmra.mrb[234].mxu0 %v34693_v57  ;;  %20511 = vmatmul.mubr.f32.gmra.mrb[234].mxu1 %v34693_v57  ;;  %22010 = vst [vmem:[%s27686_s6 + $0xfc8] sm:$0xff] %v21498_v23  ;;  %22012 = vst [vmem:[%s27686_s6 + $0xfd8] sm:$0xff] %v21500_v34 }
 0xbb2   : > { %19238 = vmatprep.mubr.f32.mxu0 %v33848_v3  ;;  %20516 = vmatprep.mubr.f32.mxu1 %v33848_v3 }
 0xbb5   : > { %19242 = vmatmul.mubr.f32.gmra.mrb[236].mxu0 %v34694_v35  ;;  %20520 = vmatmul.mubr.f32.gmra.mrb[236].mxu1 %v34694_v35 }
 0xbb6   : > { %19247 = vmatprep.mubr.f32.mxu0 %v33848_v3  ;;  %20525 = vmatprep.mubr.f32.mxu1 %v33848_v3 }
 0xbb9   : > { %19251 = vmatmul.mubr.f32.gmra.mrb[238].mxu0 %v34695_v41  ;;  %20529 = vmatmul.mubr.f32.gmra.mrb[238].mxu1 %v34695_v41 }
 0xbba   : > { %19256 = vmatprep.mubr.f32.mxu0 %v33848_v3  ;;  %20534 = vmatprep.mubr.f32.mxu1 %v33848_v3 }
 0xbbd   : > { %19260 = vmatmul.mubr.f32.gmra.mrb[240].mxu0 %v34696_v17  ;;  %20538 = vmatmul.mubr.f32.gmra.mrb[240].mxu1 %v34696_v17 }
 0xbbe   : > { %19265 = vmatprep.mubr.f32.mxu0 %v33848_v3  ;;  %20543 = vmatprep.mubr.f32.mxu1 %v33848_v3 }
 0xbc1   : > { %19269 = vmatmul.mubr.f32.gmra.mrb[242].mxu0 %v34697_v16  ;;  %20547 = vmatmul.mubr.f32.gmra.mrb[242].mxu1 %v34697_v16 }
 0xbc2   : > { %19274 = vmatprep.mubr.f32.mxu0 %v33848_v3  ;;  %20552 = vmatprep.mubr.f32.mxu1 %v33848_v3 }
 0xbc5   : > { %19278 = vmatmul.mubr.f32.gmra.mrb[244].mxu0 %v34698_v20  ;;  %20556 = vmatmul.mubr.f32.gmra.mrb[244].mxu1 %v34698_v20 }
 0xbc6   : > { %19283 = vmatprep.mubr.f32.mxu0 %v33848_v3  ;;  %20561 = vmatprep.mubr.f32.mxu1 %v33848_v3 }
 0xbc9   : > { %19287 = vmatmul.mubr.f32.gmra.mrb[246].mxu0 %v34699_v2  ;;  %20565 = vmatmul.mubr.f32.gmra.mrb[246].mxu1 %v34699_v2 }
 0xbca   : > { %19292 = vmatprep.mubr.f32.mxu0 %v33848_v3  ;;  %20570 = vmatprep.mubr.f32.mxu1 %v33848_v3 }
 0xbcd   : > { %19296 = vmatmul.mubr.f32.gmra.mrb[248].mxu0 %v34700_v24  ;;  %20574 = vmatmul.mubr.f32.gmra.mrb[248].mxu1 %v34700_v24 }
 0xbce   : > { %19301 = vmatprep.mubr.f32.mxu0 %v33848_v3  ;;  %20579 = vmatprep.mubr.f32.mxu1 %v33848_v3 }
 0xbd1   : > { %19305 = vmatmul.mubr.f32.gmra.mrb[250].mxu0 %v34701_v12  ;;  %20583 = vmatmul.mubr.f32.gmra.mrb[250].mxu1 %v34701_v12 }
 0xbd2   : > { %19310 = vmatprep.mubr.f32.mxu0 %v33848_v3  ;;  %20588 = vmatprep.mubr.f32.mxu1 %v33848_v3 }
 0xbd5   : > { %19314 = vmatmul.mubr.f32.gmra.mrb[252].mxu0 %v34702_v9  ;;  %20592 = vmatmul.mubr.f32.gmra.mrb[252].mxu1 %v34702_v9 }
 0xbd6   : > { %19319 = vmatprep.mubr.f32.mxu0 %v33848_v3  ;;  %20597 = vmatprep.mubr.f32.mxu1 %v33848_v3 }
 0xbd9   : > { %19323 = vmatmul.mubr.f32.gmra.mrb[254].mxu0 %v34703_v52  ;;  %20601 = vmatmul.mubr.f32.gmra.mrb[254].mxu1 %v34703_v52 }
 0xbda   : > { %19417 = vmatprep.mubr.f32.mxu0 %v33848_v3  ;;  %20695 = vmatprep.mubr.f32.mxu1 %v33848_v3 }
 0xbdd   : > { %19419 = vmatmul.mubr.f32.vlgmr.msra.gmra.mrb[224].mxu0 %v26412_v51  ;;  %20697 = vmatmul.mubr.f32.vlgmr.msra.gmra.mrb[224].mxu1 %v26412_v51 }
 0xbde   : > { %22882 = vmatpush1.bf16.msra.mxu0 %v34635_v0  ;;  %22930 = vmatpush1.bf16.msra.mxu1 %v34636_v43 }
 0xbdf   : > { %19424 = vmatprep.mubr.f32.mxu0 %v33848_v3  ;;  %20702 = vmatprep.mubr.f32.mxu1 %v33848_v3 }
 0xbe0   : > { %22884 = vmatprep.subr.bf16.mxu0 %v34637_v10  ;;  %22932 = vmatprep.subr.bf16.mxu1 %v34638_v28 }
 0xbe1   : > { %19426 = vmatmul.mubr.f32.gmra.mrb[226].mxu0 %v26465_v62  ;;  %20704 = vmatmul.mubr.f32.gmra.mrb[226].mxu1 %v26465_v62 }
 0xbe2   : > { %19431 = vmatprep.mubr.f32.mxu0 %v33848_v3  ;;  %20709 = vmatprep.mubr.f32.mxu1 %v33848_v3 }
 0xbe3   : > { %22886 = vmatpush1.bf16.msra.mxu0 %v34644_v39  ;;  %22934 = vmatpush1.bf16.msra.mxu1 %v34645_v32 }
 0xbe5   : > { %19433 = vmatmul.mubr.f32.gmra.mrb[228].mxu0 %v26468_v6  ;;  %20711 = vmatmul.mubr.f32.gmra.mrb[228].mxu1 %v26468_v6 }
 0xbe6   : > { %19438 = vmatprep.mubr.f32.mxu0 %v33848_v3  ;;  %20716 = vmatprep.mubr.f32.mxu1 %v33848_v3 }
 0xbe9   : > { %19440 = vmatmul.mubr.f32.gmra.mrb[230].mxu0 %v26476_v8  ;;  %20718 = vmatmul.mubr.f32.gmra.mrb[230].mxu1 %v26476_v8 }
 0xbea   : > { %19445 = vmatprep.mubr.f32.mxu0 %v33848_v3  ;;  %20723 = vmatprep.mubr.f32.mxu1 %v33848_v3 }
 0xbed   : > { %19447 = vmatmul.mubr.f32.gmra.mrb[232].mxu0 %v26483_v25  ;;  %20725 = vmatmul.mubr.f32.gmra.mrb[232].mxu1 %v26483_v25 }
 0xbee   : > { %19452 = vmatprep.mubr.f32.mxu0 %v33848_v3  ;;  %20730 = vmatprep.mubr.f32.mxu1 %v33848_v3 }
 0xbf1   : > { %19454 = vmatmul.mubr.f32.gmra.mrb[234].mxu0 %v26485_v47  ;;  %20732 = vmatmul.mubr.f32.gmra.mrb[234].mxu1 %v26485_v47 }
 0xbf2   : > { %19459 = vmatprep.mubr.f32.mxu0 %v33848_v3  ;;  %20737 = vmatprep.mubr.f32.mxu1 %v33848_v3 }
 0xbf5   : > { %19461 = vmatmul.mubr.f32.gmra.mrb[236].mxu0 %v26530_v11  ;;  %20739 = vmatmul.mubr.f32.gmra.mrb[236].mxu1 %v26530_v11 }
 0xbf6   : > { %19466 = vmatprep.mubr.f32.mxu0 %v33848_v3  ;;  %20744 = vmatprep.mubr.f32.mxu1 %v33848_v3 }
 0xbf9   : > { %19468 = vmatmul.mubr.f32.gmra.mrb[238].mxu0 %v26532_v59  ;;  %20746 = vmatmul.mubr.f32.gmra.mrb[238].mxu1 %v26532_v59 }
 0xbfa   : > { %19473 = vmatprep.mubr.f32.mxu0 %v33848_v3  ;;  %20751 = vmatprep.mubr.f32.mxu1 %v33848_v3 }
 0xbfd   : > { %19475 = vmatmul.mubr.f32.gmra.mrb[240].mxu0 %v26586_v46  ;;  %20753 = vmatmul.mubr.f32.gmra.mrb[240].mxu1 %v26586_v46 }
 0xbfe   : > { %19480 = vmatprep.mubr.f32.mxu0 %v33848_v3  ;;  %20758 = vmatprep.mubr.f32.mxu1 %v33848_v3 }
 0xc01   : > { %19482 = vmatmul.mubr.f32.gmra.mrb[242].mxu0 %v26646_v61  ;;  %20760 = vmatmul.mubr.f32.gmra.mrb[242].mxu1 %v26646_v61 }
 0xc02   : > { %19487 = vmatprep.mubr.f32.mxu0 %v33848_v3  ;;  %20765 = vmatprep.mubr.f32.mxu1 %v33848_v3 }
 0xc05   : > { %19489 = vmatmul.mubr.f32.gmra.mrb[244].mxu0 %v26665_v60  ;;  %20767 = vmatmul.mubr.f32.gmra.mrb[244].mxu1 %v26665_v60 }
 0xc06   : > { %19494 = vmatprep.mubr.f32.mxu0 %v33848_v3  ;;  %20772 = vmatprep.mubr.f32.mxu1 %v33848_v3 }
 0xc09   : > { %19496 = vmatmul.mubr.f32.gmra.mrb[246].mxu0 %v34630_v55  ;;  %20774 = vmatmul.mubr.f32.gmra.mrb[246].mxu1 %v34630_v55 }
 0xc0a   : > { %19501 = vmatprep.mubr.f32.mxu0 %v33848_v3  ;;  %20779 = vmatprep.mubr.f32.mxu1 %v33848_v3 }
 0xc0d   : > { %19503 = vmatmul.mubr.f32.gmra.mrb[248].mxu0 %v34631_v19  ;;  %20781 = vmatmul.mubr.f32.gmra.mrb[248].mxu1 %v34631_v19 }
 0xc0e   : > { %19508 = vmatprep.mubr.f32.mxu0 %v33848_v3  ;;  %20786 = vmatprep.mubr.f32.mxu1 %v33848_v3 }
 0xc11   : > { %19510 = vmatmul.mubr.f32.gmra.mrb[250].mxu0 %v34632_v37  ;;  %20788 = vmatmul.mubr.f32.gmra.mrb[250].mxu1 %v34632_v37 }
 0xc12   : > { %19515 = vmatprep.mubr.f32.mxu0 %v33848_v3  ;;  %20793 = vmatprep.mubr.f32.mxu1 %v33848_v3 }
 0xc15   : > { %19517 = vmatmul.mubr.f32.gmra.mrb[252].mxu0 %v34633_v14  ;;  %20795 = vmatmul.mubr.f32.gmra.mrb[252].mxu1 %v34633_v14 }
 0xc16   : > { %19522 = vmatprep.mubr.f32.mxu0 %v33848_v3  ;;  %20800 = vmatprep.mubr.f32.mxu1 %v33848_v3 }
 0xc19   : > { %19524 = vmatmul.mubr.f32.gmra.mrb[254].mxu0 %v26756_v48  ;;  %20802 = vmatmul.mubr.f32.gmra.mrb[254].mxu1 %v26756_v48 }
 0xc1a   : > { %19602 = vmatprep.mubr.f32.mxu0 %v33848_v3  ;;  %20880 = vmatprep.mubr.f32.mxu1 %v33848_v3 }
 0xc1d   : > { %19604 = vmatmul.mubr.f32.vlgmr.msra.gmra.mrb[224].mxu0 %v26412_v51  ;;  %20882 = vmatmul.mubr.f32.vlgmr.msra.gmra.mrb[224].mxu1 %v26412_v51 }
 0xc1e   : > { %19609 = vmatprep.mubr.f32.mxu0 %v33848_v3  ;;  %20887 = vmatprep.mubr.f32.mxu1 %v33848_v3 }
 0xc21   : > { %19611 = vmatmul.mubr.f32.gmra.mrb[226].mxu0 %v26465_v62  ;;  %20889 = vmatmul.mubr.f32.gmra.mrb[226].mxu1 %v26465_v62 }
 0xc22   : > { %19616 = vmatprep.mubr.f32.mxu0 %v33848_v3  ;;  %20894 = vmatprep.mubr.f32.mxu1 %v33848_v3 }
 0xc25   : > { %19618 = vmatmul.mubr.f32.gmra.mrb[228].mxu0 %v26468_v6  ;;  %20896 = vmatmul.mubr.f32.gmra.mrb[228].mxu1 %v26468_v6 }
 0xc26   : > { %19623 = vmatprep.mubr.f32.mxu0 %v33848_v3  ;;  %20901 = vmatprep.mubr.f32.mxu1 %v33848_v3 }
 0xc29   : > { %19625 = vmatmul.mubr.f32.gmra.mrb[230].mxu0 %v26476_v8  ;;  %20903 = vmatmul.mubr.f32.gmra.mrb[230].mxu1 %v26476_v8 }
 0xc2a   : > { %19630 = vmatprep.mubr.f32.mxu0 %v33848_v3  ;;  %20908 = vmatprep.mubr.f32.mxu1 %v33848_v3 }
 0xc2d   : > { %19632 = vmatmul.mubr.f32.gmra.mrb[232].mxu0 %v26483_v25  ;;  %20910 = vmatmul.mubr.f32.gmra.mrb[232].mxu1 %v26483_v25 }
 0xc2e   : > { %19637 = vmatprep.mubr.f32.mxu0 %v33848_v3  ;;  %20915 = vmatprep.mubr.f32.mxu1 %v33848_v3 }
 0xc31   : > { %19639 = vmatmul.mubr.f32.gmra.mrb[234].mxu0 %v26485_v47  ;;  %20917 = vmatmul.mubr.f32.gmra.mrb[234].mxu1 %v26485_v47 }
 0xc32   : > { %19644 = vmatprep.mubr.f32.mxu0 %v33848_v3  ;;  %20922 = vmatprep.mubr.f32.mxu1 %v33848_v3 }
 0xc35   : > { %19646 = vmatmul.mubr.f32.gmra.mrb[236].mxu0 %v26530_v11  ;;  %20924 = vmatmul.mubr.f32.gmra.mrb[236].mxu1 %v26530_v11 }
 0xc36   : > { %19651 = vmatprep.mubr.f32.mxu0 %v33848_v3  ;;  %20929 = vmatprep.mubr.f32.mxu1 %v33848_v3 }
 0xc39   : > { %19653 = vmatmul.mubr.f32.gmra.mrb[238].mxu0 %v26532_v59  ;;  %20931 = vmatmul.mubr.f32.gmra.mrb[238].mxu1 %v26532_v59 }
 0xc3a   : > { %19658 = vmatprep.mubr.f32.mxu0 %v33848_v3  ;;  %20936 = vmatprep.mubr.f32.mxu1 %v33848_v3 }
 0xc3d   : > { %19660 = vmatmul.mubr.f32.gmra.mrb[240].mxu0 %v26586_v46  ;;  %20938 = vmatmul.mubr.f32.gmra.mrb[240].mxu1 %v26586_v46 }
 0xc3e   : > { %19665 = vmatprep.mubr.f32.mxu0 %v33848_v3  ;;  %20943 = vmatprep.mubr.f32.mxu1 %v33848_v3 }
 0xc41   : > { %19667 = vmatmul.mubr.f32.gmra.mrb[242].mxu0 %v26646_v61  ;;  %20945 = vmatmul.mubr.f32.gmra.mrb[242].mxu1 %v26646_v61 }
 0xc42   : > { %19672 = vmatprep.mubr.f32.mxu0 %v33848_v3  ;;  %20950 = vmatprep.mubr.f32.mxu1 %v33848_v3 }
 0xc45   : > { %19674 = vmatmul.mubr.f32.gmra.mrb[244].mxu0 %v26665_v60  ;;  %20952 = vmatmul.mubr.f32.gmra.mrb[244].mxu1 %v26665_v60 }
 0xc46   : > { %19679 = vmatprep.mubr.f32.mxu0 %v33848_v3  ;;  %20957 = vmatprep.mubr.f32.mxu1 %v33848_v3 }
 0xc49   : > { %19681 = vmatmul.mubr.f32.gmra.mrb[246].mxu0 %v34630_v55  ;;  %20959 = vmatmul.mubr.f32.gmra.mrb[246].mxu1 %v34630_v55 }
 0xc4a   : > { %19686 = vmatprep.mubr.f32.mxu0 %v33848_v3  ;;  %20964 = vmatprep.mubr.f32.mxu1 %v33848_v3 }
 0xc4d   : > { %19688 = vmatmul.mubr.f32.gmra.mrb[248].mxu0 %v34631_v19  ;;  %20966 = vmatmul.mubr.f32.gmra.mrb[248].mxu1 %v34631_v19 }
 0xc4e   : > { %19693 = vmatprep.mubr.f32.mxu0 %v33848_v3  ;;  %20971 = vmatprep.mubr.f32.mxu1 %v33848_v3 }
 0xc51   : > { %19695 = vmatmul.mubr.f32.gmra.mrb[250].mxu0 %v34632_v37  ;;  %20973 = vmatmul.mubr.f32.gmra.mrb[250].mxu1 %v34632_v37 }
 0xc52   : > { %19700 = vmatprep.mubr.f32.mxu0 %v33848_v3  ;;  %20978 = vmatprep.mubr.f32.mxu1 %v33848_v3 }
 0xc55   : > { %19702 = vmatmul.mubr.f32.gmra.mrb[252].mxu0 %v34633_v14  ;;  %20980 = vmatmul.mubr.f32.gmra.mrb[252].mxu1 %v34633_v14 }
 0xc56   : > { %19707 = vmatprep.mubr.f32.mxu0 %v33848_v3  ;;  %20985 = vmatprep.mubr.f32.mxu1 %v33848_v3 }
 0xc59   : > { %19709 = vmatmul.mubr.f32.gmra.mrb[254].mxu0 %v26756_v48  ;;  %20987 = vmatmul.mubr.f32.gmra.mrb[254].mxu1 %v26756_v48 }
 0xcf0   : > { %v19605_v51 = vpop.f32.mrb[224].mxu0  ;;  %v20883_v59 = vpop.f32.mrb[224].mxu1 }
 0xcf1   : > { %v23383_v62 = vadd.f32 %v19605_v51, %v34649_v4  ;;  %v23415_v6 = vadd.f32 %v20883_v59, %v34649_v4  ;;  %v19607_v8 = vpop.f32.mrb[225].mxu0  ;;  %v20885_v25 = vpop.f32.mrb[225].mxu1 }
 0xcf2   : > { %v23384_v47 = vadd.f32 %v19607_v8, %v34649_v4  ;;  %v23416_v11 = vadd.f32 %v20885_v25, %v34649_v4 }
 0xcf3   : > { %v21021_v46 = vmax.f32 %v23383_v62, 0.0  ;;  %v21023_v3 = vmax.f32 %v23415_v6, 0.0 }
 0xcf4   : > { %v21022_v61 = vmax.f32 %v23384_v47, 0.0  ;;  %v21024_v60 = vmax.f32 %v23416_v11, 0.0  ;;  %v19612_v48 = vpop.f32.mrb[226].mxu0  ;;  %v20890_v55 = vpop.f32.mrb[226].mxu1 }
 0xcf5   : > { %21533 = vst [vmem:[%s27686_s6 + $0xe0] sm:$0xff] %v21021_v46  ;;  %21535 = vst [vmem:[%s27686_s6 + $0xf0] sm:$0xff] %v21023_v3  ;;  %v23385_v19 = vadd.f32 %v19612_v48, %v34651_v53  ;;  %v23417_v37 = vadd.f32 %v20890_v55, %v34651_v53  ;;  %v19614_v14 = vpop.f32.mrb[227].mxu0  ;;  %v20892_v0 = vpop.f32.mrb[227].mxu1 }
 0xcf6   : > { %21534 = vst [vmem:[%s27686_s6 + $0xe8] sm:$0xff] %v21022_v61  ;;  %21536 = vst [vmem:[%s27686_s6 + $0xf8] sm:$0xff] %v21024_v60  ;;  %v23386_v43 = vadd.f32 %v19614_v14, %v34651_v53  ;;  %v23418_v10 = vadd.f32 %v20892_v0, %v34651_v53 }
 0xcf7   : > { %v21053_v28 = vmax.f32 %v23385_v19, 0.0  ;;  %v21055_v39 = vmax.f32 %v23417_v37, 0.0 }
 0xcf8   : > { %v21054_v32 = vmax.f32 %v23386_v43, 0.0  ;;  %v21056_v4 = vmax.f32 %v23418_v10, 0.0  ;;  %v19619_v49 = vpop.f32.mrb[228].mxu0  ;;  %v20897_v50 = vpop.f32.mrb[228].mxu1 }
 0xcf9   : > { %21565 = vst [vmem:[%s27686_s6 + $0x1e0] sm:$0xff] %v21053_v28  ;;  %21567 = vst [vmem:[%s27686_s6 + $0x1f0] sm:$0xff] %v21055_v39  ;;  %v23387_v44 = vadd.f32 %v19619_v49, %v34653_v31  ;;  %v23419_v26 = vadd.f32 %v20897_v50, %v34653_v31  ;;  %v19621_v58 = vpop.f32.mrb[229].mxu0  ;;  %v20899_v33 = vpop.f32.mrb[229].mxu1 }
 0xcfa   : > { %21566 = vst [vmem:[%s27686_s6 + $0x1e8] sm:$0xff] %v21054_v32  ;;  %21568 = vst [vmem:[%s27686_s6 + $0x1f8] sm:$0xff] %v21056_v4  ;;  %v23388_v53 = vadd.f32 %v19621_v58, %v34653_v31  ;;  %v23420_v18 = vadd.f32 %v20899_v33, %v34653_v31 }
 0xcfb   : > { %v21085_v5 = vmax.f32 %v23387_v44, 0.0  ;;  %v21087_v30 = vmax.f32 %v23419_v26, 0.0 }
 0xcfc   : > { %v21086_v36 = vmax.f32 %v23388_v53, 0.0  ;;  %v21088_v56 = vmax.f32 %v23420_v18, 0.0  ;;  %v19626_v13 = vpop.f32.mrb[230].mxu0  ;;  %v20904_v38 = vpop.f32.mrb[230].mxu1 }
 0xcfd   : > { %21597 = vst [vmem:[%s27686_s6 + $0x2e0] sm:$0xff] %v21085_v5  ;;  %21599 = vst [vmem:[%s27686_s6 + $0x2f0] sm:$0xff] %v21087_v30  ;;  %v23389_v23 = vadd.f32 %v19626_v13, %v34655_v63  ;;  %v23421_v34 = vadd.f32 %v20904_v38, %v34655_v63  ;;  %v19628_v57 = vpop.f32.mrb[231].mxu0  ;;  %v20906_v35 = vpop.f32.mrb[231].mxu1 }
 0xcfe   : > { %21598 = vst [vmem:[%s27686_s6 + $0x2e8] sm:$0xff] %v21086_v36  ;;  %21600 = vst [vmem:[%s27686_s6 + $0x2f8] sm:$0xff] %v21088_v56  ;;  %v23390_v31 = vadd.f32 %v19628_v57, %v34655_v63  ;;  %v23422_v41 = vadd.f32 %v20906_v35, %v34655_v63 }
 0xcff   : > { %v21117_v17 = vmax.f32 %v23389_v23, 0.0  ;;  %v21119_v16 = vmax.f32 %v23421_v34, 0.0 }
 0xd00   : > { %v21118_v20 = vmax.f32 %v23390_v31, 0.0  ;;  %v21120_v2 = vmax.f32 %v23422_v41, 0.0  ;;  %v19633_v24 = vpop.f32.mrb[232].mxu0  ;;  %v20911_v12 = vpop.f32.mrb[232].mxu1 }
 0xd01   : > { %21629 = vst [vmem:[%s27686_s6 + $0x3e0] sm:$0xff] %v21117_v17  ;;  %21631 = vst [vmem:[%s27686_s6 + $0x3f0] sm:$0xff] %v21119_v16  ;;  %v23391_v9 = vadd.f32 %v19633_v24, %v34657_v40  ;;  %v23423_v52 = vadd.f32 %v20911_v12, %v34657_v40  ;;  %v19635_v51 = vpop.f32.mrb[233].mxu0  ;;  %v20913_v59 = vpop.f32.mrb[233].mxu1 }
 0xd02   : > { %21630 = vst [vmem:[%s27686_s6 + $0x3e8] sm:$0xff] %v21118_v20  ;;  %21632 = vst [vmem:[%s27686_s6 + $0x3f8] sm:$0xff] %v21120_v2  ;;  %v23392_v63 = vadd.f32 %v19635_v51, %v34657_v40  ;;  %v23424_v62 = vadd.f32 %v20913_v59, %v34657_v40 }
 0xd03   : > { %v21149_v6 = vmax.f32 %v23391_v9, 0.0  ;;  %v21151_v8 = vmax.f32 %v23423_v52, 0.0 }
 0xd04   : > { %v21150_v25 = vmax.f32 %v23392_v63, 0.0  ;;  %v21152_v47 = vmax.f32 %v23424_v62, 0.0  ;;  %v19640_v11 = vpop.f32.mrb[234].mxu0  ;;  %v20918_v46 = vpop.f32.mrb[234].mxu1 }
 0xd05   : > { %21661 = vst [vmem:[%s27686_s6 + $0x4e0] sm:$0xff] %v21149_v6  ;;  %21663 = vst [vmem:[%s27686_s6 + $0x4f0] sm:$0xff] %v21151_v8  ;;  %v23393_v3 = vadd.f32 %v19640_v11, %v34659_v45  ;;  %v23425_v61 = vadd.f32 %v20918_v46, %v34659_v45  ;;  %v19642_v60 = vpop.f32.mrb[235].mxu0  ;;  %v20920_v48 = vpop.f32.mrb[235].mxu1 }
 0xd06   : > { %21662 = vst [vmem:[%s27686_s6 + $0x4e8] sm:$0xff] %v21150_v25  ;;  %21664 = vst [vmem:[%s27686_s6 + $0x4f8] sm:$0xff] %v21152_v47  ;;  %v23394_v40 = vadd.f32 %v19642_v60, %v34659_v45  ;;  %v23426_v55 = vadd.f32 %v20920_v48, %v34659_v45  ;;  %v34704_v60 = vld [vmem:[#allocation61_spill] sm:$0xff] }
 0xd07   : > { %v21181_v19 = vmax.f32 %v23393_v3, 0.0  ;;  %v21183_v37 = vmax.f32 %v23425_v61, 0.0 }
 0xd08   : > { %v21182_v14 = vmax.f32 %v23394_v40, 0.0  ;;  %v21184_v0 = vmax.f32 %v23426_v55, 0.0  ;;  %v19647_v43 = vpop.f32.mrb[236].mxu0  ;;  %v20925_v10 = vpop.f32.mrb[236].mxu1 }
 0xd09   : > { %21693 = vst [vmem:[%s27686_s6 + $0x5e0] sm:$0xff] %v21181_v19  ;;  %21695 = vst [vmem:[%s27686_s6 + $0x5f0] sm:$0xff] %v21183_v37  ;;  %v23395_v28 = vadd.f32 %v19647_v43, %v34661_v29  ;;  %v23427_v39 = vadd.f32 %v20925_v10, %v34661_v29  ;;  %v19649_v32 = vpop.f32.mrb[237].mxu0  ;;  %v20927_v4 = vpop.f32.mrb[237].mxu1 }
 0xd0a   : > { %21694 = vst [vmem:[%s27686_s6 + $0x5e8] sm:$0xff] %v21182_v14  ;;  %21696 = vst [vmem:[%s27686_s6 + $0x5f8] sm:$0xff] %v21184_v0  ;;  %v23396_v45 = vadd.f32 %v19649_v32, %v34661_v29  ;;  %v23428_v49 = vadd.f32 %v20927_v4, %v34661_v29 }
 0xd0b   : > { %v21213_v50 = vmax.f32 %v23395_v28, 0.0  ;;  %v21215_v44 = vmax.f32 %v23427_v39, 0.0 }
 0xd0c   : > { %v21214_v26 = vmax.f32 %v23396_v45, 0.0  ;;  %v21216_v58 = vmax.f32 %v23428_v49, 0.0  ;;  %v19654_v33 = vpop.f32.mrb[238].mxu0  ;;  %v20932_v53 = vpop.f32.mrb[238].mxu1 }
 0xd0d   : > { %21725 = vst [vmem:[%s27686_s6 + $0x6e0] sm:$0xff] %v21213_v50  ;;  %21727 = vst [vmem:[%s27686_s6 + $0x6f0] sm:$0xff] %v21215_v44  ;;  %v23397_v18 = vadd.f32 %v19654_v33, %v34663_v15  ;;  %v23429_v5 = vadd.f32 %v20932_v53, %v34663_v15  ;;  %v19656_v30 = vpop.f32.mrb[239].mxu0  ;;  %v20934_v36 = vpop.f32.mrb[239].mxu1 }
 0xd0e   : > { %21726 = vst [vmem:[%s27686_s6 + $0x6e8] sm:$0xff] %v21214_v26  ;;  %21728 = vst [vmem:[%s27686_s6 + $0x6f8] sm:$0xff] %v21216_v58  ;;  %v23398_v29 = vadd.f32 %v19656_v30, %v34663_v15  ;;  %v23430_v56 = vadd.f32 %v20934_v36, %v34663_v15 }
 0xd0f   : > { %v21245_v13 = vmax.f32 %v23397_v18, 0.0  ;;  %v21247_v38 = vmax.f32 %v23429_v5, 0.0 }
 0xd10   : > { %v21246_v23 = vmax.f32 %v23398_v29, 0.0  ;;  %v21248_v34 = vmax.f32 %v23430_v56, 0.0  ;;  %v19661_v57 = vpop.f32.mrb[240].mxu0  ;;  %v20939_v35 = vpop.f32.mrb[240].mxu1 }
 0xd11   : > { %21757 = vst [vmem:[%s27686_s6 + $0x7e0] sm:$0xff] %v21245_v13  ;;  %21759 = vst [vmem:[%s27686_s6 + $0x7f0] sm:$0xff] %v21247_v38  ;;  %v23399_v31 = vadd.f32 %v19661_v57, %v34665_v42  ;;  %v23431_v41 = vadd.f32 %v20939_v35, %v34665_v42  ;;  %v19663_v17 = vpop.f32.mrb[241].mxu0  ;;  %v20941_v16 = vpop.f32.mrb[241].mxu1 }
 0xd12   : > { %21758 = vst [vmem:[%s27686_s6 + $0x7e8] sm:$0xff] %v21246_v23  ;;  %21760 = vst [vmem:[%s27686_s6 + $0x7f8] sm:$0xff] %v21248_v34  ;;  %v23400_v15 = vadd.f32 %v19663_v17, %v34665_v42  ;;  %v23432_v20 = vadd.f32 %v20941_v16, %v34665_v42 }
 0xd13   : > { %v21277_v2 = vmax.f32 %v23399_v31, 0.0  ;;  %v21279_v24 = vmax.f32 %v23431_v41, 0.0 }
 0xd14   : > { %v21278_v12 = vmax.f32 %v23400_v15, 0.0  ;;  %v21280_v9 = vmax.f32 %v23432_v20, 0.0  ;;  %v19668_v52 = vpop.f32.mrb[242].mxu0  ;;  %v20946_v51 = vpop.f32.mrb[242].mxu1 }
 0xd15   : > { %21789 = vst [vmem:[%s27686_s6 + $0x8e0] sm:$0xff] %v21277_v2  ;;  %21791 = vst [vmem:[%s27686_s6 + $0x8f0] sm:$0xff] %v21279_v24  ;;  %v23401_v59 = vadd.f32 %v19668_v52, %v34667_v21  ;;  %v23433_v63 = vadd.f32 %v20946_v51, %v34667_v21  ;;  %v19670_v62 = vpop.f32.mrb[243].mxu0  ;;  %v20948_v6 = vpop.f32.mrb[243].mxu1 }
 0xd16   : > { %21790 = vst [vmem:[%s27686_s6 + $0x8e8] sm:$0xff] %v21278_v12  ;;  %21792 = vst [vmem:[%s27686_s6 + $0x8f8] sm:$0xff] %v21280_v9  ;;  %v23402_v42 = vadd.f32 %v19670_v62, %v34667_v21  ;;  %v23434_v8 = vadd.f32 %v20948_v6, %v34667_v21 }
 0xd17   : > { %v21309_v25 = vmax.f32 %v23401_v59, 0.0  ;;  %v21311_v47 = vmax.f32 %v23433_v63, 0.0 }
 0xd18   : > { %v21310_v11 = vmax.f32 %v23402_v42, 0.0  ;;  %v21312_v46 = vmax.f32 %v23434_v8, 0.0  ;;  %v19675_v3 = vpop.f32.mrb[244].mxu0  ;;  %v20953_v61 = vpop.f32.mrb[244].mxu1 }
 0xd19   : > { %21821 = vst [vmem:[%s27686_s6 + $0x9e0] sm:$0xff] %v21309_v25  ;;  %21823 = vst [vmem:[%s27686_s6 + $0x9f0] sm:$0xff] %v21311_v47  ;;  %v23403_v48 = vadd.f32 %v19675_v3, %v34704_v60  ;;  %v23435_v40 = vadd.f32 %v20953_v61, %v34704_v60  ;;  %v19677_v55 = vpop.f32.mrb[245].mxu0  ;;  %v20955_v19 = vpop.f32.mrb[245].mxu1 }
 0xd1a   : > { %21822 = vst [vmem:[%s27686_s6 + $0x9e8] sm:$0xff] %v21310_v11  ;;  %21824 = vst [vmem:[%s27686_s6 + $0x9f8] sm:$0xff] %v21312_v46  ;;  %v23404_v21 = vadd.f32 %v19677_v55, %v34704_v60  ;;  %v23436_v37 = vadd.f32 %v20955_v19, %v34704_v60 }
 0xd1b   : > { %v21341_v14 = vmax.f32 %v23403_v48, 0.0  ;;  %v21343_v0 = vmax.f32 %v23435_v40, 0.0 }
 0xd1c   : > { %v21342_v43 = vmax.f32 %v23404_v21, 0.0  ;;  %v21344_v10 = vmax.f32 %v23436_v37, 0.0  ;;  %v19682_v28 = vpop.f32.mrb[246].mxu0  ;;  %v20960_v39 = vpop.f32.mrb[246].mxu1 }
 0xd1d   : > { %21853 = vst [vmem:[%s27686_s6 + $0xae0] sm:$0xff] %v21341_v14  ;;  %21855 = vst [vmem:[%s27686_s6 + $0xaf0] sm:$0xff] %v21343_v0  ;;  %v23405_v32 = vadd.f32 %v19682_v28, %v34679_v22  ;;  %v23437_v4 = vadd.f32 %v20960_v39, %v34679_v22  ;;  %v19684_v45 = vpop.f32.mrb[247].mxu0  ;;  %v20962_v49 = vpop.f32.mrb[247].mxu1 }
 0xd1e   : > { %21854 = vst [vmem:[%s27686_s6 + $0xae8] sm:$0xff] %v21342_v43  ;;  %21856 = vst [vmem:[%s27686_s6 + $0xaf8] sm:$0xff] %v21344_v10  ;;  %v23406_v50 = vadd.f32 %v19684_v45, %v34679_v22  ;;  %v23438_v44 = vadd.f32 %v20962_v49, %v34679_v22 }
 0xd1f   : > { %v21373_v26 = vmax.f32 %v23405_v32, 0.0  ;;  %v21375_v58 = vmax.f32 %v23437_v4, 0.0 }
 0xd20   : > { %v21374_v33 = vmax.f32 %v23406_v50, 0.0  ;;  %v21376_v53 = vmax.f32 %v23438_v44, 0.0  ;;  %v19689_v18 = vpop.f32.mrb[248].mxu0  ;;  %v20967_v5 = vpop.f32.mrb[248].mxu1 }
 0xd21   : > { %21885 = vst [vmem:[%s27686_s6 + $0xbe0] sm:$0xff] %v21373_v26  ;;  %21887 = vst [vmem:[%s27686_s6 + $0xbf0] sm:$0xff] %v21375_v58  ;;  %v23407_v30 = vadd.f32 %v19689_v18, %v34685_v54  ;;  %v23439_v36 = vadd.f32 %v20967_v5, %v34685_v54  ;;  %v19691_v29 = vpop.f32.mrb[249].mxu0  ;;  %v20969_v56 = vpop.f32.mrb[249].mxu1 }
 0xd22   : > { %21886 = vst [vmem:[%s27686_s6 + $0xbe8] sm:$0xff] %v21374_v33  ;;  %21888 = vst [vmem:[%s27686_s6 + $0xbf8] sm:$0xff] %v21376_v53  ;;  %v23408_v22 = vadd.f32 %v19691_v29, %v34685_v54  ;;  %v23440_v13 = vadd.f32 %v20969_v56, %v34685_v54 }
 0xd23   : > { %v21405_v38 = vmax.f32 %v23407_v30, 0.0  ;;  %v21407_v23 = vmax.f32 %v23439_v36, 0.0 }
 0xd24   : > { %v21406_v34 = vmax.f32 %v23408_v22, 0.0  ;;  %v21408_v57 = vmax.f32 %v23440_v13, 0.0  ;;  %v19696_v35 = vpop.f32.mrb[250].mxu0  ;;  %v20974_v31 = vpop.f32.mrb[250].mxu1 }
 0xd25   : > { %21917 = vst [vmem:[%s27686_s6 + $0xce0] sm:$0xff] %v21405_v38  ;;  %21919 = vst [vmem:[%s27686_s6 + $0xcf0] sm:$0xff] %v21407_v23  ;;  %v23409_v41 = vadd.f32 %v19696_v35, %v34687_v1  ;;  %v23441_v17 = vadd.f32 %v20974_v31, %v34687_v1  ;;  %v19698_v16 = vpop.f32.mrb[251].mxu0  ;;  %v20976_v15 = vpop.f32.mrb[251].mxu1 }
 0xd26   : > { %21918 = vst [vmem:[%s27686_s6 + $0xce8] sm:$0xff] %v21406_v34  ;;  %21920 = vst [vmem:[%s27686_s6 + $0xcf8] sm:$0xff] %v21408_v57  ;;  %v23410_v54 = vadd.f32 %v19698_v16, %v34687_v1  ;;  %v23442_v20 = vadd.f32 %v20976_v15, %v34687_v1 }
 0xd27   : > { %v21437_v2 = vmax.f32 %v23409_v41, 0.0  ;;  %v21439_v24 = vmax.f32 %v23441_v17, 0.0 }
 0xd28   : > { %v21438_v12 = vmax.f32 %v23410_v54, 0.0  ;;  %v21440_v9 = vmax.f32 %v23442_v20, 0.0  ;;  %v19703_v52 = vpop.f32.mrb[252].mxu0  ;;  %v20981_v51 = vpop.f32.mrb[252].mxu1 }
 0xd29   : > { %21949 = vst [vmem:[%s27686_s6 + $0xde0] sm:$0xff] %v21437_v2  ;;  %21951 = vst [vmem:[%s27686_s6 + $0xdf0] sm:$0xff] %v21439_v24  ;;  %v23411_v59 = vadd.f32 %v19703_v52, %v34689_v27  ;;  %v23443_v63 = vadd.f32 %v20981_v51, %v34689_v27  ;;  %v19705_v62 = vpop.f32.mrb[253].mxu0  ;;  %v20983_v6 = vpop.f32.mrb[253].mxu1 }
 0xd2a   : > { %21950 = vst [vmem:[%s27686_s6 + $0xde8] sm:$0xff] %v21438_v12  ;;  %21952 = vst [vmem:[%s27686_s6 + $0xdf8] sm:$0xff] %v21440_v9  ;;  %v23412_v1 = vadd.f32 %v19705_v62, %v34689_v27  ;;  %v23444_v42 = vadd.f32 %v20983_v6, %v34689_v27 }
 0xd2b   : > { %v21469_v8 = vmax.f32 %v23411_v59, 0.0  ;;  %v21471_v25 = vmax.f32 %v23443_v63, 0.0 }
 0xd2c   : > { %v21470_v47 = vmax.f32 %v23412_v1, 0.0  ;;  %v21472_v11 = vmax.f32 %v23444_v42, 0.0  ;;  %v19710_v46 = vpop.f32.mrb[254].mxu0  ;;  %v20988_v3 = vpop.f32.mrb[254].mxu1 }
 0xd2d   : > { %21981 = vst [vmem:[%s27686_s6 + $0xee0] sm:$0xff] %v21469_v8  ;;  %21983 = vst [vmem:[%s27686_s6 + $0xef0] sm:$0xff] %v21471_v25  ;;  %v23413_v61 = vadd.f32 %v19710_v46, %v34691_v7  ;;  %v23445_v60 = vadd.f32 %v20988_v3, %v34691_v7  ;;  %v19712_v27 = vpop.f32.mrb[255].mxu0  ;;  %v20990_v48 = vpop.f32.mrb[255].mxu1 }
 0xd2e   : > { %21982 = vst [vmem:[%s27686_s6 + $0xee8] sm:$0xff] %v21470_v47  ;;  %21984 = vst [vmem:[%s27686_s6 + $0xef8] sm:$0xff] %v21472_v11  ;;  %v23414_v40 = vadd.f32 %v19712_v27, %v34691_v7  ;;  %v23446_v55 = vadd.f32 %v20990_v48, %v34691_v7 }
 0xd2f   : > { %v21501_v19 = vmax.f32 %v23413_v61, 0.0  ;;  %v21503_v21 = vmax.f32 %v23445_v60, 0.0 }
 0xd30   : > { %v21502_v37 = vmax.f32 %v23414_v40, 0.0  ;;  %v21504_v14 = vmax.f32 %v23446_v55, 0.0 }
 0xd31   : > { %22013 = vst [vmem:[%s27686_s6 + $0xfe0] sm:$0xff] %v21501_v19  ;;  %22015 = vst [vmem:[%s27686_s6 + $0xff0] sm:$0xff] %v21503_v21 }
 0xd32   : > { %22014 = vst [vmem:[%s27686_s6 + $0xfe8] sm:$0xff] %v21502_v37  ;;  %22016 = vst [vmem:[%s27686_s6 + $0xff8] sm:$0xff] %v21504_v14 }
 0xd33   : > { %26122 = shalt.err (!%p26119_p6)
}
 0xd34   : > { %s26123_s23 = scalar_lea.hbm %s33125_s9, 65536  ;;  %s26127_s29 = scalar_lea.hbm %s33184_s3, 131072 }
 0xd35   : > { %p26124_p7 = scmp.ne.s32.totalorder %s33125_s9, %s26123_s23  ;;  %p26128_p0 = scmp.lt.u32.totalorder %s33125_s9, %s33184_s3 }
 0xd36   : > { %p26129_p2 = scmp.lt.u32.totalorder %s26127_s29, %s26123_s23  ;;  %p26131_p8 = scmp.lt.u32.totalorder %s26123_s23, %s33125_s9 }
 0xd37   : > { %p26125_p9 = pnand %p26124_p7, %p34705_p10 }
 0xd38   : > { %p26130_p4 = por %p26129_p2, %p26128_p0 }
 0xd39   : > { %p26126_p12 = pneg %p26125_p9 }
 0xd3a   : > { %p26132_p11 = por %p26131_p8, %p26130_p4 }
 0xd3c   : > { %p26133_p13 = pnand %p26132_p11, %p26126_p12 }
 0xd3e   : > { %26136 = shalt.err (!%p26133_p13)
}
 0xd3f   : > { %s26199_s5 = smov 4096   ;;  %s26200_s6 = smov 256  }
 0xd40   : > { %26011 = dma.vmem_to_hbm [thread:$0]  (%p34705_p10), %s33127_s7, 65536, %s33125_s9, %s33135_s10, %s26199_s5, %s26199_s5, %s26200_s6  }
 0xd41 PF: > { %p26023_p1 = scmp.ge.s32.totalorder %s26191_s17, 2  ;;  %s22051_s26 = sand.u32 1, %s26171_s12  }
 0xd42   : > { %p34706_p3 = scmp.ne.s32.totalorder %s33821_s24, 0  ;;  %s22052_s15 = scalar_lea.sflag [#allocation4], %s22051_s26 }
 0xd44   : > { %p26018_p5 = pnand %p26023_p1, %p34706_p3 }
 0xd46   : > { %26166 = dma.done.wait (!%p26018_p5), %s22052_s15, 65536  }
 0xd47   : > { %26168 = vsyncadd (!%p26018_p5), %s22052_s15, 4294901760  ;;  %s17_s17 = sadd.s32 1, %s26191_s17   ;;  %s34707_s12 = smov %s26175_s13 }
 0xd48   : > { %p14_p6 = scmp.ge.s32.totalorder %s17_s17, 4   ;;  %s34708_s13 = smov %s26179_s14 }
 0xd49   : > { %s34709_s14 = smov %s26274_s25  ;;  %s34710_s15 = smov %s26187_s16 }
 0xd4a   : > { %s34711_s16 = smov %s34713_s20  ;;  %16 = sbr.rel (!%p14_p6) target bundleno = 5 (0x5), region = 76 }
 0xd51   :  { %22057 = vsyncpa [#allocation3], 1 }
 0xd52   :  { %22059 = vsyncpa [#allocation3 + $0x1], 1 }
 0xd53   :  { %22060 = vsyncpa [#allocation4], 1 }
 0xd54   :  { %22062 = vsyncpa [#allocation4 + $0x1], 1 }

</bundles_post_ra>
